<compile_context>
chip_gen: v6e
topology: v6e:2x2x1
jax: 0.10.0
libtpu: 0.0.40
codegen_flags: <defaults>
</compile_context>

<pallas_src>
import functools

import jax
import jax.numpy as jnp
from jax.experimental import pallas as pl
from jax.experimental.pallas import tpu as pltpu


# ----------------------------------------------------------------------------
# Pallas kernels
# ----------------------------------------------------------------------------
def conv_mm_kernel(p_ref, w_ref, b_ref, o_ref, acc_ref, *, negative_slope, apply_act):
    """Tiled matmul + bias + optional LeakyReLU.  K is the innermost grid axis."""
    k = pl.program_id(2)

    @pl.when(k == 0)
    def _():
        acc_ref[...] = jnp.zeros_like(acc_ref)

    acc_ref[...] += jnp.dot(
        p_ref[...], w_ref[...], preferred_element_type=jnp.float32
    )

    @pl.when(k == pl.num_programs(2) - 1)
    def _():
        acc = acc_ref[...] + b_ref[...]
        if apply_act:
            acc = jnp.where(acc >= 0.0, acc, negative_slope * acc)
        o_ref[...] = acc.astype(o_ref.dtype)


def conv_reduce_kernel(p_ref, w_ref, b_ref, o_ref, acc_ref, *, negative_slope, apply_act):
    """C_out == 1 special case: K-reduction on the VPU/XLU instead of the MXU."""
    k = pl.program_id(1)

    @pl.when(k == 0)
    def _():
        acc_ref[...] = jnp.zeros_like(acc_ref)

    p = p_ref[...].astype(jnp.float32)          # (tm, tk)
    w = w_ref[...].astype(jnp.float32)          # (1,  tk)
    acc_ref[...] += jnp.sum(p * w, axis=-1, keepdims=True)

    @pl.when(k == pl.num_programs(1) - 1)
    def _():
        acc = acc_ref[...] + b_ref[...]
        if apply_act:
            acc = jnp.where(acc >= 0.0, acc, negative_slope * acc)
        o_ref[...] = acc.astype(o_ref.dtype)


# ----------------------------------------------------------------------------
# Pallas wrappers
# ----------------------------------------------------------------------------
def _round_up(x, m):
    return ((x + m - 1) // m) * m


def _pick_tile(dim, candidates):
    for c in candidates:
        if dim % c == 0:
            return c
    return dim  # full extent (legal: block dim == full array dim)


def conv_layer_pallas(patches, w2d, bias2d, *, negative_slope=0.2, apply_act=True,
                      out_dtype=jnp.bfloat16):
    """patches: [M, K] bf16, w2d: [K, C_out] bf16, bias2d: [1, C_out] f32."""
    M, K = patches.shape
    K2, Nc = w2d.shape
    assert K2 == K

    # Row (M) tiling: only axis we pad in HBM, and only up to the row tile.
    if M >= 256:
        tm = 256
        Mp = _round_up(M, tm)
    else:
        tm = _round_up(M, 16)
        Mp = tm
    if Mp != M:
        patches = jnp.pad(patches, ((0, Mp - M), (0, 0)))

    tk = _pick_tile(K, (2048, 1024, 512, 256, 128))

    kernel_args = dict(negative_slope=negative_slope, apply_act=apply_act)

    if Nc == 1:
        # Final PatchGAN layer: single output channel -> VPU reduction.
        w_row = w2d.reshape(1, K)
        grid = (Mp // tm, K // tk)
        out = pl.pallas_call(
            functools.partial(conv_reduce_kernel, **kernel_args),
            out_shape=jax.ShapeDtypeStruct((Mp, 1), out_dtype),
            grid_spec=pltpu.PrefetchScalarGridSpec(
                num_scalar_prefetch=0,
                grid=grid,
                in_specs=[
                    pl.BlockSpec((tm, tk), lambda i, k: (i, k)),
                    pl.BlockSpec((1, tk), lambda i, k: (0, k)),
                    pl.BlockSpec((1, 1), lambda i, k: (0, 0)),
                ],
                out_specs=pl.BlockSpec((tm, 1), lambda i, k: (i, 0)),
                scratch_shapes=[pltpu.VMEM((tm, 1), jnp.float32)],
            ),
            compiler_params=pltpu.CompilerParams(
                dimension_semantics=("parallel", "arbitrary"),
            ),
        )(patches, w_row, bias2d)
    else:
        tn = _pick_tile(Nc, (512, 256, 128))
        grid = (Mp // tm, Nc // tn, K // tk)
        out = pl.pallas_call(
            functools.partial(conv_mm_kernel, **kernel_args),
            out_shape=jax.ShapeDtypeStruct((Mp, Nc), out_dtype),
            grid_spec=pltpu.PrefetchScalarGridSpec(
                num_scalar_prefetch=0,
                grid=grid,
                in_specs=[
                    pl.BlockSpec((tm, tk), lambda i, j, k: (i, k)),
                    pl.BlockSpec((tk, tn), lambda i, j, k: (k, j)),
                    pl.BlockSpec((1, tn), lambda i, j, k: (0, j)),
                ],
                out_specs=pl.BlockSpec((tm, tn), lambda i, j, k: (i, j)),
                scratch_shapes=[pltpu.VMEM((tm, tn), jnp.float32)],
            ),
            compiler_params=pltpu.CompilerParams(
                dimension_semantics=("parallel", "parallel", "arbitrary"),
            ),
        )(patches, w2d, bias2d)

    return out[:M] if Mp != M else out


# ----------------------------------------------------------------------------
# Plain-JAX glue: NHWC im2col and spectral weight normalization
# ----------------------------------------------------------------------------
def im2col_nhwc(x, k, stride, pad):
    """x: [N, H, W, C] -> ([N*Ho*Wo, k*k*C], Ho, Wo). Columns ordered (kh, kw, c)."""
    N, H, W, C = x.shape
    xp = jnp.pad(x, ((0, 0), (pad, pad), (pad, pad), (0, 0)))
    Ho = (H + 2 * pad - k) // stride + 1
    Wo = (W + 2 * pad - k) // stride + 1
    cols = []
    for i in range(k):
        for j in range(k):
            cols.append(
                xp[:, i : i + stride * Ho : stride, j : j + stride * Wo : stride, :]
            )  # [N, Ho, Wo, C]
    patches = jnp.concatenate(cols, axis=-1)          # [N, Ho, Wo, k*k*C]
    return patches.reshape(N * Ho * Wo, k * k * C), Ho, Wo


def spectral_normalize(w, key, n_power_iterations=1, eps=1e-12):
    """PyTorch-style spectral norm of a conv weight [C_out, C_in, kh, kw].

    # TODO(synk): PyTorch's spectral_norm persists/updates the u vector across
    # forward passes (stateful buffer); here it is derived deterministically at
    # init with one power iteration, so sigma may differ slightly from a trained
    # checkpoint's running estimate.
    """
    assert n_power_iterations >= 1
    c_out = w.shape[0]
    wm = w.reshape(c_out, -1)
    u = jax.random.normal(key, (c_out,), dtype=jnp.float32)
    u = u / (jnp.linalg.norm(u) + eps)
    v = wm.T @ u
    for _ in range(n_power_iterations):
        v = wm.T @ u
        v = v / (jnp.linalg.norm(v) + eps)
        u = wm @ v
        u = u / (jnp.linalg.norm(u) + eps)
    sigma = u @ (wm @ v)
    return w / sigma


# ----------------------------------------------------------------------------
# PatchGAN discriminator
# ----------------------------------------------------------------------------
# (in_channels, out_channels, kernel, stride, padding, leaky_relu_after)
_LAYER_CFG = [
    (3, 64, 4, 2, 1, True),
    (64, 128, 4, 2, 1, True),
    (128, 256, 4, 2, 1, True),
    (256, 512, 4, 1, 1, True),
    (512, 1, 4, 1, 1, False),
]


def init_params(key):
    """Precompute matmul-ready (transposed, bf16) weights and (1, C_out) biases."""
    params = []
    for li, (cin, cout, k, _, _, _) in enumerate(_LAYER_CFG):
        kw_, kb_, ksn = jax.random.split(jax.random.fold_in(key, li), 3)
        w = 0.05 * jax.random.normal(kw_, (cout, cin, k, k), dtype=jnp.float32)
        b = 0.01 * jax.random.normal(kb_, (cout,), dtype=jnp.float32)
        w_sn = spectral_normalize(w, ksn)
        # (kh, kw, c_in) column order matches the NHWC im2col above.
        w2d = w_sn.transpose(2, 3, 1, 0).reshape(k * k * cin, cout).astype(jnp.bfloat16)
        b2d = b.reshape(1, cout).astype(jnp.float32)
        params.append((w2d, b2d))
    return params


def patchgan_discriminator(x, params):
    """x: [N, C, H, W] float32 -> patch logits [N, 1, H_out, W_out] float32."""
    # One-time layout change to NHWC bf16; activations stay NHWC bf16 between
    # layers (bf16 MXU inputs, f32 accumulation inside the kernel).
    out = x.transpose(0, 2, 3, 1).astype(jnp.bfloat16)
    n_layers = len(_LAYER_CFG)
    for li, ((w2d, b2d), (cin, cout, k, stride, pad, act)) in enumerate(
        zip(params, _LAYER_CFG)
    ):
        N = out.shape[0]
        patches, Ho, Wo = im2col_nhwc(out, k, stride, pad)
        last = li == n_layers - 1
        y = conv_layer_pallas(
            patches,
            w2d,
            b2d,
            negative_slope=0.2,
            apply_act=act,
            out_dtype=jnp.float32 if last else jnp.bfloat16,
        )
        out = y.reshape(N, Ho, Wo, cout)
    return out.transpose(0, 3, 1, 2)  # back to NCHW at the module boundary


if __name__ == "__main__":
    key = jax.random.PRNGKey(0)
    kx, kp = jax.random.split(key)
    # Spatial 32 so the final 4x4/stride-1 convs still produce valid output
    # (32 -> 16 -> 8 -> 4 -> 3 -> 2), matching PyTorch output-size arithmetic.
    x = jax.random.normal(kx, (2, 3, 32, 32), dtype=jnp.float32)
    params = init_params(kp)

    fwd = jax.jit(patchgan_discriminator)
    out = fwd(x, params)
    out = jax.block_until_ready(out)
    assert out.shape == (2, 1, 2, 2), out.shape
    assert out.dtype == jnp.float32, out.dtype
    print("KERNEL_OK")
</pallas_src>

<mosaic_0001>
module attributes {stable_mosaic.version = 11 : i64} {
  func.func @conv_mm_kernel(%arg0: i32, %arg1: i32, %arg2: i32, %arg3: memref<256x48xbf16, #tpu.memory_space<vmem>>, %arg4: memref<48x64xbf16, #tpu.memory_space<vmem>>, %arg5: memref<1x64xf32, #tpu.memory_space<vmem>>, %arg6: memref<256x64xbf16, #tpu.memory_space<vmem>>, %arg7: memref<256x64xf32, #tpu.memory_space<vmem>>) attributes {dimension_semantics = [#tpu.dimension_semantics<parallel>, #tpu.dimension_semantics<parallel>, #tpu.dimension_semantics<arbitrary>], iteration_bounds = array<i64: 2, 1, 1>, scalar_prefetch = 0 : i64, scratch_operands = 1 : i64, tpu.core_type = #tpu.core_type<tc>, window_params = [{transform_indices = @transform_0, window_bounds = array<i64: 256, 48>}, {transform_indices = @transform_1, window_bounds = array<i64: 48, 64>}, {transform_indices = @transform_2, window_bounds = array<i64: 1, 64>}, {transform_indices = @transform_3, window_bounds = array<i64: 256, 64>}]} {
    %c0_i32 = arith.constant 0 : i32
    %0 = arith.cmpi eq, %arg2, %c0_i32 : i32
    %1 = arith.extui %0 : i1 to i32
    %c0_i32_0 = arith.constant 0 : i32
    %2 = arith.cmpi ne, %1, %c0_i32_0 : i32
    scf.if %2 {
      %cst_10 = arith.constant 0.000000e+00 : f32
      %12 = vector.broadcast %cst_10 : f32 to vector<256x64xf32>
      %c0_11 = arith.constant 0 : index
      %c0_12 = arith.constant 0 : index
      %13 = vector.load %arg7[%c0_11, %c0_12] : memref<256x64xf32, #tpu.memory_space<vmem>>, vector<256x64xf32>
      tpu.vector_store %arg7[%c0_11, %c0_12], %12 {strides = array<i32>} : memref<256x64xf32, #tpu.memory_space<vmem>>, vector<256x64xf32>,
    } else {
    }
    %c0 = arith.constant 0 : index
    %c0_1 = arith.constant 0 : index
    %3 = vector.load %arg7[%c0, %c0_1] : memref<256x64xf32, #tpu.memory_space<vmem>>, vector<256x64xf32>
    %c0_2 = arith.constant 0 : index
    %c0_3 = arith.constant 0 : index
    %4 = vector.load %arg3[%c0_2, %c0_3] : memref<256x48xbf16, #tpu.memory_space<vmem>>, vector<256x48xbf16>
    %c0_4 = arith.constant 0 : index
    %c0_5 = arith.constant 0 : index
    %5 = vector.load %arg4[%c0_4, %c0_5] : memref<48x64xbf16, #tpu.memory_space<vmem>>, vector<48x64xbf16>
    %cst = arith.constant dense<0.000000e+00> : vector<256x64xf32>
    %6 = tpu.matmul %4, %5, %cst {dimension_numbers = #tpu.dot_dimension_numbers<[1], [0], [0], [1], [0, 0, 1, 1], [], []>} : vector<256x48xbf16>, vector<48x64xbf16>, vector<256x64xf32> -> vector<256x64xf32>
    %7 = arith.addf %3, %6 : vector<256x64xf32>
    %c0_6 = arith.constant 0 : index
    %c0_7 = arith.constant 0 : index
    %8 = vector.load %arg7[%c0_6, %c0_7] : memref<256x64xf32, #tpu.memory_space<vmem>>, vector<256x64xf32>
    tpu.vector_store %arg7[%c0_6, %c0_7], %7 {strides = array<i32>} : memref<256x64xf32, #tpu.memory_space<vmem>>, vector<256x64xf32>,
    %c0_i32_8 = arith.constant 0 : i32
    %9 = arith.cmpi eq, %arg2, %c0_i32_8 : i32
    %10 = arith.extui %9 : i1 to i32
    %c0_i32_9 = arith.constant 0 : i32
    %11 = arith.cmpi ne, %10, %c0_i32_9 : i32
    scf.if %11 {
      %c0_10 = arith.constant 0 : index
      %c0_11 = arith.constant 0 : index
      %12 = vector.load %arg7[%c0_10, %c0_11] : memref<256x64xf32, #tpu.memory_space<vmem>>, vector<256x64xf32>
      %c0_12 = arith.constant 0 : index
      %c0_13 = arith.constant 0 : index
      %13 = vector.load %arg5[%c0_12, %c0_13] : memref<1x64xf32, #tpu.memory_space<vmem>>, vector<1x64xf32>
      %14 = vector.broadcast %13 : vector<1x64xf32> to vector<256x64xf32>
      %15 = arith.addf %12, %14 : vector<256x64xf32>
      %cst_14 = arith.constant 0.000000e+00 : f32
      %16 = vector.broadcast %cst_14 : f32 to vector<256x64xf32>
      %17 = arith.cmpf oge, %15, %16 : vector<256x64xf32>
      %cst_15 = arith.constant 2.000000e-01 : f32
      %18 = vector.broadcast %cst_15 : f32 to vector<256x64xf32>
      %19 = arith.mulf %18, %15 : vector<256x64xf32>
      %20 = arith.select %17, %15, %19 : vector<256x64xi1>, vector<256x64xf32>
      %21 = arith.truncf %20 : vector<256x64xf32> to vector<256x64xbf16>
      %c0_16 = arith.constant 0 : index
      %c0_17 = arith.constant 0 : index
      %22 = vector.load %arg6[%c0_16, %c0_17] : memref<256x64xbf16, #tpu.memory_space<vmem>>, vector<256x64xbf16>
      tpu.vector_store %arg6[%c0_16, %c0_17], %21 {strides = array<i32>} : memref<256x64xbf16, #tpu.memory_space<vmem>>, vector<256x64xbf16>,
    } else {
    }
    return
  }
  func.func @transform_0(%arg0: i32, %arg1: i32, %arg2: i32) -> (i32, i32) {
    %c0_i32 = arith.constant 0 : i32
    return %arg0, %arg2 : i32, i32
  }
  func.func @transform_1(%arg0: i32, %arg1: i32, %arg2: i32) -> (i32, i32) {
    %c0_i32 = arith.constant 0 : i32
    return %arg2, %arg1 : i32, i32
  }
  func.func @transform_2(%arg0: i32, %arg1: i32, %arg2: i32) -> (i32, i32) {
    %c0_i32 = arith.constant 0 : i32
    %c0_i32_0 = arith.constant 0 : i32
    return %c0_i32, %arg1 : i32, i32
  }
  func.func @transform_3(%arg0: i32, %arg1: i32, %arg2: i32) -> (i32, i32) {
    %c0_i32 = arith.constant 0 : i32
    return %arg0, %arg1 : i32, i32
  }
}

module attributes {stable_mosaic.version = 11 : i64} {
  func.func @conv_mm_kernel(%arg0: i32, %arg1: i32, %arg2: i32, %arg3: memref<128x1024xbf16, #tpu.memory_space<vmem>>, %arg4: memref<1024x128xbf16, #tpu.memory_space<vmem>>, %arg5: memref<1x128xf32, #tpu.memory_space<vmem>>, %arg6: memref<128x128xbf16, #tpu.memory_space<vmem>>, %arg7: memref<128x128xf32, #tpu.memory_space<vmem>>) attributes {dimension_semantics = [#tpu.dimension_semantics<parallel>, #tpu.dimension_semantics<parallel>, #tpu.dimension_semantics<arbitrary>], iteration_bounds = array<i64: 1, 1, 1>, scalar_prefetch = 0 : i64, scratch_operands = 1 : i64, tpu.core_type = #tpu.core_type<tc>, window_params = [{transform_indices = @transform_0, window_bounds = array<i64: 128, 1024>}, {transform_indices = @transform_1, window_bounds = array<i64: 1024, 128>}, {transform_indices = @transform_2, window_bounds = array<i64: 1, 128>}, {transform_indices = @transform_3, window_bounds = array<i64: 128, 128>}]} {
    %c0_i32 = arith.constant 0 : i32
    %0 = arith.cmpi eq, %arg2, %c0_i32 : i32
    %1 = arith.extui %0 : i1 to i32
    %c0_i32_0 = arith.constant 0 : i32
    %2 = arith.cmpi ne, %1, %c0_i32_0 : i32
    scf.if %2 {
      %cst_10 = arith.constant 0.000000e+00 : f32
      %12 = vector.broadcast %cst_10 : f32 to vector<128x128xf32>
      %c0_11 = arith.constant 0 : index
      %c0_12 = arith.constant 0 : index
      %13 = vector.load %arg7[%c0_11, %c0_12] : memref<128x128xf32, #tpu.memory_space<vmem>>, vector<128x128xf32>
      tpu.vector_store %arg7[%c0_11, %c0_12], %12 {strides = array<i32>} : memref<128x128xf32, #tpu.memory_space<vmem>>, vector<128x128xf32>,
    } else {
    }
    %c0 = arith.constant 0 : index
    %c0_1 = arith.constant 0 : index
    %3 = vector.load %arg7[%c0, %c0_1] : memref<128x128xf32, #tpu.memory_space<vmem>>, vector<128x128xf32>
    %c0_2 = arith.constant 0 : index
    %c0_3 = arith.constant 0 : index
    %4 = vector.load %arg3[%c0_2, %c0_3] : memref<128x1024xbf16, #tpu.memory_space<vmem>>, vector<128x1024xbf16>
    %c0_4 = arith.constant 0 : index
    %c0_5 = arith.constant 0 : index
    %5 = vector.load %arg4[%c0_4, %c0_5] : memref<1024x128xbf16, #tpu.memory_space<vmem>>, vector<1024x128xbf16>
    %cst = arith.constant dense<0.000000e+00> : vector<128x128xf32>
    %6 = tpu.matmul %4, %5, %cst {dimension_numbers = #tpu.dot_dimension_numbers<[1], [0], [0], [1], [0, 0, 1, 1], [], []>} : vector<128x1024xbf16>, vector<1024x128xbf16>, vector<128x128xf32> -> vector<128x128xf32>
    %7 = arith.addf %3, %6 : vector<128x128xf32>
    %c0_6 = arith.constant 0 : index
    %c0_7 = arith.constant 0 : index
    %8 = vector.load %arg7[%c0_6, %c0_7] : memref<128x128xf32, #tpu.memory_space<vmem>>, vector<128x128xf32>
    tpu.vector_store %arg7[%c0_6, %c0_7], %7 {strides = array<i32>} : memref<128x128xf32, #tpu.memory_space<vmem>>, vector<128x128xf32>,
    %c0_i32_8 = arith.constant 0 : i32
    %9 = arith.cmpi eq, %arg2, %c0_i32_8 : i32
    %10 = arith.extui %9 : i1 to i32
    %c0_i32_9 = arith.constant 0 : i32
    %11 = arith.cmpi ne, %10, %c0_i32_9 : i32
    scf.if %11 {
      %c0_10 = arith.constant 0 : index
      %c0_11 = arith.constant 0 : index
      %12 = vector.load %arg7[%c0_10, %c0_11] : memref<128x128xf32, #tpu.memory_space<vmem>>, vector<128x128xf32>
      %c0_12 = arith.constant 0 : index
      %c0_13 = arith.constant 0 : index
      %13 = vector.load %arg5[%c0_12, %c0_13] : memref<1x128xf32, #tpu.memory_space<vmem>>, vector<1x128xf32>
      %14 = vector.broadcast %13 : vector<1x128xf32> to vector<128x128xf32>
      %15 = arith.addf %12, %14 : vector<128x128xf32>
      %cst_14 = arith.constant 0.000000e+00 : f32
      %16 = vector.broadcast %cst_14 : f32 to vector<128x128xf32>
      %17 = arith.cmpf oge, %15, %16 : vector<128x128xf32>
      %cst_15 = arith.constant 2.000000e-01 : f32
      %18 = vector.broadcast %cst_15 : f32 to vector<128x128xf32>
      %19 = arith.mulf %18, %15 : vector<128x128xf32>
      %20 = arith.select %17, %15, %19 : vector<128x128xi1>, vector<128x128xf32>
      %21 = arith.truncf %20 : vector<128x128xf32> to vector<128x128xbf16>
      %c0_16 = arith.constant 0 : index
      %c0_17 = arith.constant 0 : index
      %22 = vector.load %arg6[%c0_16, %c0_17] : memref<128x128xbf16, #tpu.memory_space<vmem>>, vector<128x128xbf16>
      tpu.vector_store %arg6[%c0_16, %c0_17], %21 {strides = array<i32>} : memref<128x128xbf16, #tpu.memory_space<vmem>>, vector<128x128xbf16>,
    } else {
    }
    return
  }
  func.func @transform_0(%arg0: i32, %arg1: i32, %arg2: i32) -> (i32, i32) {
    %c0_i32 = arith.constant 0 : i32
    return %arg0, %arg2 : i32, i32
  }
  func.func @transform_1(%arg0: i32, %arg1: i32, %arg2: i32) -> (i32, i32) {
    %c0_i32 = arith.constant 0 : i32
    return %arg2, %arg1 : i32, i32
  }
  func.func @transform_2(%arg0: i32, %arg1: i32, %arg2: i32) -> (i32, i32) {
    %c0_i32 = arith.constant 0 : i32
    %c0_i32_0 = arith.constant 0 : i32
    return %c0_i32, %arg1 : i32, i32
  }
  func.func @transform_3(%arg0: i32, %arg1: i32, %arg2: i32) -> (i32, i32) {
    %c0_i32 = arith.constant 0 : i32
    return %arg0, %arg1 : i32, i32
  }
}

module attributes {stable_mosaic.version = 11 : i64} {
  func.func @conv_mm_kernel(%arg0: i32, %arg1: i32, %arg2: i32, %arg3: memref<32x2048xbf16, #tpu.memory_space<vmem>>, %arg4: memref<2048x256xbf16, #tpu.memory_space<vmem>>, %arg5: memref<1x256xf32, #tpu.memory_space<vmem>>, %arg6: memref<32x256xbf16, #tpu.memory_space<vmem>>, %arg7: memref<32x256xf32, #tpu.memory_space<vmem>>) attributes {dimension_semantics = [#tpu.dimension_semantics<parallel>, #tpu.dimension_semantics<parallel>, #tpu.dimension_semantics<arbitrary>], iteration_bounds = array<i64: 1, 1, 1>, scalar_prefetch = 0 : i64, scratch_operands = 1 : i64, tpu.core_type = #tpu.core_type<tc>, window_params = [{transform_indices = @transform_0, window_bounds = array<i64: 32, 2048>}, {transform_indices = @transform_1, window_bounds = array<i64: 2048, 256>}, {transform_indices = @transform_2, window_bounds = array<i64: 1, 256>}, {transform_indices = @transform_3, window_bounds = array<i64: 32, 256>}]} {
    %c0_i32 = arith.constant 0 : i32
    %0 = arith.cmpi eq, %arg2, %c0_i32 : i32
    %1 = arith.extui %0 : i1 to i32
    %c0_i32_0 = arith.constant 0 : i32
    %2 = arith.cmpi ne, %1, %c0_i32_0 : i32
    scf.if %2 {
      %cst_10 = arith.constant 0.000000e+00 : f32
      %12 = vector.broadcast %cst_10 : f32 to vector<32x256xf32>
      %c0_11 = arith.constant 0 : index
      %c0_12 = arith.constant 0 : index
      %13 = vector.load %arg7[%c0_11, %c0_12] : memref<32x256xf32, #tpu.memory_space<vmem>>, vector<32x256xf32>
      tpu.vector_store %arg7[%c0_11, %c0_12], %12 {strides = array<i32>} : memref<32x256xf32, #tpu.memory_space<vmem>>, vector<32x256xf32>,
    } else {
    }
    %c0 = arith.constant 0 : index
    %c0_1 = arith.constant 0 : index
    %3 = vector.load %arg7[%c0, %c0_1] : memref<32x256xf32, #tpu.memory_space<vmem>>, vector<32x256xf32>
    %c0_2 = arith.constant 0 : index
    %c0_3 = arith.constant 0 : index
    %4 = vector.load %arg3[%c0_2, %c0_3] : memref<32x2048xbf16, #tpu.memory_space<vmem>>, vector<32x2048xbf16>
    %c0_4 = arith.constant 0 : index
    %c0_5 = arith.constant 0 : index
    %5 = vector.load %arg4[%c0_4, %c0_5] : memref<2048x256xbf16, #tpu.memory_space<vmem>>, vector<2048x256xbf16>
    %cst = arith.constant dense<0.000000e+00> : vector<32x256xf32>
    %6 = tpu.matmul %4, %5, %cst {dimension_numbers = #tpu.dot_dimension_numbers<[1], [0], [0], [1], [0, 0, 1, 1], [], []>} : vector<32x2048xbf16>, vector<2048x256xbf16>, vector<32x256xf32> -> vector<32x256xf32>
    %7 = arith.addf %3, %6 : vector<32x256xf32>
    %c0_6 = arith.constant 0 : index
    %c0_7 = arith.constant 0 : index
    %8 = vector.load %arg7[%c0_6, %c0_7] : memref<32x256xf32, #tpu.memory_space<vmem>>, vector<32x256xf32>
    tpu.vector_store %arg7[%c0_6, %c0_7], %7 {strides = array<i32>} : memref<32x256xf32, #tpu.memory_space<vmem>>, vector<32x256xf32>,
    %c0_i32_8 = arith.constant 0 : i32
    %9 = arith.cmpi eq, %arg2, %c0_i32_8 : i32
    %10 = arith.extui %9 : i1 to i32
    %c0_i32_9 = arith.constant 0 : i32
    %11 = arith.cmpi ne, %10, %c0_i32_9 : i32
    scf.if %11 {
      %c0_10 = arith.constant 0 : index
      %c0_11 = arith.constant 0 : index
      %12 = vector.load %arg7[%c0_10, %c0_11] : memref<32x256xf32, #tpu.memory_space<vmem>>, vector<32x256xf32>
      %c0_12 = arith.constant 0 : index
      %c0_13 = arith.constant 0 : index
      %13 = vector.load %arg5[%c0_12, %c0_13] : memref<1x256xf32, #tpu.memory_space<vmem>>, vector<1x256xf32>
      %14 = vector.broadcast %13 : vector<1x256xf32> to vector<32x256xf32>
      %15 = arith.addf %12, %14 : vector<32x256xf32>
      %cst_14 = arith.constant 0.000000e+00 : f32
      %16 = vector.broadcast %cst_14 : f32 to vector<32x256xf32>
      %17 = arith.cmpf oge, %15, %16 : vector<32x256xf32>
      %cst_15 = arith.constant 2.000000e-01 : f32
      %18 = vector.broadcast %cst_15 : f32 to vector<32x256xf32>
      %19 = arith.mulf %18, %15 : vector<32x256xf32>
      %20 = arith.select %17, %15, %19 : vector<32x256xi1>, vector<32x256xf32>
      %21 = arith.truncf %20 : vector<32x256xf32> to vector<32x256xbf16>
      %c0_16 = arith.constant 0 : index
      %c0_17 = arith.constant 0 : index
      %22 = vector.load %arg6[%c0_16, %c0_17] : memref<32x256xbf16, #tpu.memory_space<vmem>>, vector<32x256xbf16>
      tpu.vector_store %arg6[%c0_16, %c0_17], %21 {strides = array<i32>} : memref<32x256xbf16, #tpu.memory_space<vmem>>, vector<32x256xbf16>,
    } else {
    }
    return
  }
  func.func @transform_0(%arg0: i32, %arg1: i32, %arg2: i32) -> (i32, i32) {
    %c0_i32 = arith.constant 0 : i32
    return %arg0, %arg2 : i32, i32
  }
  func.func @transform_1(%arg0: i32, %arg1: i32, %arg2: i32) -> (i32, i32) {
    %c0_i32 = arith.constant 0 : i32
    return %arg2, %arg1 : i32, i32
  }
  func.func @transform_2(%arg0: i32, %arg1: i32, %arg2: i32) -> (i32, i32) {
    %c0_i32 = arith.constant 0 : i32
    %c0_i32_0 = arith.constant 0 : i32
    return %c0_i32, %arg1 : i32, i32
  }
  func.func @transform_3(%arg0: i32, %arg1: i32, %arg2: i32) -> (i32, i32) {
    %c0_i32 = arith.constant 0 : i32
    return %arg0, %arg1 : i32, i32
  }
}

module attributes {stable_mosaic.version = 11 : i64} {
  func.func @conv_mm_kernel(%arg0: i32, %arg1: i32, %arg2: i32, %arg3: memref<32x2048xbf16, #tpu.memory_space<vmem>>, %arg4: memref<2048x512xbf16, #tpu.memory_space<vmem>>, %arg5: memref<1x512xf32, #tpu.memory_space<vmem>>, %arg6: memref<32x512xbf16, #tpu.memory_space<vmem>>, %arg7: memref<32x512xf32, #tpu.memory_space<vmem>>) attributes {dimension_semantics = [#tpu.dimension_semantics<parallel>, #tpu.dimension_semantics<parallel>, #tpu.dimension_semantics<arbitrary>], iteration_bounds = array<i64: 1, 1, 2>, scalar_prefetch = 0 : i64, scratch_operands = 1 : i64, tpu.core_type = #tpu.core_type<tc>, window_params = [{transform_indices = @transform_0, window_bounds = array<i64: 32, 2048>}, {transform_indices = @transform_1, window_bounds = array<i64: 2048, 512>}, {transform_indices = @transform_2, window_bounds = array<i64: 1, 512>}, {transform_indices = @transform_3, window_bounds = array<i64: 32, 512>}]} {
    %c0_i32 = arith.constant 0 : i32
    %0 = arith.cmpi eq, %arg2, %c0_i32 : i32
    %1 = arith.extui %0 : i1 to i32
    %c0_i32_0 = arith.constant 0 : i32
    %2 = arith.cmpi ne, %1, %c0_i32_0 : i32
    scf.if %2 {
      %cst_9 = arith.constant 0.000000e+00 : f32
      %12 = vector.broadcast %cst_9 : f32 to vector<32x512xf32>
      %c0_10 = arith.constant 0 : index
      %c0_11 = arith.constant 0 : index
      %13 = vector.load %arg7[%c0_10, %c0_11] : memref<32x512xf32, #tpu.memory_space<vmem>>, vector<32x512xf32>
      tpu.vector_store %arg7[%c0_10, %c0_11], %12 {strides = array<i32>} : memref<32x512xf32, #tpu.memory_space<vmem>>, vector<32x512xf32>,
    } else {
    }
    %c0 = arith.constant 0 : index
    %c0_1 = arith.constant 0 : index
    %3 = vector.load %arg7[%c0, %c0_1] : memref<32x512xf32, #tpu.memory_space<vmem>>, vector<32x512xf32>
    %c0_2 = arith.constant 0 : index
    %c0_3 = arith.constant 0 : index
    %4 = vector.load %arg3[%c0_2, %c0_3] : memref<32x2048xbf16, #tpu.memory_space<vmem>>, vector<32x2048xbf16>
    %c0_4 = arith.constant 0 : index
    %c0_5 = arith.constant 0 : index
    %5 = vector.load %arg4[%c0_4, %c0_5] : memref<2048x512xbf16, #tpu.memory_space<vmem>>, vector<2048x512xbf16>
    %cst = arith.constant dense<0.000000e+00> : vector<32x512xf32>
    %6 = tpu.matmul %4, %5, %cst {dimension_numbers = #tpu.dot_dimension_numbers<[1], [0], [0], [1], [0, 0, 1, 1], [], []>} : vector<32x2048xbf16>, vector<2048x512xbf16>, vector<32x512xf32> -> vector<32x512xf32>
    %7 = arith.addf %3, %6 : vector<32x512xf32>
    %c0_6 = arith.constant 0 : index
    %c0_7 = arith.constant 0 : index
    %8 = vector.load %arg7[%c0_6, %c0_7] : memref<32x512xf32, #tpu.memory_space<vmem>>, vector<32x512xf32>
    tpu.vector_store %arg7[%c0_6, %c0_7], %7 {strides = array<i32>} : memref<32x512xf32, #tpu.memory_space<vmem>>, vector<32x512xf32>,
    %c1_i32 = arith.constant 1 : i32
    %9 = arith.cmpi eq, %arg2, %c1_i32 : i32
    %10 = arith.extui %9 : i1 to i32
    %c0_i32_8 = arith.constant 0 : i32
    %11 = arith.cmpi ne, %10, %c0_i32_8 : i32
    scf.if %11 {
      %c0_9 = arith.constant 0 : index
      %c0_10 = arith.constant 0 : index
      %12 = vector.load %arg7[%c0_9, %c0_10] : memref<32x512xf32, #tpu.memory_space<vmem>>, vector<32x512xf32>
      %c0_11 = arith.constant 0 : index
      %c0_12 = arith.constant 0 : index
      %13 = vector.load %arg5[%c0_11, %c0_12] : memref<1x512xf32, #tpu.memory_space<vmem>>, vector<1x512xf32>
      %14 = vector.broadcast %13 : vector<1x512xf32> to vector<32x512xf32>
      %15 = arith.addf %12, %14 : vector<32x512xf32>
      %cst_13 = arith.constant 0.000000e+00 : f32
      %16 = vector.broadcast %cst_13 : f32 to vector<32x512xf32>
      %17 = arith.cmpf oge, %15, %16 : vector<32x512xf32>
      %cst_14 = arith.constant 2.000000e-01 : f32
      %18 = vector.broadcast %cst_14 : f32 to vector<32x512xf32>
      %19 = arith.mulf %18, %15 : vector<32x512xf32>
      %20 = arith.select %17, %15, %19 : vector<32x512xi1>, vector<32x512xf32>
      %21 = arith.truncf %20 : vector<32x512xf32> to vector<32x512xbf16>
      %c0_15 = arith.constant 0 : index
      %c0_16 = arith.constant 0 : index
      %22 = vector.load %arg6[%c0_15, %c0_16] : memref<32x512xbf16, #tpu.memory_space<vmem>>, vector<32x512xbf16>
      tpu.vector_store %arg6[%c0_15, %c0_16], %21 {strides = array<i32>} : memref<32x512xbf16, #tpu.memory_space<vmem>>, vector<32x512xbf16>,
    } else {
    }
    return
  }
  func.func @transform_0(%arg0: i32, %arg1: i32, %arg2: i32) -> (i32, i32) {
    %c0_i32 = arith.constant 0 : i32
    return %arg0, %arg2 : i32, i32
  }
  func.func @transform_1(%arg0: i32, %arg1: i32, %arg2: i32) -> (i32, i32) {
    %c0_i32 = arith.constant 0 : i32
    return %arg2, %arg1 : i32, i32
  }
  func.func @transform_2(%arg0: i32, %arg1: i32, %arg2: i32) -> (i32, i32) {
    %c0_i32 = arith.constant 0 : i32
    %c0_i32_0 = arith.constant 0 : i32
    return %c0_i32, %arg1 : i32, i32
  }
  func.func @transform_3(%arg0: i32, %arg1: i32, %arg2: i32) -> (i32, i32) {
    %c0_i32 = arith.constant 0 : i32
    return %arg0, %arg1 : i32, i32
  }
}

module attributes {stable_mosaic.version = 11 : i64} {
  func.func @conv_reduce_kernel(%arg0: i32, %arg1: i32, %arg2: memref<16x2048xbf16, #tpu.memory_space<vmem>>, %arg3: memref<1x2048xbf16, #tpu.memory_space<vmem>>, %arg4: memref<1x1xf32, #tpu.memory_space<vmem>>, %arg5: memref<16x1xf32, #tpu.memory_space<vmem>>, %arg6: memref<16x1xf32, #tpu.memory_space<vmem>>) attributes {dimension_semantics = [#tpu.dimension_semantics<parallel>, #tpu.dimension_semantics<arbitrary>], iteration_bounds = array<i64: 1, 4>, scalar_prefetch = 0 : i64, scratch_operands = 1 : i64, tpu.core_type = #tpu.core_type<tc>, window_params = [{transform_indices = @transform_0, window_bounds = array<i64: 16, 2048>}, {transform_indices = @transform_1, window_bounds = array<i64: 1, 2048>}, {pipeline_mode = #tpu.pipeline_mode<synchronous>, transform_indices = @transform_2, window_bounds = array<i64: 1, 1>}, {transform_indices = @transform_3, window_bounds = array<i64: 16, 1>}]} {
    %c0_i32 = arith.constant 0 : i32
    %0 = arith.cmpi eq, %arg1, %c0_i32 : i32
    %1 = arith.extui %0 : i1 to i32
    %c0_i32_0 = arith.constant 0 : i32
    %2 = arith.cmpi ne, %1, %c0_i32_0 : i32
    scf.if %2 {
      %cst_9 = arith.constant 0.000000e+00 : f32
      %17 = vector.broadcast %cst_9 : f32 to vector<16x1xf32>
      %c0_10 = arith.constant 0 : index
      %c0_11 = arith.constant 0 : index
      %18 = vector.load %arg6[%c0_10, %c0_11] : memref<16x1xf32, #tpu.memory_space<vmem>>, vector<16x1xf32>
      tpu.vector_store %arg6[%c0_10, %c0_11], %17 {strides = array<i32>} : memref<16x1xf32, #tpu.memory_space<vmem>>, vector<16x1xf32>,
    } else {
    }
    %c0 = arith.constant 0 : index
    %c0_1 = arith.constant 0 : index
    %3 = vector.load %arg2[%c0, %c0_1] : memref<16x2048xbf16, #tpu.memory_space<vmem>>, vector<16x2048xbf16>
    %4 = arith.extf %3 : vector<16x2048xbf16> to vector<16x2048xf32>
    %c0_2 = arith.constant 0 : index
    %c0_3 = arith.constant 0 : index
    %5 = vector.load %arg3[%c0_2, %c0_3] : memref<1x2048xbf16, #tpu.memory_space<vmem>>, vector<1x2048xbf16>
    %6 = arith.extf %5 : vector<1x2048xbf16> to vector<1x2048xf32>
    %c0_4 = arith.constant 0 : index
    %c0_5 = arith.constant 0 : index
    %7 = vector.load %arg6[%c0_4, %c0_5] : memref<16x1xf32, #tpu.memory_space<vmem>>, vector<16x1xf32>
    %8 = vector.broadcast %6 : vector<1x2048xf32> to vector<16x2048xf32>
    %9 = arith.mulf %4, %8 : vector<16x2048xf32>
    %cst = arith.constant dense<0.000000e+00> : vector<16xf32>
    %10 = vector.multi_reduction <add>, %9, %cst [1] : vector<16x2048xf32> to vector<16xf32>
    %11 = vector.shape_cast %10 : vector<16xf32> to vector<16x1xf32>
    %12 = arith.addf %7, %11 : vector<16x1xf32>
    %c0_6 = arith.constant 0 : index
    %c0_7 = arith.constant 0 : index
    %13 = vector.load %arg6[%c0_6, %c0_7] : memref<16x1xf32, #tpu.memory_space<vmem>>, vector<16x1xf32>
    tpu.vector_store %arg6[%c0_6, %c0_7], %12 {strides = array<i32>} : memref<16x1xf32, #tpu.memory_space<vmem>>, vector<16x1xf32>,
    %c3_i32 = arith.constant 3 : i32
    %14 = arith.cmpi eq, %arg1, %c3_i32 : i32
    %15 = arith.extui %14 : i1 to i32
    %c0_i32_8 = arith.constant 0 : i32
    %16 = arith.cmpi ne, %15, %c0_i32_8 : i32
    scf.if %16 {
      %c0_9 = arith.constant 0 : index
      %c0_10 = arith.constant 0 : index
      %17 = vector.load %arg6[%c0_9, %c0_10] : memref<16x1xf32, #tpu.memory_space<vmem>>, vector<16x1xf32>
      %c0_11 = arith.constant 0 : index
      %c0_12 = arith.constant 0 : index
      %18 = vector.load %arg4[%c0_11, %c0_12] : memref<1x1xf32, #tpu.memory_space<vmem>>, vector<1x1xf32>
      %19 = vector.broadcast %18 : vector<1x1xf32> to vector<16x1xf32>
      %20 = arith.addf %17, %19 : vector<16x1xf32>
      %c0_13 = arith.constant 0 : index
      %c0_14 = arith.constant 0 : index
      %21 = vector.load %arg5[%c0_13, %c0_14] : memref<16x1xf32, #tpu.memory_space<vmem>>, vector<16x1xf32>
      tpu.vector_store %arg5[%c0_13, %c0_14], %20 {strides = array<i32>} : memref<16x1xf32, #tpu.memory_space<vmem>>, vector<16x1xf32>,
    } else {
    }
    return
  }
  func.func @transform_0(%arg0: i32, %arg1: i32) -> (i32, i32) {
    %c0_i32 = arith.constant 0 : i32
    return %arg0, %arg1 : i32, i32
  }
  func.func @transform_1(%arg0: i32, %arg1: i32) -> (i32, i32) {
    %c0_i32 = arith.constant 0 : i32
    %c0_i32_0 = arith.constant 0 : i32
    return %c0_i32, %arg1 : i32, i32
  }
  func.func @transform_2(%arg0: i32, %arg1: i32) -> (i32, i32) {
    %c0_i32 = arith.constant 0 : i32
    %c0_i32_0 = arith.constant 0 : i32
    %c0_i32_1 = arith.constant 0 : i32
    return %c0_i32, %c0_i32_0 : i32, i32
  }
  func.func @transform_3(%arg0: i32, %arg1: i32) -> (i32, i32) {
    %c0_i32 = arith.constant 0 : i32
    %c0_i32_0 = arith.constant 0 : i32
    return %arg0, %c0_i32 : i32, i32
  }
}

</mosaic_0001>

<bundles_post_ra>
// kernel: patchgan_discriminator.5
= control target key start
LH: loop header
LB: loop body
LE: loop exit
PB: predicated region body
PF: predicated region fallthrough
CT: control target
= control target key end

     0   :  { %s1447_s12 = smov 0   ;;  %s1449_s13 = smov 0   ;;  %s1738_s0 = inlined_call_operand.vmem [shape: bf16[512,48], index: 0, kind: input, shape index: {}]   ;;  %s1739_s1 = inlined_call_operand.vmem [shape: bf16[48,64], index: 1, kind: input, shape index: {}]   ;;  %s1740_s2 = inlined_call_operand.vmem [shape: f32[1,64], index: 2, kind: input, shape index: {}]   ;;  %s1741_s3 = inlined_call_operand.vmem [shape: bf16[512,64], index: 3, kind: output, shape index: {}]  }
   0x1   :  { %s1451_s14 = smov 0  }
   0x2 LB: > { %s32_s15 = sadd.s32 1, %s1420_s13  ;;  %p1188_p0 = scmp.ge.s32.totalorder %s1424_s14, 1  ;;  %s1424_s14 = sphi %s1451_s14, %s13_s14   ;;  %s1420_s13 = sphi %s1449_s13, %s1743_s13   ;;  %s1416_s12 = sphi %s1447_s12, %s1742_s12  }
   0x3   : > { %p34_p1 = scmp.ge.s32.totalorder %s32_s15, 2  ;;  %p188_p2 = scmp.lt.s32.totalorder %s1424_s14, 3 }
   0x5   : > { %s1745_s15 = smov (%p34_p1, %s32_s15), 0  ;;  %p189_p3 = pnand %p1188_p0, %p188_p2 }
   0x6   : > { %s1189_s18 = sshll.u32 (!%p189_p3), %s1416_s12, 5 }
   0x7   : > { %192 = sbr.rel (%p189_p3) target bundleno = 282 (0x11a), region = 32  ;;  %p230_p4 = scmp.lt.s32.totalorder (!%p189_p3), %s1189_s18, 63 }
   0xc   : > { %v1383_v0 = vld [vmem:[%s1739_s1 + $0x10] sm:$0xff]   ;;  %v1384_v1 = vld [vmem:[%s1739_s1 + $0x8] sm:$0xff]   ;;  %s1747_s18 = smov (!%p230_p4, %s1189_s18), 63  ;;  %vm264_vm0 = vcmask 523264   ;;  %v1385_v2 = vld [vmem:[%s1739_s1] sm:$0xff]   ;;  %v1426_v3 = vmov 0.0  }
   0xd   : > { %1314 = vmatprep.subr.bf16.mxu0 %v1383_v0  ;;  %1352 = vmatprep.subr.bf16.mxu1 %v1383_v0  ;;  %267 = vst.msk [vmem:[#allocation2 + $0x10] sm:$0xff] %vm264_vm0, %v1426_v3  ;;  %265 = vst.msk [vmem:[#allocation2] sm:$0xff] %vm264_vm0, %v1426_v3  ;;  %s1190_s23 = sshll.u32 %s1747_s18, 2  ;;  %vm465_vm1 = vcmask 392192   ;;  %v1557_v46 = vld [vmem:[%s1740_s2] ss:$0 sm:$0xff] }
   0xe   : > { %1315 = vmatpush3.bf16.msra.mxu0 %v1383_v0  ;;  %1355 = vmatpush3.bf16.msra.mxu1 %v1383_v0  ;;  %266 = vst.msk [vmem:[#allocation2 + $0x8] sm:$0xff] %vm264_vm0, %v1426_v3  ;;  %268 = vst.msk [vmem:[#allocation2 + $0x18] sm:$0xff] %vm264_vm0, %v1426_v3  ;;  %s1514_s26 = scalar_lea.vmem %s1738_s0, %s1190_s23  ;;  %vm1038_vm2 = vcmask 519168   ;;  %s1574_s4 = scalar_lea.vmem %s1741_s3, %s1190_s23 }
   0xf   : > { %1316 = vmatprep.subr.bf16.mxu0 %v1384_v1  ;;  %1353 = vmatprep.subr.bf16.mxu1 %v1384_v1  ;;  %269 = vst.msk [vmem:[#allocation2 + $0x20] sm:$0xff] %vm264_vm0, %v1426_v3  ;;  %270 = vst.msk [vmem:[#allocation2 + $0x28] sm:$0xff] %vm264_vm0, %v1426_v3  ;;  %v1386_v4 = vld [vmem:[%s1514_s26] sm:$0xff]   ;;  %v1388_v6 = vld [vmem:[%s1514_s26 + $0x8] sm:$0xff]  }
  0x10   : > { %271 = vst.msk [vmem:[#allocation2 + $0x30] sm:$0xff] %vm264_vm0, %v1426_v3  ;;  %272 = vst.msk [vmem:[#allocation2 + $0x38] sm:$0xff] %vm264_vm0, %v1426_v3  ;;  %v1387_v5 = vld [vmem:[%s1514_s26 + $0x40] sm:$0xff]   ;;  %1320 = vmatprep.mubr.msk.bf16.mxu0 %vm465_vm1, %v1386_v4  ;;  %v1389_v7 = vld [vmem:[%s1514_s26 + $0x48] sm:$0xff]  }
  0x11   : > { %273 = vst.msk [vmem:[#allocation2 + $0x40] sm:$0xff] %vm264_vm0, %v1426_v3  ;;  %274 = vst.msk [vmem:[#allocation2 + $0x48] sm:$0xff] %vm264_vm0, %v1426_v3  ;;  %1336 = vmatprep.mubr.msk.bf16.mxu1 %vm465_vm1, %v1387_v5  ;;  %v1390_v8 = vld [vmem:[%s1514_s26 + $0x10] sm:$0xff]   ;;  %v1392_v10 = vld [vmem:[%s1514_s26 + $0x18] sm:$0xff]  }
  0x12   : > { %275 = vst.msk [vmem:[#allocation2 + $0x50] sm:$0xff] %vm264_vm0, %v1426_v3  ;;  %276 = vst.msk [vmem:[#allocation2 + $0x58] sm:$0xff] %vm264_vm0, %v1426_v3  ;;  %1317 = vmatpush3.bf16.msra.mxu0 %v1384_v1  ;;  %1356 = vmatpush3.bf16.msra.mxu1 %v1384_v1  ;;  %v1391_v9 = vld [vmem:[%s1514_s26 + $0x50] sm:$0xff]   ;;  %v1393_v11 = vld [vmem:[%s1514_s26 + $0x58] sm:$0xff]  }
  0x13   : > { %277 = vst.msk [vmem:[#allocation2 + $0x60] sm:$0xff] %vm264_vm0, %v1426_v3  ;;  %278 = vst.msk [vmem:[#allocation2 + $0x68] sm:$0xff] %vm264_vm0, %v1426_v3  ;;  %1318 = vmatprep.subr.bf16.mxu0 %v1385_v2  ;;  %1354 = vmatprep.subr.bf16.mxu1 %v1385_v2  ;;  %v1394_v12 = vld [vmem:[%s1514_s26 + $0x20] sm:$0xff]   ;;  %v1396_v14 = vld [vmem:[%s1514_s26 + $0x28] sm:$0xff]  }
  0x14   : > { %279 = vst.msk [vmem:[#allocation2 + $0x70] sm:$0xff] %vm264_vm0, %v1426_v3  ;;  %280 = vst.msk [vmem:[#allocation2 + $0x78] sm:$0xff] %vm264_vm0, %v1426_v3  ;;  %v1395_v13 = vld [vmem:[%s1514_s26 + $0x60] sm:$0xff]   ;;  %v1397_v15 = vld [vmem:[%s1514_s26 + $0x68] sm:$0xff]  }
  0x15   : > { %281 = vst.msk [vmem:[#allocation2 + $0x80] sm:$0xff] %vm264_vm0, %v1426_v3  ;;  %282 = vst.msk [vmem:[#allocation2 + $0x88] sm:$0xff] %vm264_vm0, %v1426_v3  ;;  %v1398_v16 = vld [vmem:[%s1514_s26 + $0x30] sm:$0xff]   ;;  %v1400_v18 = vld [vmem:[%s1514_s26 + $0x38] sm:$0xff]  }
  0x16   : > { %283 = vst.msk [vmem:[#allocation2 + $0x90] sm:$0xff] %vm264_vm0, %v1426_v3  ;;  %284 = vst.msk [vmem:[#allocation2 + $0x98] sm:$0xff] %vm264_vm0, %v1426_v3  ;;  %1319 = vmatpush3.bf16.msra.mxu0 %v1385_v2  ;;  %1357 = vmatpush3.bf16.msra.mxu1 %v1385_v2  ;;  %v1399_v17 = vld [vmem:[%s1514_s26 + $0x70] sm:$0xff]   ;;  %v1401_v19 = vld [vmem:[%s1514_s26 + $0x78] sm:$0xff]  }
  0x17   : > { %285 = vst.msk [vmem:[#allocation2 + $0xa0] sm:$0xff] %vm264_vm0, %v1426_v3  ;;  %286 = vst.msk [vmem:[#allocation2 + $0xa8] sm:$0xff] %vm264_vm0, %v1426_v3  ;;  %v299_v20 = vld [vmem:[#allocation2 + $0x10] sm:$0xff]  ;;  %v297_v24 = vld [vmem:[#allocation2] sm:$0xff] }
  0x18   : > { %287 = vst.msk [vmem:[#allocation2 + $0xb0] sm:$0xff] %vm264_vm0, %v1426_v3  ;;  %288 = vst.msk [vmem:[#allocation2 + $0xb8] sm:$0xff] %vm264_vm0, %v1426_v3  ;;  %v300_v30 = vld [vmem:[#allocation2 + $0x18] sm:$0xff]  ;;  %v298_v36 = vld [vmem:[#allocation2 + $0x8] sm:$0xff] }
  0x19   : > { %289 = vst.msk [vmem:[#allocation2 + $0xc0] sm:$0xff] %vm264_vm0, %v1426_v3  ;;  %290 = vst.msk [vmem:[#allocation2 + $0xc8] sm:$0xff] %vm264_vm0, %v1426_v3  ;;  %1321 = vmatmul.mubr.msk.bf16.vlgmr.msra.gmra.mxu0 %vm465_vm1, %v1388_v6  ;;  %1337 = vmatmul.mubr.msk.bf16.vlgmr.msra.gmra.mxu1 %vm465_vm1, %v1389_v7  ;;  %v303_v42 = vld [vmem:[#allocation2 + $0x30] sm:$0xff]  ;;  %v301_v49 = vld [vmem:[#allocation2 + $0x20] sm:$0xff] }
  0x1a   : > { %291 = vst.msk [vmem:[#allocation2 + $0xd0] sm:$0xff] %vm264_vm0, %v1426_v3  ;;  %292 = vst.msk [vmem:[#allocation2 + $0xd8] sm:$0xff] %vm264_vm0, %v1426_v3  ;;  %1324 = vmatprep.mubr.msk.bf16.mxu0 %vm465_vm1, %v1390_v8  ;;  %1340 = vmatprep.mubr.msk.bf16.mxu1 %vm465_vm1, %v1391_v9  ;;  %v304_v61 = vld [vmem:[#allocation2 + $0x38] sm:$0xff] }
  0x1b   : > { %293 = vst.msk [vmem:[#allocation2 + $0xe0] sm:$0xff] %vm264_vm0, %v1426_v3  ;;  %294 = vst.msk [vmem:[#allocation2 + $0xe8] sm:$0xff] %vm264_vm0, %v1426_v3 }
  0x1c   : > { %295 = vst.msk [vmem:[#allocation2 + $0xf0] sm:$0xff] %vm264_vm0, %v1426_v3  ;;  %296 = vst.msk [vmem:[#allocation2 + $0xf8] sm:$0xff] %vm264_vm0, %v1426_v3  ;;  %v313_v25 = vld [vmem:[#allocation2 + $0x80] sm:$0xff]  ;;  %v314_v37 = vld [vmem:[#allocation2 + $0x88] sm:$0xff] }
  0x1d   : > { %v315_v21 = vld [vmem:[#allocation2 + $0x90] sm:$0xff]  ;;  %v316_v31 = vld [vmem:[#allocation2 + $0x98] sm:$0xff] }
  0x1e   : > { %v317_v50 = vld [vmem:[#allocation2 + $0xa0] sm:$0xff] }
  0x1f   : > { %v319_v43 = vld [vmem:[#allocation2 + $0xb0] sm:$0xff]  ;;  %v320_v62 = vld [vmem:[#allocation2 + $0xb8] sm:$0xff] }
  0x21   : > { %1325 = vmatmul.mubr.msk.bf16.gmra.mxu0 %vm465_vm1, %v1392_v10  ;;  %1341 = vmatmul.mubr.msk.bf16.gmra.mxu1 %vm465_vm1, %v1393_v11 }
  0x22   : > { %1328 = vmatprep.mubr.msk.bf16.mxu0 %vm465_vm1, %v1394_v12  ;;  %1344 = vmatprep.mubr.msk.bf16.mxu1 %vm465_vm1, %v1395_v13 }
  0x29   : > { %1329 = vmatmul.mubr.msk.bf16.gmra.mxu0 %vm465_vm1, %v1396_v14  ;;  %1345 = vmatmul.mubr.msk.bf16.gmra.mxu1 %vm465_vm1, %v1397_v15 }
  0x2a   : > { %1332 = vmatprep.mubr.msk.bf16.mxu0 %vm465_vm1, %v1398_v16  ;;  %1348 = vmatprep.mubr.msk.bf16.mxu1 %vm465_vm1, %v1399_v17 }
  0x31   : > { %1333 = vmatmul.mubr.msk.bf16.gmra.mxu0 %vm465_vm1, %v1400_v18  ;;  %1349 = vmatmul.mubr.msk.bf16.gmra.mxu1 %vm465_vm1, %v1401_v19 }
  0xd9   : > { %v1322_v22 = vpop.f32.mrf.mxu0  ;;  %v1338_v23 = vpop.f32.mrf.mxu1 }
  0xda   : > { %v677_v26 = vadd.f32 %v1322_v22, %v299_v20  ;;  %v693_v27 = vadd.f32 %v1338_v23, %v315_v21 }
  0xdb   : > { %v548_v28 = vpop.f32.mrf.mxu0  ;;  %v612_v29 = vpop.f32.mrf.mxu1 }
  0xdc   : > { %710 = vst.msk [vmem:[#allocation2 + $0x10] sm:$0xff] %vm264_vm0, %v677_v26  ;;  %726 = vst.msk [vmem:[#allocation2 + $0x90] sm:$0xff] %vm264_vm0, %v693_v27  ;;  %v675_v32 = vadd.f32 %v548_v28, %v297_v24  ;;  %v691_v33 = vadd.f32 %v612_v29, %v313_v25 }
  0xdd   : > { %v1323_v34 = vpop.f32.mrf.mxu0  ;;  %v1339_v35 = vpop.f32.mrf.mxu1 }
  0xde   : > { %708 = vst.msk [vmem:[#allocation2] sm:$0xff] %vm264_vm0, %v675_v32  ;;  %724 = vst.msk [vmem:[#allocation2 + $0x80] sm:$0xff] %vm264_vm0, %v691_v33  ;;  %v678_v38 = vadd.f32 %v1323_v34, %v300_v30  ;;  %v694_v39 = vadd.f32 %v1339_v35, %v316_v31 }
  0xdf   : > { %v551_v40 = vpop.f32.mrf.mxu0  ;;  %v615_v41 = vpop.f32.mrf.mxu1 }
  0xe0   : > { %711 = vst.msk [vmem:[#allocation2 + $0x18] sm:$0xff] %vm264_vm0, %v678_v38  ;;  %727 = vst.msk [vmem:[#allocation2 + $0x98] sm:$0xff] %vm264_vm0, %v694_v39  ;;  %v676_v44 = vadd.f32 %v551_v40, %v298_v36  ;;  %v692_v45 = vadd.f32 %v615_v41, %v314_v37  ;;  %v302_v37 = vld [vmem:[#allocation2 + $0x28] sm:$0xff] }
  0xe1   : > { %v1326_v47 = vpop.f32.mrf.mxu0  ;;  %v1342_v48 = vpop.f32.mrf.mxu1 }
  0xe2   : > { %709 = vst.msk [vmem:[#allocation2 + $0x8] sm:$0xff] %vm264_vm0, %v676_v44  ;;  %725 = vst.msk [vmem:[#allocation2 + $0x88] sm:$0xff] %vm264_vm0, %v692_v45  ;;  %v681_v51 = vadd.f32 %v1326_v47, %v303_v42  ;;  %v697_v52 = vadd.f32 %v1342_v48, %v319_v43  ;;  %v318_v43 = vld [vmem:[#allocation2 + $0xa8] sm:$0xff] }
  0xe3   : > { %v745_v53 = vld [vmem:[#allocation2 + $0x10] sm:$0xff]  ;;  %v564_v55 = vpop.f32.mrf.mxu0  ;;  %v628_v56 = vpop.f32.mrf.mxu1 }
  0xe4   : > { %v761_v54 = vld [vmem:[#allocation2 + $0x90] sm:$0xff]  ;;  %v784_v57 = vadd.f32 %v1557_v46, %v745_v53  ;;  %714 = vst.msk [vmem:[#allocation2 + $0x30] sm:$0xff] %vm264_vm0, %v681_v51  ;;  %730 = vst.msk [vmem:[#allocation2 + $0xb0] sm:$0xff] %vm264_vm0, %v697_v52  ;;  %v679_v59 = vadd.f32 %v564_v55, %v301_v49  ;;  %v695_v60 = vadd.f32 %v628_v56, %v317_v50 }
  0xe5   : > { %v800_v58 = vadd.f32 %v1557_v46, %v761_v54  ;;  %v743_v63 = vld [vmem:[#allocation2] sm:$0xff]  ;;  %v1327_v1 = vpop.f32.mrf.mxu0  ;;  %v1343_v2 = vpop.f32.mrf.mxu1 }
  0xe6   : > { %v759_v0 = vld [vmem:[#allocation2 + $0x80] sm:$0xff]  ;;  %vm816_vm3 = vcmp.ge.f32.partialorder %v784_v57, 0.0  ;;  %v848_v3 = vmul.f32 0.2, %v784_v57  ;;  %712 = vst.msk [vmem:[#allocation2 + $0x20] sm:$0xff] %vm264_vm0, %v679_v59  ;;  %728 = vst.msk [vmem:[#allocation2 + $0xa0] sm:$0xff] %vm264_vm0, %v695_v60  ;;  %v782_v5 = vadd.f32 %v1557_v46, %v743_v63  ;;  %v682_v9 = vadd.f32 %v1327_v1, %v304_v61 }
  0xe7   : > { %vm832_vm4 = vcmp.ge.f32.partialorder %v800_v58, 0.0  ;;  %v864_v4 = vmul.f32 0.2, %v800_v58  ;;  %v798_v6 = vadd.f32 %v1557_v46, %v759_v0  ;;  %v746_v7 = vld [vmem:[#allocation2 + $0x18] sm:$0xff]  ;;  %v698_v10 = vadd.f32 %v1343_v2, %v320_v62  ;;  %v567_v11 = vpop.f32.mrf.mxu0  ;;  %v631_v12 = vpop.f32.mrf.mxu1 }
  0xe8   : > { %v762_v8 = vld [vmem:[#allocation2 + $0x98] sm:$0xff]  ;;  %v880_v13 = vsel %vm816_vm3, %v784_v57, %v848_v3  ;;  %v785_v15 = vadd.f32 %v1557_v46, %v746_v7  ;;  %vm814_vm5 = vcmp.ge.f32.partialorder %v782_v5, 0.0  ;;  %v846_v19 = vmul.f32 0.2, %v782_v5  ;;  %715 = vst.msk [vmem:[#allocation2 + $0x38] sm:$0xff] %vm264_vm0, %v682_v9 }
  0xe9   : > { %v896_v14 = vsel %vm832_vm4, %v800_v58, %v864_v4  ;;  %v801_v16 = vadd.f32 %v1557_v46, %v762_v8  ;;  %v1265_v17 = vpack.c.bf16 %v880_v13, %v880_v13  ;;  %v744_v20 = vld [vmem:[#allocation2 + $0x8] sm:$0xff]  ;;  %731 = vst.msk [vmem:[#allocation2 + $0xb8] sm:$0xff] %vm264_vm0, %v698_v10  ;;  %v1580_v22 = vpop.f32.mrf.mxu0  ;;  %v1582_v23 = vpop.f32.mrf.mxu1  ;;  %vm830_vm6 = vcmp.ge.f32.partialorder %v798_v6, 0.0  ;;  %v307_v8 = vld [vmem:[#allocation2 + $0x50] sm:$0xff] }
  0xea   : > { %v1281_v18 = vpack.c.bf16 %v896_v14, %v896_v14  ;;  %v760_v21 = vld [vmem:[#allocation2 + $0x88] sm:$0xff]  ;;  %v862_v24 = vmul.f32 0.2, %v798_v6  ;;  %vm817_vm7 = vcmp.ge.f32.partialorder %v785_v15, 0.0  ;;  %v849_v25 = vmul.f32 0.2, %v785_v15 }
  0xeb   : > { %1041 = vst.msk [vmem:[%s1574_s4 + $0x8] sm:$0xf] %vm1038_vm2, %v1265_v17  ;;  %v878_v26 = vsel %vm814_vm5, %v782_v5, %v846_v19  ;;  %vm833_vm8 = vcmp.ge.f32.partialorder %v801_v16, 0.0  ;;  %v865_v27 = vmul.f32 0.2, %v801_v16  ;;  %v783_v28 = vadd.f32 %v1557_v46, %v744_v20  ;;  %v1589_v29 = vpop.f32.mrf.mxu0  ;;  %v1591_v30 = vpop.f32.mrf.mxu1  ;;  %v749_v35 = vld [vmem:[#allocation2 + $0x30] sm:$0xff] }
  0xec   : > { %1057 = vst.msk [vmem:[%s1574_s4 + $0x48] sm:$0xf] %vm1038_vm2, %v1281_v18  ;;  %v1263_v31 = vpack.c.bf16 %v878_v26, %v878_v26  ;;  %v894_v32 = vsel %vm830_vm6, %v798_v6, %v862_v24  ;;  %v881_v33 = vsel %vm817_vm7, %v785_v15, %v849_v25  ;;  %v799_v34 = vadd.f32 %v1557_v46, %v760_v21  ;;  %v765_v36 = vld [vmem:[#allocation2 + $0xb0] sm:$0xff]  ;;  %v321_v17 = vld [vmem:[#allocation2 + $0xc0] sm:$0xff]  ;;  %v308_v21 = vld [vmem:[#allocation2 + $0x58] sm:$0xff] }
  0xed   : > { %v1279_v38 = vpack.c.bf16 %v894_v32, %v894_v32  ;;  %v1266_v39 = vpack.c.bf16 %v881_v33, %v881_v33  ;;  %v897_v40 = vsel %vm833_vm8, %v801_v16, %v865_v27  ;;  %vm815_vm9 = vcmp.ge.f32.partialorder %v783_v28, 0.0  ;;  %v747_v41 = vld [vmem:[#allocation2 + $0x20] sm:$0xff]  ;;  %v1594_v44 = vpop.f32.mrf.mxu0  ;;  %v1596_v45 = vpop.f32.mrf.mxu1  ;;  %v323_v15 = vld [vmem:[#allocation2 + $0xd0] sm:$0xff]  ;;  %v324_v24 = vld [vmem:[#allocation2 + $0xd8] sm:$0xff] }
  0xee   : > { %v763_v42 = vld [vmem:[#allocation2 + $0xa0] sm:$0xff]  ;;  %1039 = vst.msk [vmem:[%s1574_s4] sm:$0xf] %vm1038_vm2, %v1263_v31  ;;  %v1282_v47 = vpack.c.bf16 %v897_v40, %v897_v40  ;;  %v847_v48 = vmul.f32 0.2, %v783_v28  ;;  %vm831_vm10 = vcmp.ge.f32.partialorder %v799_v34, 0.0  ;;  %v788_v50 = vadd.f32 %v1557_v46, %v749_v35 }
  0xef   : > { %v863_v49 = vmul.f32 0.2, %v799_v34  ;;  %1055 = vst.msk [vmem:[%s1574_s4 + $0x40] sm:$0xf] %vm1038_vm2, %v1279_v38  ;;  %1042 = vst.msk [vmem:[%s1574_s4 + $0xc] sm:$0xf] %vm1038_vm2, %v1266_v39  ;;  %v804_v51 = vadd.f32 %v1557_v46, %v765_v36  ;;  %v786_v52 = vadd.f32 %v1557_v46, %v747_v41  ;;  %v802_v53 = vadd.f32 %v1557_v46, %v763_v42  ;;  %v1608_v54 = vpop.f32.mrf.mxu0  ;;  %v1610_v55 = vpop.f32.mrf.mxu1 }
  0xf0   : > { %1058 = vst.msk [vmem:[%s1574_s4 + $0x4c] sm:$0xf] %vm1038_vm2, %v1282_v47  ;;  %v879_v56 = vsel %vm815_vm9, %v783_v28, %v847_v48  ;;  %v750_v58 = vld [vmem:[#allocation2 + $0x38] sm:$0xff]  ;;  %v680_v59 = vadd.f32 %v567_v11, %v302_v37  ;;  %v696_v60 = vadd.f32 %v631_v12, %v318_v43  ;;  %vm820_vm11 = vcmp.ge.f32.partialorder %v788_v50, 0.0  ;;  %v305_v16 = vld [vmem:[#allocation2 + $0x40] sm:$0xff]  ;;  %v306_v25 = vld [vmem:[#allocation2 + $0x48] sm:$0xff] }
  0xf1   : > { %v895_v57 = vsel %vm831_vm10, %v799_v34, %v863_v49  ;;  %v1264_v61 = vpack.c.bf16 %v879_v56, %v879_v56  ;;  %v852_v63 = vmul.f32 0.2, %v788_v50  ;;  %v766_v0 = vld [vmem:[#allocation2 + $0xb8] sm:$0xff]  ;;  %v1615_v1 = vpop.f32.mrf.mxu0  ;;  %v1617_v2 = vpop.f32.mrf.mxu1  ;;  %vm836_vm12 = vcmp.ge.f32.partialorder %v804_v51, 0.0  ;;  %v322_v31 = vld [vmem:[#allocation2 + $0xc8] sm:$0xff]  ;;  %v311_v38 = vld [vmem:[#allocation2 + $0x70] sm:$0xff] }
  0xf2   : > { %v1280_v62 = vpack.c.bf16 %v895_v57, %v895_v57  ;;  %v868_v3 = vmul.f32 0.2, %v804_v51  ;;  %vm818_vm13 = vcmp.ge.f32.partialorder %v786_v52, 0.0  ;;  %v850_v4 = vmul.f32 0.2, %v786_v52  ;;  %713 = vst.msk [vmem:[#allocation2 + $0x28] sm:$0xff] %vm264_vm0, %v680_v59 }
  0xf3   : > { %729 = vst.msk [vmem:[#allocation2 + $0xa8] sm:$0xff] %vm264_vm0, %v696_v60  ;;  %v884_v5 = vsel %vm820_vm11, %v788_v50, %v852_v63  ;;  %vm834_vm14 = vcmp.ge.f32.partialorder %v802_v53, 0.0  ;;  %v866_v6 = vmul.f32 0.2, %v802_v53  ;;  %v789_v7 = vadd.f32 %v1557_v46, %v750_v58  ;;  %v1626_v9 = vpop.f32.mrf.mxu0  ;;  %v1628_v10 = vpop.f32.mrf.mxu1  ;;  %v327_v39 = vld [vmem:[#allocation2 + $0xf0] sm:$0xff]  ;;  %v309_v40 = vld [vmem:[#allocation2 + $0x60] sm:$0xff] }
  0xf4   : > { %1040 = vst.msk [vmem:[%s1574_s4 + $0x4] sm:$0xf] %vm1038_vm2, %v1264_v61  ;;  %1056 = vst.msk [vmem:[%s1574_s4 + $0x44] sm:$0xf] %vm1038_vm2, %v1280_v62  ;;  %v1269_v11 = vpack.c.bf16 %v884_v5, %v884_v5  ;;  %v900_v12 = vsel %vm836_vm12, %v804_v51, %v868_v3  ;;  %v882_v13 = vsel %vm818_vm13, %v786_v52, %v850_v4  ;;  %v312_v48 = vld [vmem:[#allocation2 + $0x78] sm:$0xff]  ;;  %v310_v57 = vld [vmem:[#allocation2 + $0x68] sm:$0xff] }
  0xf5   : > { %v805_v14 = vadd.f32 %v1557_v46, %v766_v0  ;;  %v1285_v18 = vpack.c.bf16 %v900_v12, %v900_v12  ;;  %v1267_v19 = vpack.c.bf16 %v882_v13, %v882_v13  ;;  %v898_v20 = vsel %vm834_vm14, %v802_v53, %v866_v6  ;;  %v1335_v32 = vpop.f32.mrf.mxu0  ;;  %v1351_v33 = vpop.f32.mrf.mxu1  ;;  %v326_v59 = vld [vmem:[#allocation2 + $0xe8] sm:$0xff] }
  0xf6   : > { %vm821_vm15 = vcmp.ge.f32.partialorder %v789_v7, 0.0  ;;  %1045 = vst.msk [vmem:[%s1574_s4 + $0x18] sm:$0xf] %vm1038_vm2, %v1269_v11  ;;  %v1283_v26 = vpack.c.bf16 %v898_v20, %v898_v20  ;;  %v853_v27 = vmul.f32 0.2, %v789_v7  ;;  %v685_v34 = vadd.f32 %v1580_v22, %v307_v8  ;;  %v325_v22 = vld [vmem:[#allocation2 + $0xe0] sm:$0xff] }
  0xf7   : > { %vm837_vm1 = vcmp.ge.f32.partialorder %v805_v14, 0.0  ;;  %v869_v28 = vmul.f32 0.2, %v805_v14  ;;  %1061 = vst.msk [vmem:[%s1574_s4 + $0x58] sm:$0xf] %vm1038_vm2, %v1285_v18  ;;  %v701_v35 = vadd.f32 %v1582_v23, %v323_v15  ;;  %v683_v36 = vadd.f32 %v1589_v29, %v305_v16  ;;  %v328_v23 = vld [vmem:[#allocation2 + $0xf8] sm:$0xff]  ;;  %v599_v58 = vpop.f32.mrf.mxu0  ;;  %v663_v60 = vpop.f32.mrf.mxu1 }
  0xf8   : > { %1043 = vst.msk [vmem:[%s1574_s4 + $0x10] sm:$0xf] %vm1038_vm2, %v1267_v19  ;;  %v699_v37 = vadd.f32 %v1591_v30, %v321_v17  ;;  %1059 = vst.msk [vmem:[%s1574_s4 + $0x50] sm:$0xf] %vm1038_vm2, %v1283_v26  ;;  %v885_v41 = vsel %vm821_vm15, %v789_v7, %v853_v27  ;;  %v686_v43 = vadd.f32 %v1594_v44, %v308_v21 }
  0xf9   : > { %v901_v42 = vsel %vm837_vm1, %v805_v14, %v869_v28  ;;  %v702_v47 = vadd.f32 %v1596_v45, %v324_v24  ;;  %v1270_v49 = vpack.c.bf16 %v885_v41, %v885_v41  ;;  %v748_v50 = vld [vmem:[#allocation2 + $0x28] sm:$0xff]  ;;  %718 = vst.msk [vmem:[#allocation2 + $0x50] sm:$0xff] %vm264_vm0, %v685_v34  ;;  %734 = vst.msk [vmem:[#allocation2 + $0xd0] sm:$0xff] %vm264_vm0, %v701_v35 }
  0xfa   : > { %v1286_v29 = vpack.c.bf16 %v901_v42, %v901_v42  ;;  %v764_v30 = vld [vmem:[#allocation2 + $0xa8] sm:$0xff]  ;;  %716 = vst.msk [vmem:[#allocation2 + $0x40] sm:$0xff] %vm264_vm0, %v683_v36  ;;  %732 = vst.msk [vmem:[#allocation2 + $0xc0] sm:$0xff] %vm264_vm0, %v699_v37  ;;  %v684_v44 = vadd.f32 %v1608_v54, %v306_v25  ;;  %v700_v45 = vadd.f32 %v1610_v55, %v322_v31 }
  0xfb   : > { %v787_v51 = vadd.f32 %v1557_v46, %v748_v50  ;;  %v803_v52 = vadd.f32 %v1557_v46, %v764_v30  ;;  %719 = vst.msk [vmem:[#allocation2 + $0x58] sm:$0xff] %vm264_vm0, %v686_v43  ;;  %735 = vst.msk [vmem:[#allocation2 + $0xd8] sm:$0xff] %vm264_vm0, %v702_v47  ;;  %v689_v53 = vadd.f32 %v1615_v1, %v311_v38 }
  0xfc   : > { %v705_v56 = vadd.f32 %v1617_v2, %v327_v39  ;;  %1046 = vst.msk [vmem:[%s1574_s4 + $0x1c] sm:$0xf] %vm1038_vm2, %v1270_v49  ;;  %1062 = vst.msk [vmem:[%s1574_s4 + $0x5c] sm:$0xf] %vm1038_vm2, %v1286_v29  ;;  %v687_v54 = vadd.f32 %v1626_v9, %v309_v40  ;;  %v703_v55 = vadd.f32 %v1628_v10, %v325_v22 }
  0xfd   : > { %717 = vst.msk [vmem:[#allocation2 + $0x48] sm:$0xff] %vm264_vm0, %v684_v44  ;;  %733 = vst.msk [vmem:[#allocation2 + $0xc8] sm:$0xff] %vm264_vm0, %v700_v45  ;;  %v690_v61 = vadd.f32 %v1335_v32, %v312_v48  ;;  %v706_v62 = vadd.f32 %v1351_v33, %v328_v23  ;;  %vm819_vm3 = vcmp.ge.f32.partialorder %v787_v51, 0.0  ;;  %v851_v63 = vmul.f32 0.2, %v787_v51 }
  0xfe   : > { %vm835_vm4 = vcmp.ge.f32.partialorder %v803_v52, 0.0  ;;  %v867_v0 = vmul.f32 0.2, %v803_v52  ;;  %722 = vst.msk [vmem:[#allocation2 + $0x70] sm:$0xff] %vm264_vm0, %v689_v53  ;;  %738 = vst.msk [vmem:[#allocation2 + $0xf0] sm:$0xff] %vm264_vm0, %v705_v56  ;;  %v688_v1 = vadd.f32 %v599_v58, %v310_v57  ;;  %v704_v2 = vadd.f32 %v663_v60, %v326_v59 }
  0xff   : > { %720 = vst.msk [vmem:[#allocation2 + $0x60] sm:$0xff] %vm264_vm0, %v687_v54  ;;  %736 = vst.msk [vmem:[#allocation2 + $0xe0] sm:$0xff] %vm264_vm0, %v703_v55  ;;  %v883_v3 = vsel %vm819_vm3, %v787_v51, %v851_v63 }
 0x100   : > { %723 = vst.msk [vmem:[#allocation2 + $0x78] sm:$0xff] %vm264_vm0, %v690_v61  ;;  %739 = vst.msk [vmem:[#allocation2 + $0xf8] sm:$0xff] %vm264_vm0, %v706_v62  ;;  %v899_v4 = vsel %vm835_vm4, %v803_v52, %v867_v0  ;;  %v1268_v5 = vpack.c.bf16 %v883_v3, %v883_v3  ;;  %v753_v7 = vld [vmem:[#allocation2 + $0x50] sm:$0xff] }
 0x101   : > { %v1284_v6 = vpack.c.bf16 %v899_v4, %v899_v4  ;;  %721 = vst.msk [vmem:[#allocation2 + $0x68] sm:$0xff] %vm264_vm0, %v688_v1  ;;  %737 = vst.msk [vmem:[#allocation2 + $0xe8] sm:$0xff] %vm264_vm0, %v704_v2  ;;  %v769_v8 = vld [vmem:[#allocation2 + $0xd0] sm:$0xff]  ;;  %v751_v9 = vld [vmem:[#allocation2 + $0x40] sm:$0xff]  ;;  %v792_v10 = vadd.f32 %v1557_v46, %v753_v7 }
 0x102   : > { %1044 = vst.msk [vmem:[%s1574_s4 + $0x14] sm:$0xf] %vm1038_vm2, %v1268_v5  ;;  %v808_v11 = vadd.f32 %v1557_v46, %v769_v8  ;;  %v790_v12 = vadd.f32 %v1557_v46, %v751_v9  ;;  %v767_v13 = vld [vmem:[#allocation2 + $0xc0] sm:$0xff]  ;;  %v754_v14 = vld [vmem:[#allocation2 + $0x58] sm:$0xff] }
 0x103   : > { %1060 = vst.msk [vmem:[%s1574_s4 + $0x54] sm:$0xf] %vm1038_vm2, %v1284_v6  ;;  %v770_v15 = vld [vmem:[#allocation2 + $0xd8] sm:$0xff]  ;;  %v806_v16 = vadd.f32 %v1557_v46, %v767_v13  ;;  %v793_v17 = vadd.f32 %v1557_v46, %v754_v14  ;;  %vm824_vm0 = vcmp.ge.f32.partialorder %v792_v10, 0.0  ;;  %v856_v19 = vmul.f32 0.2, %v792_v10 }
 0x104   : > { %v809_v18 = vadd.f32 %v1557_v46, %v770_v15  ;;  %vm840_vm5 = vcmp.ge.f32.partialorder %v808_v11, 0.0  ;;  %v872_v20 = vmul.f32 0.2, %v808_v11  ;;  %vm822_vm6 = vcmp.ge.f32.partialorder %v790_v12, 0.0  ;;  %v752_v28 = vld [vmem:[#allocation2 + $0x48] sm:$0xff] }
 0x105   : > { %v854_v21 = vmul.f32 0.2, %v790_v12  ;;  %vm838_vm7 = vcmp.ge.f32.partialorder %v806_v16, 0.0  ;;  %v870_v24 = vmul.f32 0.2, %v806_v16  ;;  %v888_v25 = vsel %vm824_vm0, %v792_v10, %v856_v19  ;;  %v768_v31 = vld [vmem:[#allocation2 + $0xc8] sm:$0xff] }
 0x106   : > { %v904_v26 = vsel %vm840_vm5, %v808_v11, %v872_v20  ;;  %vm825_vm8 = vcmp.ge.f32.partialorder %v793_v17, 0.0  ;;  %v857_v27 = vmul.f32 0.2, %v793_v17  ;;  %v757_v32 = vld [vmem:[#allocation2 + $0x70] sm:$0xff]  ;;  %v1273_v33 = vpack.c.bf16 %v888_v25, %v888_v25  ;;  %v755_v38 = vld [vmem:[#allocation2 + $0x60] sm:$0xff] }
 0x107   : > { %v1289_v34 = vpack.c.bf16 %v904_v26, %v904_v26  ;;  %v886_v35 = vsel %vm822_vm6, %v790_v12, %v854_v21  ;;  %v902_v36 = vsel %vm838_vm7, %v806_v16, %v870_v24  ;;  %v773_v37 = vld [vmem:[#allocation2 + $0xf0] sm:$0xff]  ;;  %v771_v39 = vld [vmem:[#allocation2 + $0xe0] sm:$0xff]  ;;  %vm841_vm9 = vcmp.ge.f32.partialorder %v809_v18, 0.0  ;;  %v758_v57 = vld [vmem:[#allocation2 + $0x78] sm:$0xff] }
 0x108   : > { %v1271_v40 = vpack.c.bf16 %v886_v35, %v886_v35  ;;  %v1287_v41 = vpack.c.bf16 %v902_v36, %v902_v36  ;;  %v889_v42 = vsel %vm825_vm8, %v793_v17, %v857_v27  ;;  %1049 = vst.msk [vmem:[%s1574_s4 + $0x28] sm:$0xf] %vm1038_vm2, %v1273_v33  ;;  %v873_v47 = vmul.f32 0.2, %v809_v18  ;;  %v774_v55 = vld [vmem:[#allocation2 + $0xf8] sm:$0xff]  ;;  %v756_v61 = vld [vmem:[#allocation2 + $0x68] sm:$0xff] }
 0x109   : > { %1065 = vst.msk [vmem:[%s1574_s4 + $0x68] sm:$0xf] %vm1038_vm2, %v1289_v34  ;;  %v1274_v43 = vpack.c.bf16 %v889_v42, %v889_v42  ;;  %v791_v22 = vadd.f32 %v1557_v46, %v752_v28  ;;  %v807_v48 = vadd.f32 %v1557_v46, %v768_v31  ;;  %v796_v23 = vadd.f32 %v1557_v46, %v757_v32  ;;  %v772_v62 = vld [vmem:[#allocation2 + $0xe8] sm:$0xff] }
 0x10a   : > { %1047 = vst.msk [vmem:[%s1574_s4 + $0x20] sm:$0xf] %vm1038_vm2, %v1271_v40  ;;  %1063 = vst.msk [vmem:[%s1574_s4 + $0x60] sm:$0xf] %vm1038_vm2, %v1287_v41  ;;  %v812_v49 = vadd.f32 %v1557_v46, %v773_v37  ;;  %v794_v29 = vadd.f32 %v1557_v46, %v755_v38  ;;  %v810_v50 = vadd.f32 %v1557_v46, %v771_v39 }
 0x10b   : > { %1050 = vst.msk [vmem:[%s1574_s4 + $0x2c] sm:$0xf] %vm1038_vm2, %v1274_v43  ;;  %v905_v30 = vsel %vm841_vm9, %v809_v18, %v873_v47  ;;  %vm823_vm10 = vcmp.ge.f32.partialorder %v791_v22, 0.0  ;;  %v855_v44 = vmul.f32 0.2, %v791_v22  ;;  %vm839_vm11 = vcmp.ge.f32.partialorder %v807_v48, 0.0 }
 0x10c   : > { %v1290_v45 = vpack.c.bf16 %v905_v30, %v905_v30  ;;  %v871_v51 = vmul.f32 0.2, %v807_v48  ;;  %vm828_vm12 = vcmp.ge.f32.partialorder %v796_v23, 0.0  ;;  %v860_v52 = vmul.f32 0.2, %v796_v23 }
 0x10d   : > { %v887_v53 = vsel %vm823_vm10, %v791_v22, %v855_v44  ;;  %vm844_vm13 = vcmp.ge.f32.partialorder %v812_v49, 0.0  ;;  %v876_v56 = vmul.f32 0.2, %v812_v49  ;;  %vm826_vm14 = vcmp.ge.f32.partialorder %v794_v29, 0.0 }
 0x10e   : > { %1066 = vst.msk [vmem:[%s1574_s4 + $0x6c] sm:$0xf] %vm1038_vm2, %v1290_v45  ;;  %v1272_v58 = vpack.c.bf16 %v887_v53, %v887_v53  ;;  %v903_v59 = vsel %vm839_vm11, %v807_v48, %v871_v51  ;;  %v892_v60 = vsel %vm828_vm12, %v796_v23, %v860_v52  ;;  %v858_v54 = vmul.f32 0.2, %v794_v29 }
 0x10f   : > { %v1288_v63 = vpack.c.bf16 %v903_v59, %v903_v59  ;;  %v1277_v0 = vpack.c.bf16 %v892_v60, %v892_v60  ;;  %v908_v1 = vsel %vm844_vm13, %v812_v49, %v876_v56  ;;  %vm842_vm15 = vcmp.ge.f32.partialorder %v810_v50, 0.0 }
 0x110   : > { %1048 = vst.msk [vmem:[%s1574_s4 + $0x24] sm:$0xf] %vm1038_vm2, %v1272_v58  ;;  %v1293_v2 = vpack.c.bf16 %v908_v1, %v908_v1  ;;  %v890_v3 = vsel %vm826_vm14, %v794_v29, %v858_v54  ;;  %v874_v4 = vmul.f32 0.2, %v810_v50  ;;  %v797_v5 = vadd.f32 %v1557_v46, %v758_v57 }
 0x111   : > { %1064 = vst.msk [vmem:[%s1574_s4 + $0x64] sm:$0xf] %vm1038_vm2, %v1288_v63  ;;  %1053 = vst.msk [vmem:[%s1574_s4 + $0x38] sm:$0xf] %vm1038_vm2, %v1277_v0  ;;  %v1275_v6 = vpack.c.bf16 %v890_v3, %v890_v3  ;;  %v813_v7 = vadd.f32 %v1557_v46, %v774_v55  ;;  %v795_v8 = vadd.f32 %v1557_v46, %v756_v61 }
 0x112   : > { %v811_v9 = vadd.f32 %v1557_v46, %v772_v62  ;;  %1069 = vst.msk [vmem:[%s1574_s4 + $0x78] sm:$0xf] %vm1038_vm2, %v1293_v2  ;;  %v906_v10 = vsel %vm842_vm15, %v810_v50, %v874_v4  ;;  %vm829_vm1 = vcmp.ge.f32.partialorder %v797_v5, 0.0  ;;  %v861_v11 = vmul.f32 0.2, %v797_v5 }
 0x113   : > { %1051 = vst.msk [vmem:[%s1574_s4 + $0x30] sm:$0xf] %vm1038_vm2, %v1275_v6  ;;  %v1291_v12 = vpack.c.bf16 %v906_v10, %v906_v10  ;;  %vm845_vm3 = vcmp.ge.f32.partialorder %v813_v7, 0.0  ;;  %v877_v13 = vmul.f32 0.2, %v813_v7  ;;  %vm827_vm4 = vcmp.ge.f32.partialorder %v795_v8, 0.0 }
 0x114   : > { %v893_v14 = vsel %vm829_vm1, %v797_v5, %v861_v11  ;;  %v859_v15 = vmul.f32 0.2, %v795_v8  ;;  %vm843_vm0 = vcmp.ge.f32.partialorder %v811_v9, 0.0  ;;  %v875_v16 = vmul.f32 0.2, %v811_v9 }
 0x115   : > { %1067 = vst.msk [vmem:[%s1574_s4 + $0x70] sm:$0xf] %vm1038_vm2, %v1291_v12  ;;  %v1278_v46 = vpack.c.bf16 %v893_v14, %v893_v14  ;;  %v909_v17 = vsel %vm845_vm3, %v813_v7, %v877_v13 }
 0x116   : > { %v1294_v18 = vpack.c.bf16 %v909_v17, %v909_v17  ;;  %v891_v19 = vsel %vm827_vm4, %v795_v8, %v859_v15  ;;  %v907_v20 = vsel %vm843_vm0, %v811_v9, %v875_v16 }
 0x117   : > { %1054 = vst.msk [vmem:[%s1574_s4 + $0x3c] sm:$0xf] %vm1038_vm2, %v1278_v46  ;;  %v1276_v21 = vpack.c.bf16 %v891_v19, %v891_v19  ;;  %v1292_v24 = vpack.c.bf16 %v907_v20, %v907_v20 }
 0x118   : > { %1070 = vst.msk [vmem:[%s1574_s4 + $0x7c] sm:$0xf] %vm1038_vm2, %v1294_v18 }
 0x119   : > { %1052 = vst.msk [vmem:[%s1574_s4 + $0x34] sm:$0xf] %vm1038_vm2, %v1276_v21  ;;  %1068 = vst.msk [vmem:[%s1574_s4 + $0x74] sm:$0xf] %vm1038_vm2, %v1292_v24 }
 0x11a PF: > { %s13_s14 = sadd.s32 1, %s1424_s14   ;;  %s1742_s12 = smov %s1420_s13 }
 0x11b   : > { %p10_p5 = scmp.ge.s32.totalorder %s13_s14, 4   ;;  %s1743_s13 = smov %s1745_s15 }
 0x11d   :  { %12 = sbr.rel (!%p10_p5) target bundleno = 2 (0x2), region = 76 }

// kernel: patchgan_discriminator.6
= control target key start
LH: loop header
LB: loop body
LE: loop exit
PB: predicated region body
PF: predicated region fallthrough
CT: control target
= control target key end

     0   :  { %s2638_s1 = inlined_call_operand.vmem [shape: bf16[1024,128], index: 1, kind: input, shape index: {}]   ;;  %s2639_s0 = inlined_call_operand.vmem [shape: bf16[128,1024], index: 0, kind: input, shape index: {}]   ;;  %s2640_s2 = inlined_call_operand.vmem [shape: f32[1,128], index: 2, kind: input, shape index: {}]   ;;  %s2641_s3 = inlined_call_operand.vmem [shape: bf16[128,128], index: 3, kind: output, shape index: {}]  }
   0x1   :  { %v2005_v0 = vld [vmem:[%s2638_s1 + $0x78] sm:$0xff]   ;;  %v2009_v4 = vld [vmem:[%s2638_s1 + $0x70] sm:$0xff]   ;;  %v2013_v8 = vld [vmem:[%s2638_s1 + $0x68] sm:$0xff]  }
   0x2   :  { %v2006_v1 = vld [vmem:[%s2638_s1 + $0xf8] sm:$0xff]   ;;  %1749 = vmatprep.subr.bf16.mxu0 %v2005_v0  ;;  %v2010_v5 = vld [vmem:[%s2638_s1 + $0xf0] sm:$0xff]   ;;  %v2014_v9 = vld [vmem:[%s2638_s1 + $0xe8] sm:$0xff]  }
   0x3   :  { %v2007_v2 = vld [vmem:[%s2638_s1 + $0x38] sm:$0xff]   ;;  %1813 = vmatprep.subr.bf16.mxu1 %v2006_v1  ;;  %v2011_v6 = vld [vmem:[%s2638_s1 + $0x30] sm:$0xff]   ;;  %v2015_v10 = vld [vmem:[%s2638_s1 + $0x28] sm:$0xff]  }
   0x4   :  { %v2008_v3 = vld [vmem:[%s2638_s1 + $0xb8] sm:$0xff]   ;;  %1750 = vmatpush3.bf16.msra.mxu0 %v2007_v2  ;;  %v2012_v7 = vld [vmem:[%s2638_s1 + $0xb0] sm:$0xff]   ;;  %v2016_v11 = vld [vmem:[%s2638_s1 + $0xa8] sm:$0xff]  }
   0x5   :  { %1814 = vmatpush3.bf16.msra.mxu1 %v2008_v3  ;;  %1751 = vmatprep.subr.bf16.mxu0 %v2009_v4  ;;  %v2017_v12 = vld [vmem:[%s2638_s1 + $0x60] sm:$0xff]   ;;  %v2021_v16 = vld [vmem:[%s2638_s1 + $0x58] sm:$0xff]   ;;  %v2025_v20 = vld [vmem:[%s2638_s1 + $0x50] sm:$0xff]  }
   0x6   :  { %1815 = vmatprep.subr.bf16.mxu1 %v2010_v5  ;;  %v2018_v13 = vld [vmem:[%s2638_s1 + $0xe0] sm:$0xff]   ;;  %v2022_v17 = vld [vmem:[%s2638_s1 + $0xd8] sm:$0xff]   ;;  %v2026_v21 = vld [vmem:[%s2638_s1 + $0xd0] sm:$0xff]  }
   0x7   :  { %v2019_v14 = vld [vmem:[%s2638_s1 + $0x20] sm:$0xff]   ;;  %v2023_v18 = vld [vmem:[%s2638_s1 + $0x18] sm:$0xff]   ;;  %v2027_v22 = vld [vmem:[%s2638_s1 + $0x10] sm:$0xff]  }
   0x8   :  { %1752 = vmatpush3.bf16.msra.mxu0 %v2011_v6  ;;  %v2020_v15 = vld [vmem:[%s2638_s1 + $0xa0] sm:$0xff]   ;;  %v2024_v19 = vld [vmem:[%s2638_s1 + $0x98] sm:$0xff]   ;;  %v2028_v23 = vld [vmem:[%s2638_s1 + $0x90] sm:$0xff]  }
   0x9   :  { %1816 = vmatpush3.bf16.msra.mxu1 %v2012_v7  ;;  %1753 = vmatprep.subr.bf16.mxu0 %v2013_v8  ;;  %v2029_v24 = vld [vmem:[%s2638_s1 + $0x48] sm:$0xff]   ;;  %v2033_v28 = vld [vmem:[%s2638_s1 + $0x40] sm:$0xff]   ;;  %v2037_v40 = vld [vmem:[%s2638_s1 + $0x178] sm:$0xff]  }
   0xa   :  { %1817 = vmatprep.subr.bf16.mxu1 %v2014_v9  ;;  %v2030_v25 = vld [vmem:[%s2638_s1 + $0xc8] sm:$0xff]   ;;  %v2034_v29 = vld [vmem:[%s2638_s1 + $0xc0] sm:$0xff]   ;;  %v2038_v41 = vld [vmem:[%s2638_s1 + $0x138] sm:$0xff]  }
   0xb   :  { %v2031_v26 = vld [vmem:[%s2638_s1 + $0x8] sm:$0xff]   ;;  %v2035_v30 = vld [vmem:[%s2638_s1] sm:$0xff]   ;;  %v2039_v42 = vld [vmem:[%s2638_s1 + $0x1f8] sm:$0xff]  }
   0xc   :  { %1754 = vmatpush3.bf16.msra.mxu0 %v2015_v10  ;;  %v2032_v27 = vld [vmem:[%s2638_s1 + $0x88] sm:$0xff]   ;;  %v2036_v31 = vld [vmem:[%s2638_s1 + $0x80] sm:$0xff]   ;;  %v2040_v43 = vld [vmem:[%s2638_s1 + $0x1b8] sm:$0xff]  }
   0xd   :  { %1818 = vmatpush3.bf16.msra.mxu1 %v2016_v11  ;;  %1755 = vmatprep.subr.bf16.mxu0 %v2017_v12  ;;  %v51_v32 = vld [vmem:[%s2639_s0] sm:$0xff]  ;;  %v52_v34 = vld [vmem:[%s2639_s0 + $0x8] sm:$0xff]  ;;  %v2041_v50 = vld [vmem:[%s2638_s1 + $0x170] sm:$0xff]  }
   0xe   :  { %1819 = vmatprep.subr.bf16.mxu1 %v2018_v13  ;;  %v55_v33 = vld [vmem:[%s2639_s0 + $0x20] sm:$0xff]  ;;  %v56_v37 = vld [vmem:[%s2639_s0 + $0x28] sm:$0xff]  ;;  %v2042_v52 = vld [vmem:[%s2638_s1 + $0x130] sm:$0xff]  }
   0xf   :  { %v1541_v35 = vcombine.low %v51_v32, %v55_v33  ;;  %v1542_v36 = vcombine.high %v51_v32, %v55_v33  ;;  %v1543_v38 = vcombine.low %v52_v34, %v56_v37  ;;  %v1544_v39 = vcombine.high %v52_v34, %v56_v37  ;;  %v59_v44 = vld [vmem:[%s2639_s0 + $0x40] sm:$0xff]  ;;  %v60_v47 = vld [vmem:[%s2639_s0 + $0x48] sm:$0xff]  ;;  %v2043_v54 = vld [vmem:[%s2638_s1 + $0x1f0] sm:$0xff]  }
  0x10   :  { %1756 = vmatpush3.bf16.msra.mxu0 %v2019_v14  ;;  %v63_v45 = vld [vmem:[%s2639_s0 + $0x60] sm:$0xff]  ;;  %v64_v48 = vld [vmem:[%s2639_s0 + $0x68] sm:$0xff]  ;;  %v2044_v55 = vld [vmem:[%s2638_s1 + $0x1b0] sm:$0xff]  }
  0x11   :  { %1820 = vmatpush3.bf16.msra.mxu1 %v2020_v15  ;;  %1757 = vmatprep.subr.bf16.mxu0 %v2021_v16  ;;  %v1550_v46 = vcombine.high %v59_v44, %v63_v45  ;;  %v1552_v49 = vcombine.high %v60_v47, %v64_v48  ;;  %v1549_v51 = vcombine.low %v59_v44, %v63_v45  ;;  %v67_v56 = vld [vmem:[%s2639_s0 + $0x80] sm:$0xff]  ;;  %v68_v58 = vld [vmem:[%s2639_s0 + $0x88] sm:$0xff]  ;;  %v2059_v32 = vld [vmem:[%s2638_s1 + $0x1d0] sm:$0xff]  }
  0x12   :  { %1821 = vmatprep.subr.bf16.mxu1 %v2022_v17  ;;  %979 = vmatprep.mubr.bf16.mxu0 %v1542_v36  ;;  %v1551_v53 = vcombine.low %v60_v47, %v64_v48  ;;  %v71_v57 = vld [vmem:[%s2639_s0 + $0xa0] sm:$0xff]  ;;  %v72_v59 = vld [vmem:[%s2639_s0 + $0xa8] sm:$0xff]  ;;  %v2060_v33 = vld [vmem:[%s2638_s1 + $0x190] sm:$0xff]  }
  0x13   :  { %1076 = vmatprep.mubr.bf16.mxu1 %v1544_v39  ;;  %v1558_v60 = vcombine.high %v67_v56, %v71_v57  ;;  %v1560_v61 = vcombine.high %v68_v58, %v72_v59  ;;  %v2045_v62 = vld [vmem:[%s2638_s1 + $0x168] sm:$0xff]   ;;  %v1557_v2 = vcombine.low %v67_v56, %v71_v57  ;;  %v75_v3 = vld [vmem:[%s2639_s0 + $0xc0] sm:$0xff]  ;;  %v1559_v6 = vcombine.low %v68_v58, %v72_v59 }
  0x14   :  { %1758 = vmatpush3.bf16.msra.mxu0 %v2023_v18  ;;  %v2046_v63 = vld [vmem:[%s2638_s1 + $0x128] sm:$0xff]   ;;  %v79_v4 = vld [vmem:[%s2639_s0 + $0xe0] sm:$0xff]  ;;  %v2053_v18 = vld [vmem:[%s2638_s1 + $0x158] sm:$0xff]  }
  0x15   :  { %1822 = vmatpush3.bf16.msra.mxu1 %v2024_v19  ;;  %1759 = vmatprep.subr.bf16.mxu0 %v2025_v20  ;;  %v2047_v0 = vld [vmem:[%s2638_s1 + $0x1e8] sm:$0xff]   ;;  %v1566_v7 = vcombine.high %v75_v3, %v79_v4  ;;  %v2049_v10 = vld [vmem:[%s2638_s1 + $0x160] sm:$0xff]   ;;  %v1565_v19 = vcombine.low %v75_v3, %v79_v4  ;;  %v2054_v20 = vld [vmem:[%s2638_s1 + $0x118] sm:$0xff]  }
  0x16   :  { %1823 = vmatprep.subr.bf16.mxu1 %v2026_v21  ;;  %v2048_v1 = vld [vmem:[%s2638_s1 + $0x1a8] sm:$0xff]   ;;  %v2050_v11 = vld [vmem:[%s2638_s1 + $0x120] sm:$0xff]  }
  0x17   :  { %v76_v5 = vld [vmem:[%s2639_s0 + $0xc8] sm:$0xff]  ;;  %v2051_v12 = vld [vmem:[%s2638_s1 + $0x1e0] sm:$0xff]  }
  0x18   :  { %1760 = vmatpush3.bf16.msra.mxu0 %v2027_v22  ;;  %v80_v8 = vld [vmem:[%s2639_s0 + $0xe8] sm:$0xff]  ;;  %v2052_v13 = vld [vmem:[%s2638_s1 + $0x1a0] sm:$0xff]  }
  0x19   :  { %1824 = vmatpush3.bf16.msra.mxu1 %v2028_v23  ;;  %1761 = vmatprep.subr.bf16.mxu0 %v2029_v24  ;;  %v1568_v9 = vcombine.high %v76_v5, %v80_v8  ;;  %v83_v14 = vld [vmem:[%s2639_s0 + $0x100] sm:$0xff]  ;;  %v84_v16 = vld [vmem:[%s2639_s0 + $0x108] sm:$0xff]  ;;  %v1567_v21 = vcombine.low %v76_v5, %v80_v8  ;;  %v2055_v23 = vld [vmem:[%s2638_s1 + $0x1d8] sm:$0xff]  }
  0x1a   :  { %1825 = vmatprep.subr.bf16.mxu1 %v2030_v25  ;;  %v87_v15 = vld [vmem:[%s2639_s0 + $0x120] sm:$0xff]  ;;  %v88_v17 = vld [vmem:[%s2639_s0 + $0x128] sm:$0xff]  ;;  %v2056_v25 = vld [vmem:[%s2638_s1 + $0x198] sm:$0xff]  }
  0x1b   :  { %v1574_v22 = vcombine.high %v83_v14, %v87_v15  ;;  %v1576_v24 = vcombine.high %v84_v16, %v88_v17  ;;  %v1573_v34 = vcombine.low %v83_v14, %v87_v15  ;;  %v2062_v39 = vld [vmem:[%s2638_s1 + $0x108] sm:$0xff]   ;;  %v2066_v48 = vld [vmem:[%s2638_s1 + $0x100] sm:$0xff]   ;;  %v62_v8 = vld [vmem:[%s2639_s0 + $0x58] sm:$0xff] }
  0x1c   :  { %1762 = vmatpush3.bf16.msra.mxu0 %v2031_v26  ;;  %v91_v26 = vld [vmem:[%s2639_s0 + $0x140] sm:$0xff]  ;;  %v100_v44 = vld [vmem:[%s2639_s0 + $0x188] sm:$0xff]  ;;  %v69_v14 = vld [vmem:[%s2639_s0 + $0x90] sm:$0xff] }
  0x1d   :  { %1826 = vmatpush3.bf16.msra.mxu1 %v2032_v27  ;;  %1763 = vmatprep.subr.bf16.mxu0 %v2033_v28  ;;  %v95_v27 = vld [vmem:[%s2639_s0 + $0x160] sm:$0xff]  ;;  %v2057_v28 = vld [vmem:[%s2638_s1 + $0x150] sm:$0xff]   ;;  %v104_v45 = vld [vmem:[%s2639_s0 + $0x1a8] sm:$0xff] }
  0x1e   :  { %1827 = vmatprep.subr.bf16.mxu1 %v2034_v29  ;;  %v92_v29 = vld [vmem:[%s2639_s0 + $0x148] sm:$0xff]  ;;  %v1582_v36 = vcombine.high %v91_v26, %v95_v27  ;;  %v1581_v47 = vcombine.low %v91_v26, %v95_v27  ;;  %v1591_v59 = vcombine.low %v100_v44, %v104_v45  ;;  %v73_v15 = vld [vmem:[%s2639_s0 + $0xb0] sm:$0xff] }
  0x1f   :  { %v108_v56 = vld [vmem:[%s2639_s0 + $0x1c8] sm:$0xff]  ;;  %v1561_v26 = vcombine.low %v69_v14, %v73_v15 }
  0x20   :  { %1764 = vmatpush3.bf16.msra.mxu0 %v2035_v30  ;;  %v96_v30 = vld [vmem:[%s2639_s0 + $0x168] sm:$0xff] }
  0x21   :  { %1828 = vmatpush3.bf16.msra.mxu1 %v2036_v31  ;;  %1877 = vmatprep.subr.bf16.mxu0 %v2037_v40  ;;  %v2058_v31 = vld [vmem:[%s2638_s1 + $0x110] sm:$0xff]   ;;  %v1584_v37 = vcombine.high %v92_v29, %v96_v30  ;;  %v2063_v40 = vld [vmem:[%s2638_s1 + $0x1c8] sm:$0xff]  }
  0x22   :  { %1941 = vmatprep.subr.bf16.mxu1 %v2039_v42  ;;  %v103_v42 = vld [vmem:[%s2639_s0 + $0x1a0] sm:$0xff]  ;;  %v112_v57 = vld [vmem:[%s2639_s0 + $0x1e8] sm:$0xff] }
  0x23   :  { %980 = vmatmul.mubr.bf16.vlgmr.msra.gmra.mxu0 %v1541_v35  ;;  %v1575_v35 = vcombine.low %v84_v16, %v88_v17  ;;  %v1599_v3 = vcombine.low %v108_v56, %v112_v57  ;;  %v70_v16 = vld [vmem:[%s2639_s0 + $0x98] sm:$0xff] }
  0x24   :  { %1077 = vmatmul.mubr.bf16.vlgmr.msra.gmra.mxu1 %v1543_v38  ;;  %1878 = vmatpush3.bf16.msra.mxu0 %v2038_v41  ;;  %v2061_v38 = vld [vmem:[%s2638_s1 + $0x148] sm:$0xff]   ;;  %v99_v41 = vld [vmem:[%s2639_s0 + $0x180] sm:$0xff]  ;;  %v74_v17 = vld [vmem:[%s2639_s0 + $0xb8] sm:$0xff] }
  0x25   :  { %1942 = vmatpush3.bf16.msra.mxu1 %v2040_v43  ;;  %987 = vmatprep.mubr.bf16.mxu0 %v1550_v46  ;;  %v2064_v43 = vld [vmem:[%s2638_s1 + $0x188] sm:$0xff]   ;;  %v2065_v46 = vld [vmem:[%s2638_s1 + $0x140] sm:$0xff]   ;;  %v1589_v58 = vcombine.low %v99_v41, %v103_v42  ;;  %v1563_v27 = vcombine.low %v70_v16, %v74_v17 }
  0x26   :  { %1084 = vmatprep.mubr.bf16.mxu1 %v1552_v49  ;;  %1879 = vmatprep.subr.bf16.mxu0 %v2041_v50  ;;  %v1583_v49 = vcombine.low %v92_v29, %v96_v30  ;;  %v1590_v50 = vcombine.high %v99_v41, %v103_v42  ;;  %v85_v30 = vld [vmem:[%s2639_s0 + $0x110] sm:$0xff]  ;;  %v98_v41 = vld [vmem:[%s2639_s0 + $0x178] sm:$0xff] }
  0x27   :  { %1943 = vmatprep.subr.bf16.mxu1 %v2043_v54  ;;  %v107_v54 = vld [vmem:[%s2639_s0 + $0x1c0] sm:$0xff] }
  0x28   :  { %1880 = vmatpush3.bf16.msra.mxu0 %v2042_v52  ;;  %v1592_v52 = vcombine.high %v100_v44, %v104_v45 }
  0x29   :  { %1944 = vmatpush3.bf16.msra.mxu1 %v2044_v55  ;;  %1881 = vmatprep.subr.bf16.mxu0 %v2045_v62  ;;  %v111_v55 = vld [vmem:[%s2639_s0 + $0x1e0] sm:$0xff]  ;;  %v53_v62 = vld [vmem:[%s2639_s0 + $0x10] sm:$0xff] }
  0x2a   :  { %1945 = vmatprep.subr.bf16.mxu1 %v2047_v0  ;;  %v54_v0 = vld [vmem:[%s2639_s0 + $0x18] sm:$0xff] }
  0x2b   :  { %988 = vmatmul.mubr.bf16.gmra.mxu0 %v1549_v51  ;;  %v2067_v51 = vld [vmem:[%s2638_s1 + $0x1c0] sm:$0xff]  }
  0x2c   :  { %1085 = vmatmul.mubr.bf16.gmra.mxu1 %v1551_v53  ;;  %995 = vmatprep.mubr.bf16.mxu0 %v1558_v60  ;;  %v2068_v53 = vld [vmem:[%s2638_s1 + $0x180] sm:$0xff]   ;;  %v1598_v60 = vcombine.high %v107_v54, %v111_v55 }
  0x2d   :  { %1092 = vmatprep.mubr.bf16.mxu1 %v1560_v61  ;;  %1882 = vmatpush3.bf16.msra.mxu0 %v2046_v63  ;;  %v1600_v61 = vcombine.high %v108_v56, %v112_v57  ;;  %v57_v63 = vld [vmem:[%s2639_s0 + $0x30] sm:$0xff]  ;;  %v110_v56 = vld [vmem:[%s2639_s0 + $0x1d8] sm:$0xff] }
  0x2e   :  { %1946 = vmatpush3.bf16.msra.mxu1 %v2048_v1  ;;  %1883 = vmatprep.subr.bf16.mxu0 %v2049_v10  ;;  %v58_v1 = vld [vmem:[%s2639_s0 + $0x38] sm:$0xff]  ;;  %v1546_v4 = vcombine.high %v53_v62, %v57_v63  ;;  %v1545_v10 = vcombine.low %v53_v62, %v57_v63 }
  0x2f   :  { %1947 = vmatprep.subr.bf16.mxu1 %v2051_v12  ;;  %v1548_v5 = vcombine.high %v54_v0, %v58_v1  ;;  %v114_v57 = vld [vmem:[%s2639_s0 + $0x1f8] sm:$0xff] }
  0x30   :  { %v1603_v63 = vcombine.low %v110_v56, %v114_v57 }
  0x31   :  { %1884 = vmatpush3.bf16.msra.mxu0 %v2050_v11  ;;  %v1547_v11 = vcombine.low %v54_v0, %v58_v1 }
  0x32   :  { %1948 = vmatpush3.bf16.msra.mxu1 %v2052_v13  ;;  %1885 = vmatprep.subr.bf16.mxu0 %v2053_v18 }
  0x33   :  { %996 = vmatmul.mubr.bf16.gmra.mxu0 %v1557_v2  ;;  %1949 = vmatprep.subr.bf16.mxu1 %v2055_v23  ;;  %v1597_v2 = vcombine.low %v107_v54, %v111_v55  ;;  %v81_v23 = vld [vmem:[%s2639_s0 + $0xf0] sm:$0xff] }
  0x34   :  { %1093 = vmatmul.mubr.bf16.gmra.mxu1 %v1559_v6  ;;  %1003 = vmatprep.mubr.bf16.mxu0 %v1566_v7  ;;  %v61_v6 = vld [vmem:[%s2639_s0 + $0x50] sm:$0xff] }
  0x35   :  { %1100 = vmatprep.mubr.bf16.mxu1 %v1568_v9  ;;  %1886 = vmatpush3.bf16.msra.mxu0 %v2054_v20  ;;  %v65_v7 = vld [vmem:[%s2639_s0 + $0x70] sm:$0xff]  ;;  %v66_v9 = vld [vmem:[%s2639_s0 + $0x78] sm:$0xff]  ;;  %v1562_v20 = vcombine.high %v69_v14, %v73_v15 }
  0x36   :  { %1950 = vmatpush3.bf16.msra.mxu1 %v2056_v25  ;;  %1887 = vmatprep.subr.bf16.mxu0 %v2057_v28  ;;  %v1554_v12 = vcombine.high %v61_v6, %v65_v7  ;;  %v1556_v13 = vcombine.high %v62_v8, %v66_v9  ;;  %v1553_v18 = vcombine.low %v61_v6, %v65_v7  ;;  %v82_v25 = vld [vmem:[%s2639_s0 + $0xf8] sm:$0xff]  ;;  %v109_v54 = vld [vmem:[%s2639_s0 + $0x1d0] sm:$0xff] }
  0x37   :  { %1951 = vmatprep.subr.bf16.mxu1 %v2059_v32  ;;  %v86_v32 = vld [vmem:[%s2639_s0 + $0x118] sm:$0xff]  ;;  %v113_v55 = vld [vmem:[%s2639_s0 + $0x1f0] sm:$0xff] }
  0x38   :  { %v1601_v62 = vcombine.low %v109_v54, %v113_v55 }
  0x39   :  { %1888 = vmatpush3.bf16.msra.mxu0 %v2058_v31  ;;  %v89_v31 = vld [vmem:[%s2639_s0 + $0x130] sm:$0xff] }
  0x3a   :  { %1952 = vmatpush3.bf16.msra.mxu1 %v2060_v33  ;;  %1889 = vmatprep.subr.bf16.mxu0 %v2061_v38  ;;  %v90_v33 = vld [vmem:[%s2639_s0 + $0x138] sm:$0xff]  ;;  %v93_v38 = vld [vmem:[%s2639_s0 + $0x150] sm:$0xff]  ;;  %v1577_v42 = vcombine.low %v85_v30, %v89_v31 }
  0x3b   :  { %1004 = vmatmul.mubr.bf16.gmra.mxu0 %v1565_v19  ;;  %1953 = vmatprep.subr.bf16.mxu1 %v2063_v40  ;;  %v1555_v19 = vcombine.low %v62_v8, %v66_v9  ;;  %v94_v40 = vld [vmem:[%s2639_s0 + $0x158] sm:$0xff] }
  0x3c   :  { %1101 = vmatmul.mubr.bf16.gmra.mxu1 %v1567_v21  ;;  %1011 = vmatprep.mubr.bf16.mxu0 %v1574_v22  ;;  %v1564_v21 = vcombine.high %v70_v16, %v74_v17  ;;  %v77_v22 = vld [vmem:[%s2639_s0 + $0xd0] sm:$0xff]  ;;  %v1588_v45 = vcombine.high %v94_v40, %v98_v41 }
  0x3d   :  { %1108 = vmatprep.mubr.bf16.mxu1 %v1576_v24  ;;  %1890 = vmatpush3.bf16.msra.mxu0 %v2062_v39  ;;  %v78_v24 = vld [vmem:[%s2639_s0 + $0xd8] sm:$0xff]  ;;  %v1570_v28 = vcombine.high %v77_v22, %v81_v23  ;;  %v97_v39 = vld [vmem:[%s2639_s0 + $0x170] sm:$0xff] }
  0x3e   :  { %1954 = vmatpush3.bf16.msra.mxu1 %v2064_v43  ;;  %1891 = vmatprep.subr.bf16.mxu0 %v2065_v46  ;;  %v1572_v29 = vcombine.high %v78_v24, %v82_v25  ;;  %v1579_v43 = vcombine.low %v86_v32, %v90_v33  ;;  %v1586_v44 = vcombine.high %v93_v38, %v97_v39  ;;  %v101_v46 = vld [vmem:[%s2639_s0 + $0x190] sm:$0xff] }
  0x3f   :  { %1955 = vmatprep.subr.bf16.mxu1 %v2067_v51  ;;  %v1587_v51 = vcombine.low %v94_v40, %v98_v41 }
  0x41   :  { %1892 = vmatpush3.bf16.msra.mxu0 %v2066_v48  ;;  %v102_v48 = vld [vmem:[%s2639_s0 + $0x198] sm:$0xff] }
  0x42   :  { %1956 = vmatpush3.bf16.msra.mxu1 %v2068_v53 }
  0x43   :  { %1012 = vmatmul.mubr.bf16.gmra.mxu0 %v1573_v34  ;;  %v1569_v34 = vcombine.low %v77_v22, %v81_v23 }
  0x44   :  { %1109 = vmatmul.mubr.bf16.gmra.mxu1 %v1575_v35  ;;  %1019 = vmatprep.mubr.bf16.mxu0 %v1582_v36  ;;  %v1571_v35 = vcombine.low %v78_v24, %v82_v25  ;;  %v1578_v36 = vcombine.high %v85_v30, %v89_v31 }
  0x45   :  { %1116 = vmatprep.mubr.bf16.mxu1 %v1584_v37  ;;  %v1580_v37 = vcombine.high %v86_v32, %v90_v33 }
  0x4b   :  { %1020 = vmatmul.mubr.bf16.gmra.mxu0 %v1581_v47  ;;  %v105_v47 = vld [vmem:[%s2639_s0 + $0x1b0] sm:$0xff] }
  0x4c   :  { %1117 = vmatmul.mubr.bf16.gmra.mxu1 %v1583_v49  ;;  %1027 = vmatprep.mubr.bf16.mxu0 %v1590_v50  ;;  %v106_v49 = vld [vmem:[%s2639_s0 + $0x1b8] sm:$0xff]  ;;  %v1585_v50 = vcombine.low %v93_v38, %v97_v39 }
  0x4d   :  { %1124 = vmatprep.mubr.bf16.mxu1 %v1592_v52  ;;  %v1594_v52 = vcombine.high %v101_v46, %v105_v47  ;;  %v1596_v53 = vcombine.high %v102_v48, %v106_v49 }
  0x53   :  { %1028 = vmatmul.mubr.bf16.gmra.mxu0 %v1589_v58  ;;  %v1593_v58 = vcombine.low %v101_v46, %v105_v47 }
  0x54   :  { %1125 = vmatmul.mubr.bf16.gmra.mxu1 %v1591_v59  ;;  %1035 = vmatprep.mubr.bf16.mxu0 %v1598_v60  ;;  %v1595_v59 = vcombine.low %v102_v48, %v106_v49  ;;  %v1602_v60 = vcombine.high %v109_v54, %v113_v55 }
  0x55   :  { %1132 = vmatprep.mubr.bf16.mxu1 %v1600_v61  ;;  %v1604_v61 = vcombine.high %v110_v56, %v114_v57 }
  0x5b   :  { %1036 = vmatmul.mubr.bf16.gmra.mxu0 %v1597_v2 }
  0x5c   :  { %1133 = vmatmul.mubr.bf16.gmra.mxu1 %v1599_v3  ;;  %1173 = vmatprep.mubr.bf16.mxu0 %v1546_v4 }
  0x5d   :  { %1270 = vmatprep.mubr.bf16.mxu1 %v1548_v5 }
  0x63   :  { %1174 = vmatmul.mubr.bf16.vlgmr.msra.gmra.mxu0 %v1545_v10 }
  0x64   :  { %1271 = vmatmul.mubr.bf16.vlgmr.msra.gmra.mxu1 %v1547_v11  ;;  %1181 = vmatprep.mubr.bf16.mxu0 %v1554_v12 }
  0x65   :  { %1278 = vmatprep.mubr.bf16.mxu1 %v1556_v13 }
  0x6b   :  { %1182 = vmatmul.mubr.bf16.gmra.mxu0 %v1553_v18 }
  0x6c   :  { %1279 = vmatmul.mubr.bf16.gmra.mxu1 %v1555_v19  ;;  %1189 = vmatprep.mubr.bf16.mxu0 %v1562_v20 }
  0x6d   :  { %1286 = vmatprep.mubr.bf16.mxu1 %v1564_v21 }
  0x73   :  { %1190 = vmatmul.mubr.bf16.gmra.mxu0 %v1561_v26 }
  0x74   :  { %1287 = vmatmul.mubr.bf16.gmra.mxu1 %v1563_v27  ;;  %1197 = vmatprep.mubr.bf16.mxu0 %v1570_v28 }
  0x75   :  { %1294 = vmatprep.mubr.bf16.mxu1 %v1572_v29 }
  0x7b   :  { %1198 = vmatmul.mubr.bf16.gmra.mxu0 %v1569_v34 }
  0x7c   :  { %1295 = vmatmul.mubr.bf16.gmra.mxu1 %v1571_v35  ;;  %1205 = vmatprep.mubr.bf16.mxu0 %v1578_v36 }
  0x7d   :  { %1302 = vmatprep.mubr.bf16.mxu1 %v1580_v37 }
  0x83   :  { %1206 = vmatmul.mubr.bf16.gmra.mxu0 %v1577_v42 }
  0x84   :  { %1303 = vmatmul.mubr.bf16.gmra.mxu1 %v1579_v43  ;;  %1213 = vmatprep.mubr.bf16.mxu0 %v1586_v44 }
  0x85   :  { %1310 = vmatprep.mubr.bf16.mxu1 %v1588_v45 }
  0x8b   :  { %1214 = vmatmul.mubr.bf16.gmra.mxu0 %v1585_v50 }
  0x8c   :  { %1311 = vmatmul.mubr.bf16.gmra.mxu1 %v1587_v51  ;;  %1221 = vmatprep.mubr.bf16.mxu0 %v1594_v52 }
  0x8d   :  { %1318 = vmatprep.mubr.bf16.mxu1 %v1596_v53 }
  0x93   :  { %1222 = vmatmul.mubr.bf16.gmra.mxu0 %v1593_v58 }
  0x94   :  { %1319 = vmatmul.mubr.bf16.gmra.mxu1 %v1595_v59  ;;  %1229 = vmatprep.mubr.bf16.mxu0 %v1602_v60 }
  0x95   :  { %1326 = vmatprep.mubr.bf16.mxu1 %v1604_v61 }
  0x9b   :  { %1230 = vmatmul.mubr.bf16.gmra.mxu0 %v1601_v62 }
  0x9c   :  { %1327 = vmatmul.mubr.bf16.gmra.mxu1 %v1603_v63 }
  0xe3   :  { %v1765_v0 = vpop.f32.mrf.mxu0 }
  0xe4   :  { %v1829_v1 = vpop.f32.mrf.mxu1 }
  0xe5   :  { %v1766_v2 = vpop.f32.mrf.mxu0 }
  0xe6   :  { %v1767_v3 = vadd.f32 %v1766_v2, %v1765_v0  ;;  %v1830_v4 = vpop.f32.mrf.mxu1 }
  0xe7   :  { %v1831_v5 = vadd.f32 %v1830_v4, %v1829_v1  ;;  %v2473_v6 = vpop.f32.mrf.mxu0 }
  0xe8   :  { %v2475_v7 = vpop.f32.mrf.mxu1 }
  0xe9   :  { %v2477_v8 = vadd.f32 %v1831_v5, %v1767_v3  ;;  %v2479_v9 = vpop.f32.mrf.mxu0 }
  0xea   :  { %v2481_v10 = vpop.f32.mrf.mxu1 }
  0xeb   :  { %v1771_v11 = vpop.f32.mrf.mxu0 }
  0xec   :  { %v1835_v12 = vpop.f32.mrf.mxu1 }
  0xed   :  { %v1772_v13 = vpop.f32.mrf.mxu0 }
  0xee   :  { %v1773_v14 = vadd.f32 %v1772_v13, %v1771_v11  ;;  %v1836_v15 = vpop.f32.mrf.mxu1 }
  0xef   :  { %v1837_v16 = vadd.f32 %v1836_v15, %v1835_v12  ;;  %v2483_v17 = vpop.f32.mrf.mxu0 }
  0xf0   :  { %v2485_v18 = vpop.f32.mrf.mxu1 }
  0xf1   :  { %v2487_v19 = vadd.f32 %v1837_v16, %v1773_v14  ;;  %v2489_v20 = vpop.f32.mrf.mxu0 }
  0xf2   :  { %v2491_v21 = vpop.f32.mrf.mxu1 }
  0xf3   :  { %v1777_v22 = vpop.f32.mrf.mxu0 }
  0xf4   :  { %v1841_v23 = vpop.f32.mrf.mxu1 }
  0xf5   :  { %v1778_v24 = vpop.f32.mrf.mxu0 }
  0xf6   :  { %v1779_v25 = vadd.f32 %v1778_v24, %v1777_v22  ;;  %v1842_v26 = vpop.f32.mrf.mxu1 }
  0xf7   :  { %v1843_v27 = vadd.f32 %v1842_v26, %v1841_v23  ;;  %v2493_v28 = vpop.f32.mrf.mxu0 }
  0xf8   :  { %v2495_v29 = vpop.f32.mrf.mxu1 }
  0xf9   :  { %v2497_v30 = vadd.f32 %v1843_v27, %v1779_v25  ;;  %v2499_v31 = vpop.f32.mrf.mxu0 }
  0xfa   :  { %v2501_v32 = vpop.f32.mrf.mxu1 }
  0xfb   :  { %v1783_v33 = vpop.f32.mrf.mxu0 }
  0xfc   :  { %v1847_v34 = vpop.f32.mrf.mxu1 }
  0xfd   :  { %v1784_v35 = vpop.f32.mrf.mxu0 }
  0xfe   :  { %v1785_v36 = vadd.f32 %v1784_v35, %v1783_v33  ;;  %v1848_v37 = vpop.f32.mrf.mxu1 }
  0xff   :  { %v1849_v38 = vadd.f32 %v1848_v37, %v1847_v34  ;;  %v2503_v39 = vpop.f32.mrf.mxu0 }
 0x100   :  { %v2505_v40 = vpop.f32.mrf.mxu1 }
 0x101   :  { %v2507_v41 = vadd.f32 %v1849_v38, %v1785_v36  ;;  %v2509_v42 = vpop.f32.mrf.mxu0 }
 0x102   :  { %v2511_v43 = vpop.f32.mrf.mxu1 }
 0x103   :  { %v1789_v44 = vpop.f32.mrf.mxu0 }
 0x104   :  { %v1853_v45 = vpop.f32.mrf.mxu1 }
 0x105   :  { %v1790_v46 = vpop.f32.mrf.mxu0 }
 0x106   :  { %v1791_v47 = vadd.f32 %v1790_v46, %v1789_v44  ;;  %v1854_v48 = vpop.f32.mrf.mxu1 }
 0x107   :  { %v1855_v49 = vadd.f32 %v1854_v48, %v1853_v45  ;;  %v2513_v50 = vpop.f32.mrf.mxu0  ;;  %v1834_v48 = vadd.f32 %v2481_v10, %v2475_v7 }
 0x108   :  { %v2515_v51 = vpop.f32.mrf.mxu1 }
 0x109   :  { %v2517_v52 = vadd.f32 %v1855_v49, %v1791_v47  ;;  %v2519_v53 = vpop.f32.mrf.mxu0  ;;  %v1770_v47 = vadd.f32 %v2479_v9, %v2473_v6 }
 0x10a   :  { %v2521_v54 = vpop.f32.mrf.mxu1 }
 0x10b   :  { %v1795_v55 = vpop.f32.mrf.mxu0 }
 0x10c   :  { %v1859_v56 = vpop.f32.mrf.mxu1 }
 0x10d   :  { %v1796_v57 = vpop.f32.mrf.mxu0 }
 0x10e   :  { %v1797_v58 = vadd.f32 %v1796_v57, %v1795_v55  ;;  %v1860_v59 = vpop.f32.mrf.mxu1 }
 0x10f   :  { %v1861_v60 = vadd.f32 %v1860_v59, %v1859_v56  ;;  %v2523_v61 = vpop.f32.mrf.mxu0 }
 0x110   :  { %v2525_v62 = vpop.f32.mrf.mxu1 }
 0x111   :  { %v2527_v63 = vadd.f32 %v1861_v60, %v1797_v58  ;;  %v2529_v0 = vpop.f32.mrf.mxu0  ;;  %v2561_v60 = vld [vmem:[%s2640_s2] ss:$0 sm:$0xff] }
 0x112   :  { %v2531_v1 = vpop.f32.mrf.mxu1 }
 0x113   :  { %v1801_v2 = vpop.f32.mrf.mxu0 }
 0x114   :  { %v1865_v3 = vpop.f32.mrf.mxu1 }
 0x115   :  { %v1802_v4 = vpop.f32.mrf.mxu0 }
 0x116   :  { %v1803_v5 = vadd.f32 %v1802_v4, %v1801_v2  ;;  %v1866_v11 = vpop.f32.mrf.mxu1 }
 0x117   :  { %v1867_v12 = vadd.f32 %v1866_v11, %v1865_v3  ;;  %v2533_v13 = vpop.f32.mrf.mxu0  ;;  %v1082_v3 = vadd.f32 %v1834_v48, %v1770_v47 }
 0x118   :  { %v2535_v14 = vpop.f32.mrf.mxu1 }
 0x119   :  { %v2537_v15 = vadd.f32 %v1867_v12, %v1803_v5  ;;  %v2539_v16 = vpop.f32.mrf.mxu0 }
 0x11a   :  { %v2541_v22 = vpop.f32.mrf.mxu1 }
 0x11b   :  { %v1807_v23 = vpop.f32.mrf.mxu0 }
 0x11c   :  { %v1871_v24 = vpop.f32.mrf.mxu1 }
 0x11d   :  { %v1808_v25 = vpop.f32.mrf.mxu0 }
 0x11e   :  { %v1809_v26 = vadd.f32 %v1808_v25, %v1807_v23  ;;  %v1872_v27 = vpop.f32.mrf.mxu1  ;;  %v1840_v23 = vadd.f32 %v2491_v21, %v2485_v18 }
 0x11f   :  { %v1873_v33 = vadd.f32 %v1872_v27, %v1871_v24  ;;  %v2543_v34 = vpop.f32.mrf.mxu0 }
 0x120   :  { %v2545_v35 = vpop.f32.mrf.mxu1 }
 0x121   :  { %v2547_v36 = vadd.f32 %v1873_v33, %v1809_v26  ;;  %v2549_v37 = vpop.f32.mrf.mxu0 }
 0x122   :  { %v2551_v38 = vpop.f32.mrf.mxu1 }
 0x123   :  { %v1893_v44 = vpop.f32.mrf.mxu0 }
 0x124   :  { %v1957_v45 = vpop.f32.mrf.mxu1 }
 0x125   :  { %v1894_v46 = vpop.f32.mrf.mxu0 }
 0x126   :  { %v1895_v49 = vadd.f32 %v1894_v46, %v1893_v44  ;;  %v1958_v55 = vpop.f32.mrf.mxu1 }
 0x127   :  { %v1896_v56 = vpop.f32.mrf.mxu0  ;;  %v1959_v58 = vadd.f32 %v1958_v55, %v1957_v45 }
 0x128   :  { %v1176_v57 = vadd.f32 %v1895_v49, %v2477_v8  ;;  %v1960_v59 = vpop.f32.mrf.mxu1  ;;  %v1776_v8 = vadd.f32 %v2489_v20, %v2483_v17 }
 0x129   :  { %v1897_v2 = vpop.f32.mrf.mxu0 }
 0x12a   :  { %v1273_v4 = vadd.f32 %v1959_v58, %v1176_v57  ;;  %v1898_v5 = vadd.f32 %v1897_v2, %v1896_v56  ;;  %v1961_v6 = vpop.f32.mrf.mxu1  ;;  %v1090_v49 = vadd.f32 %v1840_v23, %v1776_v8 }
 0x12b   :  { %v1899_v9 = vpop.f32.mrf.mxu0  ;;  %v1962_v11 = vadd.f32 %v1961_v6, %v1960_v59 }
 0x12c   :  { %v1393_v7 = vadd.f32 %v2561_v60, %v1273_v4  ;;  %v1179_v10 = vadd.f32 %v1898_v5, %v1082_v3  ;;  %v1963_v12 = vpop.f32.mrf.mxu1  ;;  %v1846_v5 = vadd.f32 %v2501_v32, %v2495_v29 }
 0x12d   :  { %v1900_v24 = vpop.f32.mrf.mxu0 }
 0x12e   :  { %v1276_v25 = vadd.f32 %v1962_v11, %v1179_v10  ;;  %v1901_v26 = vadd.f32 %v1900_v24, %v1899_v9  ;;  %v1964_v27 = vpop.f32.mrf.mxu1  ;;  %v1425_v33 = vmul.f32 0.2, %v1393_v7  ;;  %vm1409_vm0 = vcmp.ge.f32.partialorder %v1393_v7, 0.0 }
 0x12f   :  { %v1902_v44 = vpop.f32.mrf.mxu0  ;;  %v1965_v47 = vadd.f32 %v1964_v27, %v1963_v12 }
 0x130   :  { %v1394_v45 = vadd.f32 %v2561_v60, %v1276_v25  ;;  %v1184_v46 = vadd.f32 %v1901_v26, %v2487_v19  ;;  %v1966_v48 = vpop.f32.mrf.mxu1  ;;  %v1441_v21 = vsel %vm1409_vm0, %v1393_v7, %v1425_v33  ;;  %v1782_v19 = vadd.f32 %v2499_v31, %v2493_v28 }
 0x131   :  { %v1903_v55 = vpop.f32.mrf.mxu0 }
 0x132   :  { %vm1410_vm1 = vcmp.ge.f32.partialorder %v1394_v45, 0.0  ;;  %v1426_v17 = vmul.f32 0.2, %v1394_v45  ;;  %v1281_v20 = vadd.f32 %v1965_v47, %v1184_v46  ;;  %v1904_v56 = vadd.f32 %v1903_v55, %v1902_v44  ;;  %v1967_v18 = vpop.f32.mrf.mxu1 }
 0x133   :  { %v1905_v57 = vpop.f32.mrf.mxu0  ;;  %v1968_v3 = vadd.f32 %v1967_v18, %v1966_v48  ;;  %v1098_v25 = vadd.f32 %v1846_v5, %v1782_v19 }
 0x134   :  { %v1442_v58 = vsel %vm1410_vm1, %v1394_v45, %v1426_v17  ;;  %v1395_v59 = vadd.f32 %v2561_v60, %v1281_v20  ;;  %v1187_v2 = vadd.f32 %v1904_v56, %v1090_v49  ;;  %v1969_v4 = vpop.f32.mrf.mxu1  ;;  %v1852_v17 = vadd.f32 %v2511_v43, %v2505_v40 }
 0x135   :  { %v1705_v6 = vpack.c.bf16 %v1442_v58, %v1441_v21  ;;  %v1906_v9 = vpop.f32.mrf.mxu0 }
 0x136   :  { %v1284_v10 = vadd.f32 %v1968_v3, %v1187_v2  ;;  %v1907_v11 = vadd.f32 %v1906_v9, %v1905_v57  ;;  %v1970_v12 = vpop.f32.mrf.mxu1  ;;  %v1427_v7 = vmul.f32 0.2, %v1395_v59  ;;  %vm1411_vm2 = vcmp.ge.f32.partialorder %v1395_v59, 0.0 }
 0x137   :  { %1706 = vst [vmem:[%s2641_s3] sm:$0xff] %v1705_v6   ;;  %v1908_v8 = vpop.f32.mrf.mxu0  ;;  %v1971_v28 = vadd.f32 %v1970_v12, %v1969_v4 }
 0x138   :  { %v1396_v23 = vadd.f32 %v2561_v60, %v1284_v10  ;;  %v1192_v24 = vadd.f32 %v1907_v11, %v2497_v30  ;;  %v1972_v31 = vpop.f32.mrf.mxu1  ;;  %v1443_v44 = vsel %vm1411_vm2, %v1395_v59, %v1427_v7  ;;  %v1788_v30 = vadd.f32 %v2509_v42, %v2503_v39 }
 0x139   :  { %v1909_v29 = vpop.f32.mrf.mxu0 }
 0x13a   :  { %vm1412_vm3 = vcmp.ge.f32.partialorder %v1396_v23, 0.0  ;;  %v1428_v32 = vmul.f32 0.2, %v1396_v23  ;;  %v1289_v26 = vadd.f32 %v1971_v28, %v1192_v24  ;;  %v1910_v27 = vadd.f32 %v1909_v29, %v1908_v8  ;;  %v1973_v33 = vpop.f32.mrf.mxu1 }
 0x13b   :  { %v1911_v45 = vpop.f32.mrf.mxu0  ;;  %v1974_v49 = vadd.f32 %v1973_v33, %v1972_v31  ;;  %v1106_v4 = vadd.f32 %v1852_v17, %v1788_v30  ;;  %v1858_v24 = vadd.f32 %v2521_v54, %v2515_v51 }
 0x13c   :  { %v1444_v46 = vsel %vm1412_vm3, %v1396_v23, %v1428_v32  ;;  %v1397_v47 = vadd.f32 %v2561_v60, %v1289_v26  ;;  %v1195_v48 = vadd.f32 %v1910_v27, %v1098_v25  ;;  %v1975_v55 = vpop.f32.mrf.mxu1 }
 0x13d   :  { %v1710_v20 = vpack.c.bf16 %v1444_v46, %v1443_v44  ;;  %v1912_v56 = vpop.f32.mrf.mxu0 }
 0x13e   :  { %v1292_v18 = vadd.f32 %v1974_v49, %v1195_v48  ;;  %v1913_v21 = vadd.f32 %v1912_v56, %v1911_v45  ;;  %v1976_v57 = vpop.f32.mrf.mxu1  ;;  %v1429_v58 = vmul.f32 0.2, %v1397_v47  ;;  %vm1413_vm4 = vcmp.ge.f32.partialorder %v1397_v47, 0.0 }
 0x13f   :  { %1742 = vst [vmem:[%s2641_s3 + $0x8] sm:$0xff] %v1710_v20   ;;  %v1914_v59 = vpop.f32.mrf.mxu0  ;;  %v1977_v39 = vadd.f32 %v1976_v57, %v1975_v55 }
 0x140   :  { %v1398_v2 = vadd.f32 %v2561_v60, %v1292_v18  ;;  %v1200_v3 = vadd.f32 %v1913_v21, %v2507_v41  ;;  %v1978_v42 = vpop.f32.mrf.mxu1  ;;  %v1445_v9 = vsel %vm1413_vm4, %v1397_v47, %v1429_v58  ;;  %v1794_v41 = vadd.f32 %v2519_v53, %v2513_v50 }
 0x141   :  { %v1915_v40 = vpop.f32.mrf.mxu0  ;;  %v1864_v21 = vadd.f32 %v2531_v1, %v2525_v62 }
 0x142   :  { %vm1414_vm5 = vcmp.ge.f32.partialorder %v1398_v2, 0.0  ;;  %v1430_v43 = vmul.f32 0.2, %v1398_v2  ;;  %v1297_v19 = vadd.f32 %v1977_v39, %v1200_v3  ;;  %v1916_v5 = vadd.f32 %v1915_v40, %v1914_v59  ;;  %v1979_v6 = vpop.f32.mrf.mxu1 }
 0x143   :  { %v1917_v10 = vpop.f32.mrf.mxu0  ;;  %v1980_v8 = vadd.f32 %v1979_v6, %v1978_v42  ;;  %v1114_v45 = vadd.f32 %v1858_v24, %v1794_v41  ;;  %v1870_v41 = vadd.f32 %v2541_v22, %v2535_v14 }
 0x144   :  { %v1446_v11 = vsel %vm1414_vm5, %v1398_v2, %v1430_v43  ;;  %v1399_v12 = vadd.f32 %v2561_v60, %v1297_v19  ;;  %v1203_v7 = vadd.f32 %v1916_v5, %v1106_v4  ;;  %v1981_v23 = vpop.f32.mrf.mxu1 }
 0x145   :  { %v1715_v28 = vpack.c.bf16 %v1446_v11, %v1445_v9  ;;  %v1918_v31 = vpop.f32.mrf.mxu0 }
 0x146   :  { %v1300_v25 = vadd.f32 %v1980_v8, %v1203_v7  ;;  %v1919_v29 = vadd.f32 %v1918_v31, %v1917_v10  ;;  %v1982_v32 = vpop.f32.mrf.mxu1  ;;  %v1431_v26 = vmul.f32 0.2, %v1399_v12  ;;  %vm1415_vm6 = vcmp.ge.f32.partialorder %v1399_v12, 0.0 }
 0x147   :  { %1743 = vst [vmem:[%s2641_s3 + $0x10] sm:$0xff] %v1715_v28   ;;  %v1920_v27 = vpop.f32.mrf.mxu0  ;;  %v1983_v50 = vadd.f32 %v1982_v32, %v1981_v23 }
 0x148   :  { %v1400_v33 = vadd.f32 %v2561_v60, %v1300_v25  ;;  %v1208_v44 = vadd.f32 %v1919_v29, %v2517_v52  ;;  %v1984_v53 = vpop.f32.mrf.mxu1  ;;  %v1447_v49 = vsel %vm1415_vm6, %v1399_v12, %v1431_v26  ;;  %v1800_v52 = vadd.f32 %v2529_v0, %v2523_v61 }
 0x149   :  { %v1921_v51 = vpop.f32.mrf.mxu0 }
 0x14a   :  { %vm1416_vm7 = vcmp.ge.f32.partialorder %v1400_v33, 0.0  ;;  %v1432_v54 = vmul.f32 0.2, %v1400_v33  ;;  %v1305_v46 = vadd.f32 %v1983_v50, %v1208_v44  ;;  %v1922_v47 = vadd.f32 %v1921_v51, %v1920_v27  ;;  %v1985_v48 = vpop.f32.mrf.mxu1 }
 0x14b   :  { %v1923_v55 = vpop.f32.mrf.mxu0  ;;  %v1986_v56 = vadd.f32 %v1985_v48, %v1984_v53  ;;  %v1122_v43 = vadd.f32 %v1864_v21, %v1800_v52 }
 0x14c   :  { %v1448_v30 = vsel %vm1416_vm7, %v1400_v33, %v1432_v54  ;;  %v1401_v17 = vadd.f32 %v2561_v60, %v1305_v46  ;;  %v1211_v20 = vadd.f32 %v1922_v47, %v1114_v45  ;;  %v1987_v18 = vpop.f32.mrf.mxu1 }
 0x14d   :  { %v1720_v57 = vpack.c.bf16 %v1448_v30, %v1447_v49  ;;  %v1924_v58 = vpop.f32.mrf.mxu0  ;;  %v1876_v30 = vadd.f32 %v2551_v38, %v2545_v35 }
 0x14e   :  { %v1308_v59 = vadd.f32 %v1986_v56, %v1211_v20  ;;  %v1925_v2 = vadd.f32 %v1924_v58, %v1923_v55  ;;  %v1988_v3 = vpop.f32.mrf.mxu1  ;;  %v1433_v39 = vmul.f32 0.2, %v1401_v17  ;;  %vm1417_vm8 = vcmp.ge.f32.partialorder %v1401_v17, 0.0 }
 0x14f   :  { %1744 = vst [vmem:[%s2641_s3 + $0x18] sm:$0xff] %v1720_v57   ;;  %v1926_v42 = vpop.f32.mrf.mxu0  ;;  %v1989_v61 = vadd.f32 %v1988_v3, %v1987_v18 }
 0x150   :  { %v1402_v4 = vadd.f32 %v2561_v60, %v1308_v59  ;;  %v1216_v40 = vadd.f32 %v1925_v2, %v2527_v63  ;;  %v1990_v0 = vpop.f32.mrf.mxu1  ;;  %v1449_v9 = vsel %vm1417_vm8, %v1401_v17, %v1433_v39  ;;  %v1806_v63 = vadd.f32 %v2539_v16, %v2533_v13 }
 0x151   :  { %v1927_v62 = vpop.f32.mrf.mxu0 }
 0x152   :  { %vm1418_vm9 = vcmp.ge.f32.partialorder %v1402_v4, 0.0  ;;  %v1434_v1 = vmul.f32 0.2, %v1402_v4  ;;  %v1313_v19 = vadd.f32 %v1989_v61, %v1216_v40  ;;  %v1928_v5 = vadd.f32 %v1927_v62, %v1926_v42  ;;  %v1991_v6 = vpop.f32.mrf.mxu1 }
 0x153   :  { %v1929_v10 = vpop.f32.mrf.mxu0  ;;  %v1992_v8 = vadd.f32 %v1991_v6, %v1990_v0  ;;  %v1130_v44 = vadd.f32 %v1870_v41, %v1806_v63 }
 0x154   :  { %v1450_v11 = vsel %vm1418_vm9, %v1402_v4, %v1434_v1  ;;  %v1403_v12 = vadd.f32 %v2561_v60, %v1313_v19  ;;  %v1219_v7 = vadd.f32 %v1928_v5, %v1122_v43  ;;  %v1993_v23 = vpop.f32.mrf.mxu1 }
 0x155   :  { %v1725_v24 = vpack.c.bf16 %v1450_v11, %v1449_v9  ;;  %v1930_v28 = vpop.f32.mrf.mxu0 }
 0x156   :  { %v1316_v31 = vadd.f32 %v1992_v8, %v1219_v7  ;;  %v1931_v25 = vadd.f32 %v1930_v28, %v1929_v10  ;;  %v1994_v29 = vpop.f32.mrf.mxu1  ;;  %v1435_v32 = vmul.f32 0.2, %v1403_v12  ;;  %vm1419_vm10 = vcmp.ge.f32.partialorder %v1403_v12, 0.0 }
 0x157   :  { %1745 = vst [vmem:[%s2641_s3 + $0x20] sm:$0xff] %v1725_v24   ;;  %v1932_v26 = vpop.f32.mrf.mxu0  ;;  %v1995_v13 = vadd.f32 %v1994_v29, %v1993_v23 }
 0x158   :  { %v1404_v27 = vadd.f32 %v2561_v60, %v1316_v31  ;;  %v1224_v33 = vadd.f32 %v1931_v25, %v2537_v15  ;;  %v1996_v16 = vpop.f32.mrf.mxu1  ;;  %v1451_v51 = vsel %vm1419_vm10, %v1403_v12, %v1435_v32  ;;  %v1812_v15 = vadd.f32 %v2549_v37, %v2543_v34 }
 0x159   :  { %v1933_v14 = vpop.f32.mrf.mxu0 }
 0x15a   :  { %vm1420_vm11 = vcmp.ge.f32.partialorder %v1404_v27, 0.0  ;;  %v1436_v22 = vmul.f32 0.2, %v1404_v27  ;;  %v1321_v50 = vadd.f32 %v1995_v13, %v1224_v33  ;;  %v1934_v53 = vadd.f32 %v1933_v14, %v1932_v26  ;;  %v1997_v45 = vpop.f32.mrf.mxu1 }
 0x15b   :  { %v1935_v54 = vpop.f32.mrf.mxu0  ;;  %v1998_v49 = vadd.f32 %v1997_v45, %v1996_v16  ;;  %v1138_v2 = vadd.f32 %v1876_v30, %v1812_v15 }
 0x15c   :  { %v1452_v46 = vsel %vm1420_vm11, %v1404_v27, %v1436_v22  ;;  %v1405_v47 = vadd.f32 %v2561_v60, %v1321_v50  ;;  %v1227_v48 = vadd.f32 %v1934_v53, %v1130_v44  ;;  %v1999_v55 = vpop.f32.mrf.mxu1 }
 0x15d   :  { %v1730_v17 = vpack.c.bf16 %v1452_v46, %v1451_v51  ;;  %v1936_v20 = vpop.f32.mrf.mxu0 }
 0x15e   :  { %v1324_v56 = vadd.f32 %v1998_v49, %v1227_v48  ;;  %v1937_v18 = vadd.f32 %v1936_v20, %v1935_v54  ;;  %v2000_v52 = vpop.f32.mrf.mxu1  ;;  %v1437_v21 = vmul.f32 0.2, %v1405_v47  ;;  %vm1421_vm12 = vcmp.ge.f32.partialorder %v1405_v47, 0.0 }
 0x15f   :  { %1746 = vst [vmem:[%s2641_s3 + $0x28] sm:$0xff] %v1730_v17   ;;  %v1938_v57 = vpop.f32.mrf.mxu0  ;;  %v2001_v34 = vadd.f32 %v2000_v52, %v1999_v55 }
 0x160   :  { %v1406_v58 = vadd.f32 %v2561_v60, %v1324_v56  ;;  %v1232_v59 = vadd.f32 %v1937_v18, %v2547_v36  ;;  %v2002_v37 = vpop.f32.mrf.mxu1  ;;  %v1453_v4 = vsel %vm1421_vm12, %v1405_v47, %v1437_v21 }
 0x161   :  { %v1939_v35 = vpop.f32.mrf.mxu0 }
 0x162   :  { %vm1422_vm13 = vcmp.ge.f32.partialorder %v1406_v58, 0.0  ;;  %v1438_v38 = vmul.f32 0.2, %v1406_v58  ;;  %v1329_v3 = vadd.f32 %v2001_v34, %v1232_v59  ;;  %v1940_v39 = vadd.f32 %v1939_v35, %v1938_v57  ;;  %v2003_v42 = vpop.f32.mrf.mxu1 }
 0x163   :  { %v2004_v43 = vadd.f32 %v2003_v42, %v2002_v37 }
 0x164   :  { %v1454_v40 = vsel %vm1422_vm13, %v1406_v58, %v1438_v38  ;;  %v1407_v61 = vadd.f32 %v2561_v60, %v1329_v3  ;;  %v1235_v0 = vadd.f32 %v1940_v39, %v1138_v2 }
 0x165   :  { %v1735_v62 = vpack.c.bf16 %v1454_v40, %v1453_v4 }
 0x166   :  { %v1332_v1 = vadd.f32 %v2004_v43, %v1235_v0  ;;  %v1439_v36 = vmul.f32 0.2, %v1407_v61  ;;  %vm1423_vm14 = vcmp.ge.f32.partialorder %v1407_v61, 0.0 }
 0x167   :  { %1747 = vst [vmem:[%s2641_s3 + $0x30] sm:$0xff] %v1735_v62  }
 0x168   :  { %v1408_v19 = vadd.f32 %v2561_v60, %v1332_v1  ;;  %v1455_v6 = vsel %vm1423_vm14, %v1407_v61, %v1439_v36 }
 0x16a   :  { %vm1424_vm15 = vcmp.ge.f32.partialorder %v1408_v19, 0.0  ;;  %v1440_v5 = vmul.f32 0.2, %v1408_v19 }
 0x16c   :  { %v1456_v9 = vsel %vm1424_vm15, %v1408_v19, %v1440_v5 }
 0x16d   :  { %v1740_v10 = vpack.c.bf16 %v1456_v9, %v1455_v6 }
 0x16f   :  { %1748 = vst [vmem:[%s2641_s3 + $0x38] sm:$0xff] %v1740_v10  }

// kernel: patchgan_discriminator.7
= control target key start
LH: loop header
LB: loop body
LE: loop exit
PB: predicated region body
PF: predicated region fallthrough
CT: control target
= control target key end

     0   :  { %s3943_s1 = inlined_call_operand.vmem [shape: bf16[2048,256], index: 1, kind: input, shape index: {}]   ;;  %s3944_s0 = inlined_call_operand.vmem [shape: bf16[32,2048], index: 0, kind: input, shape index: {}]   ;;  %s3945_s2 = inlined_call_operand.vmem [shape: f32[1,256], index: 2, kind: input, shape index: {}]   ;;  %s3946_s3 = inlined_call_operand.vmem [shape: bf16[32,256], index: 3, kind: output, shape index: {}]  }
   0x1   :  { %v2585_v0 = vld [vmem:[%s3943_s1 + $0x74] ss:$8 sps:$4 sm:$0xff]   ;;  %v2589_v2 = vld [vmem:[%s3943_s1 + $0x70] ss:$8 sps:$4 sm:$0xff]   ;;  %v2591_v4 = vld [vmem:[%s3943_s1 + $0x64] ss:$8 sps:$4 sm:$0xff]  }
   0x2   :  { %v2587_v1 = vld [vmem:[%s3943_s1 + $0x174] ss:$8 sps:$4 sm:$0xff]   ;;  %1762 = vmatprep.subr.bf16.mxu0 %v2585_v0  ;;  %v2590_v3 = vld [vmem:[%s3943_s1 + $0x170] ss:$8 sps:$4 sm:$0xff]   ;;  %v2593_v5 = vld [vmem:[%s3943_s1 + $0x164] ss:$8 sps:$4 sm:$0xff]  }
   0x3   :  { %1815 = vmatprep.subr.bf16.mxu1 %v2587_v1  ;;  %1763 = vmatpush1.bf16.msra.mxu0 %v2589_v2  ;;  %v2595_v6 = vld [vmem:[%s3943_s1 + $0x60] ss:$8 sps:$4 sm:$0xff]   ;;  %v2597_v8 = vld [vmem:[%s3943_s1 + $0x54] ss:$8 sps:$4 sm:$0xff]   ;;  %v2601_v10 = vld [vmem:[%s3943_s1 + $0x50] ss:$8 sps:$4 sm:$0xff]  }
   0x4   :  { %1816 = vmatpush1.bf16.msra.mxu1 %v2590_v3  ;;  %1764 = vmatprep.subr.bf16.mxu0 %v2591_v4  ;;  %v2596_v7 = vld [vmem:[%s3943_s1 + $0x160] ss:$8 sps:$4 sm:$0xff]   ;;  %v2599_v9 = vld [vmem:[%s3943_s1 + $0x154] ss:$8 sps:$4 sm:$0xff]   ;;  %v2602_v11 = vld [vmem:[%s3943_s1 + $0x150] ss:$8 sps:$4 sm:$0xff]  }
   0x5   :  { %1817 = vmatprep.subr.bf16.mxu1 %v2593_v5  ;;  %v2603_v12 = vld [vmem:[%s3943_s1 + $0x44] ss:$8 sps:$4 sm:$0xff]   ;;  %v2607_v14 = vld [vmem:[%s3943_s1 + $0x40] ss:$8 sps:$4 sm:$0xff]   ;;  %v2609_v16 = vld [vmem:[%s3943_s1 + $0x34] ss:$8 sps:$4 sm:$0xff]  }
   0x6   :  { %v2605_v13 = vld [vmem:[%s3943_s1 + $0x144] ss:$8 sps:$4 sm:$0xff]   ;;  %v2608_v15 = vld [vmem:[%s3943_s1 + $0x140] ss:$8 sps:$4 sm:$0xff]   ;;  %v2611_v17 = vld [vmem:[%s3943_s1 + $0x134] ss:$8 sps:$4 sm:$0xff]  }
   0x7   :  { %1765 = vmatpush1.bf16.msra.mxu0 %v2595_v6  ;;  %v2613_v18 = vld [vmem:[%s3943_s1 + $0x30] ss:$8 sps:$4 sm:$0xff]   ;;  %v2615_v20 = vld [vmem:[%s3943_s1 + $0x24] ss:$8 sps:$4 sm:$0xff]   ;;  %v2619_v22 = vld [vmem:[%s3943_s1 + $0x20] ss:$8 sps:$4 sm:$0xff]  }
   0x8   :  { %1818 = vmatpush1.bf16.msra.mxu1 %v2596_v7  ;;  %1766 = vmatprep.subr.bf16.mxu0 %v2597_v8  ;;  %v2614_v19 = vld [vmem:[%s3943_s1 + $0x130] ss:$8 sps:$4 sm:$0xff]   ;;  %v2617_v21 = vld [vmem:[%s3943_s1 + $0x124] ss:$8 sps:$4 sm:$0xff]   ;;  %v2620_v23 = vld [vmem:[%s3943_s1 + $0x120] ss:$8 sps:$4 sm:$0xff]  }
   0x9   :  { %1819 = vmatprep.subr.bf16.mxu1 %v2599_v9  ;;  %v2621_v24 = vld [vmem:[%s3943_s1 + $0x14] ss:$8 sps:$4 sm:$0xff]   ;;  %v2625_v26 = vld [vmem:[%s3943_s1 + $0x10] ss:$8 sps:$4 sm:$0xff]   ;;  %v2627_v28 = vld [vmem:[%s3943_s1 + $0x4] ss:$8 sps:$4 sm:$0xff]  }
   0xa   :  { %v2623_v25 = vld [vmem:[%s3943_s1 + $0x114] ss:$8 sps:$4 sm:$0xff]   ;;  %v2626_v27 = vld [vmem:[%s3943_s1 + $0x110] ss:$8 sps:$4 sm:$0xff]   ;;  %v2629_v29 = vld [vmem:[%s3943_s1 + $0x104] ss:$8 sps:$4 sm:$0xff]  }
   0xb   :  { %1767 = vmatpush1.bf16.msra.mxu0 %v2601_v10  ;;  %v2631_v30 = vld [vmem:[%s3943_s1] ss:$8 sps:$4 sm:$0xff]   ;;  %v2633_v32 = vld [vmem:[%s3943_s1 + $0xf4] ss:$8 sps:$4 sm:$0xff]   ;;  %v2637_v34 = vld [vmem:[%s3943_s1 + $0xf0] ss:$8 sps:$4 sm:$0xff]  }
   0xc   :  { %1820 = vmatpush1.bf16.msra.mxu1 %v2602_v11  ;;  %1768 = vmatprep.subr.bf16.mxu0 %v2603_v12  ;;  %v2632_v31 = vld [vmem:[%s3943_s1 + $0x100] ss:$8 sps:$4 sm:$0xff]   ;;  %v2635_v33 = vld [vmem:[%s3943_s1 + $0x1f4] ss:$8 sps:$4 sm:$0xff]   ;;  %v2638_v35 = vld [vmem:[%s3943_s1 + $0x1f0] ss:$8 sps:$4 sm:$0xff]  }
   0xd   :  { %1821 = vmatprep.subr.bf16.mxu1 %v2605_v13  ;;  %v2639_v36 = vld [vmem:[%s3943_s1 + $0xe4] ss:$8 sps:$4 sm:$0xff]   ;;  %v2643_v38 = vld [vmem:[%s3943_s1 + $0xe0] ss:$8 sps:$4 sm:$0xff]   ;;  %v2645_v40 = vld [vmem:[%s3943_s1 + $0xd4] ss:$8 sps:$4 sm:$0xff]  }
   0xe   :  { %v2641_v37 = vld [vmem:[%s3943_s1 + $0x1e4] ss:$8 sps:$4 sm:$0xff]   ;;  %v2644_v39 = vld [vmem:[%s3943_s1 + $0x1e0] ss:$8 sps:$4 sm:$0xff]   ;;  %v2647_v41 = vld [vmem:[%s3943_s1 + $0x1d4] ss:$8 sps:$4 sm:$0xff]  }
   0xf   :  { %1769 = vmatpush1.bf16.msra.mxu0 %v2607_v14  ;;  %v2649_v42 = vld [vmem:[%s3943_s1 + $0xd0] ss:$8 sps:$4 sm:$0xff]   ;;  %v2651_v44 = vld [vmem:[%s3943_s1 + $0xc4] ss:$8 sps:$4 sm:$0xff]   ;;  %v2655_v46 = vld [vmem:[%s3943_s1 + $0xc0] ss:$8 sps:$4 sm:$0xff]  }
  0x10   :  { %1822 = vmatpush1.bf16.msra.mxu1 %v2608_v15  ;;  %1770 = vmatprep.subr.bf16.mxu0 %v2609_v16  ;;  %v2650_v43 = vld [vmem:[%s3943_s1 + $0x1d0] ss:$8 sps:$4 sm:$0xff]   ;;  %v2653_v45 = vld [vmem:[%s3943_s1 + $0x1c4] ss:$8 sps:$4 sm:$0xff]   ;;  %v2656_v47 = vld [vmem:[%s3943_s1 + $0x1c0] ss:$8 sps:$4 sm:$0xff]  }
  0x11   :  { %1823 = vmatprep.subr.bf16.mxu1 %v2611_v17  ;;  %v34_v48 = vld [vmem:[%s3944_s0] sm:$0xff]  ;;  %v35_v50 = vld [vmem:[%s3944_s0 + $0x8] sm:$0xff]  ;;  %v2657_v52 = vld [vmem:[%s3943_s1 + $0xb4] ss:$8 sps:$4 sm:$0xff]  }
  0x12   :  { %v42_v49 = vld [vmem:[%s3944_s0 + $0x40] sm:$0xff]  ;;  %v43_v51 = vld [vmem:[%s3944_s0 + $0x48] sm:$0xff]  ;;  %v2659_v54 = vld [vmem:[%s3943_s1 + $0x1b4] ss:$8 sps:$4 sm:$0xff]  }
  0x13   :  { %1771 = vmatpush1.bf16.msra.mxu0 %v2613_v18  ;;  %v2290_v53 = vcombine.high %v34_v48, %v42_v49  ;;  %v2292_v55 = vcombine.high %v35_v50, %v43_v51  ;;  %v2661_v56 = vld [vmem:[%s3943_s1 + $0xb0] ss:$8 sps:$4 sm:$0xff]   ;;  %v2663_v58 = vld [vmem:[%s3943_s1 + $0xa4] ss:$8 sps:$4 sm:$0xff]   ;;  %v2667_v60 = vld [vmem:[%s3943_s1 + $0xa0] ss:$8 sps:$4 sm:$0xff]   ;;  %v2289_v8 = vcombine.low %v34_v48, %v42_v49  ;;  %v2291_v9 = vcombine.low %v35_v50, %v43_v51 }
  0x14   :  { %1824 = vmatpush1.bf16.msra.mxu1 %v2614_v19  ;;  %1772 = vmatprep.subr.bf16.mxu0 %v2615_v20  ;;  %v2662_v57 = vld [vmem:[%s3943_s1 + $0x1b0] ss:$8 sps:$4 sm:$0xff]   ;;  %v2665_v59 = vld [vmem:[%s3943_s1 + $0x1a4] ss:$8 sps:$4 sm:$0xff]   ;;  %v2668_v61 = vld [vmem:[%s3943_s1 + $0x1a0] ss:$8 sps:$4 sm:$0xff]  }
  0x15   :  { %1825 = vmatprep.subr.bf16.mxu1 %v2617_v21  ;;  %1794 = vmatprep.mubr.bf16.mxu0 %v2290_v53  ;;  %v2669_v62 = vld [vmem:[%s3943_s1 + $0x94] ss:$8 sps:$4 sm:$0xff]   ;;  %v2673_v0 = vld [vmem:[%s3943_s1 + $0x90] ss:$8 sps:$4 sm:$0xff]   ;;  %v2675_v2 = vld [vmem:[%s3943_s1 + $0x84] ss:$8 sps:$4 sm:$0xff]  }
  0x16   :  { %1847 = vmatprep.mubr.bf16.mxu1 %v2292_v55  ;;  %v2671_v63 = vld [vmem:[%s3943_s1 + $0x194] ss:$8 sps:$4 sm:$0xff]   ;;  %v2674_v1 = vld [vmem:[%s3943_s1 + $0x190] ss:$8 sps:$4 sm:$0xff]   ;;  %v2677_v3 = vld [vmem:[%s3943_s1 + $0x184] ss:$8 sps:$4 sm:$0xff]  }
  0x17   :  { %1773 = vmatpush1.bf16.msra.mxu0 %v2619_v22  ;;  %v2679_v4 = vld [vmem:[%s3943_s1 + $0x80] ss:$8 sps:$4 sm:$0xff]   ;;  %v2683_v6 = vld [vmem:[%s3943_s1 + $0x274] ss:$8 sps:$4 sm:$0xff]   ;;  %v2681_v10 = vld [vmem:[%s3943_s1 + $0x270] ss:$8 sps:$4 sm:$0xff]  }
  0x18   :  { %1826 = vmatpush1.bf16.msra.mxu1 %v2620_v23  ;;  %1774 = vmatprep.subr.bf16.mxu0 %v2621_v24  ;;  %v2680_v5 = vld [vmem:[%s3943_s1 + $0x180] ss:$8 sps:$4 sm:$0xff]   ;;  %v2686_v7 = vld [vmem:[%s3943_s1 + $0x374] ss:$8 sps:$4 sm:$0xff]   ;;  %v2684_v11 = vld [vmem:[%s3943_s1 + $0x370] ss:$8 sps:$4 sm:$0xff]  }
  0x19   :  { %1827 = vmatprep.subr.bf16.mxu1 %v2623_v25  ;;  %v2689_v12 = vld [vmem:[%s3943_s1 + $0x264] ss:$8 sps:$4 sm:$0xff]   ;;  %v2687_v14 = vld [vmem:[%s3943_s1 + $0x260] ss:$8 sps:$4 sm:$0xff]   ;;  %v2695_v16 = vld [vmem:[%s3943_s1 + $0x254] ss:$8 sps:$4 sm:$0xff]  }
  0x1a   :  { %v2692_v13 = vld [vmem:[%s3943_s1 + $0x364] ss:$8 sps:$4 sm:$0xff]   ;;  %v2690_v15 = vld [vmem:[%s3943_s1 + $0x360] ss:$8 sps:$4 sm:$0xff]   ;;  %v2698_v17 = vld [vmem:[%s3943_s1 + $0x354] ss:$8 sps:$4 sm:$0xff]  }
  0x1b   :  { %1775 = vmatpush1.bf16.msra.mxu0 %v2625_v26  ;;  %v2693_v18 = vld [vmem:[%s3943_s1 + $0x250] ss:$8 sps:$4 sm:$0xff]   ;;  %v2701_v20 = vld [vmem:[%s3943_s1 + $0x244] ss:$8 sps:$4 sm:$0xff]   ;;  %v2699_v22 = vld [vmem:[%s3943_s1 + $0x240] ss:$8 sps:$4 sm:$0xff]  }
  0x1c   :  { %1828 = vmatpush1.bf16.msra.mxu1 %v2626_v27  ;;  %1776 = vmatprep.subr.bf16.mxu0 %v2627_v28  ;;  %v2696_v19 = vld [vmem:[%s3943_s1 + $0x350] ss:$8 sps:$4 sm:$0xff]   ;;  %v2704_v21 = vld [vmem:[%s3943_s1 + $0x344] ss:$8 sps:$4 sm:$0xff]   ;;  %v2702_v23 = vld [vmem:[%s3943_s1 + $0x340] ss:$8 sps:$4 sm:$0xff]  }
  0x1d   :  { %1829 = vmatprep.subr.bf16.mxu1 %v2629_v29  ;;  %v2707_v24 = vld [vmem:[%s3943_s1 + $0x234] ss:$8 sps:$4 sm:$0xff]   ;;  %v2705_v26 = vld [vmem:[%s3943_s1 + $0x230] ss:$8 sps:$4 sm:$0xff]   ;;  %v50_v28 = vld [vmem:[%s3944_s0 + $0x80] sm:$0xff] }
  0x1e   :  { %v2710_v25 = vld [vmem:[%s3943_s1 + $0x334] ss:$8 sps:$4 sm:$0xff]   ;;  %v2708_v27 = vld [vmem:[%s3943_s1 + $0x330] ss:$8 sps:$4 sm:$0xff]   ;;  %v58_v29 = vld [vmem:[%s3944_s0 + $0xc0] sm:$0xff] }
  0x1f   :  { %1777 = vmatpush1.bf16.msra.mxu0 %v2631_v30  ;;  %v51_v30 = vld [vmem:[%s3944_s0 + $0x88] sm:$0xff]  ;;  %v3308_v48 = vld [vmem:[%s3944_s0 + $0x18] sm:$0xff] }
  0x20   :  { %1830 = vmatpush1.bf16.msra.mxu1 %v2632_v31  ;;  %1778 = vmatprep.subr.bf16.mxu0 %v2633_v32  ;;  %v59_v31 = vld [vmem:[%s3944_s0 + $0xc8] sm:$0xff]  ;;  %v3315_v50 = vld [vmem:[%s3944_s0 + $0x58] sm:$0xff] }
  0x21   :  { %1831 = vmatprep.subr.bf16.mxu1 %v2635_v33  ;;  %v2713_v32 = vld [vmem:[%s3943_s1 + $0x224] ss:$8 sps:$4 sm:$0xff]   ;;  %v2306_v33 = vcombine.high %v50_v28, %v58_v29  ;;  %v2296_v51 = vcombine.high %v3308_v48, %v3315_v50  ;;  %v2726_v53 = vld [vmem:[%s3943_s1 + $0x300] ss:$8 sps:$4 sm:$0xff]   ;;  %v2734_v55 = vld [vmem:[%s3943_s1 + $0x3f4] ss:$8 sps:$4 sm:$0xff]  }
  0x23   :  { %1779 = vmatpush2.bf16.msra.mxu0 %v2637_v34  ;;  %v2308_v34 = vcombine.high %v51_v30, %v59_v31 }
  0x24   :  { %1832 = vmatpush2.bf16.msra.mxu1 %v2638_v35  ;;  %1780 = vmatprep.subr.bf16.mxu0 %v2639_v36  ;;  %v2305_v35 = vcombine.low %v50_v28, %v58_v29  ;;  %v2716_v36 = vld [vmem:[%s3943_s1 + $0x324] ss:$8 sps:$4 sm:$0xff]   ;;  %v2295_v29 = vcombine.low %v3308_v48, %v3315_v50 }
  0x25   :  { %1833 = vmatprep.subr.bf16.mxu1 %v2641_v37  ;;  %v2307_v37 = vcombine.low %v51_v30, %v59_v31  ;;  %v53_v30 = vld [vmem:[%s3944_s0 + $0x98] sm:$0xff]  ;;  %v2797_v48 = vld [vmem:[%s3943_s1 + $0x444] ss:$8 sps:$4 sm:$0xff]  }
  0x26   :  { %v61_v31 = vld [vmem:[%s3944_s0 + $0xd8] sm:$0xff] }
  0x27   :  { %1781 = vmatpush2.bf16.msra.mxu0 %v2643_v38  ;;  %v2711_v38 = vld [vmem:[%s3943_s1 + $0x220] ss:$8 sps:$4 sm:$0xff]  }
  0x28   :  { %1834 = vmatpush2.bf16.msra.mxu1 %v2644_v39  ;;  %1782 = vmatprep.subr.bf16.mxu0 %v2645_v40  ;;  %v2714_v39 = vld [vmem:[%s3943_s1 + $0x320] ss:$8 sps:$4 sm:$0xff]   ;;  %v2719_v40 = vld [vmem:[%s3943_s1 + $0x214] ss:$8 sps:$4 sm:$0xff]  }
  0x29   :  { %1835 = vmatprep.subr.bf16.mxu1 %v2647_v41  ;;  %v2722_v41 = vld [vmem:[%s3943_s1 + $0x314] ss:$8 sps:$4 sm:$0xff]  }
  0x2b   :  { %1783 = vmatpush2.bf16.msra.mxu0 %v2649_v42  ;;  %v2717_v42 = vld [vmem:[%s3943_s1 + $0x210] ss:$8 sps:$4 sm:$0xff]  }
  0x2c   :  { %1836 = vmatpush2.bf16.msra.mxu1 %v2650_v43  ;;  %1784 = vmatprep.subr.bf16.mxu0 %v2651_v44  ;;  %v2720_v43 = vld [vmem:[%s3943_s1 + $0x310] ss:$8 sps:$4 sm:$0xff]   ;;  %v2725_v44 = vld [vmem:[%s3943_s1 + $0x204] ss:$8 sps:$4 sm:$0xff]  }
  0x2d   :  { %1837 = vmatprep.subr.bf16.mxu1 %v2653_v45  ;;  %v2728_v45 = vld [vmem:[%s3943_s1 + $0x304] ss:$8 sps:$4 sm:$0xff]  }
  0x2f   :  { %1785 = vmatpush2.bf16.msra.mxu0 %v2655_v46  ;;  %v3298_v46 = vld [vmem:[%s3944_s0 + $0x10] sm:$0xff] }
  0x30   :  { %1838 = vmatpush2.bf16.msra.mxu1 %v2656_v47  ;;  %1786 = vmatprep.subr.bf16.mxu0 %v2657_v52  ;;  %v3303_v47 = vld [vmem:[%s3944_s0 + $0x50] sm:$0xff]  ;;  %v2723_v52 = vld [vmem:[%s3943_s1 + $0x200] ss:$8 sps:$4 sm:$0xff]  }
  0x31   :  { %1839 = vmatprep.subr.bf16.mxu1 %v2659_v54  ;;  %v2294_v49 = vcombine.high %v3298_v46, %v3303_v47  ;;  %v2731_v54 = vld [vmem:[%s3943_s1 + $0x2f4] ss:$8 sps:$4 sm:$0xff]   ;;  %v2293_v28 = vcombine.low %v3298_v46, %v3303_v47  ;;  %v3486_v46 = vld [vmem:[%s3944_s0 + $0x28] sm:$0xff] }
  0x32   :  { %v3491_v47 = vld [vmem:[%s3944_s0 + $0x68] sm:$0xff] }
  0x33   :  { %1787 = vmatpush2.bf16.msra.mxu0 %v2661_v56  ;;  %v2729_v56 = vld [vmem:[%s3943_s1 + $0x2f0] ss:$8 sps:$4 sm:$0xff]  }
  0x34   :  { %1840 = vmatpush2.bf16.msra.mxu1 %v2662_v57  ;;  %1788 = vmatprep.subr.bf16.mxu0 %v2663_v58  ;;  %v2732_v57 = vld [vmem:[%s3943_s1 + $0x3f0] ss:$8 sps:$4 sm:$0xff]   ;;  %v2737_v58 = vld [vmem:[%s3943_s1 + $0x2e4] ss:$8 sps:$4 sm:$0xff]  }
  0x35   :  { %1841 = vmatprep.subr.bf16.mxu1 %v2665_v59  ;;  %v2740_v59 = vld [vmem:[%s3943_s1 + $0x3e4] ss:$8 sps:$4 sm:$0xff]  }
  0x37   :  { %1789 = vmatpush2.bf16.msra.mxu0 %v2667_v60  ;;  %v2735_v60 = vld [vmem:[%s3943_s1 + $0x2e0] ss:$8 sps:$4 sm:$0xff]  }
  0x38   :  { %1842 = vmatpush2.bf16.msra.mxu1 %v2668_v61  ;;  %1790 = vmatprep.subr.bf16.mxu0 %v2669_v62  ;;  %v2738_v61 = vld [vmem:[%s3943_s1 + $0x3e0] ss:$8 sps:$4 sm:$0xff]   ;;  %v2743_v62 = vld [vmem:[%s3943_s1 + $0x2d4] ss:$8 sps:$4 sm:$0xff]  }
  0x39   :  { %1843 = vmatprep.subr.bf16.mxu1 %v2671_v63  ;;  %v2746_v63 = vld [vmem:[%s3943_s1 + $0x3d4] ss:$8 sps:$4 sm:$0xff]  }
  0x3b   :  { %1791 = vmatpush2.bf16.msra.mxu0 %v2673_v0  ;;  %v2741_v0 = vld [vmem:[%s3943_s1 + $0x2d0] ss:$8 sps:$4 sm:$0xff]  }
  0x3c   :  { %1844 = vmatpush2.bf16.msra.mxu1 %v2674_v1  ;;  %1792 = vmatprep.subr.bf16.mxu0 %v2675_v2  ;;  %v2744_v1 = vld [vmem:[%s3943_s1 + $0x3d0] ss:$8 sps:$4 sm:$0xff]   ;;  %v2749_v2 = vld [vmem:[%s3943_s1 + $0x2c4] ss:$8 sps:$4 sm:$0xff]  }
  0x3d   :  { %1845 = vmatprep.subr.bf16.mxu1 %v2677_v3  ;;  %v2752_v3 = vld [vmem:[%s3943_s1 + $0x3c4] ss:$8 sps:$4 sm:$0xff]  }
  0x3f   :  { %1793 = vmatpush2.bf16.msra.mxu0 %v2679_v4  ;;  %v2747_v4 = vld [vmem:[%s3943_s1 + $0x2c0] ss:$8 sps:$4 sm:$0xff]  }
  0x40   :  { %1846 = vmatpush2.bf16.msra.mxu1 %v2680_v5  ;;  %1868 = vmatprep.subr.bf16.mxu0 %v2683_v6  ;;  %v2750_v5 = vld [vmem:[%s3943_s1 + $0x3c0] ss:$8 sps:$4 sm:$0xff]   ;;  %v2755_v6 = vld [vmem:[%s3943_s1 + $0x2b4] ss:$8 sps:$4 sm:$0xff]  }
  0x41   :  { %1921 = vmatprep.subr.bf16.mxu1 %v2686_v7  ;;  %v2758_v7 = vld [vmem:[%s3943_s1 + $0x3b4] ss:$8 sps:$4 sm:$0xff]  }
  0x42   :  { %1795 = vmatmul.mubr.bf16.vlgmr.msra.gmra.mxu0 %v2289_v8  ;;  %v2753_v8 = vld [vmem:[%s3943_s1 + $0x2b0] ss:$8 sps:$4 sm:$0xff]  }
  0x43   :  { %1848 = vmatmul.mubr.bf16.vlgmr.msra.gmra.mxu1 %v2291_v9  ;;  %1869 = vmatpush1.bf16.msra.mxu0 %v2681_v10  ;;  %v2756_v9 = vld [vmem:[%s3943_s1 + $0x3b0] ss:$8 sps:$4 sm:$0xff]   ;;  %v2761_v10 = vld [vmem:[%s3943_s1 + $0x2a4] ss:$8 sps:$4 sm:$0xff]  }
  0x44   :  { %1922 = vmatpush1.bf16.msra.mxu1 %v2684_v11  ;;  %1870 = vmatprep.subr.bf16.mxu0 %v2689_v12  ;;  %v2764_v11 = vld [vmem:[%s3943_s1 + $0x3a4] ss:$8 sps:$4 sm:$0xff]   ;;  %v2759_v12 = vld [vmem:[%s3943_s1 + $0x2a0] ss:$8 sps:$4 sm:$0xff]  }
  0x45   :  { %1923 = vmatprep.subr.bf16.mxu1 %v2692_v13  ;;  %1804 = vmatprep.mubr.bf16.mxu0 %v2306_v33  ;;  %v2762_v13 = vld [vmem:[%s3943_s1 + $0x3a0] ss:$8 sps:$4 sm:$0xff]   ;;  %v2788_v33 = vld [vmem:[%s3943_s1 + $0x564] ss:$8 sps:$4 sm:$0xff]  }
  0x46   :  { %1857 = vmatprep.mubr.bf16.mxu1 %v2308_v34 }
  0x47   :  { %1871 = vmatpush1.bf16.msra.mxu0 %v2687_v14  ;;  %v2767_v14 = vld [vmem:[%s3943_s1 + $0x294] ss:$8 sps:$4 sm:$0xff]  }
  0x48   :  { %1924 = vmatpush1.bf16.msra.mxu1 %v2690_v15  ;;  %1872 = vmatprep.subr.bf16.mxu0 %v2695_v16  ;;  %v2770_v15 = vld [vmem:[%s3943_s1 + $0x394] ss:$8 sps:$4 sm:$0xff]   ;;  %v2765_v16 = vld [vmem:[%s3943_s1 + $0x290] ss:$8 sps:$4 sm:$0xff]  }
  0x49   :  { %1925 = vmatprep.subr.bf16.mxu1 %v2698_v17  ;;  %v2768_v17 = vld [vmem:[%s3943_s1 + $0x390] ss:$8 sps:$4 sm:$0xff]  }
  0x4a   :  { %1805 = vmatmul.mubr.bf16.gmra.mxu0 %v2305_v35  ;;  %v2312_v35 = vcombine.high %v53_v30, %v61_v31 }
  0x4b   :  { %1873 = vmatpush1.bf16.msra.mxu0 %v2693_v18  ;;  %1858 = vmatmul.mubr.bf16.gmra.mxu1 %v2307_v37  ;;  %v2773_v18 = vld [vmem:[%s3943_s1 + $0x284] ss:$8 sps:$4 sm:$0xff]   ;;  %v2786_v37 = vld [vmem:[%s3943_s1 + $0x560] ss:$8 sps:$4 sm:$0xff]  }
  0x4c   :  { %1926 = vmatpush1.bf16.msra.mxu1 %v2696_v19  ;;  %1874 = vmatprep.subr.bf16.mxu0 %v2701_v20  ;;  %v2776_v19 = vld [vmem:[%s3943_s1 + $0x384] ss:$8 sps:$4 sm:$0xff]   ;;  %v2771_v20 = vld [vmem:[%s3943_s1 + $0x280] ss:$8 sps:$4 sm:$0xff]  }
  0x4d   :  { %1927 = vmatprep.subr.bf16.mxu1 %v2704_v21  ;;  %1900 = vmatprep.mubr.bf16.mxu0 %v2294_v49  ;;  %v2774_v21 = vld [vmem:[%s3943_s1 + $0x380] ss:$8 sps:$4 sm:$0xff]   ;;  %v2800_v49 = vld [vmem:[%s3943_s1 + $0x544] ss:$8 sps:$4 sm:$0xff]  }
  0x4e   :  { %1953 = vmatprep.mubr.bf16.mxu1 %v2296_v51  ;;  %v2300_v51 = vcombine.high %v3486_v46, %v3491_v47 }
  0x4f   :  { %1875 = vmatpush1.bf16.msra.mxu0 %v2699_v22  ;;  %v2779_v22 = vld [vmem:[%s3943_s1 + $0x474] ss:$8 sps:$4 sm:$0xff]  }
  0x50   :  { %1928 = vmatpush1.bf16.msra.mxu1 %v2702_v23  ;;  %1876 = vmatprep.subr.bf16.mxu0 %v2707_v24  ;;  %v2782_v23 = vld [vmem:[%s3943_s1 + $0x574] ss:$8 sps:$4 sm:$0xff]   ;;  %v2777_v24 = vld [vmem:[%s3943_s1 + $0x470] ss:$8 sps:$4 sm:$0xff]  }
  0x51   :  { %1929 = vmatprep.subr.bf16.mxu1 %v2710_v25  ;;  %v2780_v25 = vld [vmem:[%s3943_s1 + $0x570] ss:$8 sps:$4 sm:$0xff]  }
  0x53   :  { %1877 = vmatpush1.bf16.msra.mxu0 %v2705_v26  ;;  %v52_v26 = vld [vmem:[%s3944_s0 + $0x90] sm:$0xff] }
  0x54   :  { %1930 = vmatpush1.bf16.msra.mxu1 %v2708_v27  ;;  %1878 = vmatprep.subr.bf16.mxu0 %v2713_v32  ;;  %v60_v27 = vld [vmem:[%s3944_s0 + $0xd0] sm:$0xff]  ;;  %v2785_v32 = vld [vmem:[%s3943_s1 + $0x464] ss:$8 sps:$4 sm:$0xff]  }
  0x55   :  { %1931 = vmatprep.subr.bf16.mxu1 %v2716_v36  ;;  %v2310_v34 = vcombine.high %v52_v26, %v60_v27  ;;  %v2783_v36 = vld [vmem:[%s3943_s1 + $0x460] ss:$8 sps:$4 sm:$0xff]  }
  0x57   :  { %1879 = vmatpush1.bf16.msra.mxu0 %v2711_v38  ;;  %v2791_v38 = vld [vmem:[%s3943_s1 + $0x454] ss:$8 sps:$4 sm:$0xff]  }
  0x58   :  { %1932 = vmatpush1.bf16.msra.mxu1 %v2714_v39  ;;  %1880 = vmatprep.subr.bf16.mxu0 %v2719_v40  ;;  %v2794_v39 = vld [vmem:[%s3943_s1 + $0x554] ss:$8 sps:$4 sm:$0xff]   ;;  %v2789_v40 = vld [vmem:[%s3943_s1 + $0x450] ss:$8 sps:$4 sm:$0xff]  }
  0x59   :  { %1933 = vmatprep.subr.bf16.mxu1 %v2722_v41  ;;  %v2792_v41 = vld [vmem:[%s3943_s1 + $0x550] ss:$8 sps:$4 sm:$0xff]  }
  0x5b   :  { %1881 = vmatpush1.bf16.msra.mxu0 %v2717_v42  ;;  %v3476_v42 = vld [vmem:[%s3944_s0 + $0x20] sm:$0xff] }
  0x5c   :  { %1934 = vmatpush1.bf16.msra.mxu1 %v2720_v43  ;;  %1882 = vmatprep.subr.bf16.mxu0 %v2725_v44  ;;  %v3481_v43 = vld [vmem:[%s3944_s0 + $0x60] sm:$0xff]  ;;  %v2309_v44 = vcombine.low %v52_v26, %v60_v27 }
  0x5d   :  { %1935 = vmatprep.subr.bf16.mxu1 %v2728_v45  ;;  %v2311_v45 = vcombine.low %v53_v30, %v61_v31  ;;  %v2298_v50 = vcombine.high %v3476_v42, %v3481_v43  ;;  %v2857_v26 = vld [vmem:[%s3943_s1 + $0x4a4] ss:$8 sps:$4 sm:$0xff]   ;;  %v2863_v30 = vld [vmem:[%s3943_s1 + $0x494] ss:$8 sps:$4 sm:$0xff]  }
  0x5e   :  { %v2860_v27 = vld [vmem:[%s3943_s1 + $0x5a4] ss:$8 sps:$4 sm:$0xff]   ;;  %v2866_v31 = vld [vmem:[%s3943_s1 + $0x594] ss:$8 sps:$4 sm:$0xff]  }
  0x5f   :  { %1883 = vmatpush1.bf16.msra.mxu0 %v2723_v52  ;;  %v2795_v52 = vld [vmem:[%s3943_s1 + $0x440] ss:$8 sps:$4 sm:$0xff]  }
  0x60   :  { %1936 = vmatpush1.bf16.msra.mxu1 %v2726_v53  ;;  %1884 = vmatprep.subr.bf16.mxu0 %v2731_v54  ;;  %v2798_v53 = vld [vmem:[%s3943_s1 + $0x540] ss:$8 sps:$4 sm:$0xff]   ;;  %v2803_v54 = vld [vmem:[%s3943_s1 + $0x434] ss:$8 sps:$4 sm:$0xff]  }
  0x61   :  { %1937 = vmatprep.subr.bf16.mxu1 %v2734_v55  ;;  %v2806_v55 = vld [vmem:[%s3943_s1 + $0x534] ss:$8 sps:$4 sm:$0xff]  }
  0x63   :  { %1885 = vmatpush2.bf16.msra.mxu0 %v2729_v56  ;;  %v2801_v56 = vld [vmem:[%s3943_s1 + $0x430] ss:$8 sps:$4 sm:$0xff]  }
  0x64   :  { %1938 = vmatpush2.bf16.msra.mxu1 %v2732_v57  ;;  %1886 = vmatprep.subr.bf16.mxu0 %v2737_v58  ;;  %v2804_v57 = vld [vmem:[%s3943_s1 + $0x530] ss:$8 sps:$4 sm:$0xff]   ;;  %v2809_v58 = vld [vmem:[%s3943_s1 + $0x424] ss:$8 sps:$4 sm:$0xff]  }
  0x65   :  { %1939 = vmatprep.subr.bf16.mxu1 %v2740_v59  ;;  %v2812_v59 = vld [vmem:[%s3943_s1 + $0x524] ss:$8 sps:$4 sm:$0xff]  }
  0x67   :  { %1887 = vmatpush2.bf16.msra.mxu0 %v2735_v60  ;;  %v2807_v60 = vld [vmem:[%s3943_s1 + $0x420] ss:$8 sps:$4 sm:$0xff]  }
  0x68   :  { %1940 = vmatpush2.bf16.msra.mxu1 %v2738_v61  ;;  %1888 = vmatprep.subr.bf16.mxu0 %v2743_v62  ;;  %v2810_v61 = vld [vmem:[%s3943_s1 + $0x520] ss:$8 sps:$4 sm:$0xff]   ;;  %v2815_v62 = vld [vmem:[%s3943_s1 + $0x414] ss:$8 sps:$4 sm:$0xff]  }
  0x69   :  { %1941 = vmatprep.subr.bf16.mxu1 %v2746_v63  ;;  %v2818_v63 = vld [vmem:[%s3943_s1 + $0x514] ss:$8 sps:$4 sm:$0xff]  }
  0x6b   :  { %1889 = vmatpush2.bf16.msra.mxu0 %v2741_v0  ;;  %v2813_v0 = vld [vmem:[%s3943_s1 + $0x410] ss:$8 sps:$4 sm:$0xff]  }
  0x6c   :  { %1942 = vmatpush2.bf16.msra.mxu1 %v2744_v1  ;;  %1890 = vmatprep.subr.bf16.mxu0 %v2749_v2  ;;  %v2816_v1 = vld [vmem:[%s3943_s1 + $0x510] ss:$8 sps:$4 sm:$0xff]   ;;  %v2821_v2 = vld [vmem:[%s3943_s1 + $0x404] ss:$8 sps:$4 sm:$0xff]  }
  0x6d   :  { %1943 = vmatprep.subr.bf16.mxu1 %v2752_v3  ;;  %v2824_v3 = vld [vmem:[%s3943_s1 + $0x504] ss:$8 sps:$4 sm:$0xff]  }
  0x6f   :  { %1891 = vmatpush2.bf16.msra.mxu0 %v2747_v4  ;;  %v2819_v4 = vld [vmem:[%s3943_s1 + $0x400] ss:$8 sps:$4 sm:$0xff]  }
  0x70   :  { %1944 = vmatpush2.bf16.msra.mxu1 %v2750_v5  ;;  %1892 = vmatprep.subr.bf16.mxu0 %v2755_v6  ;;  %v2822_v5 = vld [vmem:[%s3943_s1 + $0x500] ss:$8 sps:$4 sm:$0xff]   ;;  %v2827_v6 = vld [vmem:[%s3943_s1 + $0x4f4] ss:$8 sps:$4 sm:$0xff]  }
  0x71   :  { %1945 = vmatprep.subr.bf16.mxu1 %v2758_v7  ;;  %v2830_v7 = vld [vmem:[%s3943_s1 + $0x5f4] ss:$8 sps:$4 sm:$0xff]  }
  0x73   :  { %1893 = vmatpush2.bf16.msra.mxu0 %v2753_v8  ;;  %v2825_v8 = vld [vmem:[%s3943_s1 + $0x4f0] ss:$8 sps:$4 sm:$0xff]  }
  0x74   :  { %1946 = vmatpush2.bf16.msra.mxu1 %v2756_v9  ;;  %1894 = vmatprep.subr.bf16.mxu0 %v2761_v10  ;;  %v2828_v9 = vld [vmem:[%s3943_s1 + $0x5f0] ss:$8 sps:$4 sm:$0xff]   ;;  %v2833_v10 = vld [vmem:[%s3943_s1 + $0x4e4] ss:$8 sps:$4 sm:$0xff]  }
  0x75   :  { %1947 = vmatprep.subr.bf16.mxu1 %v2764_v11  ;;  %v2836_v11 = vld [vmem:[%s3943_s1 + $0x5e4] ss:$8 sps:$4 sm:$0xff]  }
  0x77   :  { %1895 = vmatpush2.bf16.msra.mxu0 %v2759_v12  ;;  %v2831_v12 = vld [vmem:[%s3943_s1 + $0x4e0] ss:$8 sps:$4 sm:$0xff]  }
  0x78   :  { %1948 = vmatpush2.bf16.msra.mxu1 %v2762_v13  ;;  %1896 = vmatprep.subr.bf16.mxu0 %v2767_v14  ;;  %v2834_v13 = vld [vmem:[%s3943_s1 + $0x5e0] ss:$8 sps:$4 sm:$0xff]   ;;  %v2839_v14 = vld [vmem:[%s3943_s1 + $0x4d4] ss:$8 sps:$4 sm:$0xff]  }
  0x79   :  { %1949 = vmatprep.subr.bf16.mxu1 %v2770_v15  ;;  %v2842_v15 = vld [vmem:[%s3943_s1 + $0x5d4] ss:$8 sps:$4 sm:$0xff]  }
  0x7b   :  { %1897 = vmatpush2.bf16.msra.mxu0 %v2765_v16  ;;  %v2837_v16 = vld [vmem:[%s3943_s1 + $0x4d0] ss:$8 sps:$4 sm:$0xff]  }
  0x7c   :  { %1950 = vmatpush2.bf16.msra.mxu1 %v2768_v17  ;;  %1898 = vmatprep.subr.bf16.mxu0 %v2773_v18  ;;  %v2840_v17 = vld [vmem:[%s3943_s1 + $0x5d0] ss:$8 sps:$4 sm:$0xff]   ;;  %v2845_v18 = vld [vmem:[%s3943_s1 + $0x4c4] ss:$8 sps:$4 sm:$0xff]  }
  0x7d   :  { %1951 = vmatprep.subr.bf16.mxu1 %v2776_v19  ;;  %v2848_v19 = vld [vmem:[%s3943_s1 + $0x5c4] ss:$8 sps:$4 sm:$0xff]  }
  0x7f   :  { %1899 = vmatpush2.bf16.msra.mxu0 %v2771_v20  ;;  %v2843_v20 = vld [vmem:[%s3943_s1 + $0x4c0] ss:$8 sps:$4 sm:$0xff]  }
  0x80   :  { %1952 = vmatpush2.bf16.msra.mxu1 %v2774_v21  ;;  %1974 = vmatprep.subr.bf16.mxu0 %v2779_v22  ;;  %v2846_v21 = vld [vmem:[%s3943_s1 + $0x5c0] ss:$8 sps:$4 sm:$0xff]   ;;  %v2851_v22 = vld [vmem:[%s3943_s1 + $0x4b4] ss:$8 sps:$4 sm:$0xff]  }
  0x81   :  { %2027 = vmatprep.subr.bf16.mxu1 %v2782_v23  ;;  %v2854_v23 = vld [vmem:[%s3943_s1 + $0x5b4] ss:$8 sps:$4 sm:$0xff]  }
  0x82   :  { %1901 = vmatmul.mubr.bf16.vlgmr.msra.gmra.mxu0 %v2293_v28  ;;  %v2855_v28 = vld [vmem:[%s3943_s1 + $0x4a0] ss:$8 sps:$4 sm:$0xff]  }
  0x83   :  { %1954 = vmatmul.mubr.bf16.vlgmr.msra.gmra.mxu1 %v2295_v29  ;;  %1975 = vmatpush1.bf16.msra.mxu0 %v2777_v24  ;;  %v2849_v24 = vld [vmem:[%s3943_s1 + $0x4b0] ss:$8 sps:$4 sm:$0xff]   ;;  %v2858_v29 = vld [vmem:[%s3943_s1 + $0x5a0] ss:$8 sps:$4 sm:$0xff]  }
  0x84   :  { %2028 = vmatpush1.bf16.msra.mxu1 %v2780_v25  ;;  %1976 = vmatprep.subr.bf16.mxu0 %v2785_v32  ;;  %v2852_v25 = vld [vmem:[%s3943_s1 + $0x5b0] ss:$8 sps:$4 sm:$0xff]  }
  0x85   :  { %2029 = vmatprep.subr.bf16.mxu1 %v2788_v33  ;;  %1910 = vmatprep.mubr.bf16.mxu0 %v2310_v34  ;;  %v2861_v32 = vld [vmem:[%s3943_s1 + $0x490] ss:$8 sps:$4 sm:$0xff]   ;;  %v2869_v34 = vld [vmem:[%s3943_s1 + $0x484] ss:$8 sps:$4 sm:$0xff]  }
  0x86   :  { %1963 = vmatprep.mubr.bf16.mxu1 %v2312_v35  ;;  %v2864_v33 = vld [vmem:[%s3943_s1 + $0x590] ss:$8 sps:$4 sm:$0xff]   ;;  %v2872_v35 = vld [vmem:[%s3943_s1 + $0x584] ss:$8 sps:$4 sm:$0xff]  }
  0x87   :  { %1977 = vmatpush1.bf16.msra.mxu0 %v2783_v36  ;;  %v2867_v36 = vld [vmem:[%s3943_s1 + $0x480] ss:$8 sps:$4 sm:$0xff]  }
  0x88   :  { %2030 = vmatpush1.bf16.msra.mxu1 %v2786_v37  ;;  %1978 = vmatprep.subr.bf16.mxu0 %v2791_v38  ;;  %v2870_v37 = vld [vmem:[%s3943_s1 + $0x580] ss:$8 sps:$4 sm:$0xff]   ;;  %v2875_v38 = vld [vmem:[%s3943_s1 + $0x674] ss:$8 sps:$4 sm:$0xff]  }
  0x89   :  { %2031 = vmatprep.subr.bf16.mxu1 %v2794_v39  ;;  %v2878_v39 = vld [vmem:[%s3943_s1 + $0x774] ss:$8 sps:$4 sm:$0xff]  }
  0x8a   :  { %1911 = vmatmul.mubr.bf16.gmra.mxu0 %v2309_v44  ;;  %v2299_v44 = vcombine.low %v3486_v46, %v3491_v47  ;;  %v2881_v46 = vld [vmem:[%s3943_s1 + $0x664] ss:$8 sps:$4 sm:$0xff]  }
  0x8b   :  { %1964 = vmatmul.mubr.bf16.gmra.mxu1 %v2311_v45  ;;  %1979 = vmatpush1.bf16.msra.mxu0 %v2789_v40  ;;  %v54_v40 = vld [vmem:[%s3944_s0 + $0xa0] sm:$0xff] }
  0x8c   :  { %2032 = vmatpush1.bf16.msra.mxu1 %v2792_v41  ;;  %1980 = vmatprep.subr.bf16.mxu0 %v2797_v48  ;;  %v2297_v41 = vcombine.low %v3476_v42, %v3481_v43  ;;  %v62_v45 = vld [vmem:[%s3944_s0 + $0xe0] sm:$0xff]  ;;  %v55_v48 = vld [vmem:[%s3944_s0 + $0xa8] sm:$0xff]  ;;  %v2873_v42 = vld [vmem:[%s3943_s1 + $0x670] ss:$8 sps:$4 sm:$0xff]  }
  0x8d   :  { %2033 = vmatprep.subr.bf16.mxu1 %v2800_v49  ;;  %2006 = vmatprep.mubr.bf16.mxu0 %v2298_v50  ;;  %v63_v49 = vld [vmem:[%s3944_s0 + $0xe8] sm:$0xff]  ;;  %v2876_v43 = vld [vmem:[%s3943_s1 + $0x770] ss:$8 sps:$4 sm:$0xff]   ;;  %v2314_v50 = vcombine.high %v54_v40, %v62_v45 }
  0x8e   :  { %2059 = vmatprep.mubr.bf16.mxu1 %v2300_v51  ;;  %v2884_v47 = vld [vmem:[%s3943_s1 + $0x764] ss:$8 sps:$4 sm:$0xff]   ;;  %v2316_v51 = vcombine.high %v55_v48, %v63_v49 }
  0x8f   :  { %1981 = vmatpush1.bf16.msra.mxu0 %v2795_v52  ;;  %v2879_v52 = vld [vmem:[%s3943_s1 + $0x660] ss:$8 sps:$4 sm:$0xff]  }
  0x90   :  { %2034 = vmatpush1.bf16.msra.mxu1 %v2798_v53  ;;  %1982 = vmatprep.subr.bf16.mxu0 %v2803_v54  ;;  %v2882_v53 = vld [vmem:[%s3943_s1 + $0x760] ss:$8 sps:$4 sm:$0xff]   ;;  %v2887_v54 = vld [vmem:[%s3943_s1 + $0x654] ss:$8 sps:$4 sm:$0xff]  }
  0x91   :  { %2035 = vmatprep.subr.bf16.mxu1 %v2806_v55  ;;  %v2890_v55 = vld [vmem:[%s3943_s1 + $0x754] ss:$8 sps:$4 sm:$0xff]  }
  0x93   :  { %1983 = vmatpush1.bf16.msra.mxu0 %v2801_v56  ;;  %v3702_v56 = vld [vmem:[%s3944_s0 + $0x30] sm:$0xff] }
  0x94   :  { %2036 = vmatpush1.bf16.msra.mxu1 %v2804_v57  ;;  %1984 = vmatprep.subr.bf16.mxu0 %v2809_v58  ;;  %v2313_v57 = vcombine.low %v54_v40, %v62_v45  ;;  %v2315_v58 = vcombine.low %v55_v48, %v63_v49  ;;  %v2945_v40 = vld [vmem:[%s3943_s1 + $0x6b0] ss:$8 sps:$4 sm:$0xff]   ;;  %v2956_v45 = vld [vmem:[%s3943_s1 + $0x7a4] ss:$8 sps:$4 sm:$0xff]   ;;  %v2951_v48 = vld [vmem:[%s3943_s1 + $0x6a0] ss:$8 sps:$4 sm:$0xff]  }
  0x95   :  { %2037 = vmatprep.subr.bf16.mxu1 %v2812_v59  ;;  %v3707_v59 = vld [vmem:[%s3944_s0 + $0x70] sm:$0xff]  ;;  %v2954_v49 = vld [vmem:[%s3943_s1 + $0x7a0] ss:$8 sps:$4 sm:$0xff]  }
  0x97   :  { %1985 = vmatpush1.bf16.msra.mxu0 %v2807_v60  ;;  %v3712_v60 = vld [vmem:[%s3944_s0 + $0x38] sm:$0xff] }
  0x98   :  { %2038 = vmatpush1.bf16.msra.mxu1 %v2810_v61  ;;  %1986 = vmatprep.subr.bf16.mxu0 %v2815_v62  ;;  %v3717_v61 = vld [vmem:[%s3944_s0 + $0x78] sm:$0xff] }
  0x99   :  { %2039 = vmatprep.subr.bf16.mxu1 %v2818_v63  ;;  %v2885_v62 = vld [vmem:[%s3943_s1 + $0x650] ss:$8 sps:$4 sm:$0xff]  }
  0x9a   :  { %v2888_v63 = vld [vmem:[%s3943_s1 + $0x750] ss:$8 sps:$4 sm:$0xff]  }
  0x9b   :  { %1987 = vmatpush1.bf16.msra.mxu0 %v2813_v0  ;;  %v2893_v0 = vld [vmem:[%s3943_s1 + $0x644] ss:$8 sps:$4 sm:$0xff]  }
  0x9c   :  { %2040 = vmatpush1.bf16.msra.mxu1 %v2816_v1  ;;  %1988 = vmatprep.subr.bf16.mxu0 %v2821_v2  ;;  %v2896_v1 = vld [vmem:[%s3943_s1 + $0x744] ss:$8 sps:$4 sm:$0xff]   ;;  %v2302_v2 = vcombine.high %v3702_v56, %v3707_v59 }
  0x9d   :  { %2041 = vmatprep.subr.bf16.mxu1 %v2824_v3  ;;  %v2304_v3 = vcombine.high %v3712_v60, %v3717_v61 }
  0x9f   :  { %1989 = vmatpush1.bf16.msra.mxu0 %v2819_v4  ;;  %v2891_v4 = vld [vmem:[%s3943_s1 + $0x640] ss:$8 sps:$4 sm:$0xff]  }
  0xa0   :  { %2042 = vmatpush1.bf16.msra.mxu1 %v2822_v5  ;;  %1990 = vmatprep.subr.bf16.mxu0 %v2827_v6  ;;  %v2894_v5 = vld [vmem:[%s3943_s1 + $0x740] ss:$8 sps:$4 sm:$0xff]   ;;  %v2899_v6 = vld [vmem:[%s3943_s1 + $0x634] ss:$8 sps:$4 sm:$0xff]  }
  0xa1   :  { %2043 = vmatprep.subr.bf16.mxu1 %v2830_v7  ;;  %v2902_v7 = vld [vmem:[%s3943_s1 + $0x734] ss:$8 sps:$4 sm:$0xff]  }
  0xa3   :  { %1991 = vmatpush2.bf16.msra.mxu0 %v2825_v8  ;;  %v2897_v8 = vld [vmem:[%s3943_s1 + $0x630] ss:$8 sps:$4 sm:$0xff]  }
  0xa4   :  { %2044 = vmatpush2.bf16.msra.mxu1 %v2828_v9  ;;  %1992 = vmatprep.subr.bf16.mxu0 %v2833_v10  ;;  %v2900_v9 = vld [vmem:[%s3943_s1 + $0x730] ss:$8 sps:$4 sm:$0xff]   ;;  %v2905_v10 = vld [vmem:[%s3943_s1 + $0x624] ss:$8 sps:$4 sm:$0xff]  }
  0xa5   :  { %2045 = vmatprep.subr.bf16.mxu1 %v2836_v11  ;;  %v2908_v11 = vld [vmem:[%s3943_s1 + $0x724] ss:$8 sps:$4 sm:$0xff]  }
  0xa7   :  { %1993 = vmatpush2.bf16.msra.mxu0 %v2831_v12  ;;  %v2903_v12 = vld [vmem:[%s3943_s1 + $0x620] ss:$8 sps:$4 sm:$0xff]  }
  0xa8   :  { %2046 = vmatpush2.bf16.msra.mxu1 %v2834_v13  ;;  %1994 = vmatprep.subr.bf16.mxu0 %v2839_v14  ;;  %v2906_v13 = vld [vmem:[%s3943_s1 + $0x720] ss:$8 sps:$4 sm:$0xff]   ;;  %v2911_v14 = vld [vmem:[%s3943_s1 + $0x614] ss:$8 sps:$4 sm:$0xff]  }
  0xa9   :  { %2047 = vmatprep.subr.bf16.mxu1 %v2842_v15  ;;  %v2914_v15 = vld [vmem:[%s3943_s1 + $0x714] ss:$8 sps:$4 sm:$0xff]  }
  0xab   :  { %1995 = vmatpush2.bf16.msra.mxu0 %v2837_v16  ;;  %v2909_v16 = vld [vmem:[%s3943_s1 + $0x610] ss:$8 sps:$4 sm:$0xff]  }
  0xac   :  { %2048 = vmatpush2.bf16.msra.mxu1 %v2840_v17  ;;  %1996 = vmatprep.subr.bf16.mxu0 %v2845_v18  ;;  %v2912_v17 = vld [vmem:[%s3943_s1 + $0x710] ss:$8 sps:$4 sm:$0xff]   ;;  %v2917_v18 = vld [vmem:[%s3943_s1 + $0x604] ss:$8 sps:$4 sm:$0xff]  }
  0xad   :  { %2049 = vmatprep.subr.bf16.mxu1 %v2848_v19  ;;  %v2920_v19 = vld [vmem:[%s3943_s1 + $0x704] ss:$8 sps:$4 sm:$0xff]  }
  0xaf   :  { %1997 = vmatpush2.bf16.msra.mxu0 %v2843_v20  ;;  %v2915_v20 = vld [vmem:[%s3943_s1 + $0x600] ss:$8 sps:$4 sm:$0xff]  }
  0xb0   :  { %2050 = vmatpush2.bf16.msra.mxu1 %v2846_v21  ;;  %1998 = vmatprep.subr.bf16.mxu0 %v2851_v22  ;;  %v2918_v21 = vld [vmem:[%s3943_s1 + $0x700] ss:$8 sps:$4 sm:$0xff]   ;;  %v2923_v22 = vld [vmem:[%s3943_s1 + $0x6f4] ss:$8 sps:$4 sm:$0xff]  }
  0xb1   :  { %2051 = vmatprep.subr.bf16.mxu1 %v2854_v23  ;;  %v2926_v23 = vld [vmem:[%s3943_s1 + $0x7f4] ss:$8 sps:$4 sm:$0xff]  }
  0xb3   :  { %1999 = vmatpush2.bf16.msra.mxu0 %v2849_v24  ;;  %v2921_v24 = vld [vmem:[%s3943_s1 + $0x6f0] ss:$8 sps:$4 sm:$0xff]  }
  0xb4   :  { %2052 = vmatpush2.bf16.msra.mxu1 %v2852_v25  ;;  %2000 = vmatprep.subr.bf16.mxu0 %v2857_v26  ;;  %v2924_v25 = vld [vmem:[%s3943_s1 + $0x7f0] ss:$8 sps:$4 sm:$0xff]   ;;  %v2929_v26 = vld [vmem:[%s3943_s1 + $0x6e4] ss:$8 sps:$4 sm:$0xff]  }
  0xb5   :  { %2053 = vmatprep.subr.bf16.mxu1 %v2860_v27  ;;  %v2932_v27 = vld [vmem:[%s3943_s1 + $0x7e4] ss:$8 sps:$4 sm:$0xff]  }
  0xb7   :  { %2001 = vmatpush2.bf16.msra.mxu0 %v2855_v28  ;;  %v2927_v28 = vld [vmem:[%s3943_s1 + $0x6e0] ss:$8 sps:$4 sm:$0xff]  }
  0xb8   :  { %2054 = vmatpush2.bf16.msra.mxu1 %v2858_v29  ;;  %2002 = vmatprep.subr.bf16.mxu0 %v2863_v30  ;;  %v2930_v29 = vld [vmem:[%s3943_s1 + $0x7e0] ss:$8 sps:$4 sm:$0xff]   ;;  %v2935_v30 = vld [vmem:[%s3943_s1 + $0x6d4] ss:$8 sps:$4 sm:$0xff]  }
  0xb9   :  { %2055 = vmatprep.subr.bf16.mxu1 %v2866_v31  ;;  %v2938_v31 = vld [vmem:[%s3943_s1 + $0x7d4] ss:$8 sps:$4 sm:$0xff]  }
  0xbb   :  { %2003 = vmatpush2.bf16.msra.mxu0 %v2861_v32  ;;  %v2933_v32 = vld [vmem:[%s3943_s1 + $0x6d0] ss:$8 sps:$4 sm:$0xff]  }
  0xbc   :  { %2056 = vmatpush2.bf16.msra.mxu1 %v2864_v33  ;;  %2004 = vmatprep.subr.bf16.mxu0 %v2869_v34  ;;  %v2936_v33 = vld [vmem:[%s3943_s1 + $0x7d0] ss:$8 sps:$4 sm:$0xff]   ;;  %v2941_v34 = vld [vmem:[%s3943_s1 + $0x6c4] ss:$8 sps:$4 sm:$0xff]  }
  0xbd   :  { %2057 = vmatprep.subr.bf16.mxu1 %v2872_v35  ;;  %v2944_v35 = vld [vmem:[%s3943_s1 + $0x7c4] ss:$8 sps:$4 sm:$0xff]  }
  0xbf   :  { %2005 = vmatpush2.bf16.msra.mxu0 %v2867_v36  ;;  %v2939_v36 = vld [vmem:[%s3943_s1 + $0x6c0] ss:$8 sps:$4 sm:$0xff]  }
  0xc0   :  { %2058 = vmatpush2.bf16.msra.mxu1 %v2870_v37  ;;  %2080 = vmatprep.subr.bf16.mxu0 %v2875_v38  ;;  %v2942_v37 = vld [vmem:[%s3943_s1 + $0x7c0] ss:$8 sps:$4 sm:$0xff]   ;;  %v2947_v38 = vld [vmem:[%s3943_s1 + $0x6b4] ss:$8 sps:$4 sm:$0xff]  }
  0xc1   :  { %2133 = vmatprep.subr.bf16.mxu1 %v2878_v39  ;;  %v2950_v39 = vld [vmem:[%s3943_s1 + $0x7b4] ss:$8 sps:$4 sm:$0xff]  }
  0xc2   :  { %2007 = vmatmul.mubr.bf16.vlgmr.msra.gmra.mxu0 %v2297_v41  ;;  %v2948_v41 = vld [vmem:[%s3943_s1 + $0x7b0] ss:$8 sps:$4 sm:$0xff]  }
  0xc3   :  { %2060 = vmatmul.mubr.bf16.vlgmr.msra.gmra.mxu1 %v2299_v44  ;;  %2081 = vmatpush1.bf16.msra.mxu0 %v2873_v42  ;;  %v2953_v44 = vld [vmem:[%s3943_s1 + $0x6a4] ss:$8 sps:$4 sm:$0xff]   ;;  %v2959_v42 = vld [vmem:[%s3943_s1 + $0x694] ss:$8 sps:$4 sm:$0xff]  }
  0xc4   :  { %2134 = vmatpush1.bf16.msra.mxu1 %v2876_v43  ;;  %2082 = vmatprep.subr.bf16.mxu0 %v2881_v46  ;;  %v2962_v43 = vld [vmem:[%s3943_s1 + $0x794] ss:$8 sps:$4 sm:$0xff]   ;;  %v2957_v46 = vld [vmem:[%s3943_s1 + $0x690] ss:$8 sps:$4 sm:$0xff]  }
  0xc5   :  { %2135 = vmatprep.subr.bf16.mxu1 %v2884_v47  ;;  %2016 = vmatprep.mubr.bf16.mxu0 %v2314_v50  ;;  %v2960_v47 = vld [vmem:[%s3943_s1 + $0x790] ss:$8 sps:$4 sm:$0xff]   ;;  %v2965_v50 = vld [vmem:[%s3943_s1 + $0x684] ss:$8 sps:$4 sm:$0xff]  }
  0xc6   :  { %2069 = vmatprep.mubr.bf16.mxu1 %v2316_v51  ;;  %v2968_v51 = vld [vmem:[%s3943_s1 + $0x784] ss:$8 sps:$4 sm:$0xff]  }
  0xc7   :  { %2083 = vmatpush1.bf16.msra.mxu0 %v2879_v52  ;;  %v2963_v52 = vld [vmem:[%s3943_s1 + $0x680] ss:$8 sps:$4 sm:$0xff]  }
  0xc8   :  { %2136 = vmatpush1.bf16.msra.mxu1 %v2882_v53  ;;  %2084 = vmatprep.subr.bf16.mxu0 %v2887_v54  ;;  %v2966_v53 = vld [vmem:[%s3943_s1 + $0x780] ss:$8 sps:$4 sm:$0xff]   ;;  %v56_v54 = vld [vmem:[%s3944_s0 + $0xb0] sm:$0xff] }
  0xc9   :  { %2137 = vmatprep.subr.bf16.mxu1 %v2890_v55  ;;  %v64_v55 = vld [vmem:[%s3944_s0 + $0xf0] sm:$0xff] }
  0xca   :  { %2017 = vmatmul.mubr.bf16.gmra.mxu0 %v2313_v57  ;;  %v57_v57 = vld [vmem:[%s3944_s0 + $0xb8] sm:$0xff] }
  0xcb   :  { %2070 = vmatmul.mubr.bf16.gmra.mxu1 %v2315_v58  ;;  %2085 = vmatpush1.bf16.msra.mxu0 %v2885_v62  ;;  %v65_v58 = vld [vmem:[%s3944_s0 + $0xf8] sm:$0xff]  ;;  %v2301_v62 = vcombine.low %v3702_v56, %v3707_v59 }
  0xcc   :  { %2138 = vmatpush1.bf16.msra.mxu1 %v2888_v63  ;;  %2086 = vmatprep.subr.bf16.mxu0 %v2893_v0  ;;  %v2303_v63 = vcombine.low %v3712_v60, %v3717_v61  ;;  %v2318_v0 = vcombine.high %v56_v54, %v64_v55 }
  0xcd   :  { %2139 = vmatprep.subr.bf16.mxu1 %v2896_v1  ;;  %2112 = vmatprep.mubr.bf16.mxu0 %v2302_v2  ;;  %v2320_v1 = vcombine.high %v57_v57, %v65_v58  ;;  %v2317_v2 = vcombine.low %v56_v54, %v64_v55 }
  0xce   :  { %2165 = vmatprep.mubr.bf16.mxu1 %v2304_v3  ;;  %v2319_v3 = vcombine.low %v57_v57, %v65_v58 }
  0xcf   :  { %2087 = vmatpush1.bf16.msra.mxu0 %v2891_v4 }
  0xd0   :  { %2140 = vmatpush1.bf16.msra.mxu1 %v2894_v5  ;;  %2088 = vmatprep.subr.bf16.mxu0 %v2899_v6 }
  0xd1   :  { %2141 = vmatprep.subr.bf16.mxu1 %v2902_v7 }
  0xd3   :  { %2089 = vmatpush1.bf16.msra.mxu0 %v2897_v8 }
  0xd4   :  { %2142 = vmatpush1.bf16.msra.mxu1 %v2900_v9  ;;  %2090 = vmatprep.subr.bf16.mxu0 %v2905_v10 }
  0xd5   :  { %2143 = vmatprep.subr.bf16.mxu1 %v2908_v11 }
  0xd7   :  { %2091 = vmatpush1.bf16.msra.mxu0 %v2903_v12 }
  0xd8   :  { %2144 = vmatpush1.bf16.msra.mxu1 %v2906_v13  ;;  %2092 = vmatprep.subr.bf16.mxu0 %v2911_v14 }
  0xd9   :  { %2145 = vmatprep.subr.bf16.mxu1 %v2914_v15 }
  0xdb   :  { %2093 = vmatpush1.bf16.msra.mxu0 %v2909_v16 }
  0xdc   :  { %2146 = vmatpush1.bf16.msra.mxu1 %v2912_v17  ;;  %2094 = vmatprep.subr.bf16.mxu0 %v2917_v18 }
  0xdd   :  { %2147 = vmatprep.subr.bf16.mxu1 %v2920_v19 }
  0xdf   :  { %2095 = vmatpush1.bf16.msra.mxu0 %v2915_v20 }
  0xe0   :  { %2148 = vmatpush1.bf16.msra.mxu1 %v2918_v21  ;;  %2096 = vmatprep.subr.bf16.mxu0 %v2923_v22 }
  0xe1   :  { %2149 = vmatprep.subr.bf16.mxu1 %v2926_v23 }
  0xe3   :  { %2097 = vmatpush2.bf16.msra.mxu0 %v2921_v24 }
  0xe4   :  { %2150 = vmatpush2.bf16.msra.mxu1 %v2924_v25  ;;  %2098 = vmatprep.subr.bf16.mxu0 %v2929_v26 }
  0xe5   :  { %2151 = vmatprep.subr.bf16.mxu1 %v2932_v27 }
  0xe7   :  { %2099 = vmatpush2.bf16.msra.mxu0 %v2927_v28 }
  0xe8   :  { %2152 = vmatpush2.bf16.msra.mxu1 %v2930_v29  ;;  %2100 = vmatprep.subr.bf16.mxu0 %v2935_v30 }
  0xe9   :  { %2153 = vmatprep.subr.bf16.mxu1 %v2938_v31 }
  0xeb   :  { %2101 = vmatpush2.bf16.msra.mxu0 %v2933_v32 }
  0xec   :  { %2154 = vmatpush2.bf16.msra.mxu1 %v2936_v33  ;;  %2102 = vmatprep.subr.bf16.mxu0 %v2941_v34 }
  0xed   :  { %2155 = vmatprep.subr.bf16.mxu1 %v2944_v35 }
  0xef   :  { %2103 = vmatpush2.bf16.msra.mxu0 %v2939_v36 }
  0xf0   :  { %2156 = vmatpush2.bf16.msra.mxu1 %v2942_v37  ;;  %2104 = vmatprep.subr.bf16.mxu0 %v2947_v38 }
  0xf1   :  { %2157 = vmatprep.subr.bf16.mxu1 %v2950_v39 }
  0xf3   :  { %2105 = vmatpush2.bf16.msra.mxu0 %v2945_v40 }
  0xf4   :  { %2158 = vmatpush2.bf16.msra.mxu1 %v2948_v41  ;;  %2106 = vmatprep.subr.bf16.mxu0 %v2953_v44 }
  0xf5   :  { %2159 = vmatprep.subr.bf16.mxu1 %v2956_v45 }
  0xf7   :  { %2107 = vmatpush2.bf16.msra.mxu0 %v2951_v48 }
  0xf8   :  { %2160 = vmatpush2.bf16.msra.mxu1 %v2954_v49  ;;  %2108 = vmatprep.subr.bf16.mxu0 %v2959_v42  ;;  %v2215_v49 = vlaneseq }
  0xf9   :  { %2161 = vmatprep.subr.bf16.mxu1 %v2962_v43 }
  0xfb   :  { %2109 = vmatpush2.bf16.msra.mxu0 %v2957_v46 }
  0xfc   :  { %2162 = vmatpush2.bf16.msra.mxu1 %v2960_v47  ;;  %2110 = vmatprep.subr.bf16.mxu0 %v2965_v50 }
  0xfd   :  { %2163 = vmatprep.subr.bf16.mxu1 %v2968_v51 }
  0xff   :  { %2111 = vmatpush2.bf16.msra.mxu0 %v2963_v52  ;;  %v2216_v52 = vshrl.u32 %v2215_v49, 7 }
 0x100   :  { %2164 = vmatpush2.bf16.msra.mxu1 %v2966_v53 }
 0x102   :  { %2113 = vmatmul.mubr.bf16.vlgmr.msra.gmra.mxu0 %v2301_v62  ;;  %v1796_v4 = vpop.f32.mrf.mxu0 }
 0x103   :  { %2166 = vmatmul.mubr.bf16.vlgmr.msra.gmra.mxu1 %v2303_v63  ;;  %2122 = vmatprep.mubr.bf16.mxu0 %v2318_v0  ;;  %v1849_v5 = vpop.f32.mrf.mxu1 }
 0x104   :  { %2175 = vmatprep.mubr.bf16.mxu1 %v2320_v1  ;;  %v1798_v6 = vpop.f32.mrf.mxu0  ;;  %v1850_v44 = vadd.f32 %v1849_v5, %v1796_v4 }
 0x105   :  { %v1851_v7 = vpop.f32.mrf.mxu1 }
 0x106   :  { %v1800_v56 = vpop.f32.mrf.mxu0  ;;  %v1852_v45 = vadd.f32 %v1851_v7, %v1798_v6 }
 0x107   :  { %v1853_v59 = vpop.f32.mrf.mxu1 }
 0x108   :  { %v1802_v8 = vpop.f32.mrf.mxu0  ;;  %v1854_v46 = vadd.f32 %v1853_v59, %v1800_v56  ;;  %v2213_v56 = vld [vmem:[%s3945_s2] sm:$0x3] }
 0x109   :  { %v1855_v61 = vpop.f32.mrf.mxu1 }
 0x10a   :  { %2123 = vmatmul.mubr.bf16.gmra.mxu0 %v2317_v2  ;;  %v1806_v60 = vpop.f32.mrf.mxu0  ;;  %v1856_v53 = vadd.f32 %v1855_v61, %v1802_v8 }
 0x10b   :  { %2176 = vmatmul.mubr.bf16.gmra.mxu1 %v2319_v3  ;;  %v1859_v9 = vpop.f32.mrf.mxu1  ;;  %v2217_v3 = vsub.s32 0, %v2216_v52 }
 0x10c   :  { %v1808_v10 = vpop.f32.mrf.mxu0  ;;  %v1860_v62 = vadd.f32 %v1859_v9, %v1806_v60 }
 0x10d   :  { %v1861_v11 = vpop.f32.mrf.mxu1 }
 0x10e   :  { %v1810_v12 = vpop.f32.mrf.mxu0  ;;  %v1862_v63 = vadd.f32 %v1861_v11, %v1808_v10 }
 0x10f   :  { %v1863_v13 = vpop.f32.mrf.mxu1 }
 0x110   :  { %v1812_v14 = vpop.f32.mrf.mxu0  ;;  %v1864_v59 = vadd.f32 %v1863_v13, %v1810_v12 }
 0x111   :  { %v1865_v16 = vpop.f32.mrf.mxu1 }
 0x142   :  { %v1902_v15 = vpop.f32.mrf.mxu0 }
 0x143   :  { %v1955_v17 = vpop.f32.mrf.mxu1  ;;  %v1903_v48 = vadd.f32 %v1902_v15, %v1850_v44  ;;  %v2221_v15 = vsub.s32 1, %v2216_v52 }
 0x144   :  { %v1904_v18 = vpop.f32.mrf.mxu0 }
 0x145   :  { %v1957_v19 = vpop.f32.mrf.mxu1  ;;  %v1905_v47 = vadd.f32 %v1904_v18, %v1852_v45  ;;  %v1956_v50 = vadd.f32 %v1955_v17, %v1903_v48  ;;  %v1866_v17 = vadd.f32 %v1865_v16, %v1812_v14 }
 0x146   :  { %v1906_v20 = vpop.f32.mrf.mxu0 }
 0x147   :  { %v1959_v21 = vpop.f32.mrf.mxu1  ;;  %v1907_v51 = vadd.f32 %v1906_v20, %v1854_v46  ;;  %v1958_v57 = vadd.f32 %v1957_v19, %v1905_v47  ;;  %v3914_v20 = vrot.slane %v2213_v56, %v2217_v3 }
 0x148   :  { %v1908_v22 = vpop.f32.mrf.mxu0 }
 0x149   :  { %v1961_v23 = vpop.f32.mrf.mxu1  ;;  %v1909_v0 = vadd.f32 %v1908_v22, %v1856_v53  ;;  %v1960_v1 = vadd.f32 %v1959_v21, %v1907_v51 }
 0x14a   :  { %v1912_v24 = vpop.f32.mrf.mxu0 }
 0x14b   :  { %v1965_v25 = vpop.f32.mrf.mxu1  ;;  %v1913_v4 = vadd.f32 %v1912_v24, %v1860_v62  ;;  %v1962_v60 = vadd.f32 %v1961_v23, %v1909_v0 }
 0x14c   :  { %v1914_v26 = vpop.f32.mrf.mxu0 }
 0x14d   :  { %v1967_v27 = vpop.f32.mrf.mxu1  ;;  %v1915_v5 = vadd.f32 %v1914_v26, %v1862_v63  ;;  %v1966_v21 = vadd.f32 %v1965_v25, %v1913_v4 }
 0x14e   :  { %v1916_v28 = vpop.f32.mrf.mxu0 }
 0x14f   :  { %v3901_v29 = vpop.f32.mrf.mxu1  ;;  %v1917_v11 = vadd.f32 %v1916_v28, %v1864_v59  ;;  %v1968_v22 = vadd.f32 %v1967_v27, %v1915_v5 }
 0x150   :  { %v1918_v30 = vpop.f32.mrf.mxu0 }
 0x151   :  { %v3903_v31 = vpop.f32.mrf.mxu1  ;;  %v1919_v24 = vadd.f32 %v1918_v30, %v1866_v17  ;;  %v1970_v28 = vadd.f32 %v3901_v29, %v1917_v11 }
 0x153   :  { %v1972_v27 = vadd.f32 %v3903_v31, %v1919_v24 }
 0x182   :  { %v2008_v32 = vpop.f32.mrf.mxu0 }
 0x183   :  { %v2061_v33 = vpop.f32.mrf.mxu1  ;;  %v2009_v58 = vadd.f32 %v2008_v32, %v1956_v50 }
 0x184   :  { %v2010_v34 = vpop.f32.mrf.mxu0 }
 0x185   :  { %v2063_v35 = vpop.f32.mrf.mxu1  ;;  %v2011_v2 = vadd.f32 %v2010_v34, %v1958_v57  ;;  %v2062_v8 = vadd.f32 %v2061_v33, %v2009_v58  ;;  %v3916_v33 = vrot.slane %v2213_v56, %v2221_v15 }
 0x186   :  { %v2012_v36 = vpop.f32.mrf.mxu0 }
 0x187   :  { %v2065_v37 = vpop.f32.mrf.mxu1  ;;  %v2013_v61 = vadd.f32 %v2012_v36, %v1960_v1  ;;  %v2064_v18 = vadd.f32 %v2063_v35, %v2011_v2 }
 0x188   :  { %v2014_v38 = vpop.f32.mrf.mxu0 }
 0x189   :  { %v2067_v39 = vpop.f32.mrf.mxu1  ;;  %v2015_v26 = vadd.f32 %v2014_v38, %v1962_v60  ;;  %v2066_v44 = vadd.f32 %v2065_v37, %v2013_v61 }
 0x18a   :  { %v2018_v40 = vpop.f32.mrf.mxu0 }
 0x18b   :  { %v3905_v41 = vpop.f32.mrf.mxu1  ;;  %v2019_v14 = vadd.f32 %v2018_v40, %v1966_v21  ;;  %v2068_v30 = vadd.f32 %v2067_v39, %v2015_v26 }
 0x18c   :  { %v2020_v42 = vpop.f32.mrf.mxu0 }
 0x18d   :  { %v2073_v43 = vpop.f32.mrf.mxu1  ;;  %v2021_v16 = vadd.f32 %v2020_v42, %v1968_v22  ;;  %v2072_v40 = vadd.f32 %v3905_v41, %v2019_v14 }
 0x18e   :  { %v2022_v54 = vpop.f32.mrf.mxu0 }
 0x18f   :  { %v3907_v55 = vpop.f32.mrf.mxu1  ;;  %v2023_v37 = vadd.f32 %v2022_v54, %v1970_v28  ;;  %v2074_v42 = vadd.f32 %v2073_v43, %v2021_v16 }
 0x190   :  { %v2024_v6 = vpop.f32.mrf.mxu0 }
 0x191   :  { %v3909_v7 = vpop.f32.mrf.mxu1  ;;  %v2025_v52 = vadd.f32 %v2024_v6, %v1972_v27  ;;  %v2076_v62 = vadd.f32 %v3907_v55, %v2023_v37 }
 0x193   :  { %v2078_v5 = vadd.f32 %v3909_v7, %v2025_v52 }
 0x1c2   :  { %v2114_v9 = vpop.f32.mrf.mxu0 }
 0x1c3   :  { %v2167_v10 = vpop.f32.mrf.mxu1  ;;  %v2115_v19 = vadd.f32 %v2114_v9, %v2062_v8 }
 0x1c4   :  { %v2116_v32 = vpop.f32.mrf.mxu0 }
 0x1c5   :  { %v2169_v34 = vpop.f32.mrf.mxu1  ;;  %v2168_v12 = vadd.f32 %v2167_v10, %v2115_v19  ;;  %v2117_v13 = vadd.f32 %v2116_v32, %v2064_v18 }
 0x1c6   :  { %v2118_v23 = vpop.f32.mrf.mxu0 }
 0x1c7   :  { %v2171_v36 = vpop.f32.mrf.mxu1  ;;  %v2225_v35 = vadd.f32 %v3914_v20, %v2168_v12  ;;  %v2170_v45 = vadd.f32 %v2169_v34, %v2117_v13  ;;  %v2119_v25 = vadd.f32 %v2118_v23, %v2066_v44 }
 0x1c8   :  { %v2120_v38 = vpop.f32.mrf.mxu0 }
 0x1c9   :  { %v2173_v48 = vpop.f32.mrf.mxu1  ;;  %v2241_v49 = vmul.f32 0.2, %v2225_v35  ;;  %v2226_v46 = vadd.f32 %v3916_v33, %v2170_v45  ;;  %v2172_v47 = vadd.f32 %v2171_v36, %v2119_v25  ;;  %vm2233_vm0 = vcmp.ge.f32.partialorder %v2225_v35, 0.0 }
 0x1ca   :  { %v2121_v50 = vadd.f32 %v2120_v38, %v2068_v30  ;;  %v2124_v29 = vpop.f32.mrf.mxu0 }
 0x1cb   :  { %v2177_v51 = vpop.f32.mrf.mxu1  ;;  %vm2234_vm1 = vcmp.ge.f32.partialorder %v2226_v46, 0.0  ;;  %v2242_v53 = vmul.f32 0.2, %v2226_v46  ;;  %v2227_v31 = vadd.f32 %v3914_v20, %v2172_v47  ;;  %v2125_v57 = vadd.f32 %v2124_v29, %v2072_v40 }
 0x1cc   :  { %v2174_v39 = vadd.f32 %v2173_v48, %v2121_v50  ;;  %v2126_v58 = vpop.f32.mrf.mxu0  ;;  %v2249_v63 = vsel %vm2233_vm0, %v2225_v35, %v2241_v49 }
 0x1cd   :  { %v2179_v54 = vpop.f32.mrf.mxu1  ;;  %v2250_v0 = vsel %vm2234_vm1, %v2226_v46, %v2242_v53  ;;  %v2127_v1 = vadd.f32 %v2126_v58, %v2074_v42  ;;  %v2243_v43 = vmul.f32 0.2, %v2227_v31  ;;  %v2178_v3 = vadd.f32 %v2177_v51, %v2125_v57 }
 0x1ce   :  { %v2581_v41 = vpack.c.bf16 %v2250_v0, %v2249_v63  ;;  %v2228_v2 = vadd.f32 %v3916_v33, %v2174_v39  ;;  %v2128_v4 = vpop.f32.mrf.mxu0  ;;  %vm2235_vm2 = vcmp.ge.f32.partialorder %v2227_v31, 0.0 }
 0x1cf   :  { %v2180_v6 = vadd.f32 %v2179_v54, %v2127_v1  ;;  %v2129_v56 = vadd.f32 %v2128_v4, %v2076_v62  ;;  %v2181_v59 = vpop.f32.mrf.mxu1  ;;  %v2229_v8 = vadd.f32 %v3914_v20, %v2178_v3  ;;  %v2251_v9 = vsel %vm2235_vm2, %v2227_v31, %v2243_v43 }
 0x1d0   :  { %2281 = vst [vmem:[%s3946_s3] sm:$0xff] %v2581_v41  ;;  %vm2236_vm3 = vcmp.ge.f32.partialorder %v2228_v2, 0.0  ;;  %v2244_v55 = vmul.f32 0.2, %v2228_v2  ;;  %v2130_v61 = vpop.f32.mrf.mxu0 }
 0x1d1   :  { %v2230_v15 = vadd.f32 %v3916_v33, %v2180_v6  ;;  %v2182_v17 = vadd.f32 %v2181_v59, %v2129_v56  ;;  %v2131_v60 = vadd.f32 %v2130_v61, %v2078_v5  ;;  %vm2237_vm4 = vcmp.ge.f32.partialorder %v2229_v8, 0.0  ;;  %v2183_v21 = vpop.f32.mrf.mxu1 }
 0x1d2   :  { %v2252_v10 = vsel %vm2236_vm3, %v2228_v2, %v2244_v55  ;;  %v2245_v7 = vmul.f32 0.2, %v2229_v8 }
 0x1d3   :  { %v2582_v11 = vpack.c.bf16 %v2252_v10, %v2251_v9  ;;  %vm2238_vm5 = vcmp.ge.f32.partialorder %v2230_v15, 0.0  ;;  %v2246_v18 = vmul.f32 0.2, %v2230_v15  ;;  %v2231_v19 = vadd.f32 %v3914_v20, %v2182_v17 }
 0x1d4   :  { %v2184_v22 = vadd.f32 %v2183_v21, %v2131_v60  ;;  %v2253_v24 = vsel %vm2237_vm4, %v2229_v8, %v2245_v7 }
 0x1d5   :  { %2282 = vst [vmem:[%s3946_s3 + $0x8] sm:$0xff] %v2582_v11  ;;  %v2254_v26 = vsel %vm2238_vm5, %v2230_v15, %v2246_v18  ;;  %v2247_v34 = vmul.f32 0.2, %v2231_v19  ;;  %vm2239_vm6 = vcmp.ge.f32.partialorder %v2231_v19, 0.0 }
 0x1d6   :  { %v2583_v32 = vpack.c.bf16 %v2254_v26, %v2253_v24  ;;  %v2232_v44 = vadd.f32 %v3916_v33, %v2184_v22 }
 0x1d7   :  { %v2255_v20 = vsel %vm2239_vm6, %v2231_v19, %v2247_v34 }
 0x1d8   :  { %2283 = vst [vmem:[%s3946_s3 + $0x10] sm:$0xff] %v2583_v32  ;;  %vm2240_vm7 = vcmp.ge.f32.partialorder %v2232_v44, 0.0  ;;  %v2248_v12 = vmul.f32 0.2, %v2232_v44 }
 0x1da   :  { %v2256_v13 = vsel %vm2240_vm7, %v2232_v44, %v2248_v12 }
 0x1db   :  { %v2584_v14 = vpack.c.bf16 %v2256_v13, %v2255_v20 }
 0x1dd   :  { %2284 = vst [vmem:[%s3946_s3 + $0x18] sm:$0xff] %v2584_v14 }

// kernel: patchgan_discriminator.9
= control target key start
LH: loop header
LB: loop body
LE: loop exit
PB: predicated region body
PF: predicated region fallthrough
CT: control target
= control target key end

     0   :  { %s922_s0 = inlined_call_operand.vmem [shape: bf16[16,8192], index: 0, kind: input, shape index: {}]   ;;  %s923_s1 = inlined_call_operand.vmem [shape: bf16[1,8192], index: 1, kind: input, shape index: {}]   ;;  %s924_s2 = inlined_call_operand.<no memory space> [shape: f32[1,1], index: 2, kind: input, shape index: {}]   ;;  %s925_s3 = inlined_call_operand.vmem [shape: f32[16,1], index: 3, kind: output, shape index: {}]  }
   0x1   :  { %v8_v0 = vstv %s924_s2 }
   0x2   :  { %9 = vst [vmem:[#allocation3] sm:$0x1] %v8_v0 }
   0x3   :  { %s763_s14 = smov 0   ;;  %s765_s15 = smov 0  }
   0x4   :  { %s767_s16 = smov 0   ;;  %s769_s17 = smov 0  }
   0x5   :  { %s771_s18 = smov 0  }
   0x6 LB: > { %s24_s2 = sadd.s32 1, %s733_s17  ;;  %p43_p1 = scmp.ne.s32.totalorder %s725_s15, %s721_s14  ;;  %s737_s18 = sphi %s771_s18, %s15_s18   ;;  %s733_s17 = sphi %s769_s17, %s929_s17   ;;  %s729_s16 = sphi %s767_s16, %s928_s16   ;;  %s725_s15 = sphi %s765_s15, %s927_s15   ;;  %s721_s14 = sphi %s763_s14, %s926_s14  }
   0x7   : > { %p25_p0 = scmp.ge.s32.totalorder %s24_s2, 4  ;;  %p44_p2 = scmp.eq.s32.totalorder %s737_s18, 0 }
   0x8   : > { %s36_s20 = sadd.s32 1, %s725_s15  ;;  %p643_p5 = scmp.ge.s32.totalorder %s737_s18, 4 }
   0x9   : > { %s931_s2 = smov (%p25_p0, %s24_s2), 0  ;;  %p45_p3 = por %p44_p2, %p43_p1 }
   0xa   : > { %s32_s19 = ssub.s32 %s733_s17, %s931_s2  ;;  %145 = sbr.rel (%p643_p5) target bundleno = 27 (0x1b), region = 20 }
   0xb   : > { %p34_p4 = scmp.eq.s32.totalorder %s32_s19, 0 }
   0xd   : > { %s798_s21 = scalar_select %p34_p4, %s725_s15, %s36_s20  }
   0xf   : > { %148 = sbr.rel (!%p45_p3) target bundleno = 27 (0x1b), region = 24  ;;  %s150_s22 = sand.u32 (%p45_p3), 1, %s725_s15  }
  0x10   : > { %s657_s23 = sshll.u32 (%p45_p3), %s733_s17, 6  ;;  %s644_s24 = sshll.u32 (%p45_p3), %s150_s22, 7 }
  0x11   : > { %s806_s27 = scalar_lea.vmem (%p45_p3), %s922_s0, %s657_s23  ;;  %s152_s28 = scalar_lea.vmem (%p45_p3), [#allocation4], %s644_s24 }
  0x12   : > { %v171_v1 = vld [vmem:[%s806_s27] sm:$0xff] (%p45_p3)  ;;  %v173_v2 = vld [vmem:[%s806_s27 + $0x8] sm:$0xff] (%p45_p3)  ;;  %v175_v3 = vld [vmem:[%s806_s27 + $0x10] sm:$0xff] (%p45_p3) }
  0x13   : > { %172 = vst [vmem:[%s152_s28] sm:$0xff] (%p45_p3), %v171_v1  ;;  %174 = vst [vmem:[%s152_s28 + $0x8] sm:$0xff] (%p45_p3), %v173_v2  ;;  %v177_v4 = vld [vmem:[%s806_s27 + $0x18] sm:$0xff] (%p45_p3)  ;;  %v179_v5 = vld [vmem:[%s806_s27 + $0x20] sm:$0xff] (%p45_p3) }
  0x14   : > { %176 = vst [vmem:[%s152_s28 + $0x10] sm:$0xff] %v175_v3  ;;  %v181_v6 = vld [vmem:[%s806_s27 + $0x28] sm:$0xff]  ;;  %178 = vst [vmem:[%s152_s28 + $0x18] sm:$0xff] %v177_v4  ;;  %v183_v7 = vld [vmem:[%s806_s27 + $0x30] sm:$0xff] }
  0x15   : > { %180 = vst [vmem:[%s152_s28 + $0x20] sm:$0xff] %v179_v5  ;;  %182 = vst [vmem:[%s152_s28 + $0x28] sm:$0xff] %v181_v6  ;;  %v185_v8 = vld [vmem:[%s806_s27 + $0x38] sm:$0xff]  ;;  %v187_v9 = vld [vmem:[%s806_s27 + $0x100] sm:$0xff] }
  0x16   : > { %184 = vst [vmem:[%s152_s28 + $0x30] sm:$0xff] %v183_v7  ;;  %186 = vst [vmem:[%s152_s28 + $0x38] sm:$0xff] %v185_v8  ;;  %v189_v10 = vld [vmem:[%s806_s27 + $0x108] sm:$0xff]  ;;  %v191_v11 = vld [vmem:[%s806_s27 + $0x110] sm:$0xff] }
  0x17   : > { %188 = vst [vmem:[%s152_s28 + $0x40] sm:$0xff] %v187_v9  ;;  %v193_v12 = vld [vmem:[%s806_s27 + $0x118] sm:$0xff]  ;;  %190 = vst [vmem:[%s152_s28 + $0x48] sm:$0xff] %v189_v10  ;;  %v195_v13 = vld [vmem:[%s806_s27 + $0x120] sm:$0xff] }
  0x18   : > { %192 = vst [vmem:[%s152_s28 + $0x50] sm:$0xff] %v191_v11  ;;  %194 = vst [vmem:[%s152_s28 + $0x58] sm:$0xff] %v193_v12  ;;  %v197_v14 = vld [vmem:[%s806_s27 + $0x128] sm:$0xff]  ;;  %v199_v15 = vld [vmem:[%s806_s27 + $0x130] sm:$0xff] }
  0x19   : > { %196 = vst [vmem:[%s152_s28 + $0x60] sm:$0xff] %v195_v13  ;;  %198 = vst [vmem:[%s152_s28 + $0x68] sm:$0xff] %v197_v14  ;;  %v201_v16 = vld [vmem:[%s806_s27 + $0x138] sm:$0xff] }
  0x1a   : > { %200 = vst [vmem:[%s152_s28 + $0x70] sm:$0xff] %v199_v15  ;;  %202 = vst [vmem:[%s152_s28 + $0x78] sm:$0xff] %v201_v16 }
  0x1b PF: > { %p647_p6 = scmp.ge.s32.totalorder %s737_s18, 1  ;;  %p215_p7 = scmp.lt.s32.totalorder %s737_s18, 5 }
  0x1d   : > { %p216_p8 = pnand %p647_p6, %p215_p7 }
  0x1e   : > { %s222_s29 = sand.u32 (!%p216_p8), 1, %s721_s14   ;;  %s649_s30 = sshll.u32 (!%p216_p8), %s729_s16, 4 }
  0x1f   : > { %219 = sbr.rel (%p216_p8) target bundleno = 240 (0xf0), region = 51  ;;  %s648_s4 = sshll.u32 (!%p216_p8), %s222_s29, 7 }
  0x20   : > { %p252_p9 = scmp.lt.s32.totalorder (!%p216_p8), %s649_s30, 63  ;;  %s831_s8 = scalar_lea.vmem (!%p216_p8), [#allocation4], %s648_s4 }
  0x21   : > { %p650_p10 = scmp.ne.s32.totalorder (!%p216_p8), %s729_s16, 0 }
  0x24   : > { %s933_s30 = smov (!%p252_p9, %s649_s30), 63  ;;  %265 = sbr.rel (%p650_p10) target bundleno = 43 (0x2b), region = 59 }
  0x25   : > { %s254_s7 = scalar_lea.vmem %s923_s1, %s933_s30 }
  0x29   : > { %vm266_vm0 = vcmask 7168   ;;  %v739_v17 = vmov 0.0  }
  0x2a   : > { %267 = vst.msk [vmem:[#allocation2] sm:$0xff] %vm266_vm0, %v739_v17  ;;  %268 = vst.msk [vmem:[#allocation2 + $0x8] sm:$0xff] %vm266_vm0, %v739_v17 }
  0x2b PF: > { %v329_v18 = vlaneseq  ;;  %v317_v19 = vld [vmem:[%s254_s7] sm:$0xff]  ;;  %v269_v25 = vld [vmem:[%s831_s8] sm:$0xff]  ;;  %v318_v39 = vld [vmem:[%s254_s7 + $0x8] sm:$0xff]  ;;  %vm541_vm1 = vcmask 7168   ;;  %p651_p11 = scmp.ne.s32.totalorder %s729_s16, 3 }
  0x2c   : > { %v319_v20 = vunpack.c.l.bf16 %v317_v19  ;;  %v320_v29 = vunpack.c.h.bf16 %v317_v19  ;;  %v270_v31 = vld [vmem:[%s831_s8 + $0x8] sm:$0xff]  ;;  %v285_v32 = vunpack.c.l.bf16 %v269_v25  ;;  %v286_v33 = vunpack.c.h.bf16 %v269_v25  ;;  %v271_v37 = vld [vmem:[%s831_s8 + $0x10] sm:$0xff]  ;;  %v277_v42 = vld [vmem:[%s831_s8 + $0x40] sm:$0xff] }
  0x2d   : > { %v330_v21 = vshrl.u32 %v329_v18, 7  ;;  %v287_v38 = vunpack.c.l.bf16 %v270_v31  ;;  %v288_v43 = vunpack.c.h.bf16 %v270_v31  ;;  %v278_v44 = vld [vmem:[%s831_s8 + $0x48] sm:$0xff]  ;;  %v289_v49 = vunpack.c.l.bf16 %v271_v37  ;;  %v272_v52 = vld [vmem:[%s831_s8 + $0x18] sm:$0xff]  ;;  %v273_v59 = vld [vmem:[%s831_s8 + $0x20] sm:$0xff] }
  0x2e   : > { %v321_v50 = vunpack.c.l.bf16 %v318_v39  ;;  %v302_v53 = vunpack.c.h.bf16 %v277_v42  ;;  %v301_v56 = vunpack.c.l.bf16 %v277_v42  ;;  %v290_v57 = vunpack.c.h.bf16 %v271_v37  ;;  %v279_v0 = vld [vmem:[%s831_s8 + $0x50] sm:$0xff]  ;;  %v280_v17 = vld [vmem:[%s831_s8 + $0x58] sm:$0xff]  ;;  %v274_v25 = vld [vmem:[%s831_s8 + $0x28] sm:$0xff] }
  0x2f   : > { %v834_v22 = vsub.s32 0, %v330_v21  ;;  %v836_v23 = vsub.s32 2, %v330_v21  ;;  %v838_v24 = vsub.s32 4, %v330_v21  ;;  %v843_v28 = vsub.s32 6, %v330_v21  ;;  %v281_v37 = vld [vmem:[%s831_s8 + $0x60] sm:$0xff] }
  0x30   : > { %v303_v58 = vunpack.c.l.bf16 %v278_v44  ;;  %v291_v1 = vunpack.c.l.bf16 %v272_v52  ;;  %v304_v2 = vunpack.c.h.bf16 %v278_v44  ;;  %v292_v9 = vunpack.c.h.bf16 %v272_v52  ;;  %v275_v44 = vld [vmem:[%s831_s8 + $0x30] sm:$0xff] }
  0x31   : > { %v332_v26 = vrot.slane %v319_v20, %v834_v22  ;;  %v336_v27 = vrot.slane %v319_v20, %v836_v23  ;;  %v340_v30 = vrot.slane %v319_v20, %v838_v24  ;;  %v344_v34 = vrot.slane %v319_v20, %v843_v28 }
  0x32   : > { %v348_v40 = vrot.slane %v320_v29, %v834_v22  ;;  %v352_v45 = vrot.slane %v320_v29, %v836_v23  ;;  %v356_v51 = vrot.slane %v320_v29, %v838_v24  ;;  %v360_v60 = vrot.slane %v320_v29, %v843_v28 }
  0x33   : > { %v412_v35 = vrot.slane %v332_v26, %v834_v22  ;;  %v416_v36 = vrot.slane %v336_v27, %v834_v22  ;;  %v420_v41 = vrot.slane %v340_v30, %v834_v22  ;;  %v424_v46 = vrot.slane %v344_v34, %v834_v22 }
  0x34   : > { %v428_v54 = vrot.slane %v348_v40, %v834_v22  ;;  %v432_v61 = vrot.slane %v352_v45, %v834_v22  ;;  %v364_v3 = vrot.slane %v321_v50, %v834_v22  ;;  %v436_v4 = vrot.slane %v356_v51, %v834_v22 }
  0x35   : > { %v473_v47 = vmul.f32 %v412_v35, %v285_v32  ;;  %v474_v48 = vmul.f32 %v416_v36, %v286_v33  ;;  %v475_v55 = vmul.f32 %v420_v41, %v287_v38  ;;  %v476_v62 = vmul.f32 %v424_v46, %v288_v43 }
  0x36   : > { %v477_v5 = vmul.f32 %v428_v54, %v289_v49  ;;  %v490_v6 = vmul.f32 %v416_v36, %v302_v53  ;;  %v489_v8 = vmul.f32 %v412_v35, %v301_v56  ;;  %v293_v10 = vunpack.c.l.bf16 %v273_v59 }
  0x37   : > { %v505_v63 = vadd.f32 %v474_v48, %v473_v47  ;;  %v368_v11 = vrot.slane %v321_v50, %v836_v23  ;;  %v305_v12 = vunpack.c.l.bf16 %v279_v0  ;;  %v440_v13 = vrot.slane %v360_v60, %v834_v22 }
  0x38   : > { %v478_v14 = vmul.f32 %v432_v61, %v290_v57  ;;  %v491_v15 = vmul.f32 %v420_v41, %v303_v58  ;;  %v869_v18 = vunpack.c.h.bf16 %v318_v39  ;;  %v372_v19 = vrot.slane %v321_v50, %v838_v24 }
  0x39   : > { %v506_v7 = vadd.f32 %v505_v63, %v475_v55  ;;  %v444_v20 = vrot.slane %v364_v3, %v834_v22  ;;  %v306_v21 = vunpack.c.h.bf16 %v279_v0  ;;  %v479_v26 = vmul.f32 %v436_v4, %v291_v1  ;;  %v282_v55 = vld [vmem:[%s831_s8 + $0x68] sm:$0xff] }
  0x3a   : > { %v492_v27 = vmul.f32 %v424_v46, %v304_v2  ;;  %v522_v30 = vadd.f32 %v490_v6, %v489_v8  ;;  %v294_v31 = vunpack.c.h.bf16 %v273_v59  ;;  %v376_v32 = vrot.slane %v321_v50, %v843_v28 }
  0x3b   : > { %v507_v16 = vadd.f32 %v506_v7, %v476_v62  ;;  %v448_v33 = vrot.slane %v368_v11, %v834_v22  ;;  %v307_v34 = vunpack.c.l.bf16 %v280_v17  ;;  %v480_v35 = vmul.f32 %v440_v13, %v292_v9  ;;  %v276_v62 = vld [vmem:[%s831_s8 + $0x38] sm:$0xff] }
  0x3c   : > { %v493_v38 = vmul.f32 %v428_v54, %v305_v12  ;;  %v523_v39 = vadd.f32 %v522_v30, %v491_v15  ;;  %v295_v40 = vunpack.c.l.bf16 %v274_v25  ;;  %v380_v41 = vrot.slane %v869_v18, %v834_v22  ;;  %v283_v12 = vld [vmem:[%s831_s8 + $0x70] sm:$0xff] }
  0x3d   : > { %v508_v29 = vadd.f32 %v507_v16, %v477_v5  ;;  %v452_v42 = vrot.slane %v372_v19, %v834_v22  ;;  %v308_v43 = vunpack.c.h.bf16 %v280_v17  ;;  %v481_v45 = vmul.f32 %v444_v20, %v293_v10 }
  0x3e   : > { %v494_v47 = vmul.f32 %v432_v61, %v306_v21  ;;  %v524_v48 = vadd.f32 %v523_v39, %v492_v27  ;;  %v296_v49 = vunpack.c.h.bf16 %v274_v25  ;;  %v384_v50 = vrot.slane %v869_v18, %v836_v23  ;;  %v284_v27 = vld [vmem:[%s831_s8 + $0x78] sm:$0xff] }
  0x3f   : > { %v509_v36 = vadd.f32 %v508_v29, %v478_v14  ;;  %v456_v51 = vrot.slane %v376_v32, %v834_v22  ;;  %v309_v52 = vunpack.c.l.bf16 %v281_v37  ;;  %v482_v53 = vmul.f32 %v448_v33, %v294_v31 }
  0x40   : > { %v495_v56 = vmul.f32 %v436_v4, %v307_v34  ;;  %v525_v57 = vadd.f32 %v524_v48, %v493_v38  ;;  %v297_v58 = vunpack.c.l.bf16 %v275_v44  ;;  %v388_v59 = vrot.slane %v869_v18, %v838_v24  ;;  %v323_v48 = vld [vmem:[#allocation2] sm:$0xff] }
  0x41   : > { %v510_v46 = vadd.f32 %v509_v36, %v479_v26  ;;  %v460_v60 = vrot.slane %v380_v41, %v834_v22  ;;  %v310_v61 = vunpack.c.h.bf16 %v281_v37  ;;  %v483_v63 = vmul.f32 %v452_v42, %v295_v40 }
  0x42   : > { %v496_v23 = vmul.f32 %v440_v13, %v308_v43  ;;  %v526_v1 = vadd.f32 %v525_v57, %v494_v47  ;;  %v298_v2 = vunpack.c.h.bf16 %v275_v44  ;;  %v392_v3 = vrot.slane %v869_v18, %v843_v28 }
  0x43   : > { %v511_v54 = vadd.f32 %v510_v46, %v480_v35  ;;  %v464_v4 = vrot.slane %v384_v50, %v834_v22  ;;  %v311_v5 = vunpack.c.l.bf16 %v282_v55  ;;  %v484_v6 = vmul.f32 %v456_v51, %v296_v49 }
  0x44   : > { %v497_v8 = vmul.f32 %v444_v20, %v309_v52  ;;  %v527_v24 = vadd.f32 %v526_v1, %v495_v56  ;;  %v299_v9 = vunpack.c.l.bf16 %v276_v62  ;;  %v468_v10 = vrot.slane %v388_v59, %v834_v22 }
  0x45   : > { %v512_v0 = vadd.f32 %v511_v54, %v481_v45  ;;  %v485_v11 = vmul.f32 %v460_v60, %v297_v58  ;;  %v312_v13 = vunpack.c.h.bf16 %v282_v55  ;;  %v498_v15 = vmul.f32 %v448_v33, %v310_v61 }
  0x46   : > { %v528_v16 = vadd.f32 %v527_v24, %v496_v23  ;;  %v300_v17 = vunpack.c.h.bf16 %v276_v62  ;;  %v472_v28 = vrot.slane %v392_v3, %v834_v22  ;;  %v486_v18 = vmul.f32 %v464_v4, %v298_v2 }
  0x47   : > { %v513_v7 = vadd.f32 %v512_v0, %v482_v53  ;;  %v313_v21 = vunpack.c.l.bf16 %v283_v12  ;;  %v499_v25 = vmul.f32 %v452_v42, %v311_v5  ;;  %v487_v20 = vmul.f32 %v468_v10, %v299_v9 }
  0x48   : > { %v529_v26 = vadd.f32 %v528_v16, %v497_v8  ;;  %v314_v30 = vunpack.c.h.bf16 %v283_v12  ;;  %v500_v31 = vmul.f32 %v456_v51, %v312_v13  ;;  %v488_v34 = vmul.f32 %v472_v28, %v300_v17  ;;  %v324_v51 = vld [vmem:[#allocation2 + $0x8] sm:$0xff] }
  0x49   : > { %v514_v14 = vadd.f32 %v513_v7, %v483_v63  ;;  %v315_v36 = vunpack.c.l.bf16 %v284_v27  ;;  %v501_v37 = vmul.f32 %v460_v60, %v313_v21  ;;  %v316_v39 = vunpack.c.h.bf16 %v284_v27 }
  0x4a   : > { %v530_v32 = vadd.f32 %v529_v26, %v498_v15  ;;  %v502_v40 = vmul.f32 %v464_v4, %v314_v30 }
  0x4b   : > { %v515_v19 = vadd.f32 %v514_v14, %v484_v6  ;;  %v503_v43 = vmul.f32 %v468_v10, %v315_v36  ;;  %v504_v42 = vmul.f32 %v472_v28, %v316_v39 }
  0x4c   : > { %v531_v33 = vadd.f32 %v530_v32, %v499_v25 }
  0x4d   : > { %v516_v29 = vadd.f32 %v515_v19, %v485_v11 }
  0x4e   : > { %v532_v22 = vadd.f32 %v531_v33, %v500_v31 }
  0x4f   : > { %v517_v35 = vadd.f32 %v516_v29, %v486_v18 }
  0x50   : > { %v533_v44 = vadd.f32 %v532_v22, %v501_v37 }
  0x51   : > { %v518_v38 = vadd.f32 %v517_v35, %v487_v20 }
  0x52   : > { %v534_v45 = vadd.f32 %v533_v44, %v502_v40 }
  0x53   : > { %v519_v41 = vadd.f32 %v518_v38, %v488_v34 }
  0x54   : > { %v535_v46 = vadd.f32 %v534_v45, %v503_v43 }
  0x55   : > { %520 = vadd.xlane.f32.xlu0 %v519_v41 }
  0x56   : > { %v536_v47 = vadd.f32 %v535_v46, %v504_v42 }
  0x59   : > { %537 = vadd.xlane.f32.xlu0 %v536_v47 }
  0xde   : > { %v521_v49 = vpop.xlane.xlu0 %520 }
  0xdf   : > { %v539_v50 = vadd.f32 %v521_v49, %v323_v48 }
  0xe1   : > { %542 = vst.msk [vmem:[#allocation2] sm:$0xff] %vm541_vm1, %v539_v50  ;;  %547 = sbr.rel (%p651_p11) target bundleno = 240 (0xf0), region = 63 }
  0xe2   : > { %v538_v52 = vpop.xlane.xlu0 %537 }
  0xe3   : > { %v540_v53 = vadd.f32 %v538_v52, %v324_v51 }
  0xe5   : > { %543 = vst.msk [vmem:[#allocation2 + $0x8] sm:$0xff] %vm541_vm1, %v540_v53 }
  0xe6   : > { %v652_v55 = vld [vmem:[#allocation3] ss:$0 sm:$0xff] }
  0xe8   : > { %v548_v54 = vld [vmem:[#allocation2] sm:$0xff] }
  0xe9   : > { %v557_v57 = vadd.f32 %v652_v55, %v548_v54 }
  0xeb   : > { %559 = vst.msk [vmem:[%s925_s3] sm:$0xff] %vm541_vm1, %v557_v57 }
  0xec   : > { %v549_v56 = vld [vmem:[#allocation2 + $0x8] sm:$0xff] }
  0xed   : > { %v558_v58 = vadd.f32 %v652_v55, %v549_v56 }
  0xef   : > { %560 = vst.msk [vmem:[%s925_s3 + $0x8] sm:$0xff] %vm541_vm1, %v558_v58 }
  0xf0 PF: > { %s15_s18 = sadd.s32 1, %s737_s18   ;;  %s926_s14 = smov %s725_s15 }
  0xf1   : > { %p12_p12 = scmp.ge.s32.totalorder %s15_s18, 6   ;;  %s927_s15 = smov %s798_s21 }
  0xf2   : > { %s928_s16 = smov %s733_s17  ;;  %s929_s17 = smov %s931_s2 }
  0xf3   :  { %14 = sbr.rel (!%p12_p12) target bundleno = 6 (0x6), region = 101 }

// kernel: patchgan_discriminator.8
= control target key start
LH: loop header
LB: loop body
LE: loop exit
PB: predicated region body
PF: predicated region fallthrough
CT: control target
= control target key end

     0   :  { %s6268_s12 = smov 0   ;;  %s6270_s13 = smov 0   ;;  %s7329_s0 = inlined_call_operand.vmem [shape: bf16[32,4096], index: 0, kind: input, shape index: {}]   ;;  %s7330_s1 = inlined_call_operand.vmem [shape: bf16[4096,512], index: 1, kind: input, shape index: {}]   ;;  %s7331_s2 = inlined_call_operand.vmem [shape: f32[1,512], index: 2, kind: input, shape index: {}]   ;;  %s7332_s3 = inlined_call_operand.vmem [shape: bf16[32,512], index: 3, kind: output, shape index: {}]  }
   0x1   :  { %s6272_s14 = smov 0   ;;  %s6274_s15 = smov 0  }
   0x2   :  { %s6276_s16 = smov 0  }
   0x3 LB: > { %s25_s17 = sadd.s32 1, %s6241_s15  ;;  %p48_p1 = scmp.ne.s32.totalorder %s6233_s13, %s6229_s12  ;;  %s6245_s16 = sphi %s6276_s16, %s13_s16   ;;  %s6241_s15 = sphi %s6274_s15, %s7348_s15   ;;  %s6237_s14 = sphi %s6272_s14, %s7347_s14   ;;  %s6233_s13 = sphi %s6270_s13, %s7346_s13   ;;  %s6229_s12 = sphi %s6268_s12, %s7345_s12  }
   0x4   : > { %p26_p0 = scmp.ge.s32.totalorder %s25_s17, 2  ;;  %p49_p2 = scmp.eq.s32.totalorder %s6245_s16, 0 }
   0x5   : > { %s41_s19 = sadd.s32 1, %s6233_s13  ;;  %p4821_p5 = scmp.ge.s32.totalorder %s6245_s16, 2 }
   0x6   : > { %s7350_s17 = smov (%p26_p0, %s25_s17), 0  ;;  %p50_p3 = por %p49_p2, %p48_p1 }
   0x7   : > { %s37_s18 = ssub.s32 %s6241_s15, %s7350_s17  ;;  %164 = sbr.rel (%p4821_p5) target bundleno = 32 (0x20), region = 20 }
   0x8   : > { %p39_p4 = scmp.eq.s32.totalorder %s37_s18, 0 }
   0xa   : > { %s6303_s20 = scalar_select %p39_p4, %s6233_s13, %s41_s19  }
   0xc   : > { %167 = sbr.rel (!%p50_p3) target bundleno = 32 (0x20), region = 24  ;;  %s169_s21 = sand.u32 (%p50_p3), 1, %s6233_s13  }
   0xd   : > { %s5388_s22 = sshll.u32 (%p50_p3), %s6241_s15, 6  ;;  %s4822_s23 = sshll.u32 (%p50_p3), %s169_s21, 8 }
   0xe   : > { %s6311_s26 = scalar_lea.vmem (%p50_p3), %s7329_s0, %s5388_s22  ;;  %s6316_s27 = scalar_lea.vmem (%p50_p3), [#allocation3], %s4822_s23 }
   0xf   : > { %v190_v0 = vld [vmem:[%s6311_s26] sm:$0xff] (%p50_p3)  ;;  %v192_v1 = vld [vmem:[%s6311_s26 + $0x8] sm:$0xff] (%p50_p3)  ;;  %v194_v2 = vld [vmem:[%s6311_s26 + $0x10] sm:$0xff] (%p50_p3) }
  0x10   : > { %191 = vst [vmem:[%s6316_s27] sm:$0xff] (%p50_p3), %v190_v0  ;;  %193 = vst [vmem:[%s6316_s27 + $0x8] sm:$0xff] (%p50_p3), %v192_v1  ;;  %v196_v3 = vld [vmem:[%s6311_s26 + $0x18] sm:$0xff] (%p50_p3)  ;;  %v198_v4 = vld [vmem:[%s6311_s26 + $0x20] sm:$0xff] (%p50_p3) }
  0x11   : > { %195 = vst [vmem:[%s6316_s27 + $0x10] sm:$0xff] %v194_v2  ;;  %v200_v5 = vld [vmem:[%s6311_s26 + $0x28] sm:$0xff]  ;;  %197 = vst [vmem:[%s6316_s27 + $0x18] sm:$0xff] %v196_v3  ;;  %v202_v6 = vld [vmem:[%s6311_s26 + $0x30] sm:$0xff] }
  0x12   : > { %199 = vst [vmem:[%s6316_s27 + $0x20] sm:$0xff] %v198_v4  ;;  %201 = vst [vmem:[%s6316_s27 + $0x28] sm:$0xff] %v200_v5  ;;  %v204_v7 = vld [vmem:[%s6311_s26 + $0x38] sm:$0xff]  ;;  %v206_v8 = vld [vmem:[%s6311_s26 + $0x80] sm:$0xff] }
  0x13   : > { %203 = vst [vmem:[%s6316_s27 + $0x30] sm:$0xff] %v202_v6  ;;  %205 = vst [vmem:[%s6316_s27 + $0x38] sm:$0xff] %v204_v7  ;;  %v208_v9 = vld [vmem:[%s6311_s26 + $0x88] sm:$0xff]  ;;  %v210_v10 = vld [vmem:[%s6311_s26 + $0x90] sm:$0xff] }
  0x14   : > { %207 = vst [vmem:[%s6316_s27 + $0x40] sm:$0xff] %v206_v8  ;;  %v212_v11 = vld [vmem:[%s6311_s26 + $0x98] sm:$0xff]  ;;  %209 = vst [vmem:[%s6316_s27 + $0x48] sm:$0xff] %v208_v9  ;;  %v214_v12 = vld [vmem:[%s6311_s26 + $0xa0] sm:$0xff] }
  0x15   : > { %211 = vst [vmem:[%s6316_s27 + $0x50] sm:$0xff] %v210_v10  ;;  %213 = vst [vmem:[%s6316_s27 + $0x58] sm:$0xff] %v212_v11  ;;  %v216_v13 = vld [vmem:[%s6311_s26 + $0xa8] sm:$0xff]  ;;  %v218_v14 = vld [vmem:[%s6311_s26 + $0xb0] sm:$0xff] }
  0x16   : > { %215 = vst [vmem:[%s6316_s27 + $0x60] sm:$0xff] %v214_v12  ;;  %217 = vst [vmem:[%s6316_s27 + $0x68] sm:$0xff] %v216_v13  ;;  %v220_v15 = vld [vmem:[%s6311_s26 + $0xb8] sm:$0xff]  ;;  %v222_v16 = vld [vmem:[%s6311_s26 + $0x100] sm:$0xff] }
  0x17   : > { %219 = vst [vmem:[%s6316_s27 + $0x70] sm:$0xff] %v218_v14  ;;  %v224_v17 = vld [vmem:[%s6311_s26 + $0x108] sm:$0xff]  ;;  %221 = vst [vmem:[%s6316_s27 + $0x78] sm:$0xff] %v220_v15  ;;  %v226_v18 = vld [vmem:[%s6311_s26 + $0x110] sm:$0xff] }
  0x18   : > { %223 = vst [vmem:[%s6316_s27 + $0x80] sm:$0xff] %v222_v16  ;;  %225 = vst [vmem:[%s6316_s27 + $0x88] sm:$0xff] %v224_v17  ;;  %v228_v19 = vld [vmem:[%s6311_s26 + $0x118] sm:$0xff]  ;;  %v230_v20 = vld [vmem:[%s6311_s26 + $0x120] sm:$0xff] }
  0x19   : > { %227 = vst [vmem:[%s6316_s27 + $0x90] sm:$0xff] %v226_v18  ;;  %229 = vst [vmem:[%s6316_s27 + $0x98] sm:$0xff] %v228_v19  ;;  %v232_v21 = vld [vmem:[%s6311_s26 + $0x128] sm:$0xff]  ;;  %v234_v22 = vld [vmem:[%s6311_s26 + $0x130] sm:$0xff] }
  0x1a   : > { %231 = vst [vmem:[%s6316_s27 + $0xa0] sm:$0xff] %v230_v20  ;;  %v236_v23 = vld [vmem:[%s6311_s26 + $0x138] sm:$0xff]  ;;  %233 = vst [vmem:[%s6316_s27 + $0xa8] sm:$0xff] %v232_v21  ;;  %v238_v24 = vld [vmem:[%s6311_s26 + $0x180] sm:$0xff] }
  0x1b   : > { %235 = vst [vmem:[%s6316_s27 + $0xb0] sm:$0xff] %v234_v22  ;;  %237 = vst [vmem:[%s6316_s27 + $0xb8] sm:$0xff] %v236_v23  ;;  %v240_v25 = vld [vmem:[%s6311_s26 + $0x188] sm:$0xff]  ;;  %v242_v26 = vld [vmem:[%s6311_s26 + $0x190] sm:$0xff] }
  0x1c   : > { %239 = vst [vmem:[%s6316_s27 + $0xc0] sm:$0xff] %v238_v24  ;;  %241 = vst [vmem:[%s6316_s27 + $0xc8] sm:$0xff] %v240_v25  ;;  %v244_v27 = vld [vmem:[%s6311_s26 + $0x198] sm:$0xff]  ;;  %v246_v28 = vld [vmem:[%s6311_s26 + $0x1a0] sm:$0xff] }
  0x1d   : > { %243 = vst [vmem:[%s6316_s27 + $0xd0] sm:$0xff] %v242_v26  ;;  %v248_v29 = vld [vmem:[%s6311_s26 + $0x1a8] sm:$0xff]  ;;  %245 = vst [vmem:[%s6316_s27 + $0xd8] sm:$0xff] %v244_v27  ;;  %v250_v30 = vld [vmem:[%s6311_s26 + $0x1b0] sm:$0xff] }
  0x1e   : > { %247 = vst [vmem:[%s6316_s27 + $0xe0] sm:$0xff] %v246_v28  ;;  %249 = vst [vmem:[%s6316_s27 + $0xe8] sm:$0xff] %v248_v29  ;;  %v252_v31 = vld [vmem:[%s6311_s26 + $0x1b8] sm:$0xff] }
  0x1f   : > { %251 = vst [vmem:[%s6316_s27 + $0xf0] sm:$0xff] %v250_v30  ;;  %253 = vst [vmem:[%s6316_s27 + $0xf8] sm:$0xff] %v252_v31 }
  0x20 PF: > { %p4825_p6 = scmp.ge.s32.totalorder %s6245_s16, 1  ;;  %p273_p7 = scmp.lt.s32.totalorder %s6245_s16, 3 }
  0x22   : > { %p274_p8 = pnand %p4825_p6, %p273_p7 }
  0x24   : > { %277 = sbr.rel (%p274_p8) target bundleno = 818 (0x332), region = 51 }
  0x29   : > { %s280_s28 = sand.u32 1, %s6229_s12   ;;  %s4827_s29 = sshll.u32 %s6237_s14, 8 }
  0x2a   : > { %s4826_s30 = sshll.u32 %s280_s28, 8  ;;  %p326_p9 = scmp.lt.s32.totalorder %s4827_s29, 511 }
  0x2b   : > { %s6388_s8 = scalar_lea.vmem [#allocation3], %s4826_s30  ;;  %p4830_p10 = scmp.ne.s32.totalorder %s6237_s14, 0 }
  0x2c   : > { %s7352_s29 = smov (!%p326_p9, %s4827_s29), 511 }
  0x2d   : > { %s5389_s4 = sshll.u32 %s7352_s29, 4  ;;  %356 = sbr.rel (%p4830_p10) target bundleno = 59 (0x3b), region = 59 }
  0x2e   : > { %s6386_s7 = scalar_lea.vmem %s7330_s1, %s5389_s4 }
  0x32   : > { %v6247_v32 = vmov 0.0  }
  0x33   : > { %357 = vst [vmem:[#allocation2 + $0x30] sm:$0xff] %v6247_v32  ;;  %358 = vst [vmem:[#allocation2] sm:$0xff] %v6247_v32 }
  0x34   : > { %359 = vst [vmem:[#allocation2 + $0x58] sm:$0xff] %v6247_v32  ;;  %360 = vst [vmem:[#allocation2 + $0x18] sm:$0xff] %v6247_v32 }
  0x35   : > { %361 = vst [vmem:[#allocation2 + $0x50] sm:$0xff] %v6247_v32  ;;  %362 = vst [vmem:[#allocation2 + $0x68] sm:$0xff] %v6247_v32 }
  0x36   : > { %363 = vst [vmem:[#allocation2 + $0x8] sm:$0xff] %v6247_v32  ;;  %364 = vst [vmem:[#allocation2 + $0x48] sm:$0xff] %v6247_v32 }
  0x37   : > { %365 = vst [vmem:[#allocation2 + $0x40] sm:$0xff] %v6247_v32  ;;  %366 = vst [vmem:[#allocation2 + $0x20] sm:$0xff] %v6247_v32 }
  0x38   : > { %367 = vst [vmem:[#allocation2 + $0x10] sm:$0xff] %v6247_v32  ;;  %368 = vst [vmem:[#allocation2 + $0x38] sm:$0xff] %v6247_v32 }
  0x39   : > { %369 = vst [vmem:[#allocation2 + $0x60] sm:$0xff] %v6247_v32  ;;  %370 = vst [vmem:[#allocation2 + $0x70] sm:$0xff] %v6247_v32 }
  0x3a   : > { %371 = vst [vmem:[#allocation2 + $0x78] sm:$0xff] %v6247_v32  ;;  %372 = vst [vmem:[#allocation2 + $0x28] sm:$0xff] %v6247_v32 }
  0x3b PF: > { %v5439_v33 = vld [vmem:[%s6386_s7 + $0xe4] ss:$16 sps:$4 sm:$0xff]   ;;  %v5443_v35 = vld [vmem:[%s6386_s7 + $0xe0] ss:$16 sps:$4 sm:$0xff]   ;;  %v390_v19 = vld [vmem:[%s6388_s8 + $0x8] sm:$0xff]  ;;  %p5375_p11 = scmp.ne.s32.totalorder %s6237_s14, 1 }
  0x3c   : > { %v5441_v34 = vld [vmem:[%s6386_s7 + $0x2e4] ss:$16 sps:$4 sm:$0xff]   ;;  %3653 = vmatprep.subr.bf16.mxu0 %v5439_v33  ;;  %v5444_v36 = vld [vmem:[%s6386_s7 + $0x2e0] ss:$16 sps:$4 sm:$0xff]   ;;  %v398_v20 = vld [vmem:[%s6388_s8 + $0x48] sm:$0xff] }
  0x3d   : > { %3706 = vmatprep.subr.bf16.mxu1 %v5441_v34  ;;  %v5445_v37 = vld [vmem:[%s6386_s7 + $0xc4] ss:$16 sps:$4 sm:$0xff]   ;;  %3654 = vmatpush1.bf16.msra.mxu0 %v5443_v35  ;;  %v5449_v39 = vld [vmem:[%s6386_s7 + $0xc0] ss:$16 sps:$4 sm:$0xff]   ;;  %v6447_v24 = vcombine.high %v390_v19, %v398_v20 }
  0x3e   : > { %3707 = vmatpush1.bf16.msra.mxu1 %v5444_v36  ;;  %v5447_v38 = vld [vmem:[%s6386_s7 + $0x2c4] ss:$16 sps:$4 sm:$0xff]   ;;  %3655 = vmatprep.subr.bf16.mxu0 %v5445_v37  ;;  %v5450_v40 = vld [vmem:[%s6386_s7 + $0x2c0] ss:$16 sps:$4 sm:$0xff]  }
  0x3f   : > { %3708 = vmatprep.subr.bf16.mxu1 %v5447_v38  ;;  %v5451_v41 = vld [vmem:[%s6386_s7 + $0xa4] ss:$16 sps:$4 sm:$0xff]   ;;  %v5455_v43 = vld [vmem:[%s6386_s7 + $0xa0] ss:$16 sps:$4 sm:$0xff]   ;;  %3738 = vmatprep.mubr.bf16.mxu1 %v6447_v24 }
  0x40   : > { %v5453_v42 = vld [vmem:[%s6386_s7 + $0x2a4] ss:$16 sps:$4 sm:$0xff]   ;;  %v5456_v44 = vld [vmem:[%s6386_s7 + $0x2a0] ss:$16 sps:$4 sm:$0xff]  }
  0x41   : > { %3656 = vmatpush1.bf16.msra.mxu0 %v5449_v39  ;;  %v5457_v45 = vld [vmem:[%s6386_s7 + $0x84] ss:$16 sps:$4 sm:$0xff]   ;;  %v5461_v47 = vld [vmem:[%s6386_s7 + $0x80] ss:$16 sps:$4 sm:$0xff]  }
  0x42   : > { %3709 = vmatpush1.bf16.msra.mxu1 %v5450_v40  ;;  %3657 = vmatprep.subr.bf16.mxu0 %v5451_v41  ;;  %v5459_v46 = vld [vmem:[%s6386_s7 + $0x284] ss:$16 sps:$4 sm:$0xff]   ;;  %v5462_v48 = vld [vmem:[%s6386_s7 + $0x280] ss:$16 sps:$4 sm:$0xff]  }
  0x43   : > { %3710 = vmatprep.subr.bf16.mxu1 %v5453_v42  ;;  %v5463_v49 = vld [vmem:[%s6386_s7 + $0x64] ss:$16 sps:$4 sm:$0xff]   ;;  %v5467_v51 = vld [vmem:[%s6386_s7 + $0x60] ss:$16 sps:$4 sm:$0xff]   ;;  %v6469_v42 = vcombine.low %v390_v19, %v398_v20  ;;  %v6531_v19 = vld [vmem:[%s6388_s8 + $0x58] sm:$0xff] }
  0x44   : > { %v5465_v50 = vld [vmem:[%s6386_s7 + $0x264] ss:$16 sps:$4 sm:$0xff]   ;;  %v5468_v52 = vld [vmem:[%s6386_s7 + $0x260] ss:$16 sps:$4 sm:$0xff]  }
  0x45   : > { %3658 = vmatpush1.bf16.msra.mxu0 %v5455_v43  ;;  %v5469_v53 = vld [vmem:[%s6386_s7 + $0x44] ss:$16 sps:$4 sm:$0xff]   ;;  %v5473_v55 = vld [vmem:[%s6386_s7 + $0x40] ss:$16 sps:$4 sm:$0xff]  }
  0x46   : > { %3711 = vmatpush1.bf16.msra.mxu1 %v5456_v44  ;;  %3659 = vmatprep.subr.bf16.mxu0 %v5457_v45  ;;  %v5471_v54 = vld [vmem:[%s6386_s7 + $0x244] ss:$16 sps:$4 sm:$0xff]   ;;  %v5474_v56 = vld [vmem:[%s6386_s7 + $0x240] ss:$16 sps:$4 sm:$0xff]  }
  0x47   : > { %3712 = vmatprep.subr.bf16.mxu1 %v5459_v46  ;;  %v5475_v57 = vld [vmem:[%s6386_s7 + $0x24] ss:$16 sps:$4 sm:$0xff]   ;;  %v5479_v59 = vld [vmem:[%s6386_s7 + $0x20] ss:$16 sps:$4 sm:$0xff]  }
  0x48   : > { %v5477_v58 = vld [vmem:[%s6386_s7 + $0x224] ss:$16 sps:$4 sm:$0xff]   ;;  %v5480_v60 = vld [vmem:[%s6386_s7 + $0x220] ss:$16 sps:$4 sm:$0xff]  }
  0x49   : > { %3660 = vmatpush1.bf16.msra.mxu0 %v5461_v47  ;;  %v5481_v61 = vld [vmem:[%s6386_s7 + $0x4] ss:$16 sps:$4 sm:$0xff]   ;;  %v5485_v63 = vld [vmem:[%s6386_s7] ss:$16 sps:$4 sm:$0xff]  }
  0x4a   : > { %3713 = vmatpush1.bf16.msra.mxu1 %v5462_v48  ;;  %3661 = vmatprep.subr.bf16.mxu0 %v5463_v49  ;;  %v5483_v62 = vld [vmem:[%s6386_s7 + $0x204] ss:$16 sps:$4 sm:$0xff]   ;;  %v5486_v0 = vld [vmem:[%s6386_s7 + $0x200] ss:$16 sps:$4 sm:$0xff]  }
  0x4b   : > { %3714 = vmatprep.subr.bf16.mxu1 %v5465_v50  ;;  %v5487_v1 = vld [vmem:[%s6386_s7 + $0x1e4] ss:$16 sps:$4 sm:$0xff]   ;;  %v5491_v3 = vld [vmem:[%s6386_s7 + $0x1e0] ss:$16 sps:$4 sm:$0xff]  }
  0x4c   : > { %v5489_v2 = vld [vmem:[%s6386_s7 + $0x3e4] ss:$16 sps:$4 sm:$0xff]   ;;  %v5492_v4 = vld [vmem:[%s6386_s7 + $0x3e0] ss:$16 sps:$4 sm:$0xff]  }
  0x4d   : > { %3662 = vmatpush1.bf16.msra.mxu0 %v5467_v51  ;;  %v5493_v5 = vld [vmem:[%s6386_s7 + $0x1c4] ss:$16 sps:$4 sm:$0xff]   ;;  %v5497_v7 = vld [vmem:[%s6386_s7 + $0x1c0] ss:$16 sps:$4 sm:$0xff]  }
  0x4e   : > { %3715 = vmatpush1.bf16.msra.mxu1 %v5468_v52  ;;  %3663 = vmatprep.subr.bf16.mxu0 %v5469_v53  ;;  %v5495_v6 = vld [vmem:[%s6386_s7 + $0x3c4] ss:$16 sps:$4 sm:$0xff]   ;;  %v5498_v8 = vld [vmem:[%s6386_s7 + $0x3c0] ss:$16 sps:$4 sm:$0xff]  }
  0x4f   : > { %3716 = vmatprep.subr.bf16.mxu1 %v5471_v54  ;;  %v5499_v9 = vld [vmem:[%s6386_s7 + $0x1a4] ss:$16 sps:$4 sm:$0xff]   ;;  %v5503_v11 = vld [vmem:[%s6386_s7 + $0x1a0] ss:$16 sps:$4 sm:$0xff]  }
  0x50   : > { %v5501_v10 = vld [vmem:[%s6386_s7 + $0x3a4] ss:$16 sps:$4 sm:$0xff]   ;;  %v5504_v12 = vld [vmem:[%s6386_s7 + $0x3a0] ss:$16 sps:$4 sm:$0xff]  }
  0x51   : > { %3664 = vmatpush1.bf16.msra.mxu0 %v5473_v55  ;;  %v5505_v13 = vld [vmem:[%s6386_s7 + $0x184] ss:$16 sps:$4 sm:$0xff]   ;;  %v5509_v15 = vld [vmem:[%s6386_s7 + $0x180] ss:$16 sps:$4 sm:$0xff]  }
  0x52   : > { %3717 = vmatpush1.bf16.msra.mxu1 %v5474_v56  ;;  %3665 = vmatprep.subr.bf16.mxu0 %v5475_v57  ;;  %v5507_v14 = vld [vmem:[%s6386_s7 + $0x384] ss:$16 sps:$4 sm:$0xff]   ;;  %v5510_v16 = vld [vmem:[%s6386_s7 + $0x380] ss:$16 sps:$4 sm:$0xff]  }
  0x53   : > { %3718 = vmatprep.subr.bf16.mxu1 %v5477_v58  ;;  %v389_v17 = vld [vmem:[%s6388_s8] sm:$0xff] }
  0x54   : > { %v397_v18 = vld [vmem:[%s6388_s8 + $0x40] sm:$0xff] }
  0x55   : > { %3666 = vmatpush1.bf16.msra.mxu0 %v5479_v59  ;;  %v5511_v21 = vld [vmem:[%s6386_s7 + $0x164] ss:$16 sps:$4 sm:$0xff]   ;;  %v6444_v22 = vcombine.high %v389_v17, %v397_v18  ;;  %v5515_v25 = vld [vmem:[%s6386_s7 + $0x160] ss:$16 sps:$4 sm:$0xff]   ;;  %v6467_v41 = vcombine.low %v389_v17, %v397_v18  ;;  %v6524_v17 = vld [vmem:[%s6388_s8 + $0x18] sm:$0xff] }
  0x56   : > { %3719 = vmatpush1.bf16.msra.mxu1 %v5480_v60  ;;  %3667 = vmatprep.subr.bf16.mxu0 %v5481_v61  ;;  %v5513_v23 = vld [vmem:[%s6386_s7 + $0x364] ss:$16 sps:$4 sm:$0xff]   ;;  %v5516_v26 = vld [vmem:[%s6386_s7 + $0x360] ss:$16 sps:$4 sm:$0xff]   ;;  %v6535_v20 = vcombine.high %v6524_v17, %v6531_v19 }
  0x57   : > { %3720 = vmatprep.subr.bf16.mxu1 %v5483_v62  ;;  %3685 = vmatprep.mubr.bf16.mxu0 %v6444_v22  ;;  %v5517_v27 = vld [vmem:[%s6386_s7 + $0x144] ss:$16 sps:$4 sm:$0xff]   ;;  %v5521_v29 = vld [vmem:[%s6386_s7 + $0x140] ss:$16 sps:$4 sm:$0xff]  }
  0x58   : > { %v5519_v28 = vld [vmem:[%s6386_s7 + $0x344] ss:$16 sps:$4 sm:$0xff]   ;;  %v5522_v30 = vld [vmem:[%s6386_s7 + $0x340] ss:$16 sps:$4 sm:$0xff]  }
  0x59   : > { %3668 = vmatpush1.bf16.msra.mxu0 %v5485_v63  ;;  %v5523_v31 = vld [vmem:[%s6386_s7 + $0x124] ss:$16 sps:$4 sm:$0xff]   ;;  %v5527_v33 = vld [vmem:[%s6386_s7 + $0x120] ss:$16 sps:$4 sm:$0xff]   ;;  %v406_v63 = vld [vmem:[%s6388_s8 + $0x88] sm:$0xff] }
  0x5a   : > { %3721 = vmatpush1.bf16.msra.mxu1 %v5486_v0  ;;  %3669 = vmatprep.subr.bf16.mxu0 %v5487_v1  ;;  %v5525_v32 = vld [vmem:[%s6386_s7 + $0x324] ss:$16 sps:$4 sm:$0xff]   ;;  %v5528_v34 = vld [vmem:[%s6386_s7 + $0x320] ss:$16 sps:$4 sm:$0xff]   ;;  %v414_v0 = vld [vmem:[%s6388_s8 + $0xc8] sm:$0xff] }
  0x5b   : > { %3722 = vmatprep.subr.bf16.mxu1 %v5489_v2  ;;  %v5529_v35 = vld [vmem:[%s6386_s7 + $0x104] ss:$16 sps:$4 sm:$0xff]   ;;  %v5533_v37 = vld [vmem:[%s6386_s7 + $0x100] ss:$16 sps:$4 sm:$0xff]  }
  0x5c   : > { %v5531_v36 = vld [vmem:[%s6386_s7 + $0x304] ss:$16 sps:$4 sm:$0xff]   ;;  %v5534_v38 = vld [vmem:[%s6386_s7 + $0x300] ss:$16 sps:$4 sm:$0xff]  }
  0x5d   : > { %3670 = vmatpush2.bf16.msra.mxu0 %v5491_v3  ;;  %v5537_v39 = vld [vmem:[%s6386_s7 + $0x4e4] ss:$16 sps:$4 sm:$0xff]   ;;  %v5535_v43 = vld [vmem:[%s6386_s7 + $0x4e0] ss:$16 sps:$4 sm:$0xff]   ;;  %v6498_v3 = vcombine.high %v406_v63, %v414_v0 }
  0x5e   : > { %3723 = vmatpush2.bf16.msra.mxu1 %v5492_v4  ;;  %3671 = vmatprep.subr.bf16.mxu0 %v5493_v5  ;;  %v5540_v40 = vld [vmem:[%s6386_s7 + $0x6e4] ss:$16 sps:$4 sm:$0xff]   ;;  %v5538_v44 = vld [vmem:[%s6386_s7 + $0x6e0] ss:$16 sps:$4 sm:$0xff]  }
  0x5f   : > { %3724 = vmatprep.subr.bf16.mxu1 %v5495_v6  ;;  %v5543_v45 = vld [vmem:[%s6386_s7 + $0x4c4] ss:$16 sps:$4 sm:$0xff]   ;;  %v5541_v47 = vld [vmem:[%s6386_s7 + $0x4c0] ss:$16 sps:$4 sm:$0xff]   ;;  %v6503_v6 = vcombine.low %v406_v63, %v414_v0 }
  0x60   : > { %v5546_v46 = vld [vmem:[%s6386_s7 + $0x6c4] ss:$16 sps:$4 sm:$0xff]   ;;  %v5544_v48 = vld [vmem:[%s6386_s7 + $0x6c0] ss:$16 sps:$4 sm:$0xff]  }
  0x61   : > { %3672 = vmatpush2.bf16.msra.mxu0 %v5497_v7  ;;  %v5549_v49 = vld [vmem:[%s6386_s7 + $0x4a4] ss:$16 sps:$4 sm:$0xff]   ;;  %v5547_v51 = vld [vmem:[%s6386_s7 + $0x4a0] ss:$16 sps:$4 sm:$0xff]  }
  0x62   : > { %3725 = vmatpush2.bf16.msra.mxu1 %v5498_v8  ;;  %3673 = vmatprep.subr.bf16.mxu0 %v5499_v9  ;;  %v5552_v50 = vld [vmem:[%s6386_s7 + $0x6a4] ss:$16 sps:$4 sm:$0xff]   ;;  %v5550_v52 = vld [vmem:[%s6386_s7 + $0x6a0] ss:$16 sps:$4 sm:$0xff]  }
  0x63   : > { %3726 = vmatprep.subr.bf16.mxu1 %v5501_v10  ;;  %v5555_v53 = vld [vmem:[%s6386_s7 + $0x484] ss:$16 sps:$4 sm:$0xff]   ;;  %v5553_v55 = vld [vmem:[%s6386_s7 + $0x480] ss:$16 sps:$4 sm:$0xff]  }
  0x64   : > { %v5558_v54 = vld [vmem:[%s6386_s7 + $0x684] ss:$16 sps:$4 sm:$0xff]   ;;  %v5556_v56 = vld [vmem:[%s6386_s7 + $0x680] ss:$16 sps:$4 sm:$0xff]  }
  0x65   : > { %3674 = vmatpush2.bf16.msra.mxu0 %v5503_v11  ;;  %v5561_v57 = vld [vmem:[%s6386_s7 + $0x464] ss:$16 sps:$4 sm:$0xff]   ;;  %v5559_v59 = vld [vmem:[%s6386_s7 + $0x460] ss:$16 sps:$4 sm:$0xff]  }
  0x66   : > { %3727 = vmatpush2.bf16.msra.mxu1 %v5504_v12  ;;  %3675 = vmatprep.subr.bf16.mxu0 %v5505_v13  ;;  %v5564_v58 = vld [vmem:[%s6386_s7 + $0x664] ss:$16 sps:$4 sm:$0xff]   ;;  %v5562_v60 = vld [vmem:[%s6386_s7 + $0x660] ss:$16 sps:$4 sm:$0xff]  }
  0x67   : > { %3728 = vmatprep.subr.bf16.mxu1 %v5507_v14  ;;  %v405_v61 = vld [vmem:[%s6388_s8 + $0x80] sm:$0xff]  ;;  %v407_v63 = vld [vmem:[%s6388_s8 + $0x90] sm:$0xff] }
  0x68   : > { %v413_v62 = vld [vmem:[%s6388_s8 + $0xc0] sm:$0xff]  ;;  %v415_v0 = vld [vmem:[%s6388_s8 + $0xd0] sm:$0xff] }
  0x69   : > { %3676 = vmatpush2.bf16.msra.mxu0 %v5509_v15  ;;  %v5567_v1 = vld [vmem:[%s6386_s7 + $0x444] ss:$16 sps:$4 sm:$0xff]   ;;  %v6496_v2 = vcombine.high %v405_v61, %v413_v62  ;;  %v6500_v4 = vcombine.low %v405_v61, %v413_v62  ;;  %v5565_v7 = vld [vmem:[%s6386_s7 + $0x440] ss:$16 sps:$4 sm:$0xff]  }
  0x6a   : > { %3729 = vmatpush2.bf16.msra.mxu1 %v5510_v16  ;;  %3677 = vmatprep.subr.bf16.mxu0 %v5511_v21  ;;  %v5570_v5 = vld [vmem:[%s6386_s7 + $0x644] ss:$16 sps:$4 sm:$0xff]   ;;  %v5568_v8 = vld [vmem:[%s6386_s7 + $0x640] ss:$16 sps:$4 sm:$0xff]  }
  0x6b   : > { %3730 = vmatprep.subr.bf16.mxu1 %v5513_v23  ;;  %v5573_v9 = vld [vmem:[%s6386_s7 + $0x424] ss:$16 sps:$4 sm:$0xff]   ;;  %v5571_v11 = vld [vmem:[%s6386_s7 + $0x420] ss:$16 sps:$4 sm:$0xff]  }
  0x6c   : > { %v5576_v10 = vld [vmem:[%s6386_s7 + $0x624] ss:$16 sps:$4 sm:$0xff]   ;;  %v5574_v12 = vld [vmem:[%s6386_s7 + $0x620] ss:$16 sps:$4 sm:$0xff]  }
  0x6d   : > { %3678 = vmatpush2.bf16.msra.mxu0 %v5515_v25  ;;  %v5579_v13 = vld [vmem:[%s6386_s7 + $0x404] ss:$16 sps:$4 sm:$0xff]   ;;  %v5577_v21 = vld [vmem:[%s6386_s7 + $0x400] ss:$16 sps:$4 sm:$0xff]  }
  0x6e   : > { %3731 = vmatpush2.bf16.msra.mxu1 %v5516_v26  ;;  %3679 = vmatprep.subr.bf16.mxu0 %v5517_v27  ;;  %v5582_v14 = vld [vmem:[%s6386_s7 + $0x604] ss:$16 sps:$4 sm:$0xff]   ;;  %v5580_v23 = vld [vmem:[%s6386_s7 + $0x600] ss:$16 sps:$4 sm:$0xff]  }
  0x6f   : > { %3732 = vmatprep.subr.bf16.mxu1 %v5519_v28  ;;  %v6518_v15 = vld [vmem:[%s6388_s8 + $0x10] sm:$0xff] }
  0x70   : > { %v6521_v16 = vld [vmem:[%s6388_s8 + $0x50] sm:$0xff] }
  0x71   : > { %3680 = vmatpush2.bf16.msra.mxu0 %v5521_v29  ;;  %v6528_v18 = vcombine.high %v6518_v15, %v6521_v16  ;;  %v5585_v25 = vld [vmem:[%s6386_s7 + $0x5e4] ss:$16 sps:$4 sm:$0xff]   ;;  %v5583_v27 = vld [vmem:[%s6386_s7 + $0x5e0] ss:$16 sps:$4 sm:$0xff]  }
  0x72   : > { %3733 = vmatpush2.bf16.msra.mxu1 %v5522_v30  ;;  %3681 = vmatprep.subr.bf16.mxu0 %v5523_v31  ;;  %v5588_v26 = vld [vmem:[%s6386_s7 + $0x7e4] ss:$16 sps:$4 sm:$0xff]   ;;  %v5586_v28 = vld [vmem:[%s6386_s7 + $0x7e0] ss:$16 sps:$4 sm:$0xff]  }
  0x73   : > { %3734 = vmatprep.subr.bf16.mxu1 %v5525_v32  ;;  %v5591_v29 = vld [vmem:[%s6386_s7 + $0x5c4] ss:$16 sps:$4 sm:$0xff]   ;;  %v5589_v31 = vld [vmem:[%s6386_s7 + $0x5c0] ss:$16 sps:$4 sm:$0xff]  }
  0x74   : > { %v5594_v30 = vld [vmem:[%s6386_s7 + $0x7c4] ss:$16 sps:$4 sm:$0xff]   ;;  %v5592_v32 = vld [vmem:[%s6386_s7 + $0x7c0] ss:$16 sps:$4 sm:$0xff]  }
  0x75   : > { %3682 = vmatpush2.bf16.msra.mxu0 %v5527_v33  ;;  %v5597_v33 = vld [vmem:[%s6386_s7 + $0x5a4] ss:$16 sps:$4 sm:$0xff]   ;;  %v5631_v61 = vld [vmem:[%s6386_s7 + $0x8e0] ss:$16 sps:$4 sm:$0xff]  }
  0x76   : > { %3735 = vmatpush2.bf16.msra.mxu1 %v5528_v34  ;;  %3683 = vmatprep.subr.bf16.mxu0 %v5529_v35  ;;  %v5600_v34 = vld [vmem:[%s6386_s7 + $0x7a4] ss:$16 sps:$4 sm:$0xff]   ;;  %v5595_v35 = vld [vmem:[%s6386_s7 + $0x5a0] ss:$16 sps:$4 sm:$0xff]  }
  0x77   : > { %3736 = vmatprep.subr.bf16.mxu1 %v5531_v36  ;;  %v5598_v36 = vld [vmem:[%s6386_s7 + $0x7a0] ss:$16 sps:$4 sm:$0xff]  }
  0x78   : > { %v5634_v62 = vld [vmem:[%s6386_s7 + $0xae0] ss:$16 sps:$4 sm:$0xff]  }
  0x79   : > { %3684 = vmatpush2.bf16.msra.mxu0 %v5533_v37  ;;  %v5603_v37 = vld [vmem:[%s6386_s7 + $0x584] ss:$16 sps:$4 sm:$0xff]  }
  0x7a   : > { %3737 = vmatpush2.bf16.msra.mxu1 %v5534_v38  ;;  %3759 = vmatprep.subr.bf16.mxu0 %v5537_v39  ;;  %v5606_v38 = vld [vmem:[%s6386_s7 + $0x784] ss:$16 sps:$4 sm:$0xff]   ;;  %v5601_v39 = vld [vmem:[%s6386_s7 + $0x580] ss:$16 sps:$4 sm:$0xff]  }
  0x7b   : > { %3812 = vmatprep.subr.bf16.mxu1 %v5540_v40  ;;  %v5604_v40 = vld [vmem:[%s6386_s7 + $0x780] ss:$16 sps:$4 sm:$0xff]  }
  0x7c   : > { %3686 = vmatmul.mubr.bf16.vlgmr.msra.gmra.mxu0 %v6467_v41 }
  0x7d   : > { %3739 = vmatmul.mubr.bf16.vlgmr.msra.gmra.mxu1 %v6469_v42  ;;  %3760 = vmatpush1.bf16.msra.mxu0 %v5535_v43  ;;  %v5609_v43 = vld [vmem:[%s6386_s7 + $0x564] ss:$16 sps:$4 sm:$0xff]  }
  0x7e   : > { %3813 = vmatpush1.bf16.msra.mxu1 %v5538_v44  ;;  %3761 = vmatprep.subr.bf16.mxu0 %v5543_v45  ;;  %v5612_v44 = vld [vmem:[%s6386_s7 + $0x764] ss:$16 sps:$4 sm:$0xff]   ;;  %v5607_v45 = vld [vmem:[%s6386_s7 + $0x560] ss:$16 sps:$4 sm:$0xff]  }
  0x7f   : > { %3814 = vmatprep.subr.bf16.mxu1 %v5546_v46  ;;  %3695 = vmatprep.mubr.bf16.mxu0 %v6496_v2  ;;  %v5610_v46 = vld [vmem:[%s6386_s7 + $0x760] ss:$16 sps:$4 sm:$0xff]  }
  0x80   : > { %3748 = vmatprep.mubr.bf16.mxu1 %v6498_v3 }
  0x81   : > { %3762 = vmatpush1.bf16.msra.mxu0 %v5541_v47  ;;  %v5615_v47 = vld [vmem:[%s6386_s7 + $0x544] ss:$16 sps:$4 sm:$0xff]  }
  0x82   : > { %3815 = vmatpush1.bf16.msra.mxu1 %v5544_v48  ;;  %3763 = vmatprep.subr.bf16.mxu0 %v5549_v49  ;;  %v5618_v48 = vld [vmem:[%s6386_s7 + $0x744] ss:$16 sps:$4 sm:$0xff]   ;;  %v5613_v49 = vld [vmem:[%s6386_s7 + $0x540] ss:$16 sps:$4 sm:$0xff]  }
  0x83   : > { %3816 = vmatprep.subr.bf16.mxu1 %v5552_v50  ;;  %v5616_v50 = vld [vmem:[%s6386_s7 + $0x740] ss:$16 sps:$4 sm:$0xff]  }
  0x84   : > { %3696 = vmatmul.mubr.bf16.gmra.mxu0 %v6500_v4 }
  0x85   : > { %3764 = vmatpush1.bf16.msra.mxu0 %v5547_v51  ;;  %3749 = vmatmul.mubr.bf16.gmra.mxu1 %v6503_v6  ;;  %v5621_v51 = vld [vmem:[%s6386_s7 + $0x524] ss:$16 sps:$4 sm:$0xff]  }
  0x86   : > { %3817 = vmatpush1.bf16.msra.mxu1 %v5550_v52  ;;  %3765 = vmatprep.subr.bf16.mxu0 %v5555_v53  ;;  %v5624_v52 = vld [vmem:[%s6386_s7 + $0x724] ss:$16 sps:$4 sm:$0xff]   ;;  %v5619_v53 = vld [vmem:[%s6386_s7 + $0x520] ss:$16 sps:$4 sm:$0xff]  }
  0x87   : > { %3818 = vmatprep.subr.bf16.mxu1 %v5558_v54  ;;  %3791 = vmatprep.mubr.bf16.mxu0 %v6528_v18  ;;  %v5622_v54 = vld [vmem:[%s6386_s7 + $0x720] ss:$16 sps:$4 sm:$0xff]  }
  0x88   : > { %3844 = vmatprep.mubr.bf16.mxu1 %v6535_v20 }
  0x89   : > { %3766 = vmatpush1.bf16.msra.mxu0 %v5553_v55  ;;  %v5627_v55 = vld [vmem:[%s6386_s7 + $0x504] ss:$16 sps:$4 sm:$0xff]  }
  0x8a   : > { %3819 = vmatpush1.bf16.msra.mxu1 %v5556_v56  ;;  %3767 = vmatprep.subr.bf16.mxu0 %v5561_v57  ;;  %v5630_v56 = vld [vmem:[%s6386_s7 + $0x704] ss:$16 sps:$4 sm:$0xff]   ;;  %v5625_v57 = vld [vmem:[%s6386_s7 + $0x500] ss:$16 sps:$4 sm:$0xff]  }
  0x8b   : > { %3820 = vmatprep.subr.bf16.mxu1 %v5564_v58  ;;  %v5628_v58 = vld [vmem:[%s6386_s7 + $0x700] ss:$16 sps:$4 sm:$0xff]  }
  0x8d   : > { %3768 = vmatpush1.bf16.msra.mxu0 %v5559_v59  ;;  %v5633_v59 = vld [vmem:[%s6386_s7 + $0x8e4] ss:$16 sps:$4 sm:$0xff]  }
  0x8e   : > { %3821 = vmatpush1.bf16.msra.mxu1 %v5562_v60  ;;  %3769 = vmatprep.subr.bf16.mxu0 %v5567_v1  ;;  %v5636_v60 = vld [vmem:[%s6386_s7 + $0xae4] ss:$16 sps:$4 sm:$0xff]   ;;  %v6581_v1 = vcombine.low %v6518_v15, %v6521_v16 }
  0x8f   : > { %3822 = vmatprep.subr.bf16.mxu1 %v5570_v5  ;;  %v6585_v5 = vcombine.low %v6524_v17, %v6531_v19  ;;  %v5645_v15 = vld [vmem:[%s6386_s7 + $0x8a4] ss:$16 sps:$4 sm:$0xff]   ;;  %v5643_v17 = vld [vmem:[%s6386_s7 + $0x8a0] ss:$16 sps:$4 sm:$0xff]  }
  0x90   : > { %v5648_v16 = vld [vmem:[%s6386_s7 + $0xaa4] ss:$16 sps:$4 sm:$0xff]   ;;  %v5646_v19 = vld [vmem:[%s6386_s7 + $0xaa0] ss:$16 sps:$4 sm:$0xff]  }
  0x91   : > { %3770 = vmatpush1.bf16.msra.mxu0 %v5565_v7  ;;  %v408_v7 = vld [vmem:[%s6388_s8 + $0x98] sm:$0xff] }
  0x92   : > { %3823 = vmatpush1.bf16.msra.mxu1 %v5568_v8  ;;  %3771 = vmatprep.subr.bf16.mxu0 %v5573_v9  ;;  %v416_v8 = vld [vmem:[%s6388_s8 + $0xd8] sm:$0xff]  ;;  %v5639_v9 = vld [vmem:[%s6386_s7 + $0x8c4] ss:$16 sps:$4 sm:$0xff]  }
  0x93   : > { %3824 = vmatprep.subr.bf16.mxu1 %v5576_v10  ;;  %v5642_v10 = vld [vmem:[%s6386_s7 + $0xac4] ss:$16 sps:$4 sm:$0xff]  }
  0x95   : > { %3772 = vmatpush1.bf16.msra.mxu0 %v5571_v11  ;;  %v6591_v11 = vcombine.high %v407_v63, %v415_v0 }
  0x96   : > { %3825 = vmatpush1.bf16.msra.mxu1 %v5574_v12  ;;  %3773 = vmatprep.subr.bf16.mxu0 %v5579_v13  ;;  %v6593_v12 = vcombine.high %v408_v7, %v416_v8  ;;  %v5637_v13 = vld [vmem:[%s6386_s7 + $0x8c0] ss:$16 sps:$4 sm:$0xff]  }
  0x97   : > { %3826 = vmatprep.subr.bf16.mxu1 %v5582_v14  ;;  %v5640_v14 = vld [vmem:[%s6386_s7 + $0xac0] ss:$16 sps:$4 sm:$0xff]  }
  0x99   : > { %3774 = vmatpush1.bf16.msra.mxu0 %v5577_v21  ;;  %v6606_v21 = vld [vmem:[%s6388_s8 + $0x20] sm:$0xff] }
  0x9a   : > { %3827 = vmatpush1.bf16.msra.mxu1 %v5580_v23  ;;  %3775 = vmatprep.subr.bf16.mxu0 %v5585_v25  ;;  %v6609_v23 = vld [vmem:[%s6388_s8 + $0x60] sm:$0xff]  ;;  %v6611_v25 = vcombine.low %v407_v63, %v415_v0 }
  0x9b   : > { %3828 = vmatprep.subr.bf16.mxu1 %v5588_v26  ;;  %v6613_v26 = vcombine.low %v408_v7, %v416_v8  ;;  %v5691_v63 = vld [vmem:[%s6386_s7 + $0x9a0] ss:$16 sps:$4 sm:$0xff]   ;;  %v5699_v7 = vld [vmem:[%s6386_s7 + $0x984] ss:$16 sps:$4 sm:$0xff]  }
  0x9c   : > { %v5694_v0 = vld [vmem:[%s6386_s7 + $0xba0] ss:$16 sps:$4 sm:$0xff]   ;;  %v5702_v8 = vld [vmem:[%s6386_s7 + $0xb84] ss:$16 sps:$4 sm:$0xff]  }
  0x9d   : > { %3776 = vmatpush2.bf16.msra.mxu0 %v5583_v27  ;;  %v6616_v27 = vld [vmem:[%s6388_s8 + $0x28] sm:$0xff] }
  0x9e   : > { %3829 = vmatpush2.bf16.msra.mxu1 %v5586_v28  ;;  %3777 = vmatprep.subr.bf16.mxu0 %v5591_v29  ;;  %v6619_v28 = vld [vmem:[%s6388_s8 + $0x68] sm:$0xff]  ;;  %v5651_v29 = vld [vmem:[%s6386_s7 + $0x884] ss:$16 sps:$4 sm:$0xff]  }
  0x9f   : > { %3830 = vmatprep.subr.bf16.mxu1 %v5594_v30  ;;  %v5654_v30 = vld [vmem:[%s6386_s7 + $0xa84] ss:$16 sps:$4 sm:$0xff]  }
  0xa1   : > { %3778 = vmatpush2.bf16.msra.mxu0 %v5589_v31  ;;  %v6625_v31 = vcombine.high %v6606_v21, %v6609_v23 }
  0xa2   : > { %3831 = vmatpush2.bf16.msra.mxu1 %v5592_v32  ;;  %3779 = vmatprep.subr.bf16.mxu0 %v5597_v33  ;;  %v6629_v32 = vcombine.high %v6616_v27, %v6619_v28  ;;  %v5649_v33 = vld [vmem:[%s6386_s7 + $0x880] ss:$16 sps:$4 sm:$0xff]  }
  0xa3   : > { %3832 = vmatprep.subr.bf16.mxu1 %v5600_v34  ;;  %v5652_v34 = vld [vmem:[%s6386_s7 + $0xa80] ss:$16 sps:$4 sm:$0xff]  }
  0xa5   : > { %3780 = vmatpush2.bf16.msra.mxu0 %v5595_v35  ;;  %v5657_v35 = vld [vmem:[%s6386_s7 + $0x864] ss:$16 sps:$4 sm:$0xff]  }
  0xa6   : > { %3833 = vmatpush2.bf16.msra.mxu1 %v5598_v36  ;;  %3781 = vmatprep.subr.bf16.mxu0 %v5603_v37  ;;  %v5660_v36 = vld [vmem:[%s6386_s7 + $0xa64] ss:$16 sps:$4 sm:$0xff]   ;;  %v5655_v37 = vld [vmem:[%s6386_s7 + $0x860] ss:$16 sps:$4 sm:$0xff]  }
  0xa7   : > { %3834 = vmatprep.subr.bf16.mxu1 %v5606_v38  ;;  %v5658_v38 = vld [vmem:[%s6386_s7 + $0xa60] ss:$16 sps:$4 sm:$0xff]  }
  0xa9   : > { %3782 = vmatpush2.bf16.msra.mxu0 %v5601_v39  ;;  %v5663_v39 = vld [vmem:[%s6386_s7 + $0x844] ss:$16 sps:$4 sm:$0xff]  }
  0xaa   : > { %3835 = vmatpush2.bf16.msra.mxu1 %v5604_v40  ;;  %3783 = vmatprep.subr.bf16.mxu0 %v5609_v43  ;;  %v5666_v40 = vld [vmem:[%s6386_s7 + $0xa44] ss:$16 sps:$4 sm:$0xff]   ;;  %v5661_v43 = vld [vmem:[%s6386_s7 + $0x840] ss:$16 sps:$4 sm:$0xff]  }
  0xab   : > { %3836 = vmatprep.subr.bf16.mxu1 %v5612_v44  ;;  %v5664_v44 = vld [vmem:[%s6386_s7 + $0xa40] ss:$16 sps:$4 sm:$0xff]  }
  0xad   : > { %3784 = vmatpush2.bf16.msra.mxu0 %v5607_v45  ;;  %v5669_v45 = vld [vmem:[%s6386_s7 + $0x824] ss:$16 sps:$4 sm:$0xff]  }
  0xae   : > { %3837 = vmatpush2.bf16.msra.mxu1 %v5610_v46  ;;  %3785 = vmatprep.subr.bf16.mxu0 %v5615_v47  ;;  %v5672_v46 = vld [vmem:[%s6386_s7 + $0xa24] ss:$16 sps:$4 sm:$0xff]   ;;  %v5667_v47 = vld [vmem:[%s6386_s7 + $0x820] ss:$16 sps:$4 sm:$0xff]  }
  0xaf   : > { %3838 = vmatprep.subr.bf16.mxu1 %v5618_v48  ;;  %v5670_v48 = vld [vmem:[%s6386_s7 + $0xa20] ss:$16 sps:$4 sm:$0xff]  }
  0xb1   : > { %3786 = vmatpush2.bf16.msra.mxu0 %v5613_v49  ;;  %v5675_v49 = vld [vmem:[%s6386_s7 + $0x804] ss:$16 sps:$4 sm:$0xff]  }
  0xb2   : > { %3839 = vmatpush2.bf16.msra.mxu1 %v5616_v50  ;;  %3787 = vmatprep.subr.bf16.mxu0 %v5621_v51  ;;  %v5678_v50 = vld [vmem:[%s6386_s7 + $0xa04] ss:$16 sps:$4 sm:$0xff]   ;;  %v5673_v51 = vld [vmem:[%s6386_s7 + $0x800] ss:$16 sps:$4 sm:$0xff]  }
  0xb3   : > { %3840 = vmatprep.subr.bf16.mxu1 %v5624_v52  ;;  %v5676_v52 = vld [vmem:[%s6386_s7 + $0xa00] ss:$16 sps:$4 sm:$0xff]  }
  0xb5   : > { %3788 = vmatpush2.bf16.msra.mxu0 %v5619_v53  ;;  %v5681_v53 = vld [vmem:[%s6386_s7 + $0x9e4] ss:$16 sps:$4 sm:$0xff]  }
  0xb6   : > { %3841 = vmatpush2.bf16.msra.mxu1 %v5622_v54  ;;  %3789 = vmatprep.subr.bf16.mxu0 %v5627_v55  ;;  %v5684_v54 = vld [vmem:[%s6386_s7 + $0xbe4] ss:$16 sps:$4 sm:$0xff]   ;;  %v5679_v55 = vld [vmem:[%s6386_s7 + $0x9e0] ss:$16 sps:$4 sm:$0xff]  }
  0xb7   : > { %3842 = vmatprep.subr.bf16.mxu1 %v5630_v56  ;;  %v5682_v56 = vld [vmem:[%s6386_s7 + $0xbe0] ss:$16 sps:$4 sm:$0xff]  }
  0xb9   : > { %3790 = vmatpush2.bf16.msra.mxu0 %v5625_v57  ;;  %v5687_v57 = vld [vmem:[%s6386_s7 + $0x9c4] ss:$16 sps:$4 sm:$0xff]  }
  0xba   : > { %3843 = vmatpush2.bf16.msra.mxu1 %v5628_v58  ;;  %3865 = vmatprep.subr.bf16.mxu0 %v5633_v59  ;;  %v5690_v58 = vld [vmem:[%s6386_s7 + $0xbc4] ss:$16 sps:$4 sm:$0xff]   ;;  %v5685_v59 = vld [vmem:[%s6386_s7 + $0x9c0] ss:$16 sps:$4 sm:$0xff]  }
  0xbb   : > { %3918 = vmatprep.subr.bf16.mxu1 %v5636_v60  ;;  %v5688_v60 = vld [vmem:[%s6386_s7 + $0xbc0] ss:$16 sps:$4 sm:$0xff]  }
  0xbc   : > { %3792 = vmatmul.mubr.bf16.vlgmr.msra.gmra.mxu0 %v6581_v1 }
  0xbd   : > { %3845 = vmatmul.mubr.bf16.vlgmr.msra.gmra.mxu1 %v6585_v5  ;;  %3866 = vmatpush1.bf16.msra.mxu0 %v5631_v61  ;;  %v5693_v61 = vld [vmem:[%s6386_s7 + $0x9a4] ss:$16 sps:$4 sm:$0xff]  }
  0xbe   : > { %3919 = vmatpush1.bf16.msra.mxu1 %v5634_v62  ;;  %3867 = vmatprep.subr.bf16.mxu0 %v5639_v9  ;;  %v5696_v62 = vld [vmem:[%s6386_s7 + $0xba4] ss:$16 sps:$4 sm:$0xff]   ;;  %v5697_v9 = vld [vmem:[%s6386_s7 + $0x980] ss:$16 sps:$4 sm:$0xff]  }
  0xbf   : > { %3920 = vmatprep.subr.bf16.mxu1 %v5642_v10  ;;  %3801 = vmatprep.mubr.bf16.mxu0 %v6591_v11  ;;  %v5700_v10 = vld [vmem:[%s6386_s7 + $0xb80] ss:$16 sps:$4 sm:$0xff]  }
  0xc0   : > { %3854 = vmatprep.mubr.bf16.mxu1 %v6593_v12 }
  0xc1   : > { %3868 = vmatpush1.bf16.msra.mxu0 %v5637_v13  ;;  %v5705_v13 = vld [vmem:[%s6386_s7 + $0x964] ss:$16 sps:$4 sm:$0xff]  }
  0xc2   : > { %3921 = vmatpush1.bf16.msra.mxu1 %v5640_v14  ;;  %3869 = vmatprep.subr.bf16.mxu0 %v5645_v15  ;;  %v5708_v14 = vld [vmem:[%s6386_s7 + $0xb64] ss:$16 sps:$4 sm:$0xff]   ;;  %v5703_v15 = vld [vmem:[%s6386_s7 + $0x960] ss:$16 sps:$4 sm:$0xff]  }
  0xc3   : > { %3922 = vmatprep.subr.bf16.mxu1 %v5648_v16  ;;  %v5706_v16 = vld [vmem:[%s6386_s7 + $0xb60] ss:$16 sps:$4 sm:$0xff]  }
  0xc4   : > { %3802 = vmatmul.mubr.bf16.gmra.mxu0 %v6611_v25 }
  0xc5   : > { %3855 = vmatmul.mubr.bf16.gmra.mxu1 %v6613_v26  ;;  %3870 = vmatpush1.bf16.msra.mxu0 %v5643_v17  ;;  %v5711_v17 = vld [vmem:[%s6386_s7 + $0x944] ss:$16 sps:$4 sm:$0xff]  }
  0xc6   : > { %3923 = vmatpush1.bf16.msra.mxu1 %v5646_v19  ;;  %3871 = vmatprep.subr.bf16.mxu0 %v5651_v29  ;;  %v5714_v19 = vld [vmem:[%s6386_s7 + $0xb44] ss:$16 sps:$4 sm:$0xff]   ;;  %v5709_v29 = vld [vmem:[%s6386_s7 + $0x940] ss:$16 sps:$4 sm:$0xff]  }
  0xc7   : > { %3924 = vmatprep.subr.bf16.mxu1 %v5654_v30  ;;  %3897 = vmatprep.mubr.bf16.mxu0 %v6625_v31  ;;  %v5712_v30 = vld [vmem:[%s6386_s7 + $0xb40] ss:$16 sps:$4 sm:$0xff]  }
  0xc8   : > { %3950 = vmatprep.mubr.bf16.mxu1 %v6629_v32 }
  0xc9   : > { %3872 = vmatpush1.bf16.msra.mxu0 %v5649_v33  ;;  %v5717_v33 = vld [vmem:[%s6386_s7 + $0x924] ss:$16 sps:$4 sm:$0xff]  }
  0xca   : > { %3925 = vmatpush1.bf16.msra.mxu1 %v5652_v34  ;;  %3873 = vmatprep.subr.bf16.mxu0 %v5657_v35  ;;  %v5720_v34 = vld [vmem:[%s6386_s7 + $0xb24] ss:$16 sps:$4 sm:$0xff]   ;;  %v5715_v35 = vld [vmem:[%s6386_s7 + $0x920] ss:$16 sps:$4 sm:$0xff]  }
  0xcb   : > { %3926 = vmatprep.subr.bf16.mxu1 %v5660_v36  ;;  %v5718_v36 = vld [vmem:[%s6386_s7 + $0xb20] ss:$16 sps:$4 sm:$0xff]  }
  0xcd   : > { %3874 = vmatpush1.bf16.msra.mxu0 %v5655_v37  ;;  %v5723_v37 = vld [vmem:[%s6386_s7 + $0x904] ss:$16 sps:$4 sm:$0xff]  }
  0xce   : > { %3927 = vmatpush1.bf16.msra.mxu1 %v5658_v38  ;;  %3875 = vmatprep.subr.bf16.mxu0 %v5663_v39  ;;  %v5726_v38 = vld [vmem:[%s6386_s7 + $0xb04] ss:$16 sps:$4 sm:$0xff]   ;;  %v5721_v39 = vld [vmem:[%s6386_s7 + $0x900] ss:$16 sps:$4 sm:$0xff]  }
  0xcf   : > { %3928 = vmatprep.subr.bf16.mxu1 %v5666_v40  ;;  %v5724_v40 = vld [vmem:[%s6386_s7 + $0xb00] ss:$16 sps:$4 sm:$0xff]  }
  0xd1   : > { %3876 = vmatpush1.bf16.msra.mxu0 %v5661_v43  ;;  %v5729_v43 = vld [vmem:[%s6386_s7 + $0xce4] ss:$16 sps:$4 sm:$0xff]  }
  0xd2   : > { %3929 = vmatpush1.bf16.msra.mxu1 %v5664_v44  ;;  %3877 = vmatprep.subr.bf16.mxu0 %v5669_v45  ;;  %v5732_v44 = vld [vmem:[%s6386_s7 + $0xee4] ss:$16 sps:$4 sm:$0xff]   ;;  %v5727_v45 = vld [vmem:[%s6386_s7 + $0xce0] ss:$16 sps:$4 sm:$0xff]  }
  0xd3   : > { %3930 = vmatprep.subr.bf16.mxu1 %v5672_v46  ;;  %v5730_v46 = vld [vmem:[%s6386_s7 + $0xee0] ss:$16 sps:$4 sm:$0xff]  }
  0xd5   : > { %3878 = vmatpush1.bf16.msra.mxu0 %v5667_v47  ;;  %v409_v47 = vld [vmem:[%s6388_s8 + $0xa0] sm:$0xff] }
  0xd6   : > { %3931 = vmatpush1.bf16.msra.mxu1 %v5670_v48  ;;  %3879 = vmatprep.subr.bf16.mxu0 %v5675_v49  ;;  %v417_v48 = vld [vmem:[%s6388_s8 + $0xe0] sm:$0xff]  ;;  %v6693_v49 = vcombine.low %v6606_v21, %v6609_v23 }
  0xd7   : > { %3932 = vmatprep.subr.bf16.mxu1 %v5678_v50  ;;  %v6697_v50 = vcombine.low %v6616_v27, %v6619_v28  ;;  %v5733_v23 = vld [vmem:[%s6386_s7 + $0xcc0] ss:$16 sps:$4 sm:$0xff]   ;;  %v5741_v28 = vld [vmem:[%s6386_s7 + $0xca4] ss:$16 sps:$4 sm:$0xff]  }
  0xd8   : > { %v5736_v27 = vld [vmem:[%s6386_s7 + $0xec0] ss:$16 sps:$4 sm:$0xff]  }
  0xd9   : > { %3880 = vmatpush1.bf16.msra.mxu0 %v5673_v51  ;;  %v410_v51 = vld [vmem:[%s6388_s8 + $0xa8] sm:$0xff] }
  0xda   : > { %3933 = vmatpush1.bf16.msra.mxu1 %v5676_v52  ;;  %3881 = vmatprep.subr.bf16.mxu0 %v5681_v53  ;;  %v418_v52 = vld [vmem:[%s6388_s8 + $0xe8] sm:$0xff]  ;;  %v5735_v53 = vld [vmem:[%s6386_s7 + $0xcc4] ss:$16 sps:$4 sm:$0xff]  }
  0xdb   : > { %3934 = vmatprep.subr.bf16.mxu1 %v5684_v54  ;;  %v5738_v54 = vld [vmem:[%s6386_s7 + $0xec4] ss:$16 sps:$4 sm:$0xff]   ;;  %v6705_v21 = vcombine.high %v410_v51, %v418_v52 }
  0xdd   : > { %3882 = vmatpush2.bf16.msra.mxu0 %v5679_v55  ;;  %v6703_v55 = vcombine.high %v409_v47, %v417_v48 }
  0xde   : > { %3935 = vmatpush2.bf16.msra.mxu1 %v5682_v56  ;;  %3883 = vmatprep.subr.bf16.mxu0 %v5687_v57  ;;  %v5744_v56 = vld [vmem:[%s6386_s7 + $0xea4] ss:$16 sps:$4 sm:$0xff]   ;;  %v5739_v57 = vld [vmem:[%s6386_s7 + $0xca0] ss:$16 sps:$4 sm:$0xff]  }
  0xdf   : > { %3936 = vmatprep.subr.bf16.mxu1 %v5690_v58  ;;  %v5742_v58 = vld [vmem:[%s6386_s7 + $0xea0] ss:$16 sps:$4 sm:$0xff]  }
  0xe1   : > { %3884 = vmatpush2.bf16.msra.mxu0 %v5685_v59  ;;  %v6718_v59 = vld [vmem:[%s6388_s8 + $0x30] sm:$0xff] }
  0xe2   : > { %3937 = vmatpush2.bf16.msra.mxu1 %v5688_v60  ;;  %3885 = vmatprep.subr.bf16.mxu0 %v5693_v61  ;;  %v6721_v60 = vld [vmem:[%s6388_s8 + $0x70] sm:$0xff]  ;;  %v6723_v61 = vcombine.low %v409_v47, %v417_v48 }
  0xe3   : > { %3938 = vmatprep.subr.bf16.mxu1 %v5696_v62  ;;  %v6725_v62 = vcombine.low %v410_v51, %v418_v52  ;;  %v5775_v47 = vld [vmem:[%s6386_s7 + $0xde0] ss:$16 sps:$4 sm:$0xff]   ;;  %v5783_v51 = vld [vmem:[%s6386_s7 + $0xdc4] ss:$16 sps:$4 sm:$0xff]  }
  0xe4   : > { %v5778_v48 = vld [vmem:[%s6386_s7 + $0xfe0] ss:$16 sps:$4 sm:$0xff]   ;;  %v5786_v52 = vld [vmem:[%s6386_s7 + $0xfc4] ss:$16 sps:$4 sm:$0xff]  }
  0xe5   : > { %3886 = vmatpush2.bf16.msra.mxu0 %v5691_v63  ;;  %v6728_v63 = vld [vmem:[%s6388_s8 + $0x38] sm:$0xff] }
  0xe6   : > { %3939 = vmatpush2.bf16.msra.mxu1 %v5694_v0  ;;  %3887 = vmatprep.subr.bf16.mxu0 %v5699_v7  ;;  %v6731_v0 = vld [vmem:[%s6388_s8 + $0x78] sm:$0xff]  ;;  %v5747_v7 = vld [vmem:[%s6386_s7 + $0xc84] ss:$16 sps:$4 sm:$0xff]  }
  0xe7   : > { %3940 = vmatprep.subr.bf16.mxu1 %v5702_v8  ;;  %v5750_v8 = vld [vmem:[%s6386_s7 + $0xe84] ss:$16 sps:$4 sm:$0xff]  }
  0xe9   : > { %3888 = vmatpush2.bf16.msra.mxu0 %v5697_v9  ;;  %v6737_v9 = vcombine.high %v6718_v59, %v6721_v60 }
  0xea   : > { %3941 = vmatpush2.bf16.msra.mxu1 %v5700_v10  ;;  %3889 = vmatprep.subr.bf16.mxu0 %v5705_v13  ;;  %v6741_v10 = vcombine.high %v6728_v63, %v6731_v0  ;;  %v5745_v13 = vld [vmem:[%s6386_s7 + $0xc80] ss:$16 sps:$4 sm:$0xff]  }
  0xeb   : > { %3942 = vmatprep.subr.bf16.mxu1 %v5708_v14  ;;  %v5748_v14 = vld [vmem:[%s6386_s7 + $0xe80] ss:$16 sps:$4 sm:$0xff]  }
  0xed   : > { %3890 = vmatpush2.bf16.msra.mxu0 %v5703_v15  ;;  %v5753_v15 = vld [vmem:[%s6386_s7 + $0xc64] ss:$16 sps:$4 sm:$0xff]  }
  0xee   : > { %3943 = vmatpush2.bf16.msra.mxu1 %v5706_v16  ;;  %3891 = vmatprep.subr.bf16.mxu0 %v5711_v17  ;;  %v5756_v16 = vld [vmem:[%s6386_s7 + $0xe64] ss:$16 sps:$4 sm:$0xff]   ;;  %v5751_v17 = vld [vmem:[%s6386_s7 + $0xc60] ss:$16 sps:$4 sm:$0xff]  }
  0xef   : > { %3944 = vmatprep.subr.bf16.mxu1 %v5714_v19  ;;  %v5754_v19 = vld [vmem:[%s6386_s7 + $0xe60] ss:$16 sps:$4 sm:$0xff]  }
  0xf1   : > { %3892 = vmatpush2.bf16.msra.mxu0 %v5709_v29  ;;  %v5759_v29 = vld [vmem:[%s6386_s7 + $0xc44] ss:$16 sps:$4 sm:$0xff]  }
  0xf2   : > { %3945 = vmatpush2.bf16.msra.mxu1 %v5712_v30  ;;  %3893 = vmatprep.subr.bf16.mxu0 %v5717_v33  ;;  %v5762_v30 = vld [vmem:[%s6386_s7 + $0xe44] ss:$16 sps:$4 sm:$0xff]   ;;  %v5757_v33 = vld [vmem:[%s6386_s7 + $0xc40] ss:$16 sps:$4 sm:$0xff]  }
  0xf3   : > { %3946 = vmatprep.subr.bf16.mxu1 %v5720_v34  ;;  %v5760_v34 = vld [vmem:[%s6386_s7 + $0xe40] ss:$16 sps:$4 sm:$0xff]  }
  0xf5   : > { %3894 = vmatpush2.bf16.msra.mxu0 %v5715_v35  ;;  %v5765_v35 = vld [vmem:[%s6386_s7 + $0xc24] ss:$16 sps:$4 sm:$0xff]  }
  0xf6   : > { %3947 = vmatpush2.bf16.msra.mxu1 %v5718_v36  ;;  %3895 = vmatprep.subr.bf16.mxu0 %v5723_v37  ;;  %v5768_v36 = vld [vmem:[%s6386_s7 + $0xe24] ss:$16 sps:$4 sm:$0xff]   ;;  %v5763_v37 = vld [vmem:[%s6386_s7 + $0xc20] ss:$16 sps:$4 sm:$0xff]  }
  0xf7   : > { %3948 = vmatprep.subr.bf16.mxu1 %v5726_v38  ;;  %v5766_v38 = vld [vmem:[%s6386_s7 + $0xe20] ss:$16 sps:$4 sm:$0xff]  }
  0xf9   : > { %3896 = vmatpush2.bf16.msra.mxu0 %v5721_v39  ;;  %v5771_v39 = vld [vmem:[%s6386_s7 + $0xc04] ss:$16 sps:$4 sm:$0xff]  }
  0xfa   : > { %3949 = vmatpush2.bf16.msra.mxu1 %v5724_v40  ;;  %3971 = vmatprep.subr.bf16.mxu0 %v5729_v43  ;;  %v5774_v40 = vld [vmem:[%s6386_s7 + $0xe04] ss:$16 sps:$4 sm:$0xff]   ;;  %v5769_v43 = vld [vmem:[%s6386_s7 + $0xc00] ss:$16 sps:$4 sm:$0xff]  }
  0xfb   : > { %4024 = vmatprep.subr.bf16.mxu1 %v5732_v44  ;;  %v5772_v44 = vld [vmem:[%s6386_s7 + $0xe00] ss:$16 sps:$4 sm:$0xff]  }
  0xfc   : > { %3898 = vmatmul.mubr.bf16.vlgmr.msra.gmra.mxu0 %v6693_v49 }
  0xfd   : > { %3951 = vmatmul.mubr.bf16.vlgmr.msra.gmra.mxu1 %v6697_v50  ;;  %3972 = vmatpush1.bf16.msra.mxu0 %v5727_v45  ;;  %v5777_v45 = vld [vmem:[%s6386_s7 + $0xde4] ss:$16 sps:$4 sm:$0xff]  }
  0xfe   : > { %4025 = vmatpush1.bf16.msra.mxu1 %v5730_v46  ;;  %3973 = vmatprep.subr.bf16.mxu0 %v5735_v53  ;;  %v5780_v46 = vld [vmem:[%s6386_s7 + $0xfe4] ss:$16 sps:$4 sm:$0xff]   ;;  %v5781_v53 = vld [vmem:[%s6386_s7 + $0xdc0] ss:$16 sps:$4 sm:$0xff]  }
  0xff   : > { %4026 = vmatprep.subr.bf16.mxu1 %v5738_v54  ;;  %3907 = vmatprep.mubr.bf16.mxu0 %v6703_v55  ;;  %v5784_v54 = vld [vmem:[%s6386_s7 + $0xfc0] ss:$16 sps:$4 sm:$0xff]  }
 0x100   : > { %3960 = vmatprep.mubr.bf16.mxu1 %v6705_v21 }
 0x101   : > { %3974 = vmatpush1.bf16.msra.mxu0 %v5733_v23  ;;  %v5789_v23 = vld [vmem:[%s6386_s7 + $0xda4] ss:$16 sps:$4 sm:$0xff]  }
 0x102   : > { %4027 = vmatpush1.bf16.msra.mxu1 %v5736_v27  ;;  %3975 = vmatprep.subr.bf16.mxu0 %v5741_v28  ;;  %v5792_v27 = vld [vmem:[%s6386_s7 + $0xfa4] ss:$16 sps:$4 sm:$0xff]   ;;  %v5787_v28 = vld [vmem:[%s6386_s7 + $0xda0] ss:$16 sps:$4 sm:$0xff]  }
 0x103   : > { %4028 = vmatprep.subr.bf16.mxu1 %v5744_v56  ;;  %v5790_v56 = vld [vmem:[%s6386_s7 + $0xfa0] ss:$16 sps:$4 sm:$0xff]  }
 0x104   : > { %3908 = vmatmul.mubr.bf16.gmra.mxu0 %v6723_v61 }
 0x105   : > { %3961 = vmatmul.mubr.bf16.gmra.mxu1 %v6725_v62  ;;  %3976 = vmatpush1.bf16.msra.mxu0 %v5739_v57  ;;  %v5795_v57 = vld [vmem:[%s6386_s7 + $0xd84] ss:$16 sps:$4 sm:$0xff]  }
 0x106   : > { %4029 = vmatpush1.bf16.msra.mxu1 %v5742_v58  ;;  %3977 = vmatprep.subr.bf16.mxu0 %v5747_v7  ;;  %v5798_v58 = vld [vmem:[%s6386_s7 + $0xf84] ss:$16 sps:$4 sm:$0xff]   ;;  %v5793_v7 = vld [vmem:[%s6386_s7 + $0xd80] ss:$16 sps:$4 sm:$0xff]  }
 0x107   : > { %4030 = vmatprep.subr.bf16.mxu1 %v5750_v8  ;;  %4003 = vmatprep.mubr.bf16.mxu0 %v6737_v9  ;;  %v5796_v8 = vld [vmem:[%s6386_s7 + $0xf80] ss:$16 sps:$4 sm:$0xff]  }
 0x108   : > { %4056 = vmatprep.mubr.bf16.mxu1 %v6741_v10 }
 0x109   : > { %3978 = vmatpush1.bf16.msra.mxu0 %v5745_v13  ;;  %v5801_v13 = vld [vmem:[%s6386_s7 + $0xd64] ss:$16 sps:$4 sm:$0xff]  }
 0x10a   : > { %4031 = vmatpush1.bf16.msra.mxu1 %v5748_v14  ;;  %3979 = vmatprep.subr.bf16.mxu0 %v5753_v15  ;;  %v5804_v14 = vld [vmem:[%s6386_s7 + $0xf64] ss:$16 sps:$4 sm:$0xff]   ;;  %v5799_v15 = vld [vmem:[%s6386_s7 + $0xd60] ss:$16 sps:$4 sm:$0xff]  }
 0x10b   : > { %4032 = vmatprep.subr.bf16.mxu1 %v5756_v16  ;;  %v5802_v16 = vld [vmem:[%s6386_s7 + $0xf60] ss:$16 sps:$4 sm:$0xff]  }
 0x10d   : > { %3980 = vmatpush1.bf16.msra.mxu0 %v5751_v17  ;;  %v5807_v17 = vld [vmem:[%s6386_s7 + $0xd44] ss:$16 sps:$4 sm:$0xff]  }
 0x10e   : > { %4033 = vmatpush1.bf16.msra.mxu1 %v5754_v19  ;;  %3981 = vmatprep.subr.bf16.mxu0 %v5759_v29  ;;  %v5810_v19 = vld [vmem:[%s6386_s7 + $0xf44] ss:$16 sps:$4 sm:$0xff]   ;;  %v5805_v29 = vld [vmem:[%s6386_s7 + $0xd40] ss:$16 sps:$4 sm:$0xff]  }
 0x10f   : > { %4034 = vmatprep.subr.bf16.mxu1 %v5762_v30  ;;  %v5808_v30 = vld [vmem:[%s6386_s7 + $0xf40] ss:$16 sps:$4 sm:$0xff]  }
 0x111   : > { %3982 = vmatpush1.bf16.msra.mxu0 %v5757_v33  ;;  %v5813_v33 = vld [vmem:[%s6386_s7 + $0xd24] ss:$16 sps:$4 sm:$0xff]  }
 0x112   : > { %4035 = vmatpush1.bf16.msra.mxu1 %v5760_v34  ;;  %3983 = vmatprep.subr.bf16.mxu0 %v5765_v35  ;;  %v5816_v34 = vld [vmem:[%s6386_s7 + $0xf24] ss:$16 sps:$4 sm:$0xff]   ;;  %v5811_v35 = vld [vmem:[%s6386_s7 + $0xd20] ss:$16 sps:$4 sm:$0xff]  }
 0x113   : > { %4036 = vmatprep.subr.bf16.mxu1 %v5768_v36  ;;  %v5814_v36 = vld [vmem:[%s6386_s7 + $0xf20] ss:$16 sps:$4 sm:$0xff]  }
 0x115   : > { %3984 = vmatpush1.bf16.msra.mxu0 %v5763_v37  ;;  %v5819_v37 = vld [vmem:[%s6386_s7 + $0xd04] ss:$16 sps:$4 sm:$0xff]  }
 0x116   : > { %4037 = vmatpush1.bf16.msra.mxu1 %v5766_v38  ;;  %3985 = vmatprep.subr.bf16.mxu0 %v5771_v39  ;;  %v5822_v38 = vld [vmem:[%s6386_s7 + $0xf04] ss:$16 sps:$4 sm:$0xff]   ;;  %v5817_v39 = vld [vmem:[%s6386_s7 + $0xd00] ss:$16 sps:$4 sm:$0xff]  }
 0x117   : > { %4038 = vmatprep.subr.bf16.mxu1 %v5774_v40  ;;  %v5820_v40 = vld [vmem:[%s6386_s7 + $0xf00] ss:$16 sps:$4 sm:$0xff]  }
 0x119   : > { %3986 = vmatpush1.bf16.msra.mxu0 %v5769_v43  ;;  %v5825_v43 = vld [vmem:[%s6386_s7 + $0xec] ss:$16 sps:$4 sm:$0xff]  }
 0x11a   : > { %4039 = vmatpush1.bf16.msra.mxu1 %v5772_v44  ;;  %3987 = vmatprep.subr.bf16.mxu0 %v5777_v45  ;;  %v5828_v44 = vld [vmem:[%s6386_s7 + $0x2ec] ss:$16 sps:$4 sm:$0xff]   ;;  %v5823_v45 = vld [vmem:[%s6386_s7 + $0xe8] ss:$16 sps:$4 sm:$0xff]  }
 0x11b   : > { %4040 = vmatprep.subr.bf16.mxu1 %v5780_v46  ;;  %v5826_v46 = vld [vmem:[%s6386_s7 + $0x2e8] ss:$16 sps:$4 sm:$0xff]  }
 0x11d   : > { %3988 = vmatpush2.bf16.msra.mxu0 %v5775_v47  ;;  %v411_v47 = vld [vmem:[%s6388_s8 + $0xb0] sm:$0xff] }
 0x11e   : > { %4041 = vmatpush2.bf16.msra.mxu1 %v5778_v48  ;;  %3989 = vmatprep.subr.bf16.mxu0 %v5783_v51  ;;  %v419_v48 = vld [vmem:[%s6388_s8 + $0xf0] sm:$0xff]  ;;  %v6805_v51 = vcombine.low %v6718_v59, %v6721_v60  ;;  %v5829_v60 = vld [vmem:[%s6386_s7 + $0xc8] ss:$16 sps:$4 sm:$0xff]  }
 0x11f   : > { %4042 = vmatprep.subr.bf16.mxu1 %v5786_v52  ;;  %v6809_v52 = vcombine.low %v6728_v63, %v6731_v0  ;;  %v5832_v63 = vld [vmem:[%s6386_s7 + $0x2c8] ss:$16 sps:$4 sm:$0xff]   ;;  %v5837_v0 = vld [vmem:[%s6386_s7 + $0xac] ss:$16 sps:$4 sm:$0xff]  }
 0x121   : > { %3990 = vmatpush2.bf16.msra.mxu0 %v5781_v53  ;;  %v412_v53 = vld [vmem:[%s6388_s8 + $0xb8] sm:$0xff] }
 0x122   : > { %4043 = vmatpush2.bf16.msra.mxu1 %v5784_v54  ;;  %3991 = vmatprep.subr.bf16.mxu0 %v5789_v23  ;;  %v420_v54 = vld [vmem:[%s6388_s8 + $0xf8] sm:$0xff] }
 0x123   : > { %4044 = vmatprep.subr.bf16.mxu1 %v5792_v27  ;;  %v5831_v23 = vld [vmem:[%s6386_s7 + $0xcc] ss:$16 sps:$4 sm:$0xff]   ;;  %v6817_v59 = vcombine.high %v412_v53, %v420_v54 }
 0x124   : > { %v5834_v27 = vld [vmem:[%s6386_s7 + $0x2cc] ss:$16 sps:$4 sm:$0xff]  }
 0x125   : > { %3992 = vmatpush2.bf16.msra.mxu0 %v5787_v28  ;;  %v6815_v28 = vcombine.high %v411_v47, %v419_v48  ;;  %7338 = vst [vmem:[#allocation5_spill] sm:$0xff] %v6817_v59 }
 0x126   : > { %4045 = vmatpush2.bf16.msra.mxu1 %v5790_v56  ;;  %3993 = vmatprep.subr.bf16.mxu0 %v5795_v57  ;;  %v5840_v56 = vld [vmem:[%s6386_s7 + $0x2ac] ss:$16 sps:$4 sm:$0xff]   ;;  %v6827_v57 = vcombine.low %v411_v47, %v419_v48  ;;  %v5871_v47 = vld [vmem:[%s6386_s7 + $0x1e8] ss:$16 sps:$4 sm:$0xff]  }
 0x127   : > { %4046 = vmatprep.subr.bf16.mxu1 %v5798_v58  ;;  %7337 = vst [vmem:[#allocation4_spill] sm:$0xff] %v6815_v28  ;;  %v5835_v58 = vld [vmem:[%s6386_s7 + $0xa8] ss:$16 sps:$4 sm:$0xff]  }
 0x128   : > { %7339 = vst [vmem:[#allocation6_spill] sm:$0xff] %v6827_v57  ;;  %v5874_v48 = vld [vmem:[%s6386_s7 + $0x3e8] ss:$16 sps:$4 sm:$0xff]  }
 0x129   : > { %3994 = vmatpush2.bf16.msra.mxu0 %v5793_v7  ;;  %v5838_v7 = vld [vmem:[%s6386_s7 + $0x2a8] ss:$16 sps:$4 sm:$0xff]  }
 0x12a   : > { %4047 = vmatpush2.bf16.msra.mxu1 %v5796_v8  ;;  %3995 = vmatprep.subr.bf16.mxu0 %v5801_v13  ;;  %v6831_v8 = vcombine.low %v412_v53, %v420_v54  ;;  %v5843_v13 = vld [vmem:[%s6386_s7 + $0x8c] ss:$16 sps:$4 sm:$0xff]  }
 0x12b   : > { %4048 = vmatprep.subr.bf16.mxu1 %v5804_v14  ;;  %v5846_v14 = vld [vmem:[%s6386_s7 + $0x28c] ss:$16 sps:$4 sm:$0xff]  }
 0x12c   : > { %7340 = vst [vmem:[#allocation7_spill] sm:$0xff] %v6831_v8  ;;  %v5879_v53 = vld [vmem:[%s6386_s7 + $0x1cc] ss:$16 sps:$4 sm:$0xff]  }
 0x12d   : > { %3996 = vmatpush2.bf16.msra.mxu0 %v5799_v15  ;;  %v5841_v15 = vld [vmem:[%s6386_s7 + $0x88] ss:$16 sps:$4 sm:$0xff]   ;;  %v5882_v54 = vld [vmem:[%s6386_s7 + $0x3cc] ss:$16 sps:$4 sm:$0xff]  }
 0x12e   : > { %4049 = vmatpush2.bf16.msra.mxu1 %v5802_v16  ;;  %3997 = vmatprep.subr.bf16.mxu0 %v5807_v17  ;;  %v5844_v16 = vld [vmem:[%s6386_s7 + $0x288] ss:$16 sps:$4 sm:$0xff]   ;;  %v5849_v17 = vld [vmem:[%s6386_s7 + $0x6c] ss:$16 sps:$4 sm:$0xff]  }
 0x12f   : > { %4050 = vmatprep.subr.bf16.mxu1 %v5810_v19  ;;  %v5852_v19 = vld [vmem:[%s6386_s7 + $0x26c] ss:$16 sps:$4 sm:$0xff]  }
 0x131   : > { %3998 = vmatpush2.bf16.msra.mxu0 %v5805_v29  ;;  %v5847_v29 = vld [vmem:[%s6386_s7 + $0x68] ss:$16 sps:$4 sm:$0xff]  }
 0x132   : > { %4051 = vmatpush2.bf16.msra.mxu1 %v5808_v30  ;;  %3999 = vmatprep.subr.bf16.mxu0 %v5813_v33  ;;  %v5850_v30 = vld [vmem:[%s6386_s7 + $0x268] ss:$16 sps:$4 sm:$0xff]   ;;  %v5855_v33 = vld [vmem:[%s6386_s7 + $0x4c] ss:$16 sps:$4 sm:$0xff]  }
 0x133   : > { %4052 = vmatprep.subr.bf16.mxu1 %v5816_v34  ;;  %v5858_v34 = vld [vmem:[%s6386_s7 + $0x24c] ss:$16 sps:$4 sm:$0xff]  }
 0x135   : > { %4000 = vmatpush2.bf16.msra.mxu0 %v5811_v35  ;;  %v5853_v35 = vld [vmem:[%s6386_s7 + $0x48] ss:$16 sps:$4 sm:$0xff]  }
 0x136   : > { %4053 = vmatpush2.bf16.msra.mxu1 %v5814_v36  ;;  %4001 = vmatprep.subr.bf16.mxu0 %v5819_v37  ;;  %v5856_v36 = vld [vmem:[%s6386_s7 + $0x248] ss:$16 sps:$4 sm:$0xff]  }
 0x137   : > { %4054 = vmatprep.subr.bf16.mxu1 %v5822_v38  ;;  %v5859_v37 = vld [vmem:[%s6386_s7 + $0x28] ss:$16 sps:$4 sm:$0xff]  }
 0x138   : > { %v5862_v38 = vld [vmem:[%s6386_s7 + $0x228] ss:$16 sps:$4 sm:$0xff]  }
 0x139   : > { %4002 = vmatpush2.bf16.msra.mxu0 %v5817_v39  ;;  %v5867_v39 = vld [vmem:[%s6386_s7 + $0xc] ss:$16 sps:$4 sm:$0xff]  }
 0x13a   : > { %4055 = vmatpush2.bf16.msra.mxu1 %v5820_v40  ;;  %4077 = vmatprep.subr.bf16.mxu0 %v5825_v43  ;;  %v5870_v40 = vld [vmem:[%s6386_s7 + $0x20c] ss:$16 sps:$4 sm:$0xff]   ;;  %v5865_v43 = vld [vmem:[%s6386_s7 + $0x8] ss:$16 sps:$4 sm:$0xff]  }
 0x13b   : > { %4130 = vmatprep.subr.bf16.mxu1 %v5828_v44  ;;  %v5868_v44 = vld [vmem:[%s6386_s7 + $0x208] ss:$16 sps:$4 sm:$0xff]  }
 0x13c   : > { %4004 = vmatmul.mubr.bf16.vlgmr.msra.gmra.mxu0 %v6805_v51 }
 0x13d   : > { %4057 = vmatmul.mubr.bf16.vlgmr.msra.gmra.mxu1 %v6809_v52  ;;  %4078 = vmatpush1.bf16.msra.mxu0 %v5823_v45  ;;  %v5873_v45 = vld [vmem:[%s6386_s7 + $0x1ec] ss:$16 sps:$4 sm:$0xff]  }
 0x13e   : > { %4131 = vmatpush1.bf16.msra.mxu1 %v5826_v46  ;;  %4079 = vmatprep.subr.bf16.mxu0 %v5831_v23  ;;  %v5876_v46 = vld [vmem:[%s6386_s7 + $0x3ec] ss:$16 sps:$4 sm:$0xff]   ;;  %v5877_v23 = vld [vmem:[%s6386_s7 + $0x1c8] ss:$16 sps:$4 sm:$0xff]  }
 0x13f   : > { %4132 = vmatprep.subr.bf16.mxu1 %v5834_v27  ;;  %4013 = vmatprep.mubr.bf16.mxu0 %v6815_v28  ;;  %v5880_v27 = vld [vmem:[%s6386_s7 + $0x3c8] ss:$16 sps:$4 sm:$0xff]  }
 0x140   : > { %4066 = vmatprep.mubr.bf16.mxu1 %v6817_v59  ;;  %v6102_v59 = vld [vmem:[%s6386_s7 + $0xb28] ss:$16 sps:$4 sm:$0xff]  }
 0x141   : > { %4080 = vmatpush1.bf16.msra.mxu0 %v5829_v60  ;;  %v5885_v60 = vld [vmem:[%s6386_s7 + $0x1ac] ss:$16 sps:$4 sm:$0xff]  }
 0x142   : > { %4133 = vmatpush1.bf16.msra.mxu1 %v5832_v63  ;;  %4081 = vmatprep.subr.bf16.mxu0 %v5837_v0  ;;  %v5888_v63 = vld [vmem:[%s6386_s7 + $0x3ac] ss:$16 sps:$4 sm:$0xff]   ;;  %v5883_v0 = vld [vmem:[%s6386_s7 + $0x1a8] ss:$16 sps:$4 sm:$0xff]  }
 0x143   : > { %4134 = vmatprep.subr.bf16.mxu1 %v5840_v56  ;;  %v5886_v56 = vld [vmem:[%s6386_s7 + $0x3a8] ss:$16 sps:$4 sm:$0xff]  }
 0x144   : > { %4014 = vmatmul.mubr.bf16.gmra.mxu0 %v6827_v57  ;;  %v6099_v57 = vld [vmem:[%s6386_s7 + $0x928] ss:$16 sps:$4 sm:$0xff]  }
 0x145   : > { %4067 = vmatmul.mubr.bf16.gmra.mxu1 %v6831_v8  ;;  %4082 = vmatpush1.bf16.msra.mxu0 %v5835_v58  ;;  %v5891_v58 = vld [vmem:[%s6386_s7 + $0x18c] ss:$16 sps:$4 sm:$0xff]  }
 0x146   : > { %4135 = vmatpush1.bf16.msra.mxu1 %v5838_v7  ;;  %4083 = vmatprep.subr.bf16.mxu0 %v5843_v13  ;;  %v5894_v7 = vld [vmem:[%s6386_s7 + $0x38c] ss:$16 sps:$4 sm:$0xff]   ;;  %v5889_v13 = vld [vmem:[%s6386_s7 + $0x188] ss:$16 sps:$4 sm:$0xff]  }
 0x147   : > { %4136 = vmatprep.subr.bf16.mxu1 %v5846_v14  ;;  %4109 = vmatprep.mubr.bf16.mxu0 %v6444_v22  ;;  %v5861_v22 = vld [vmem:[%s6386_s7 + $0x2c] ss:$16 sps:$4 sm:$0xff]   ;;  %v5892_v14 = vld [vmem:[%s6386_s7 + $0x388] ss:$16 sps:$4 sm:$0xff]  }
 0x148   : > { %4162 = vmatprep.mubr.bf16.mxu1 %v6447_v24  ;;  %v5864_v24 = vld [vmem:[%s6386_s7 + $0x22c] ss:$16 sps:$4 sm:$0xff]  }
 0x149   : > { %4084 = vmatpush1.bf16.msra.mxu0 %v5841_v15  ;;  %v5897_v15 = vld [vmem:[%s6386_s7 + $0x16c] ss:$16 sps:$4 sm:$0xff]  }
 0x14a   : > { %4137 = vmatpush1.bf16.msra.mxu1 %v5844_v16  ;;  %4085 = vmatprep.subr.bf16.mxu0 %v5849_v17  ;;  %v5900_v16 = vld [vmem:[%s6386_s7 + $0x36c] ss:$16 sps:$4 sm:$0xff]   ;;  %v5895_v17 = vld [vmem:[%s6386_s7 + $0x168] ss:$16 sps:$4 sm:$0xff]  }
 0x14b   : > { %4138 = vmatprep.subr.bf16.mxu1 %v5852_v19  ;;  %v5898_v19 = vld [vmem:[%s6386_s7 + $0x368] ss:$16 sps:$4 sm:$0xff]  }
 0x14d   : > { %4086 = vmatpush1.bf16.msra.mxu0 %v5847_v29  ;;  %v5903_v29 = vld [vmem:[%s6386_s7 + $0x14c] ss:$16 sps:$4 sm:$0xff]  }
 0x14e   : > { %4139 = vmatpush1.bf16.msra.mxu1 %v5850_v30  ;;  %4087 = vmatprep.subr.bf16.mxu0 %v5855_v33  ;;  %v5906_v30 = vld [vmem:[%s6386_s7 + $0x34c] ss:$16 sps:$4 sm:$0xff]   ;;  %v5901_v33 = vld [vmem:[%s6386_s7 + $0x148] ss:$16 sps:$4 sm:$0xff]  }
 0x14f   : > { %4140 = vmatprep.subr.bf16.mxu1 %v5858_v34  ;;  %v5904_v34 = vld [vmem:[%s6386_s7 + $0x348] ss:$16 sps:$4 sm:$0xff]  }
 0x151   : > { %4088 = vmatpush1.bf16.msra.mxu0 %v5853_v35  ;;  %v5909_v35 = vld [vmem:[%s6386_s7 + $0x12c] ss:$16 sps:$4 sm:$0xff]  }
 0x152   : > { %4141 = vmatpush1.bf16.msra.mxu1 %v5856_v36  ;;  %4089 = vmatprep.subr.bf16.mxu0 %v5861_v22  ;;  %v5912_v36 = vld [vmem:[%s6386_s7 + $0x32c] ss:$16 sps:$4 sm:$0xff]   ;;  %v5907_v22 = vld [vmem:[%s6386_s7 + $0x128] ss:$16 sps:$4 sm:$0xff]  }
 0x153   : > { %4142 = vmatprep.subr.bf16.mxu1 %v5864_v24  ;;  %v5910_v24 = vld [vmem:[%s6386_s7 + $0x328] ss:$16 sps:$4 sm:$0xff]  }
 0x155   : > { %4090 = vmatpush1.bf16.msra.mxu0 %v5859_v37  ;;  %v5915_v37 = vld [vmem:[%s6386_s7 + $0x10c] ss:$16 sps:$4 sm:$0xff]  }
 0x156   : > { %4143 = vmatpush1.bf16.msra.mxu1 %v5862_v38  ;;  %4091 = vmatprep.subr.bf16.mxu0 %v5867_v39  ;;  %v5918_v38 = vld [vmem:[%s6386_s7 + $0x30c] ss:$16 sps:$4 sm:$0xff]   ;;  %v5913_v39 = vld [vmem:[%s6386_s7 + $0x108] ss:$16 sps:$4 sm:$0xff]  }
 0x157   : > { %4144 = vmatprep.subr.bf16.mxu1 %v5870_v40  ;;  %v5916_v40 = vld [vmem:[%s6386_s7 + $0x308] ss:$16 sps:$4 sm:$0xff]  }
 0x159   : > { %4092 = vmatpush1.bf16.msra.mxu0 %v5865_v43  ;;  %v5921_v43 = vld [vmem:[%s6386_s7 + $0x4ec] ss:$16 sps:$4 sm:$0xff]  }
 0x15a   : > { %4145 = vmatpush1.bf16.msra.mxu1 %v5868_v44  ;;  %4093 = vmatprep.subr.bf16.mxu0 %v5873_v45  ;;  %v5924_v44 = vld [vmem:[%s6386_s7 + $0x6ec] ss:$16 sps:$4 sm:$0xff]   ;;  %v5919_v45 = vld [vmem:[%s6386_s7 + $0x4e8] ss:$16 sps:$4 sm:$0xff]  }
 0x15b   : > { %4146 = vmatprep.subr.bf16.mxu1 %v5876_v46  ;;  %v5922_v46 = vld [vmem:[%s6386_s7 + $0x6e8] ss:$16 sps:$4 sm:$0xff]  }
 0x15d   : > { %4094 = vmatpush2.bf16.msra.mxu0 %v5871_v47  ;;  %v5927_v47 = vld [vmem:[%s6386_s7 + $0x4cc] ss:$16 sps:$4 sm:$0xff]  }
 0x15e   : > { %4147 = vmatpush2.bf16.msra.mxu1 %v5874_v48  ;;  %4095 = vmatprep.subr.bf16.mxu0 %v5879_v53  ;;  %v5930_v48 = vld [vmem:[%s6386_s7 + $0x6cc] ss:$16 sps:$4 sm:$0xff]   ;;  %v5925_v53 = vld [vmem:[%s6386_s7 + $0x4c8] ss:$16 sps:$4 sm:$0xff]  }
 0x15f   : > { %4148 = vmatprep.subr.bf16.mxu1 %v5882_v54  ;;  %v5928_v54 = vld [vmem:[%s6386_s7 + $0x6c8] ss:$16 sps:$4 sm:$0xff]  }
 0x161   : > { %4096 = vmatpush2.bf16.msra.mxu0 %v5877_v23  ;;  %v5933_v23 = vld [vmem:[%s6386_s7 + $0x4ac] ss:$16 sps:$4 sm:$0xff]  }
 0x162   : > { %4149 = vmatpush2.bf16.msra.mxu1 %v5880_v27  ;;  %4097 = vmatprep.subr.bf16.mxu0 %v5885_v60  ;;  %v5936_v27 = vld [vmem:[%s6386_s7 + $0x6ac] ss:$16 sps:$4 sm:$0xff]   ;;  %v5931_v60 = vld [vmem:[%s6386_s7 + $0x4a8] ss:$16 sps:$4 sm:$0xff]  }
 0x163   : > { %4150 = vmatprep.subr.bf16.mxu1 %v5888_v63  ;;  %v5934_v63 = vld [vmem:[%s6386_s7 + $0x6a8] ss:$16 sps:$4 sm:$0xff]  }
 0x165   : > { %4098 = vmatpush2.bf16.msra.mxu0 %v5883_v0  ;;  %v5937_v0 = vld [vmem:[%s6386_s7 + $0x488] ss:$16 sps:$4 sm:$0xff]  }
 0x166   : > { %4151 = vmatpush2.bf16.msra.mxu1 %v5886_v56  ;;  %4099 = vmatprep.subr.bf16.mxu0 %v5891_v58  ;;  %v5940_v56 = vld [vmem:[%s6386_s7 + $0x688] ss:$16 sps:$4 sm:$0xff]  }
 0x167   : > { %4152 = vmatprep.subr.bf16.mxu1 %v5894_v7  ;;  %v5943_v58 = vld [vmem:[%s6386_s7 + $0x468] ss:$16 sps:$4 sm:$0xff]   ;;  %v5954_v7 = vld [vmem:[%s6386_s7 + $0x64c] ss:$16 sps:$4 sm:$0xff]  }
 0x169   : > { %4100 = vmatpush2.bf16.msra.mxu0 %v5889_v13  ;;  %v5949_v13 = vld [vmem:[%s6386_s7 + $0x448] ss:$16 sps:$4 sm:$0xff]  }
 0x16a   : > { %4153 = vmatpush2.bf16.msra.mxu1 %v5892_v14  ;;  %4101 = vmatprep.subr.bf16.mxu0 %v5897_v15  ;;  %v5952_v14 = vld [vmem:[%s6386_s7 + $0x648] ss:$16 sps:$4 sm:$0xff]  }
 0x16b   : > { %4154 = vmatprep.subr.bf16.mxu1 %v5900_v16  ;;  %v5955_v15 = vld [vmem:[%s6386_s7 + $0x428] ss:$16 sps:$4 sm:$0xff]  }
 0x16c   : > { %v5958_v16 = vld [vmem:[%s6386_s7 + $0x628] ss:$16 sps:$4 sm:$0xff]  }
 0x16d   : > { %4102 = vmatpush2.bf16.msra.mxu0 %v5895_v17  ;;  %v5963_v17 = vld [vmem:[%s6386_s7 + $0x40c] ss:$16 sps:$4 sm:$0xff]  }
 0x16e   : > { %4155 = vmatpush2.bf16.msra.mxu1 %v5898_v19  ;;  %4103 = vmatprep.subr.bf16.mxu0 %v5903_v29  ;;  %v5966_v19 = vld [vmem:[%s6386_s7 + $0x60c] ss:$16 sps:$4 sm:$0xff]   ;;  %v5961_v29 = vld [vmem:[%s6386_s7 + $0x408] ss:$16 sps:$4 sm:$0xff]  }
 0x16f   : > { %4156 = vmatprep.subr.bf16.mxu1 %v5906_v30  ;;  %v5964_v30 = vld [vmem:[%s6386_s7 + $0x608] ss:$16 sps:$4 sm:$0xff]  }
 0x171   : > { %4104 = vmatpush2.bf16.msra.mxu0 %v5901_v33  ;;  %v5969_v33 = vld [vmem:[%s6386_s7 + $0x5ec] ss:$16 sps:$4 sm:$0xff]  }
 0x172   : > { %4157 = vmatpush2.bf16.msra.mxu1 %v5904_v34  ;;  %4105 = vmatprep.subr.bf16.mxu0 %v5909_v35  ;;  %v5972_v34 = vld [vmem:[%s6386_s7 + $0x7ec] ss:$16 sps:$4 sm:$0xff]   ;;  %v5967_v35 = vld [vmem:[%s6386_s7 + $0x5e8] ss:$16 sps:$4 sm:$0xff]  }
 0x173   : > { %4158 = vmatprep.subr.bf16.mxu1 %v5912_v36  ;;  %v5970_v36 = vld [vmem:[%s6386_s7 + $0x7e8] ss:$16 sps:$4 sm:$0xff]  }
 0x175   : > { %4106 = vmatpush2.bf16.msra.mxu0 %v5907_v22  ;;  %v5975_v22 = vld [vmem:[%s6386_s7 + $0x5cc] ss:$16 sps:$4 sm:$0xff]  }
 0x176   : > { %4159 = vmatpush2.bf16.msra.mxu1 %v5910_v24  ;;  %4107 = vmatprep.subr.bf16.mxu0 %v5915_v37  ;;  %v5978_v24 = vld [vmem:[%s6386_s7 + $0x7cc] ss:$16 sps:$4 sm:$0xff]   ;;  %v5973_v37 = vld [vmem:[%s6386_s7 + $0x5c8] ss:$16 sps:$4 sm:$0xff]  }
 0x177   : > { %4160 = vmatprep.subr.bf16.mxu1 %v5918_v38  ;;  %v5976_v38 = vld [vmem:[%s6386_s7 + $0x7c8] ss:$16 sps:$4 sm:$0xff]  }
 0x179   : > { %4108 = vmatpush2.bf16.msra.mxu0 %v5913_v39  ;;  %v5981_v39 = vld [vmem:[%s6386_s7 + $0x5ac] ss:$16 sps:$4 sm:$0xff]  }
 0x17a   : > { %4161 = vmatpush2.bf16.msra.mxu1 %v5916_v40  ;;  %4183 = vmatprep.subr.bf16.mxu0 %v5921_v43  ;;  %v5984_v40 = vld [vmem:[%s6386_s7 + $0x7ac] ss:$16 sps:$4 sm:$0xff]   ;;  %v5979_v43 = vld [vmem:[%s6386_s7 + $0x5a8] ss:$16 sps:$4 sm:$0xff]  }
 0x17b   : > { %4236 = vmatprep.subr.bf16.mxu1 %v5924_v44  ;;  %v5982_v44 = vld [vmem:[%s6386_s7 + $0x7a8] ss:$16 sps:$4 sm:$0xff]  }
 0x17c   : > { %4110 = vmatmul.mubr.bf16.vlgmr.msra.gmra.mxu0 %v6467_v41  ;;  %v5939_v41 = vld [vmem:[%s6386_s7 + $0x48c] ss:$16 sps:$4 sm:$0xff]  }
 0x17d   : > { %4163 = vmatmul.mubr.bf16.vlgmr.msra.gmra.mxu1 %v6469_v42  ;;  %4184 = vmatpush1.bf16.msra.mxu0 %v5919_v45  ;;  %v5942_v42 = vld [vmem:[%s6386_s7 + $0x68c] ss:$16 sps:$4 sm:$0xff]  }
 0x17e   : > { %4237 = vmatpush1.bf16.msra.mxu1 %v5922_v46  ;;  %4185 = vmatprep.subr.bf16.mxu0 %v5927_v47  ;;  %v5987_v45 = vld [vmem:[%s6386_s7 + $0x58c] ss:$16 sps:$4 sm:$0xff]   ;;  %v6943_v47 = vpop.f32.mrf.mxu0 }
 0x17f   : > { %4238 = vmatprep.subr.bf16.mxu1 %v5930_v48  ;;  %4119 = vmatprep.mubr.bf16.mxu0 %v6496_v2  ;;  %v5945_v2 = vld [vmem:[%s6386_s7 + $0x46c] ss:$16 sps:$4 sm:$0xff]   ;;  %v5985_v48 = vld [vmem:[%s6386_s7 + $0x588] ss:$16 sps:$4 sm:$0xff]  }
 0x180   : > { %4172 = vmatprep.mubr.bf16.mxu1 %v6498_v3  ;;  %v5948_v3 = vld [vmem:[%s6386_s7 + $0x66c] ss:$16 sps:$4 sm:$0xff]  }
 0x181   : > { %4186 = vmatpush1.bf16.msra.mxu0 %v5925_v53  ;;  %v5990_v46 = vld [vmem:[%s6386_s7 + $0x78c] ss:$16 sps:$4 sm:$0xff]   ;;  %v5988_v53 = vld [vmem:[%s6386_s7 + $0x788] ss:$16 sps:$4 sm:$0xff]  }
 0x182   : > { %4239 = vmatpush1.bf16.msra.mxu1 %v5928_v54  ;;  %4187 = vmatprep.subr.bf16.mxu0 %v5933_v23  ;;  %v5993_v54 = vld [vmem:[%s6386_s7 + $0x56c] ss:$16 sps:$4 sm:$0xff]  }
 0x183   : > { %4240 = vmatprep.subr.bf16.mxu1 %v5936_v27  ;;  %v5996_v23 = vld [vmem:[%s6386_s7 + $0x76c] ss:$16 sps:$4 sm:$0xff]   ;;  %v6949_v27 = vpop.f32.mrf.mxu1 }
 0x184   : > { %4120 = vmatmul.mubr.bf16.gmra.mxu0 %v6500_v4  ;;  %v5946_v4 = vld [vmem:[%s6386_s7 + $0x668] ss:$16 sps:$4 sm:$0xff]   ;;  %v3741_v8 = vadd.f32 %v6949_v27, %v6943_v47  ;;  %v6107_v47 = vld [vmem:[%s6386_s7 + $0x90c] ss:$16 sps:$4 sm:$0xff]  }
 0x185   : > { %4173 = vmatmul.mubr.bf16.gmra.mxu1 %v6503_v6  ;;  %4188 = vmatpush1.bf16.msra.mxu0 %v5931_v60  ;;  %v5951_v6 = vld [vmem:[%s6386_s7 + $0x44c] ss:$16 sps:$4 sm:$0xff]   ;;  %v6951_v60 = vpop.f32.mrf.mxu0 }
 0x186   : > { %4241 = vmatpush1.bf16.msra.mxu1 %v5934_v63  ;;  %4189 = vmatprep.subr.bf16.mxu0 %v5939_v41  ;;  %v5991_v63 = vld [vmem:[%s6386_s7 + $0x568] ss:$16 sps:$4 sm:$0xff]   ;;  %v6110_v27 = vld [vmem:[%s6386_s7 + $0xb0c] ss:$16 sps:$4 sm:$0xff]  }
 0x187   : > { %4242 = vmatprep.subr.bf16.mxu1 %v5942_v42  ;;  %4215 = vmatprep.mubr.bf16.mxu0 %v6528_v18  ;;  %v5957_v18 = vld [vmem:[%s6386_s7 + $0x42c] ss:$16 sps:$4 sm:$0xff]   ;;  %v5994_v41 = vld [vmem:[%s6386_s7 + $0x768] ss:$16 sps:$4 sm:$0xff]  }
 0x188   : > { %4268 = vmatprep.mubr.bf16.mxu1 %v6535_v20  ;;  %v5960_v20 = vld [vmem:[%s6386_s7 + $0x62c] ss:$16 sps:$4 sm:$0xff]  }
 0x189   : > { %4190 = vmatpush1.bf16.msra.mxu0 %v5937_v0  ;;  %v5999_v42 = vld [vmem:[%s6386_s7 + $0x54c] ss:$16 sps:$4 sm:$0xff]  }
 0x18a   : > { %4243 = vmatpush1.bf16.msra.mxu1 %v5940_v56  ;;  %4191 = vmatprep.subr.bf16.mxu0 %v5945_v2  ;;  %v6002_v0 = vld [vmem:[%s6386_s7 + $0x74c] ss:$16 sps:$4 sm:$0xff]   ;;  %v6957_v56 = vpop.f32.mrf.mxu1  ;;  %v6959_v2 = vpop.f32.mrf.mxu0 }
 0x18b   : > { %4244 = vmatprep.subr.bf16.mxu1 %v5948_v3  ;;  %v5997_v3 = vld [vmem:[%s6386_s7 + $0x548] ss:$16 sps:$4 sm:$0xff]  }
 0x18d   : > { %4192 = vmatpush1.bf16.msra.mxu0 %v5943_v58  ;;  %v6000_v58 = vld [vmem:[%s6386_s7 + $0x748] ss:$16 sps:$4 sm:$0xff]  }
 0x18e   : > { %4245 = vmatpush1.bf16.msra.mxu1 %v5946_v4  ;;  %4193 = vmatprep.subr.bf16.mxu0 %v5951_v6  ;;  %v6005_v4 = vld [vmem:[%s6386_s7 + $0x52c] ss:$16 sps:$4 sm:$0xff]  }
 0x18f   : > { %4246 = vmatprep.subr.bf16.mxu1 %v5954_v7  ;;  %v6008_v6 = vld [vmem:[%s6386_s7 + $0x72c] ss:$16 sps:$4 sm:$0xff]   ;;  %v6965_v7 = vpop.f32.mrf.mxu1 }
 0x191   : > { %4194 = vmatpush1.bf16.msra.mxu0 %v5949_v13  ;;  %v6967_v13 = vpop.f32.mrf.mxu0 }
 0x192   : > { %4247 = vmatpush1.bf16.msra.mxu1 %v5952_v14  ;;  %4195 = vmatprep.subr.bf16.mxu0 %v5957_v18  ;;  %v6003_v14 = vld [vmem:[%s6386_s7 + $0x528] ss:$16 sps:$4 sm:$0xff]  }
 0x193   : > { %4248 = vmatprep.subr.bf16.mxu1 %v5960_v20  ;;  %v6006_v18 = vld [vmem:[%s6386_s7 + $0x728] ss:$16 sps:$4 sm:$0xff]   ;;  %v6971_v20 = vpop.f32.mrf.mxu0 }
 0x195   : > { %4196 = vmatpush1.bf16.msra.mxu0 %v5955_v15  ;;  %v6011_v15 = vld [vmem:[%s6386_s7 + $0x50c] ss:$16 sps:$4 sm:$0xff]  }
 0x196   : > { %4249 = vmatpush1.bf16.msra.mxu1 %v5958_v16  ;;  %4197 = vmatprep.subr.bf16.mxu0 %v5963_v17  ;;  %v6014_v16 = vld [vmem:[%s6386_s7 + $0x70c] ss:$16 sps:$4 sm:$0xff]   ;;  %v6975_v17 = vpop.f32.mrf.mxu1 }
 0x197   : > { %4250 = vmatprep.subr.bf16.mxu1 %v5966_v19  ;;  %v6009_v19 = vld [vmem:[%s6386_s7 + $0x508] ss:$16 sps:$4 sm:$0xff]  }
 0x199   : > { %4198 = vmatpush1.bf16.msra.mxu0 %v5961_v29  ;;  %v6012_v29 = vld [vmem:[%s6386_s7 + $0x708] ss:$16 sps:$4 sm:$0xff]  }
 0x19a   : > { %4251 = vmatpush1.bf16.msra.mxu1 %v5964_v30  ;;  %4199 = vmatprep.subr.bf16.mxu0 %v5969_v33  ;;  %v6979_v30 = vpop.f32.mrf.mxu1  ;;  %v6981_v33 = vpop.f32.mrf.mxu0 }
 0x19b   : > { %4252 = vmatprep.subr.bf16.mxu1 %v5972_v34  ;;  %v6017_v34 = vld [vmem:[%s6386_s7 + $0x8ec] ss:$16 sps:$4 sm:$0xff]  }
 0x19d   : > { %4200 = vmatpush2.bf16.msra.mxu0 %v5967_v35  ;;  %v6020_v35 = vld [vmem:[%s6386_s7 + $0xaec] ss:$16 sps:$4 sm:$0xff]  }
 0x19e   : > { %4253 = vmatpush2.bf16.msra.mxu1 %v5970_v36  ;;  %4201 = vmatprep.subr.bf16.mxu0 %v5975_v22  ;;  %v6015_v36 = vld [vmem:[%s6386_s7 + $0x8e8] ss:$16 sps:$4 sm:$0xff]  }
 0x19f   : > { %4254 = vmatprep.subr.bf16.mxu1 %v5978_v24  ;;  %v6018_v22 = vld [vmem:[%s6386_s7 + $0xae8] ss:$16 sps:$4 sm:$0xff]   ;;  %v6987_v24 = vpop.f32.mrf.mxu1 }
 0x1a1   : > { %4202 = vmatpush2.bf16.msra.mxu0 %v5973_v37  ;;  %v6989_v37 = vpop.f32.mrf.mxu0 }
 0x1a2   : > { %4255 = vmatpush2.bf16.msra.mxu1 %v5976_v38  ;;  %4203 = vmatprep.subr.bf16.mxu0 %v5981_v39  ;;  %v6023_v38 = vld [vmem:[%s6386_s7 + $0x8cc] ss:$16 sps:$4 sm:$0xff]  }
 0x1a3   : > { %4256 = vmatprep.subr.bf16.mxu1 %v5984_v40  ;;  %v6026_v39 = vld [vmem:[%s6386_s7 + $0xacc] ss:$16 sps:$4 sm:$0xff]   ;;  %v6021_v40 = vld [vmem:[%s6386_s7 + $0x8c8] ss:$16 sps:$4 sm:$0xff]  }
 0x1a5   : > { %4204 = vmatpush2.bf16.msra.mxu0 %v5979_v43  ;;  %v6024_v43 = vld [vmem:[%s6386_s7 + $0xac8] ss:$16 sps:$4 sm:$0xff]  }
 0x1a6   : > { %4257 = vmatpush2.bf16.msra.mxu1 %v5982_v44  ;;  %4205 = vmatprep.subr.bf16.mxu0 %v5987_v45  ;;  %v6997_v44 = vpop.f32.mrf.mxu1  ;;  %v6999_v45 = vpop.f32.mrf.mxu0 }
 0x1a7   : > { %4258 = vmatprep.subr.bf16.mxu1 %v5990_v46  ;;  %v6029_v46 = vld [vmem:[%s6386_s7 + $0x8ac] ss:$16 sps:$4 sm:$0xff]  }
 0x1a9   : > { %4206 = vmatpush2.bf16.msra.mxu0 %v5985_v48  ;;  %v6032_v48 = vld [vmem:[%s6386_s7 + $0xaac] ss:$16 sps:$4 sm:$0xff]  }
 0x1aa   : > { %4259 = vmatpush2.bf16.msra.mxu1 %v5988_v53  ;;  %4207 = vmatprep.subr.bf16.mxu0 %v5993_v54  ;;  %v6030_v53 = vld [vmem:[%s6386_s7 + $0xaa8] ss:$16 sps:$4 sm:$0xff]   ;;  %v7009_v54 = vpop.f32.mrf.mxu1 }
 0x1ab   : > { %4260 = vmatprep.subr.bf16.mxu1 %v5996_v23  ;;  %v6035_v23 = vld [vmem:[%s6386_s7 + $0x88c] ss:$16 sps:$4 sm:$0xff]  }
 0x1ad   : > { %4208 = vmatpush2.bf16.msra.mxu0 %v5991_v63  ;;  %v6038_v63 = vld [vmem:[%s6386_s7 + $0xa8c] ss:$16 sps:$4 sm:$0xff]  }
 0x1ae   : > { %4261 = vmatpush2.bf16.msra.mxu1 %v5994_v41  ;;  %4209 = vmatprep.subr.bf16.mxu0 %v5999_v42  ;;  %v7013_v41 = vpop.f32.mrf.mxu1  ;;  %v6036_v42 = vld [vmem:[%s6386_s7 + $0xa88] ss:$16 sps:$4 sm:$0xff]  }
 0x1af   : > { %4262 = vmatprep.subr.bf16.mxu1 %v6002_v0  ;;  %v6041_v0 = vld [vmem:[%s6386_s7 + $0x86c] ss:$16 sps:$4 sm:$0xff]  }
 0x1b1   : > { %4210 = vmatpush2.bf16.msra.mxu0 %v5997_v3  ;;  %v6044_v3 = vld [vmem:[%s6386_s7 + $0xa6c] ss:$16 sps:$4 sm:$0xff]  }
 0x1b2   : > { %4263 = vmatpush2.bf16.msra.mxu1 %v6000_v58  ;;  %4211 = vmatprep.subr.bf16.mxu0 %v6005_v4  ;;  %v6039_v58 = vld [vmem:[%s6386_s7 + $0x868] ss:$16 sps:$4 sm:$0xff]  }
 0x1b3   : > { %4264 = vmatprep.subr.bf16.mxu1 %v6008_v6  ;;  %v6042_v4 = vld [vmem:[%s6386_s7 + $0xa68] ss:$16 sps:$4 sm:$0xff]   ;;  %v6047_v6 = vld [vmem:[%s6386_s7 + $0x84c] ss:$16 sps:$4 sm:$0xff]  }
 0x1b5   : > { %4212 = vmatpush2.bf16.msra.mxu0 %v6003_v14  ;;  %v6050_v14 = vld [vmem:[%s6386_s7 + $0xa4c] ss:$16 sps:$4 sm:$0xff]  }
 0x1b6   : > { %4265 = vmatpush2.bf16.msra.mxu1 %v6006_v18  ;;  %4213 = vmatprep.subr.bf16.mxu0 %v6011_v15  ;;  %v6045_v18 = vld [vmem:[%s6386_s7 + $0x848] ss:$16 sps:$4 sm:$0xff]  }
 0x1b7   : > { %4266 = vmatprep.subr.bf16.mxu1 %v6014_v16  ;;  %v6048_v15 = vld [vmem:[%s6386_s7 + $0xa48] ss:$16 sps:$4 sm:$0xff]   ;;  %v6053_v16 = vld [vmem:[%s6386_s7 + $0x82c] ss:$16 sps:$4 sm:$0xff]  }
 0x1b9   : > { %4214 = vmatpush2.bf16.msra.mxu0 %v6009_v19  ;;  %v6056_v19 = vld [vmem:[%s6386_s7 + $0xa2c] ss:$16 sps:$4 sm:$0xff]  }
 0x1ba   : > { %4267 = vmatpush2.bf16.msra.mxu1 %v6012_v29  ;;  %4289 = vmatprep.subr.bf16.mxu0 %v6017_v34 }
 0x1bb   : > { %4342 = vmatprep.subr.bf16.mxu1 %v6020_v35  ;;  %v6051_v35 = vld [vmem:[%s6386_s7 + $0x828] ss:$16 sps:$4 sm:$0xff]  }
 0x1bc   : > { %4216 = vmatmul.mubr.bf16.vlgmr.msra.gmra.mxu0 %v6581_v1  ;;  %v7005_v1 = vpop.f32.mrf.mxu0 }
 0x1bd   : > { %4269 = vmatmul.mubr.bf16.vlgmr.msra.gmra.mxu1 %v6585_v5  ;;  %4290 = vmatpush1.bf16.msra.mxu0 %v6015_v36  ;;  %v6027_v5 = vld [vmem:[%s6386_s7 + $0x8a8] ss:$16 sps:$4 sm:$0xff]  }
 0x1be   : > { %4343 = vmatpush1.bf16.msra.mxu1 %v6018_v22  ;;  %4291 = vmatprep.subr.bf16.mxu0 %v6023_v38  ;;  %v6054_v36 = vld [vmem:[%s6386_s7 + $0xa28] ss:$16 sps:$4 sm:$0xff]   ;;  %v6059_v38 = vld [vmem:[%s6386_s7 + $0x80c] ss:$16 sps:$4 sm:$0xff]  }
 0x1bf   : > { %4344 = vmatprep.subr.bf16.mxu1 %v6026_v39  ;;  %4225 = vmatprep.mubr.bf16.mxu0 %v6591_v11  ;;  %v7015_v11 = vpop.f32.mrf.mxu0  ;;  %v6062_v39 = vld [vmem:[%s6386_s7 + $0xa0c] ss:$16 sps:$4 sm:$0xff]  }
 0x1c0   : > { %4278 = vmatprep.mubr.bf16.mxu1 %v6593_v12  ;;  %v6033_v12 = vld [vmem:[%s6386_s7 + $0x888] ss:$16 sps:$4 sm:$0xff]  }
 0x1c1   : > { %4292 = vmatpush1.bf16.msra.mxu0 %v6021_v40 }
 0x1c2   : > { %4345 = vmatpush1.bf16.msra.mxu1 %v6024_v43  ;;  %4293 = vmatprep.subr.bf16.mxu0 %v6029_v46  ;;  %v6057_v43 = vld [vmem:[%s6386_s7 + $0x808] ss:$16 sps:$4 sm:$0xff]  }
 0x1c3   : > { %4346 = vmatprep.subr.bf16.mxu1 %v6032_v48  ;;  %v6060_v46 = vld [vmem:[%s6386_s7 + $0xa08] ss:$16 sps:$4 sm:$0xff]  }
 0x1c4   : > { %4226 = vmatmul.mubr.bf16.gmra.mxu0 %v6611_v25  ;;  %v7025_v25 = vpop.f32.mrf.mxu1 }
 0x1c5   : > { %4279 = vmatmul.mubr.bf16.gmra.mxu1 %v6613_v26  ;;  %4294 = vmatpush1.bf16.msra.mxu0 %v6027_v5  ;;  %v7027_v26 = vpop.f32.mrf.mxu0  ;;  %v6065_v5 = vld [vmem:[%s6386_s7 + $0x9ec] ss:$16 sps:$4 sm:$0xff]  }
 0x1c6   : > { %4347 = vmatpush1.bf16.msra.mxu1 %v6030_v53  ;;  %4295 = vmatprep.subr.bf16.mxu0 %v6035_v23  ;;  %v6068_v53 = vld [vmem:[%s6386_s7 + $0xbec] ss:$16 sps:$4 sm:$0xff]  }
 0x1c7   : > { %4348 = vmatprep.subr.bf16.mxu1 %v6038_v63  ;;  %4321 = vmatprep.mubr.bf16.mxu0 %v6625_v31  ;;  %v7033_v31 = vpop.f32.mrf.mxu1  ;;  %v6063_v63 = vld [vmem:[%s6386_s7 + $0x9e8] ss:$16 sps:$4 sm:$0xff]  }
 0x1c8   : > { %4374 = vmatprep.mubr.bf16.mxu1 %v6629_v32  ;;  %v7035_v32 = vpop.f32.mrf.mxu0 }
 0x1c9   : > { %4296 = vmatpush1.bf16.msra.mxu0 %v6033_v12  ;;  %v7041_v29 = vpop.f32.mrf.mxu1  ;;  %v6066_v12 = vld [vmem:[%s6386_s7 + $0xbe8] ss:$16 sps:$4 sm:$0xff]  }
 0x1ca   : > { %4349 = vmatpush1.bf16.msra.mxu1 %v6036_v42  ;;  %4297 = vmatprep.subr.bf16.mxu0 %v6041_v0  ;;  %v7043_v34 = vpop.f32.mrf.mxu0  ;;  %v6071_v0 = vld [vmem:[%s6386_s7 + $0x9cc] ss:$16 sps:$4 sm:$0xff]  }
 0x1cb   : > { %4350 = vmatprep.subr.bf16.mxu1 %v6044_v3  ;;  %v7047_v22 = vpop.f32.mrf.mxu1  ;;  %v6074_v3 = vld [vmem:[%s6386_s7 + $0xbcc] ss:$16 sps:$4 sm:$0xff]  }
 0x1cc   : > { %v7051_v40 = vpop.f32.mrf.mxu0 }
 0x1cd   : > { %4298 = vmatpush1.bf16.msra.mxu0 %v6039_v58  ;;  %v7055_v48 = vpop.f32.mrf.mxu1 }
 0x1ce   : > { %4351 = vmatpush1.bf16.msra.mxu1 %v6042_v4  ;;  %4299 = vmatprep.subr.bf16.mxu0 %v6047_v6  ;;  %v7059_v23 = vpop.f32.mrf.mxu0  ;;  %v6069_v4 = vld [vmem:[%s6386_s7 + $0x9c8] ss:$16 sps:$4 sm:$0xff]  }
 0x1cf   : > { %4352 = vmatprep.subr.bf16.mxu1 %v6050_v14  ;;  %v7063_v42 = vpop.f32.mrf.mxu1  ;;  %v6072_v6 = vld [vmem:[%s6386_s7 + $0xbc8] ss:$16 sps:$4 sm:$0xff]  }
 0x1d0   : > { %v7067_v58 = vpop.f32.mrf.mxu0 }
 0x1d1   : > { %4300 = vmatpush1.bf16.msra.mxu0 %v6045_v18  ;;  %v7071_v14 = vpop.f32.mrf.mxu1 }
 0x1d2   : > { %4353 = vmatpush1.bf16.msra.mxu1 %v6048_v15  ;;  %4301 = vmatprep.subr.bf16.mxu0 %v6053_v16  ;;  %v7073_v18 = vpop.f32.mrf.mxu0  ;;  %v6077_v15 = vld [vmem:[%s6386_s7 + $0x9ac] ss:$16 sps:$4 sm:$0xff]  }
 0x1d3   : > { %4354 = vmatprep.subr.bf16.mxu1 %v6056_v19  ;;  %v6080_v16 = vld [vmem:[%s6386_s7 + $0xbac] ss:$16 sps:$4 sm:$0xff]   ;;  %v7077_v19 = vpop.f32.mrf.mxu1 }
 0x1d5   : > { %4302 = vmatpush1.bf16.msra.mxu0 %v6051_v35  ;;  %v6075_v35 = vld [vmem:[%s6386_s7 + $0x9a8] ss:$16 sps:$4 sm:$0xff]  }
 0x1d6   : > { %4355 = vmatpush1.bf16.msra.mxu1 %v6054_v36  ;;  %4303 = vmatprep.subr.bf16.mxu0 %v6059_v38  ;;  %v6078_v36 = vld [vmem:[%s6386_s7 + $0xba8] ss:$16 sps:$4 sm:$0xff]   ;;  %v7081_v38 = vpop.f32.mrf.mxu0 }
 0x1d7   : > { %4356 = vmatprep.subr.bf16.mxu1 %v6062_v39  ;;  %v6083_v39 = vld [vmem:[%s6386_s7 + $0x98c] ss:$16 sps:$4 sm:$0xff]  }
 0x1d9   : > { %4304 = vmatpush1.bf16.msra.mxu0 %v6057_v43  ;;  %v6086_v43 = vld [vmem:[%s6386_s7 + $0xb8c] ss:$16 sps:$4 sm:$0xff]  }
 0x1da   : > { %4357 = vmatpush1.bf16.msra.mxu1 %v6060_v46  ;;  %4305 = vmatprep.subr.bf16.mxu0 %v6065_v5  ;;  %v7085_v46 = vpop.f32.mrf.mxu1  ;;  %v6081_v5 = vld [vmem:[%s6386_s7 + $0x988] ss:$16 sps:$4 sm:$0xff]  }
 0x1db   : > { %4358 = vmatprep.subr.bf16.mxu1 %v6068_v53  ;;  %v6084_v53 = vld [vmem:[%s6386_s7 + $0xb88] ss:$16 sps:$4 sm:$0xff]  }
 0x1dd   : > { %4306 = vmatpush2.bf16.msra.mxu0 %v6063_v63  ;;  %v7089_v63 = vpop.f32.mrf.mxu0 }
 0x1de   : > { %4359 = vmatpush2.bf16.msra.mxu1 %v6066_v12  ;;  %4307 = vmatprep.subr.bf16.mxu0 %v6071_v0  ;;  %v6089_v12 = vld [vmem:[%s6386_s7 + $0x96c] ss:$16 sps:$4 sm:$0xff]  }
 0x1df   : > { %4360 = vmatprep.subr.bf16.mxu1 %v6074_v3  ;;  %v6092_v0 = vld [vmem:[%s6386_s7 + $0xb6c] ss:$16 sps:$4 sm:$0xff]   ;;  %v7093_v3 = vpop.f32.mrf.mxu1 }
 0x1e1   : > { %4308 = vmatpush2.bf16.msra.mxu0 %v6069_v4  ;;  %v6087_v4 = vld [vmem:[%s6386_s7 + $0x968] ss:$16 sps:$4 sm:$0xff]  }
 0x1e2   : > { %4361 = vmatpush2.bf16.msra.mxu1 %v6072_v6  ;;  %4309 = vmatprep.subr.bf16.mxu0 %v6077_v15  ;;  %v6090_v6 = vld [vmem:[%s6386_s7 + $0xb68] ss:$16 sps:$4 sm:$0xff]   ;;  %v7097_v15 = vpop.f32.mrf.mxu0 }
 0x1e3   : > { %4362 = vmatprep.subr.bf16.mxu1 %v6080_v16  ;;  %v6095_v16 = vld [vmem:[%s6386_s7 + $0x94c] ss:$16 sps:$4 sm:$0xff]  }
 0x1e5   : > { %4310 = vmatpush2.bf16.msra.mxu0 %v6075_v35  ;;  %v6098_v35 = vld [vmem:[%s6386_s7 + $0xb4c] ss:$16 sps:$4 sm:$0xff]  }
 0x1e6   : > { %4363 = vmatpush2.bf16.msra.mxu1 %v6078_v36  ;;  %4311 = vmatprep.subr.bf16.mxu0 %v6083_v39  ;;  %v7101_v36 = vpop.f32.mrf.mxu1  ;;  %v6093_v39 = vld [vmem:[%s6386_s7 + $0x948] ss:$16 sps:$4 sm:$0xff]  }
 0x1e7   : > { %4364 = vmatprep.subr.bf16.mxu1 %v6086_v43  ;;  %v6096_v43 = vld [vmem:[%s6386_s7 + $0xb48] ss:$16 sps:$4 sm:$0xff]  }
 0x1e9   : > { %4312 = vmatpush2.bf16.msra.mxu0 %v6081_v5  ;;  %v7105_v5 = vpop.f32.mrf.mxu0 }
 0x1ea   : > { %4365 = vmatpush2.bf16.msra.mxu1 %v6084_v53  ;;  %4313 = vmatprep.subr.bf16.mxu0 %v6089_v12  ;;  %v7107_v53 = vpop.f32.mrf.mxu1  ;;  %v6101_v12 = vld [vmem:[%s6386_s7 + $0x92c] ss:$16 sps:$4 sm:$0xff]  }
 0x1eb   : > { %4366 = vmatprep.subr.bf16.mxu1 %v6092_v0  ;;  %v6104_v0 = vld [vmem:[%s6386_s7 + $0xb2c] ss:$16 sps:$4 sm:$0xff]  }
 0x1ec   : > { %v7122_v28 = vpop.f32.mrf.mxu1 }
 0x1ed   : > { %4314 = vmatpush2.bf16.msra.mxu0 %v6087_v4  ;;  %v3743_v4 = vadd.f32 %v6957_v56, %v6951_v60  ;;  %v3747_v60 = vadd.f32 %v6975_v17, %v6967_v13  ;;  %v6116_v13 = vld [vmem:[%s6386_s7 + $0xeec] ss:$16 sps:$4 sm:$0xff]   ;;  %v3751_v17 = vadd.f32 %v6979_v30, %v6971_v20  ;;  %v6111_v20 = vld [vmem:[%s6386_s7 + $0xce8] ss:$16 sps:$4 sm:$0xff]  }
 0x1ee   : > { %4367 = vmatpush2.bf16.msra.mxu1 %v6090_v6  ;;  %4315 = vmatprep.subr.bf16.mxu0 %v6095_v16  ;;  %v3794_v6 = vadd.f32 %v7005_v1, %v3741_v8  ;;  %v3745_v16 = vadd.f32 %v6965_v7, %v6959_v2  ;;  %v6105_v2 = vld [vmem:[%s6386_s7 + $0x908] ss:$16 sps:$4 sm:$0xff]  }
 0x1ef   : > { %4368 = vmatprep.subr.bf16.mxu1 %v6098_v35  ;;  %v7120_v35 = vpop.f32.mrf.mxu0  ;;  %v3796_v8 = vadd.f32 %v7015_v11, %v3743_v4  ;;  %v6108_v7 = vld [vmem:[%s6386_s7 + $0xb08] ss:$16 sps:$4 sm:$0xff]   ;;  %v6113_v11 = vld [vmem:[%s6386_s7 + $0xcec] ss:$16 sps:$4 sm:$0xff]  }
 0x1f0   : > { %v3798_v56 = vadd.f32 %v7027_v26, %v3745_v16  ;;  %v3847_v1 = vadd.f32 %v7013_v41, %v3794_v6  ;;  %v3753_v41 = vadd.f32 %v6987_v24, %v6981_v33  ;;  %v6114_v30 = vld [vmem:[%s6386_s7 + $0xee8] ss:$16 sps:$4 sm:$0xff]  }
 0x1f1   : > { %4316 = vmatpush2.bf16.msra.mxu0 %v6093_v39  ;;  %v3800_v39 = vadd.f32 %v7035_v32, %v3747_v60  ;;  %v3755_v32 = vadd.f32 %v6997_v44, %v6989_v37  ;;  %v6119_v37 = vld [vmem:[%s6386_s7 + $0xccc] ss:$16 sps:$4 sm:$0xff]  }
 0x1f2   : > { %4369 = vmatpush2.bf16.msra.mxu1 %v6096_v43  ;;  %4317 = vmatprep.subr.bf16.mxu0 %v6101_v12  ;;  %v7134_v43 = vpop.f32.mrf.mxu0  ;;  %v7136_v12 = vpop.f32.mrf.mxu1  ;;  %v3851_v26 = vadd.f32 %v7033_v31, %v3798_v56  ;;  %v6122_v44 = vld [vmem:[%s6386_s7 + $0xecc] ss:$16 sps:$4 sm:$0xff]  }
 0x1f3   : > { %4370 = vmatprep.subr.bf16.mxu1 %v6104_v0  ;;  %v3804_v0 = vadd.f32 %v7043_v34, %v3751_v17  ;;  %v6128_v60 = vld [vmem:[%s6386_s7 + $0xeac] ss:$16 sps:$4 sm:$0xff]   ;;  %v6123_v17 = vld [vmem:[%s6386_s7 + $0xca8] ss:$16 sps:$4 sm:$0xff]  }
 0x1f4   : > { %v3904_v33 = vadd.f32 %v7089_v63, %v3851_v26  ;;  %v7156_v24 = vpop.f32.mrf.mxu0  ;;  %v7158_v31 = vpop.f32.mrf.mxu1 }
 0x1f5   : > { %4318 = vmatpush2.bf16.msra.mxu0 %v6099_v57  ;;  %v3849_v57 = vadd.f32 %v7025_v25, %v3796_v8  ;;  %v3853_v25 = vadd.f32 %v7041_v29, %v3800_v39  ;;  %v3808_v29 = vadd.f32 %v7059_v23, %v3755_v32  ;;  %v3857_v16 = vadd.f32 %v7047_v22, %v3804_v0  ;;  %v6125_v22 = vld [vmem:[%s6386_s7 + $0xcac] ss:$16 sps:$4 sm:$0xff]  }
 0x1f6   : > { %4371 = vmatpush2.bf16.msra.mxu1 %v6102_v59  ;;  %4319 = vmatprep.subr.bf16.mxu0 %v6107_v47  ;;  %v3900_v59 = vadd.f32 %v7073_v18, %v3847_v1  ;;  %v3806_v18 = vadd.f32 %v7051_v40, %v3753_v41  ;;  %v6134_v41 = vld [vmem:[%s6386_s7 + $0xe8c] ss:$16 sps:$4 sm:$0xff]  }
 0x1f7   : > { %4372 = vmatprep.subr.bf16.mxu1 %v6110_v27  ;;  %v3902_v4 = vadd.f32 %v7081_v38, %v3849_v57  ;;  %v3757_v38 = vadd.f32 %v7009_v54, %v6999_v45  ;;  %v3906_v40 = vadd.f32 %v7097_v15, %v3853_v25  ;;  %v6117_v45 = vld [vmem:[%s6386_s7 + $0xcc8] ss:$16 sps:$4 sm:$0xff]   ;;  %v3957_v27 = vadd.f32 %v7093_v3, %v3904_v33  ;;  %v377_v57 = vld [vmem:[#allocation2 + $0x50] sm:$0xff] }
 0x1f8   : > { %v3953_v34 = vadd.f32 %v7077_v19, %v3900_v59  ;;  %v6120_v54 = vld [vmem:[%s6386_s7 + $0xec8] ss:$16 sps:$4 sm:$0xff]   ;;  %v3859_v23 = vadd.f32 %v7055_v48, %v3806_v18  ;;  %v3861_v48 = vadd.f32 %v7063_v42, %v3808_v29  ;;  %v6140_v29 = vld [vmem:[%s6386_s7 + $0xe6c] ss:$16 sps:$4 sm:$0xff]  }
 0x1f9   : > { %4320 = vmatpush2.bf16.msra.mxu0 %v6105_v2  ;;  %v3955_v47 = vadd.f32 %v7085_v46, %v3902_v4  ;;  %v3810_v15 = vadd.f32 %v7067_v58, %v3757_v38  ;;  %v3910_v46 = vadd.f32 %v7105_v5, %v3857_v16  ;;  %v3959_v58 = vadd.f32 %v7101_v36, %v3906_v40  ;;  %v374_v2 = vld [vmem:[#allocation2] sm:$0xff] }
 0x1fa   : > { %4373 = vmatpush2.bf16.msra.mxu1 %v6108_v7  ;;  %4395 = vmatprep.subr.bf16.mxu0 %v6113_v11  ;;  %v3912_v3 = vadd.f32 %v7120_v35, %v3859_v23  ;;  %v3914_v42 = vadd.f32 %v7134_v43, %v3861_v48  ;;  %v6131_v35 = vld [vmem:[%s6386_s7 + $0xc8c] ss:$16 sps:$4 sm:$0xff]   ;;  %v382_v16 = vld [vmem:[#allocation2 + $0x20] sm:$0xff]  ;;  %v6135_v23 = vld [vmem:[%s6386_s7 + $0xc68] ss:$16 sps:$4 sm:$0xff]  }
 0x1fb   : > { %4448 = vmatprep.subr.bf16.mxu1 %v6116_v13  ;;  %v3963_v26 = vadd.f32 %v7107_v53, %v3910_v46  ;;  %v378_v43 = vld [vmem:[#allocation2 + $0x68] sm:$0xff] }
 0x1fc   : > { %v4005_v63 = vpop.f32.mrf.mxu0  ;;  %4322 = vmatmul.mubr.bf16.vlgmr.msra.gmra.mxu0 %v6693_v49  ;;  %v373_v49 = vld [vmem:[#allocation2 + $0x30] sm:$0xff]  ;;  %v6144_v48 = vld [vmem:[%s6386_s7 + $0xe48] ss:$16 sps:$4 sm:$0xff]  }
 0x1fd   : > { %v4058_v6 = vpop.f32.mrf.mxu1  ;;  %4375 = vmatmul.mubr.bf16.vlgmr.msra.gmra.mxu1 %v6697_v50  ;;  %v4006_v19 = vadd.f32 %v4005_v63, %v3953_v34  ;;  %4396 = vmatpush1.bf16.msra.mxu0 %v6111_v20  ;;  %v3965_v20 = vadd.f32 %v7122_v28, %v3912_v3  ;;  %v3967_v28 = vadd.f32 %v7136_v12, %v3914_v42  ;;  %v381_v34 = vld [vmem:[#allocation2 + $0x40] sm:$0xff]  ;;  %v6152_v3 = vld [vmem:[%s6386_s7 + $0xe2c] ss:$16 sps:$4 sm:$0xff]   ;;  %v6159_v42 = vld [vmem:[%s6386_s7 + $0xde8] ss:$16 sps:$4 sm:$0xff]  }
 0x1fe   : > { %4449 = vmatpush1.bf16.msra.mxu1 %v6114_v30  ;;  %v4007_v8 = vpop.f32.mrf.mxu0  ;;  %4397 = vmatprep.subr.bf16.mxu0 %v6119_v37  ;;  %v6129_v37 = vld [vmem:[%s6386_s7 + $0xc88] ss:$16 sps:$4 sm:$0xff]  }
 0x1ff   : > { %v4060_v50 = vpop.f32.mrf.mxu1  ;;  %4450 = vmatprep.subr.bf16.mxu1 %v6122_v44  ;;  %v4059_v56 = vadd.f32 %v4058_v6, %v4006_v19  ;;  %v4008_v1 = vadd.f32 %v4007_v8, %v3955_v47  ;;  %4331 = vmatprep.mubr.bf16.mxu0 %v6703_v55  ;;  %v6126_v55 = vld [vmem:[%s6386_s7 + $0xea8] ss:$16 sps:$4 sm:$0xff]  }
 0x200   : > { %4384 = vmatprep.mubr.bf16.mxu1 %v6705_v21  ;;  %v4009_v7 = vpop.f32.mrf.mxu0  ;;  %v3863_v21 = vadd.f32 %v7071_v14, %v3810_v15  ;;  %v6132_v44 = vld [vmem:[%s6386_s7 + $0xe88] ss:$16 sps:$4 sm:$0xff]  }
 0x201   : > { %v4062_v39 = vpop.f32.mrf.mxu1  ;;  %v4501_v5 = vadd.f32 %v4059_v56, %v373_v49  ;;  %v4061_v11 = vadd.f32 %v4060_v50, %v4008_v1  ;;  %v4010_v13 = vadd.f32 %v4009_v7, %v3957_v27  ;;  %4398 = vmatpush1.bf16.msra.mxu0 %v6117_v45  ;;  %v6138_v15 = vld [vmem:[%s6386_s7 + $0xe68] ss:$16 sps:$4 sm:$0xff]   ;;  %v385_v49 = vld [vmem:[#allocation2 + $0x60] sm:$0xff] }
 0x202   : > { %4451 = vmatpush1.bf16.msra.mxu1 %v6120_v54  ;;  %v4011_v36 = vpop.f32.mrf.mxu0  ;;  %4399 = vmatprep.subr.bf16.mxu0 %v6125_v22  ;;  %v3916_v14 = vadd.f32 %v7156_v24, %v3863_v21  ;;  %v6141_v1 = vld [vmem:[%s6386_s7 + $0xc48] ss:$16 sps:$4 sm:$0xff]   ;;  %v6164_v21 = vld [vmem:[%s6386_s7 + $0xfec] ss:$16 sps:$4 sm:$0xff]  }
 0x203   : > { %v4064_v59 = vpop.f32.mrf.mxu1  ;;  %4452 = vmatprep.subr.bf16.mxu1 %v6128_v60  ;;  %4517 = vst [vmem:[#allocation2 + $0x30] sm:$0xff] %v4501_v5  ;;  %v4502_v32 = vadd.f32 %v4061_v11, %v374_v2  ;;  %v4063_v0 = vadd.f32 %v4062_v39, %v4010_v13  ;;  %v4012_v4 = vadd.f32 %v4011_v36, %v3959_v58  ;;  %v386_v60 = vld [vmem:[#allocation2 + $0x70] sm:$0xff]  ;;  %v6149_v58 = vld [vmem:[%s6386_s7 + $0xc2c] ss:$16 sps:$4 sm:$0xff]   ;;  %v6147_v7 = vld [vmem:[%s6386_s7 + $0xc28] ss:$16 sps:$4 sm:$0xff]  }
 0x204   : > { %v4015_v30 = vpop.f32.mrf.mxu0  ;;  %4332 = vmatmul.mubr.bf16.gmra.mxu0 %v6723_v61  ;;  %v6137_v61 = vld [vmem:[%s6386_s7 + $0xc6c] ss:$16 sps:$4 sm:$0xff]   ;;  %v3969_v6 = vadd.f32 %v7158_v31, %v3916_v14  ;;  %v6150_v39 = vld [vmem:[%s6386_s7 + $0xe28] ss:$16 sps:$4 sm:$0xff]  }
 0x205   : > { %v4068_v25 = vpop.f32.mrf.mxu1  ;;  %4385 = vmatmul.mubr.bf16.gmra.mxu1 %v6725_v62  ;;  %4518 = vst [vmem:[#allocation2] sm:$0xff] %v4502_v32  ;;  %v4505_v53 = vadd.f32 %v4063_v0, %v377_v57  ;;  %v4065_v18 = vadd.f32 %v4064_v59, %v4012_v4  ;;  %v4016_v33 = vadd.f32 %v4015_v30, %v3963_v26  ;;  %v6146_v31 = vld [vmem:[%s6386_s7 + $0xe4c] ss:$16 sps:$4 sm:$0xff]   ;;  %v6153_v13 = vld [vmem:[%s6386_s7 + $0xc08] ss:$16 sps:$4 sm:$0xff]  }
 0x206   : > { %4400 = vmatpush1.bf16.msra.mxu0 %v6123_v17  ;;  %4453 = vmatpush1.bf16.msra.mxu1 %v6126_v55  ;;  %v4017_v24 = vpop.f32.mrf.mxu0  ;;  %v6155_v5 = vld [vmem:[%s6386_s7 + $0xc0c] ss:$16 sps:$4 sm:$0xff]   ;;  %v6156_v17 = vld [vmem:[%s6386_s7 + $0xe08] ss:$16 sps:$4 sm:$0xff]  }
 0x207   : > { %v4070_v38 = vpop.f32.mrf.mxu1  ;;  %4401 = vmatprep.subr.bf16.mxu0 %v6131_v35  ;;  %4454 = vmatprep.subr.bf16.mxu1 %v6134_v41  ;;  %4521 = vst [vmem:[#allocation2 + $0x50] sm:$0xff] %v4505_v53  ;;  %v4506_v62 = vadd.f32 %v4065_v18, %v378_v43  ;;  %v4018_v40 = vadd.f32 %v4017_v24, %v3965_v20  ;;  %v6158_v11 = vld [vmem:[%s6386_s7 + $0xe0c] ss:$16 sps:$4 sm:$0xff]   ;;  %v6162_v57 = vld [vmem:[%s6386_s7 + $0xfe8] ss:$16 sps:$4 sm:$0xff]  }
 0x208   : > { %v4069_v63 = vadd.f32 %v4068_v25, %v4016_v33  ;;  %4427 = vmatprep.mubr.bf16.mxu0 %v6737_v9  ;;  %4480 = vmatprep.mubr.bf16.mxu1 %v6741_v10  ;;  %v4019_v12 = vpop.f32.mrf.mxu0  ;;  %v6143_v10 = vld [vmem:[%s6386_s7 + $0xc4c] ss:$16 sps:$4 sm:$0xff]   ;;  %v6165_v35 = vld [vmem:[%s6386_s7 + $0xdc8] ss:$16 sps:$4 sm:$0xff]  }
 0x209   : > { %v4072_v47 = vpop.f32.mrf.mxu1  ;;  %4522 = vst [vmem:[#allocation2 + $0x68] sm:$0xff] %v4506_v62  ;;  %v4020_v45 = vadd.f32 %v4019_v12, %v3967_v28  ;;  %v4071_v54 = vadd.f32 %v4070_v38, %v4018_v40  ;;  %v6161_v55 = vld [vmem:[%s6386_s7 + $0xdec] ss:$16 sps:$4 sm:$0xff]   ;;  %v6168_v41 = vld [vmem:[%s6386_s7 + $0xfc8] ss:$16 sps:$4 sm:$0xff]   ;;  %v7341_v12 = vld [vmem:[#allocation4_spill] sm:$0xff] }
 0x20a   : > { %v4509_v19 = vadd.f32 %v4069_v63, %v381_v34  ;;  %4402 = vmatpush1.bf16.msra.mxu0 %v6129_v37  ;;  %4455 = vmatpush1.bf16.msra.mxu1 %v6132_v44  ;;  %v4021_v27 = vpop.f32.mrf.mxu0  ;;  %v6167_v36 = vld [vmem:[%s6386_s7 + $0xdcc] ss:$16 sps:$4 sm:$0xff]   ;;  %v6171_v0 = vld [vmem:[%s6386_s7 + $0xda8] ss:$16 sps:$4 sm:$0xff]  }
 0x20b   : > { %v4074_v9 = vpop.f32.mrf.mxu1  ;;  %4403 = vmatprep.subr.bf16.mxu0 %v6137_v61  ;;  %4456 = vmatprep.subr.bf16.mxu1 %v6140_v29  ;;  %v4510_v8 = vadd.f32 %v4071_v54, %v382_v16  ;;  %v4022_v50 = vadd.f32 %v4021_v27, %v3969_v6  ;;  %v4073_v22 = vadd.f32 %v4072_v47, %v4020_v45  ;;  %v6170_v59 = vld [vmem:[%s6386_s7 + $0xfcc] ss:$16 sps:$4 sm:$0xff]   ;;  %v6174_v4 = vld [vmem:[%s6386_s7 + $0xfa8] ss:$16 sps:$4 sm:$0xff]   ;;  %v7343_v47 = vld [vmem:[#allocation6_spill] sm:$0xff] }
 0x20c   : > { %4525 = vst [vmem:[#allocation2 + $0x40] sm:$0xff] %v4509_v19  ;;  %v6173_v26 = vld [vmem:[%s6386_s7 + $0xdac] ss:$16 sps:$4 sm:$0xff]   ;;  %v6177_v43 = vld [vmem:[%s6386_s7 + $0xd88] ss:$16 sps:$4 sm:$0xff]  }
 0x20d   : > { %4526 = vst [vmem:[#allocation2 + $0x20] sm:$0xff] %v4510_v8  ;;  %v4513_v46 = vadd.f32 %v4073_v22, %v385_v49  ;;  %v4075_v56 = vadd.f32 %v4074_v9, %v4022_v50  ;;  %v6176_v32 = vld [vmem:[%s6386_s7 + $0xfac] ss:$16 sps:$4 sm:$0xff]   ;;  %v6180_v30 = vld [vmem:[%s6386_s7 + $0xf88] ss:$16 sps:$4 sm:$0xff]  }
 0x20e   : > { %4404 = vmatpush1.bf16.msra.mxu0 %v6135_v23  ;;  %4457 = vmatpush1.bf16.msra.mxu1 %v6138_v15  ;;  %v6179_v20 = vld [vmem:[%s6386_s7 + $0xd8c] ss:$16 sps:$4 sm:$0xff]   ;;  %v6183_v18 = vld [vmem:[%s6386_s7 + $0xd68] ss:$16 sps:$4 sm:$0xff]  }
 0x20f   : > { %4405 = vmatprep.subr.bf16.mxu0 %v6143_v10  ;;  %4458 = vmatprep.subr.bf16.mxu1 %v6146_v31  ;;  %4529 = vst [vmem:[#allocation2 + $0x60] sm:$0xff] %v4513_v46  ;;  %v4514_v2 = vadd.f32 %v4075_v56, %v386_v60  ;;  %v6182_v14 = vld [vmem:[%s6386_s7 + $0xf8c] ss:$16 sps:$4 sm:$0xff]   ;;  %v6186_v33 = vld [vmem:[%s6386_s7 + $0xf68] ss:$16 sps:$4 sm:$0xff]  }
 0x210   : > { %v6185_v25 = vld [vmem:[%s6386_s7 + $0xd6c] ss:$16 sps:$4 sm:$0xff]   ;;  %v6189_v28 = vld [vmem:[%s6386_s7 + $0xd48] ss:$16 sps:$4 sm:$0xff]  }
 0x211   : > { %4530 = vst [vmem:[#allocation2 + $0x70] sm:$0xff] %v4514_v2  ;;  %v6188_v53 = vld [vmem:[%s6386_s7 + $0xf6c] ss:$16 sps:$4 sm:$0xff]   ;;  %v6192_v24 = vld [vmem:[%s6386_s7 + $0xf48] ss:$16 sps:$4 sm:$0xff]  }
 0x212   : > { %4406 = vmatpush1.bf16.msra.mxu0 %v6141_v1  ;;  %4459 = vmatpush1.bf16.msra.mxu1 %v6144_v48  ;;  %v6191_v37 = vld [vmem:[%s6386_s7 + $0xd4c] ss:$16 sps:$4 sm:$0xff]   ;;  %v6195_v61 = vld [vmem:[%s6386_s7 + $0xd28] ss:$16 sps:$4 sm:$0xff]  }
 0x213   : > { %4407 = vmatprep.subr.bf16.mxu0 %v6149_v58  ;;  %4460 = vmatprep.subr.bf16.mxu1 %v6152_v3  ;;  %v6194_v44 = vld [vmem:[%s6386_s7 + $0xf4c] ss:$16 sps:$4 sm:$0xff]   ;;  %v6198_v29 = vld [vmem:[%s6386_s7 + $0xf28] ss:$16 sps:$4 sm:$0xff]  }
 0x214   : > { %v6197_v34 = vld [vmem:[%s6386_s7 + $0xd2c] ss:$16 sps:$4 sm:$0xff]   ;;  %v6201_v63 = vld [vmem:[%s6386_s7 + $0xd08] ss:$16 sps:$4 sm:$0xff]  }
 0x215   : > { %v6200_v38 = vld [vmem:[%s6386_s7 + $0xf2c] ss:$16 sps:$4 sm:$0xff]   ;;  %v6204_v6 = vld [vmem:[%s6386_s7 + $0xf08] ss:$16 sps:$4 sm:$0xff]  }
 0x216   : > { %4408 = vmatpush1.bf16.msra.mxu0 %v6147_v7  ;;  %4461 = vmatpush1.bf16.msra.mxu1 %v6150_v39  ;;  %v6203_v62 = vld [vmem:[%s6386_s7 + $0xd0c] ss:$16 sps:$4 sm:$0xff]  }
 0x217   : > { %4409 = vmatprep.subr.bf16.mxu0 %v6155_v5  ;;  %4462 = vmatprep.subr.bf16.mxu1 %v6158_v11  ;;  %v6206_v40 = vld [vmem:[%s6386_s7 + $0xf0c] ss:$16 sps:$4 sm:$0xff]  }
 0x218   : > { %v7342_v16 = vld [vmem:[#allocation5_spill] sm:$0xff]  ;;  %v7344_v19 = vld [vmem:[#allocation7_spill] sm:$0xff] }
 0x21a   : > { %4410 = vmatpush1.bf16.msra.mxu0 %v6153_v13  ;;  %4463 = vmatpush1.bf16.msra.mxu1 %v6156_v17 }
 0x21b   : > { %4411 = vmatprep.subr.bf16.mxu0 %v6161_v55  ;;  %4464 = vmatprep.subr.bf16.mxu1 %v6164_v21 }
 0x21e   : > { %4412 = vmatpush2.bf16.msra.mxu0 %v6159_v42  ;;  %4465 = vmatpush2.bf16.msra.mxu1 %v6162_v57 }
 0x21f   : > { %4413 = vmatprep.subr.bf16.mxu0 %v6167_v36  ;;  %4466 = vmatprep.subr.bf16.mxu1 %v6170_v59 }
 0x222   : > { %4414 = vmatpush2.bf16.msra.mxu0 %v6165_v35  ;;  %4467 = vmatpush2.bf16.msra.mxu1 %v6168_v41 }
 0x223   : > { %4415 = vmatprep.subr.bf16.mxu0 %v6173_v26  ;;  %4468 = vmatprep.subr.bf16.mxu1 %v6176_v32 }
 0x226   : > { %4416 = vmatpush2.bf16.msra.mxu0 %v6171_v0  ;;  %4469 = vmatpush2.bf16.msra.mxu1 %v6174_v4 }
 0x227   : > { %4417 = vmatprep.subr.bf16.mxu0 %v6179_v20  ;;  %4470 = vmatprep.subr.bf16.mxu1 %v6182_v14 }
 0x22a   : > { %4418 = vmatpush2.bf16.msra.mxu0 %v6177_v43  ;;  %4471 = vmatpush2.bf16.msra.mxu1 %v6180_v30 }
 0x22b   : > { %4419 = vmatprep.subr.bf16.mxu0 %v6185_v25  ;;  %4472 = vmatprep.subr.bf16.mxu1 %v6188_v53 }
 0x22e   : > { %4420 = vmatpush2.bf16.msra.mxu0 %v6183_v18  ;;  %4473 = vmatpush2.bf16.msra.mxu1 %v6186_v33 }
 0x22f   : > { %4421 = vmatprep.subr.bf16.mxu0 %v6191_v37  ;;  %4474 = vmatprep.subr.bf16.mxu1 %v6194_v44 }
 0x232   : > { %4422 = vmatpush2.bf16.msra.mxu0 %v6189_v28  ;;  %4475 = vmatpush2.bf16.msra.mxu1 %v6192_v24 }
 0x233   : > { %4423 = vmatprep.subr.bf16.mxu0 %v6197_v34  ;;  %4476 = vmatprep.subr.bf16.mxu1 %v6200_v38 }
 0x236   : > { %4424 = vmatpush2.bf16.msra.mxu0 %v6195_v61  ;;  %4477 = vmatpush2.bf16.msra.mxu1 %v6198_v29 }
 0x237   : > { %4425 = vmatprep.subr.bf16.mxu0 %v6203_v62  ;;  %4478 = vmatprep.subr.bf16.mxu1 %v6206_v40 }
 0x23a   : > { %4426 = vmatpush2.bf16.msra.mxu0 %v6201_v63  ;;  %4479 = vmatpush2.bf16.msra.mxu1 %v6204_v6 }
 0x23c   : > { %v4111_v45 = vpop.f32.mrf.mxu0 }
 0x23d   : > { %4428 = vmatmul.mubr.bf16.vlgmr.msra.gmra.mxu0 %v6805_v51  ;;  %4481 = vmatmul.mubr.bf16.vlgmr.msra.gmra.mxu1 %v6809_v52  ;;  %v4164_v54 = vpop.f32.mrf.mxu1 }
 0x23e   : > { %4437 = vmatprep.mubr.bf16.mxu0 %v7341_v12  ;;  %4490 = vmatprep.mubr.bf16.mxu1 %v7342_v16  ;;  %v4113_v23 = vpop.f32.mrf.mxu0  ;;  %v4165_v43 = vadd.f32 %v4164_v54, %v4111_v45 }
 0x23f   : > { %v4166_v15 = vpop.f32.mrf.mxu1 }
 0x240   : > { %v4115_v27 = vpop.f32.mrf.mxu0  ;;  %v4167_v30 = vadd.f32 %v4166_v15, %v4113_v23 }
 0x241   : > { %v4168_v49 = vpop.f32.mrf.mxu1 }
 0x242   : > { %v4117_v9 = vpop.f32.mrf.mxu0  ;;  %v4169_v33 = vadd.f32 %v4168_v49, %v4115_v27 }
 0x243   : > { %v4170_v31 = vpop.f32.mrf.mxu1 }
 0x244   : > { %v4121_v10 = vpop.f32.mrf.mxu0  ;;  %v4171_v44 = vadd.f32 %v4170_v31, %v4117_v9 }
 0x245   : > { %4438 = vmatmul.mubr.bf16.gmra.mxu0 %v7343_v47  ;;  %4491 = vmatmul.mubr.bf16.gmra.mxu1 %v7344_v19  ;;  %v4174_v51 = vpop.f32.mrf.mxu1 }
 0x246   : > { %v4123_v8 = vpop.f32.mrf.mxu0  ;;  %v4175_v34 = vadd.f32 %v4174_v51, %v4121_v10 }
 0x247   : > { %v4176_v52 = vpop.f32.mrf.mxu1 }
 0x248   : > { %v4125_v50 = vpop.f32.mrf.mxu0  ;;  %v4177_v63 = vadd.f32 %v4176_v52, %v4123_v8 }
 0x249   : > { %v4178_v22 = vpop.f32.mrf.mxu1 }
 0x24a   : > { %v4127_v60 = vpop.f32.mrf.mxu0  ;;  %v4179_v47 = vadd.f32 %v4178_v22, %v4125_v50 }
 0x24b   : > { %v4180_v56 = vpop.f32.mrf.mxu1 }
 0x24c   : > { %v4181_v49 = vadd.f32 %v4180_v56, %v4127_v60 }
 0x27c   : > { %v4217_v46 = vpop.f32.mrf.mxu0 }
 0x27d   : > { %v4270_v1 = vpop.f32.mrf.mxu1  ;;  %v4218_v25 = vadd.f32 %v4217_v46, %v4165_v43 }
 0x27e   : > { %v4219_v48 = vpop.f32.mrf.mxu0 }
 0x27f   : > { %v4272_v58 = vpop.f32.mrf.mxu1  ;;  %v4220_v37 = vadd.f32 %v4219_v48, %v4167_v30  ;;  %v4271_v28 = vadd.f32 %v4270_v1, %v4218_v25  ;;  %v380_v25 = vld [vmem:[#allocation2 + $0x48] sm:$0xff] }
 0x280   : > { %v4221_v3 = vpop.f32.mrf.mxu0 }
 0x281   : > { %v4274_v2 = vpop.f32.mrf.mxu1  ;;  %v4222_v24 = vadd.f32 %v4221_v3, %v4169_v33  ;;  %v4273_v29 = vadd.f32 %v4272_v58, %v4220_v37  ;;  %v375_v3 = vld [vmem:[#allocation2 + $0x58] sm:$0xff] }
 0x282   : > { %v4223_v7 = vpop.f32.mrf.mxu0 }
 0x283   : > { %v4276_v39 = vpop.f32.mrf.mxu1  ;;  %v4224_v62 = vadd.f32 %v4223_v7, %v4171_v44  ;;  %v4275_v12 = vadd.f32 %v4274_v2, %v4222_v24  ;;  %v383_v24 = vld [vmem:[#allocation2 + $0x10] sm:$0xff] }
 0x284   : > { %v4227_v5 = vpop.f32.mrf.mxu0 }
 0x285   : > { %v4280_v11 = vpop.f32.mrf.mxu1  ;;  %v4228_v6 = vadd.f32 %v4227_v5, %v4175_v34  ;;  %v4277_v23 = vadd.f32 %v4276_v39, %v4224_v62 }
 0x286   : > { %v4229_v13 = vpop.f32.mrf.mxu0 }
 0x287   : > { %v4282_v17 = vpop.f32.mrf.mxu1  ;;  %v4230_v19 = vadd.f32 %v4229_v13, %v4177_v63  ;;  %v4281_v9 = vadd.f32 %v4280_v11, %v4228_v6 }
 0x288   : > { %v4231_v55 = vpop.f32.mrf.mxu0 }
 0x289   : > { %v4284_v21 = vpop.f32.mrf.mxu1  ;;  %v4232_v10 = vadd.f32 %v4231_v55, %v4179_v47  ;;  %v4283_v58 = vadd.f32 %v4282_v17, %v4230_v19  ;;  %v387_v19 = vld [vmem:[#allocation2 + $0x78] sm:$0xff] }
 0x28a   : > { %v4233_v42 = vpop.f32.mrf.mxu0 }
 0x28b   : > { %v7255_v57 = vpop.f32.mrf.mxu1  ;;  %v4234_v8 = vadd.f32 %v4233_v42, %v4181_v49  ;;  %v4285_v39 = vadd.f32 %v4284_v21, %v4232_v10  ;;  %v379_v42 = vld [vmem:[#allocation2 + $0x8] sm:$0xff] }
 0x28c   : > { %v388_v49 = vld [vmem:[#allocation2 + $0x28] sm:$0xff] }
 0x2bc   : > { %v4323_v36 = vpop.f32.mrf.mxu0 }
 0x2bd   : > { %v4376_v59 = vpop.f32.mrf.mxu1  ;;  %v4324_v40 = vadd.f32 %v4323_v36, %v4271_v28  ;;  %v376_v36 = vld [vmem:[#allocation2 + $0x18] sm:$0xff] }
 0x2be   : > { %v4325_v35 = vpop.f32.mrf.mxu0 }
 0x2bf   : > { %v4378_v41 = vpop.f32.mrf.mxu1  ;;  %v4326_v16 = vadd.f32 %v4325_v35, %v4273_v29  ;;  %v4377_v15 = vadd.f32 %v4376_v59, %v4324_v40  ;;  %v384_v40 = vld [vmem:[#allocation2 + $0x38] sm:$0xff] }
 0x2c0   : > { %v4327_v26 = vpop.f32.mrf.mxu0 }
 0x2c1   : > { %v4380_v32 = vpop.f32.mrf.mxu1  ;;  %v4328_v27 = vadd.f32 %v4327_v26, %v4275_v12  ;;  %v4379_v46 = vadd.f32 %v4378_v41, %v4326_v16  ;;  %v4287_v41 = vadd.f32 %v7255_v57, %v4234_v8 }
 0x2c2   : > { %v4329_v0 = vpop.f32.mrf.mxu0 }
 0x2c3   : > { %v4382_v4 = vpop.f32.mrf.mxu1  ;;  %v4330_v1 = vadd.f32 %v4329_v0, %v4277_v23  ;;  %v4381_v22 = vadd.f32 %v4380_v32, %v4328_v27 }
 0x2c4   : > { %v4333_v20 = vpop.f32.mrf.mxu0 }
 0x2c5   : > { %v4386_v14 = vpop.f32.mrf.mxu1  ;;  %v4334_v52 = vadd.f32 %v4333_v20, %v4281_v9  ;;  %v4383_v11 = vadd.f32 %v4382_v4, %v4330_v1 }
 0x2c6   : > { %v4335_v53 = vpop.f32.mrf.mxu0 }
 0x2c7   : > { %v4388_v18 = vpop.f32.mrf.mxu1  ;;  %v4336_v13 = vadd.f32 %v4335_v53, %v4283_v58  ;;  %v4387_v17 = vadd.f32 %v4386_v14, %v4334_v52 }
 0x2c8   : > { %v4337_v38 = vpop.f32.mrf.mxu0 }
 0x2c9   : > { %v7257_v61 = vpop.f32.mrf.mxu1  ;;  %v4338_v20 = vadd.f32 %v4337_v38, %v4285_v39  ;;  %v4389_v21 = vadd.f32 %v4388_v18, %v4336_v13 }
 0x2ca   : > { %v4339_v45 = vpop.f32.mrf.mxu0 }
 0x2cb   : > { %v4392_v54 = vpop.f32.mrf.mxu1  ;;  %v4340_v37 = vadd.f32 %v4339_v45, %v4287_v41  ;;  %v4391_v34 = vadd.f32 %v7257_v61, %v4338_v20 }
 0x2cd   : > { %v4393_v6 = vadd.f32 %v4392_v54, %v4340_v37 }
 0x2fd   : > { %v4429_v31 = vpop.f32.mrf.mxu0  ;;  %v4482_v51 = vpop.f32.mrf.mxu1 }
 0x2fe   : > { %v4430_v48 = vadd.f32 %v4429_v31, %v4377_v15 }
 0x2ff   : > { %v4431_v2 = vpop.f32.mrf.mxu0  ;;  %v4484_v50 = vpop.f32.mrf.mxu1 }
 0x300   : > { %v4483_v7 = vadd.f32 %v4482_v51, %v4430_v48  ;;  %v4432_v5 = vadd.f32 %v4431_v2, %v4379_v46 }
 0x301   : > { %v4433_v60 = vpop.f32.mrf.mxu0  ;;  %v4486_v56 = vpop.f32.mrf.mxu1 }
 0x302   : > { %v4503_v55 = vadd.f32 %v4483_v7, %v375_v3  ;;  %v4485_v59 = vadd.f32 %v4484_v50, %v4432_v5  ;;  %v4434_v35 = vadd.f32 %v4433_v60, %v4381_v22 }
 0x303   : > { %v4435_v26 = vpop.f32.mrf.mxu0  ;;  %v4488_v0 = vpop.f32.mrf.mxu1 }
 0x304   : > { %4519 = vst [vmem:[#allocation2 + $0x58] sm:$0xff] %v4503_v55  ;;  %v4504_v32 = vadd.f32 %v4485_v59, %v376_v36  ;;  %v4487_v43 = vadd.f32 %v4486_v56, %v4434_v35  ;;  %v4436_v30 = vadd.f32 %v4435_v26, %v4383_v11 }
 0x305   : > { %v4439_v53 = vpop.f32.mrf.mxu0  ;;  %v4492_v33 = vpop.f32.mrf.mxu1 }
 0x306   : > { %4520 = vst [vmem:[#allocation2 + $0x18] sm:$0xff] %v4504_v32  ;;  %v4507_v4 = vadd.f32 %v4487_v43, %v379_v42  ;;  %v4489_v44 = vadd.f32 %v4488_v0, %v4436_v30  ;;  %v4440_v28 = vadd.f32 %v4439_v53, %v4387_v17 }
 0x307   : > { %v4441_v57 = vpop.f32.mrf.mxu0  ;;  %v4494_v14 = vpop.f32.mrf.mxu1 }
 0x308   : > { %4523 = vst [vmem:[#allocation2 + $0x8] sm:$0xff] %v4507_v4  ;;  %v4508_v38 = vadd.f32 %v4489_v44, %v380_v25  ;;  %v4493_v29 = vadd.f32 %v4492_v33, %v4440_v28  ;;  %v4442_v62 = vadd.f32 %v4441_v57, %v4389_v21 }
 0x309   : > { %v4443_v63 = vpop.f32.mrf.mxu0  ;;  %v4496_v18 = vpop.f32.mrf.mxu1 }
 0x30a   : > { %4524 = vst [vmem:[#allocation2 + $0x48] sm:$0xff] %v4508_v38  ;;  %v4511_v12 = vadd.f32 %v4493_v29, %v383_v24  ;;  %v4495_v16 = vadd.f32 %v4494_v14, %v4442_v62  ;;  %v4444_v47 = vadd.f32 %v4443_v63, %v4391_v34 }
 0x30b   : > { %v4445_v45 = vpop.f32.mrf.mxu0  ;;  %v4498_v61 = vpop.f32.mrf.mxu1 }
 0x30c   : > { %4527 = vst [vmem:[#allocation2 + $0x10] sm:$0xff] %v4511_v12  ;;  %v4512_v23 = vadd.f32 %v4495_v16, %v384_v40  ;;  %v4497_v15 = vadd.f32 %v4496_v18, %v4444_v47  ;;  %v4446_v27 = vadd.f32 %v4445_v45, %v4393_v6 }
 0x30e   : > { %4528 = vst [vmem:[#allocation2 + $0x38] sm:$0xff] %v4512_v23  ;;  %v4515_v9 = vadd.f32 %v4497_v15, %v387_v19  ;;  %v4499_v10 = vadd.f32 %v4498_v61, %v4446_v27  ;;  %4536 = sbr.rel (%p5375_p11) target bundleno = 818 (0x332), region = 63 }
 0x310   : > { %4531 = vst [vmem:[#allocation2 + $0x78] sm:$0xff] %v4515_v9  ;;  %v4516_v31 = vadd.f32 %v4499_v10, %v388_v49 }
 0x312   : > { %4532 = vst [vmem:[#allocation2 + $0x28] sm:$0xff] %v4516_v31 }
 0x313   : > { %v4555_v54 = vlaneseq  ;;  %v4553_v46 = vld [vmem:[%s7331_s2] sm:$0xf]  ;;  %v4537_v1 = vld [vmem:[#allocation2 + $0x30] sm:$0xff]  ;;  %v4539_v2 = vld [vmem:[#allocation2 + $0x58] sm:$0xff] }
 0x314   : > { %v4538_v48 = vld [vmem:[#allocation2] sm:$0xff]  ;;  %v4540_v50 = vld [vmem:[#allocation2 + $0x18] sm:$0xff]  ;;  %v4541_v22 = vld [vmem:[#allocation2 + $0x50] sm:$0xff] }
 0x315   : > { %v4556_v51 = vshrl.u32 %v4555_v54, 7  ;;  %v4542_v36 = vld [vmem:[#allocation2 + $0x68] sm:$0xff]  ;;  %v4545_v25 = vld [vmem:[#allocation2 + $0x40] sm:$0xff]  ;;  %v4547_v28 = vld [vmem:[#allocation2 + $0x10] sm:$0xff] }
 0x316   : > { %v4543_v60 = vld [vmem:[#allocation2 + $0x8] sm:$0xff]  ;;  %v4546_v44 = vld [vmem:[#allocation2 + $0x20] sm:$0xff]  ;;  %v4548_v24 = vld [vmem:[#allocation2 + $0x38] sm:$0xff] }
 0x317   : > { %v4557_v58 = vsub.s32 0, %v4556_v51  ;;  %v4561_v8 = vsub.s32 1, %v4556_v51  ;;  %v4565_v52 = vsub.s32 2, %v4556_v51  ;;  %v4569_v3 = vsub.s32 3, %v4556_v51  ;;  %v4544_v56 = vld [vmem:[#allocation2 + $0x48] sm:$0xff]  ;;  %v4549_v19 = vld [vmem:[#allocation2 + $0x60] sm:$0xff] }
 0x318   : > { %v4550_v45 = vld [vmem:[#allocation2 + $0x70] sm:$0xff]  ;;  %v4551_v49 = vld [vmem:[#allocation2 + $0x78] sm:$0xff] }
 0x319   : > { %v7265_v7 = vrot.slane %v4553_v46, %v4557_v58  ;;  %v7267_v5 = vrot.slane %v4553_v46, %v4561_v8  ;;  %v7269_v39 = vrot.slane %v4553_v46, %v4565_v52  ;;  %v7271_v13 = vrot.slane %v4553_v46, %v4569_v3  ;;  %v4552_v46 = vld [vmem:[#allocation2 + $0x28] sm:$0xff] }
 0x31b   : > { %v4575_v11 = vadd.f32 %v7265_v7, %v4537_v1  ;;  %v4576_v55 = vadd.f32 %v7267_v5, %v4538_v48  ;;  %v4577_v59 = vadd.f32 %v7269_v39, %v4539_v2  ;;  %v4578_v35 = vadd.f32 %v7271_v13, %v4540_v50 }
 0x31c   : > { %v4579_v41 = vadd.f32 %v7265_v7, %v4541_v22  ;;  %v4580_v17 = vadd.f32 %v7267_v5, %v4542_v36  ;;  %v4581_v42 = vadd.f32 %v7269_v39, %v4543_v60  ;;  %v4582_v26 = vadd.f32 %v7271_v13, %v4544_v56 }
 0x31d   : > { %vm4591_vm0 = vcmp.ge.f32.partialorder %v4575_v11, 0.0  ;;  %vm4592_vm1 = vcmp.ge.f32.partialorder %v4576_v55, 0.0  ;;  %v4607_v0 = vmul.f32 0.2, %v4575_v11  ;;  %v4608_v20 = vmul.f32 0.2, %v4576_v55 }
 0x31e   : > { %vm4593_vm2 = vcmp.ge.f32.partialorder %v4577_v59, 0.0  ;;  %vm4594_vm3 = vcmp.ge.f32.partialorder %v4578_v35, 0.0  ;;  %v4609_v32 = vmul.f32 0.2, %v4577_v59  ;;  %v4610_v43 = vmul.f32 0.2, %v4578_v35 }
 0x31f   : > { %v4623_v30 = vsel %vm4591_vm0, %v4575_v11, %v4607_v0  ;;  %v4624_v21 = vsel %vm4592_vm1, %v4576_v55, %v4608_v20  ;;  %vm4595_vm4 = vcmp.ge.f32.partialorder %v4579_v41, 0.0  ;;  %vm4596_vm5 = vcmp.ge.f32.partialorder %v4580_v17, 0.0 }
 0x320   : > { %v5390_v53 = vpack.c.bf16 %v4624_v21, %v4623_v30  ;;  %v4625_v33 = vsel %vm4593_vm2, %v4577_v59, %v4609_v32  ;;  %v4626_v37 = vsel %vm4594_vm3, %v4578_v35, %v4610_v43  ;;  %v4611_v4 = vmul.f32 0.2, %v4579_v41 }
 0x321   : > { %v5391_v57 = vpack.c.bf16 %v4626_v37, %v4625_v33  ;;  %v4612_v14 = vmul.f32 0.2, %v4580_v17  ;;  %vm4597_vm6 = vcmp.ge.f32.partialorder %v4581_v42, 0.0  ;;  %vm4598_vm7 = vcmp.ge.f32.partialorder %v4582_v26, 0.0 }
 0x322   : > { %4687 = vst [vmem:[%s7332_s3] sm:$0xff] %v5390_v53  ;;  %v4627_v34 = vsel %vm4595_vm4, %v4579_v41, %v4611_v4  ;;  %v4613_v38 = vmul.f32 0.2, %v4581_v42  ;;  %v4614_v29 = vmul.f32 0.2, %v4582_v26  ;;  %v4583_v62 = vadd.f32 %v7265_v7, %v4545_v25 }
 0x323   : > { %4688 = vst [vmem:[%s7332_s3 + $0x8] sm:$0xff] %v5391_v57  ;;  %v4628_v40 = vsel %vm4596_vm5, %v4580_v17, %v4612_v14  ;;  %v4584_v63 = vadd.f32 %v7267_v5, %v4546_v44  ;;  %v4585_v18 = vadd.f32 %v7269_v39, %v4547_v28  ;;  %v4586_v6 = vadd.f32 %v7271_v13, %v4548_v24 }
 0x324   : > { %v5392_v12 = vpack.c.bf16 %v4628_v40, %v4627_v34  ;;  %v4629_v16 = vsel %vm4597_vm6, %v4581_v42, %v4613_v38  ;;  %v4630_v47 = vsel %vm4598_vm7, %v4582_v26, %v4614_v29  ;;  %vm4599_vm8 = vcmp.ge.f32.partialorder %v4583_v62, 0.0 }
 0x325   : > { %v5393_v23 = vpack.c.bf16 %v4630_v47, %v4629_v16  ;;  %vm4600_vm9 = vcmp.ge.f32.partialorder %v4584_v63, 0.0  ;;  %v4615_v15 = vmul.f32 0.2, %v4583_v62  ;;  %v4616_v27 = vmul.f32 0.2, %v4584_v63 }
 0x326   : > { %4689 = vst [vmem:[%s7332_s3 + $0x10] sm:$0xff] %v5392_v12  ;;  %vm4601_vm10 = vcmp.ge.f32.partialorder %v4585_v18, 0.0  ;;  %vm4602_vm11 = vcmp.ge.f32.partialorder %v4586_v6, 0.0  ;;  %v4617_v61 = vmul.f32 0.2, %v4585_v18  ;;  %v4587_v54 = vadd.f32 %v7265_v7, %v4549_v19 }
 0x327   : > { %v4618_v9 = vmul.f32 0.2, %v4586_v6  ;;  %4690 = vst [vmem:[%s7332_s3 + $0x18] sm:$0xff] %v5393_v23  ;;  %v4631_v10 = vsel %vm4599_vm8, %v4583_v62, %v4615_v15  ;;  %v4632_v31 = vsel %vm4600_vm9, %v4584_v63, %v4616_v27  ;;  %v4588_v51 = vadd.f32 %v7267_v5, %v4550_v45 }
 0x328   : > { %v5394_v1 = vpack.c.bf16 %v4632_v31, %v4631_v10  ;;  %v4633_v48 = vsel %vm4601_vm10, %v4585_v18, %v4617_v61  ;;  %v4589_v8 = vadd.f32 %v7269_v39, %v4551_v49  ;;  %vm4603_vm12 = vcmp.ge.f32.partialorder %v4587_v54, 0.0 }
 0x329   : > { %v4634_v58 = vsel %vm4602_vm11, %v4586_v6, %v4618_v9  ;;  %vm4604_vm13 = vcmp.ge.f32.partialorder %v4588_v51, 0.0  ;;  %v4619_v3 = vmul.f32 0.2, %v4587_v54  ;;  %v4620_v2 = vmul.f32 0.2, %v4588_v51 }
 0x32a   : > { %v5395_v52 = vpack.c.bf16 %v4634_v58, %v4633_v48  ;;  %4691 = vst [vmem:[%s7332_s3 + $0x20] sm:$0xff] %v5394_v1  ;;  %v4590_v50 = vadd.f32 %v7271_v13, %v4552_v46  ;;  %vm4605_vm14 = vcmp.ge.f32.partialorder %v4589_v8, 0.0  ;;  %v4621_v22 = vmul.f32 0.2, %v4589_v8 }
 0x32b   : > { %v4635_v7 = vsel %vm4603_vm12, %v4587_v54, %v4619_v3  ;;  %v4636_v5 = vsel %vm4604_vm13, %v4588_v51, %v4620_v2 }
 0x32c   : > { %4692 = vst [vmem:[%s7332_s3 + $0x28] sm:$0xff] %v5395_v52  ;;  %vm4606_vm15 = vcmp.ge.f32.partialorder %v4590_v50, 0.0  ;;  %v4622_v39 = vmul.f32 0.2, %v4590_v50  ;;  %v4637_v36 = vsel %vm4605_vm14, %v4589_v8, %v4621_v22  ;;  %v5396_v60 = vpack.c.bf16 %v4636_v5, %v4635_v7 }
 0x32e   : > { %v4638_v56 = vsel %vm4606_vm15, %v4590_v50, %v4622_v39  ;;  %4693 = vst [vmem:[%s7332_s3 + $0x30] sm:$0xff] %v5396_v60 }
 0x32f   : > { %v5397_v11 = vpack.c.bf16 %v4638_v56, %v4637_v36 }
 0x331   : > { %4694 = vst [vmem:[%s7332_s3 + $0x38] sm:$0xff] %v5397_v11 }
 0x332 PF: > { %s13_s16 = sadd.s32 1, %s6245_s16   ;;  %s7345_s12 = smov %s6233_s13 }
 0x333   : > { %p10_p12 = scmp.ge.s32.totalorder %s13_s16, 4   ;;  %s7346_s13 = smov %s6303_s20 }
 0x334   : > { %s7347_s14 = smov %s6241_s15  ;;  %s7348_s15 = smov %s7350_s17 }
 0x335   :  { %12 = sbr.rel (!%p10_p12) target bundleno = 3 (0x3), region = 104 }

</bundles_post_ra>
